<compile_context>
chip_gen: v5e
topology: v5e:2x2
jax: 0.10.0
libtpu: 0.0.40
codegen_flags: <defaults>
</compile_context>

<pallas_src>
import functools

import jax
import jax.numpy as jnp
from jax.experimental import pallas as pl
from jax.experimental.pallas import tpu as pltpu

_VMEM = pl.BlockSpec(memory_space=pltpu.MemorySpace.VMEM)


def _round_up(x, m):
    return (x + m - 1) // m * m


# ----------------------------- Pallas kernels ------------------------------ #

def _matmul_bias_act_kernel(x_ref, w_ref, b_ref, o_ref, *, relu):
    # x_ref: (TILE_M, K) bf16, w_ref: (K, Cout) bf16, b_ref: (1, Cout) f32.
    acc = jnp.dot(x_ref[...], w_ref[...], preferred_element_type=jnp.float32)
    acc = acc + b_ref[...]                       # broadcast (1, Cout)
    if relu:
        acc = jnp.maximum(acc, 0.0)
    o_ref[...] = acc


def _maxpool3x3_dense_kernel(x_ref, o_ref):
    # 3x3 stride-1 max map computed from a single VMEM read (no 9x HBM stack).
    x = x_ref[...]                               # (N, H, W, C)
    _, H, W, _ = x.shape
    h = jnp.maximum(jnp.maximum(x[:, :, 0:W - 2, :], x[:, :, 1:W - 1, :]),
                    x[:, :, 2:W, :])
    v = jnp.maximum(jnp.maximum(h[:, 0:H - 2, :, :], h[:, 1:H - 1, :, :]),
                    h[:, 2:H, :, :])
    o_ref[...] = v                               # (N, H-2, W-2, C)


def _bn_relu_piece(x, g, b, eps):
    # Training-mode BatchNorm (batch stats, biased variance) + ReLU.
    mean = jnp.mean(x, axis=0, keepdims=True)
    cen = x - mean
    var = jnp.mean(cen * cen, axis=0, keepdims=True)
    return jnp.maximum(cen * jax.lax.rsqrt(var + eps) * g + b, 0.0)


def _concat_bn_relu_kernel(fused_ref, x1_ref, x2_ref, g_ref, b_ref, o_ref, *, eps):
    # Output channel layout: [branch0:96 | branch1b:64 | branch2c:96 | branch3b:64]
    # fused_ref layout:      [branch0:96 | branch1a:48 | branch2a:64 | branch3b:64]
    # BN stats are per-channel, so computing them per contiguous piece is exact.
    o_ref[:, 0:96] = _bn_relu_piece(fused_ref[:, 0:96],
                                    g_ref[:, 0:96], b_ref[:, 0:96], eps)
    o_ref[:, 96:160] = _bn_relu_piece(x1_ref[...],
                                      g_ref[:, 96:160], b_ref[:, 96:160], eps)
    o_ref[:, 160:256] = _bn_relu_piece(x2_ref[...],
                                       g_ref[:, 160:256], b_ref[:, 160:256], eps)
    o_ref[:, 256:320] = _bn_relu_piece(fused_ref[:, 208:272],
                                       g_ref[:, 256:320], b_ref[:, 256:320], eps)


# ------------------------------ JAX wrappers -------------------------------- #

def _im2col(x, kh, kw, stride, padding):
    """x: (N,H,W,C) -> patches (N*OH*OW, kh*kw*C), plus output dims."""
    # TODO(synk): move patch assembly in-kernel (implicit GEMM) to cut the
    # kh*kw x HBM traffic at realistic input sizes.
    if padding:
        x = jnp.pad(x, ((0, 0), (padding, padding), (padding, padding), (0, 0)))
    N, H, W, C = x.shape
    OH = (H - kh) // stride + 1
    OW = (W - kw) // stride + 1
    cols = []
    for i in range(kh):
        for j in range(kw):
            sl = jax.lax.slice(
                x,
                (0, i, j, 0),
                (N, i + (OH - 1) * stride + 1, j + (OW - 1) * stride + 1, C),
                (1, stride, stride, 1),
            )
            cols.append(sl)
    patches = jnp.concatenate(cols, axis=-1)     # (N, OH, OW, kh*kw*C)
    return patches.reshape(N * OH * OW, kh * kw * C), (N, OH, OW)


def _matmul_bias_act(patches, w_flat, bias, *, relu, tile_m=256):
    """(M,K) @ (K,Cout) + bias [+ReLU]; bf16 MXU inputs, f32 accumulation.

    M-tiled parallel grid -> double-buffered DMAs, bounded VMEM, megacore-able.
    """
    M, K = patches.shape
    Cout = w_flat.shape[1]
    tm = min(tile_m, _round_up(M, 8))            # tile_m and 8-rounding keep tm % 8 == 0
    Mp = _round_up(M, tm)
    if Mp != M:
        patches = jnp.pad(patches, ((0, Mp - M), (0, 0)))
    kern = functools.partial(_matmul_bias_act_kernel, relu=relu)
    out = pl.pallas_call(
        kern,
        out_shape=jax.ShapeDtypeStruct((Mp, Cout), jnp.float32),
        grid=(Mp // tm,),
        in_specs=[
            pl.BlockSpec((tm, K), lambda i: (i, 0)),
            pl.BlockSpec((K, Cout), lambda i: (0, 0)),
            pl.BlockSpec((1, Cout), lambda i: (0, 0)),
        ],
        out_specs=pl.BlockSpec((tm, Cout), lambda i: (i, 0)),
        compiler_params=pltpu.CompilerParams(
            dimension_semantics=("parallel",),
            vmem_limit_bytes=32 * 1024 * 1024,   # explicit, portable (v5e/v6e/v7x)
        ),
    )(patches.astype(jnp.bfloat16), w_flat.astype(jnp.bfloat16),
      bias.reshape(1, Cout).astype(jnp.float32))
    return out[:M] if Mp != M else out


def conv2d(x, w, b, *, stride=1, padding=0, relu=True):
    """x: (N,H,W,Cin) NHWC; w: PyTorch layout (Cout,Cin,KH,KW); b: (Cout,)."""
    Cout, Cin, KH, KW = w.shape
    patches, (N, OH, OW) = _im2col(x, KH, KW, stride, padding)
    # patch row order (kh, kw, cin) matches (KH,KW,Cin,Cout) weight flatten.
    w_flat = jnp.transpose(w, (2, 3, 1, 0)).reshape(KH * KW * Cin, Cout)
    out = _matmul_bias_act(patches, w_flat, b, relu=relu)
    return out.reshape(N, OH, OW, Cout)


def maxpool2d(x, k=3, stride=2):
    assert k == 3, "module only uses 3x3 pooling"
    N, H, W, C = x.shape
    OH = (H - k) // stride + 1
    OW = (W - k) // stride + 1
    dense = pl.pallas_call(
        _maxpool3x3_dense_kernel,
        out_shape=jax.ShapeDtypeStruct((N, H - 2, W - 2, C), jnp.float32),
        in_specs=[_VMEM],
        out_specs=_VMEM,
    )(x)
    # Cheap stride-2 subsample of the window-start positions (XLA slice).
    return jax.lax.slice(
        dense, (0, 0, 0, 0),
        (N, (OH - 1) * stride + 1, (OW - 1) * stride + 1, C),
        (1, stride, stride, 1))


# ------------------------------- the module --------------------------------- #

_CONV_SPECS = {
    "sub0conv1":    (32, 1, 3, 3),
    "sub0conv2":    (32, 32, 3, 3),
    "sub0conv3":    (64, 32, 3, 3),
    "sub2p1_conv1": (80, 64, 1, 1),
    "sub2p1_conv2": (192, 80, 3, 3),
    "branch0":      (96, 192, 1, 1),
    "branch1a":     (48, 192, 1, 1),
    "branch1b":     (64, 48, 5, 5),
    "branch2a":     (64, 192, 1, 1),
    "branch2b":     (96, 64, 3, 3),
    "branch2c":     (96, 96, 3, 3),
    "branch3b":     (64, 192, 1, 1),
}


def init_params(key):
    params = {}
    for name, shp in _CONV_SPECS.items():
        key, kw_, kb_ = jax.random.split(key, 3)
        params[name] = (
            jax.random.normal(kw_, shp, jnp.float32) * 0.05,
            jax.random.normal(kb_, (shp[0],), jnp.float32) * 0.01,
        )
    # BatchNorm2d(320) default PyTorch init: gamma=1, beta=0.
    params["bn_gamma"] = jnp.ones((320,), jnp.float32)
    params["bn_beta"] = jnp.zeros((320,), jnp.float32)
    return params


def stem_forward(params, x_nchw):
    x = jnp.transpose(x_nchw, (0, 2, 3, 1))      # NCHW -> NHWC
    x = conv2d(x, *params["sub0conv1"], stride=2, padding=0, relu=True)
    x = conv2d(x, *params["sub0conv2"], stride=1, padding=0, relu=True)
    x = conv2d(x, *params["sub0conv3"], stride=1, padding=1, relu=True)
    x = maxpool2d(x, 3, 2)
    x = conv2d(x, *params["sub2p1_conv1"], stride=1, padding=0, relu=True)
    x = conv2d(x, *params["sub2p1_conv2"], stride=1, padding=0, relu=True)
    x = maxpool2d(x, 3, 2)

    N, H, W, C = x.shape
    M = N * H * W

    # Fused 1x1 branch convs: one lane-dense (M, 272) matmul instead of four.
    wcols, bcols = [], []
    for name in ("branch0", "branch1a", "branch2a", "branch3b"):
        w, b = params[name]
        wcols.append(jnp.transpose(w, (2, 3, 1, 0)).reshape(C, w.shape[0]))
        bcols.append(b)
    w_fused = jnp.concatenate(wcols, axis=1)     # (192, 272)
    b_fused = jnp.concatenate(bcols)             # (272,)
    fused = _matmul_bias_act(x.reshape(M, C), w_fused, b_fused, relu=False)
    # fused channel layout: [branch0:96 | branch1a:48 | branch2a:64 | branch3b:64]

    x1 = conv2d(fused[:, 96:144].reshape(N, H, W, 48),
                *params["branch1b"], padding=2, relu=False)       # (N,H,W,64)
    x2 = conv2d(fused[:, 144:208].reshape(N, H, W, 64),
                *params["branch2b"], padding=1, relu=False)
    x2 = conv2d(x2, *params["branch2c"], padding=1, relu=False)   # (N,H,W,96)
    # branch3a (AvgPool) is dead code in the reference forward (X3 is
    # overwritten by branch3b); sub1p2_conv1 is never called.  Both skipped.

    # Fused channel-concat + BatchNorm(320) + ReLU: one kernel, 320-lane output.
    bn_kern = functools.partial(_concat_bn_relu_kernel, eps=1e-5)
    y = pl.pallas_call(
        bn_kern,
        out_shape=jax.ShapeDtypeStruct((M, 320), jnp.float32),
        in_specs=[_VMEM] * 5,
        out_specs=_VMEM,
    )(fused, x1.reshape(M, 64), x2.reshape(M, 96),
      params["bn_gamma"].reshape(1, 320), params["bn_beta"].reshape(1, 320))
    y = y.reshape(N, H, W, 320)
    return jnp.transpose(y, (0, 3, 1, 2))        # NHWC -> NCHW


if __name__ == "__main__":
    key = jax.random.PRNGKey(0)
    pkey, xkey = jax.random.split(key)
    params = init_params(pkey)
    # Small input consistent with the module: (N=2, C=1, H=W=39)
    # spatial path 39 -> 19 -> 17 -> 17 -> 8 -> 8 -> 6 -> 2, output (2, 320, 2, 2)
    x = jax.random.normal(xkey, (2, 1, 39, 39), jnp.float32)

    out = jax.jit(stem_forward)(params, x)
    out = jax.block_until_ready(out)

    assert out.shape == (2, 320, 2, 2), out.shape
    assert bool(jnp.all(jnp.isfinite(out)))
    print("KERNEL_OK")
</pallas_src>

<mosaic_0001>
module attributes {stable_mosaic.version = 11 : i64} {
  func.func @_matmul_bias_act_kernel(%arg0: i32, %arg1: memref<256x9xbf16, #tpu.memory_space<vmem>>, %arg2: memref<9x32xbf16, #tpu.memory_space<vmem>>, %arg3: memref<1x32xf32, #tpu.memory_space<vmem>>, %arg4: memref<256x32xf32, #tpu.memory_space<vmem>>) attributes {dimension_semantics = [#tpu.dimension_semantics<parallel>], iteration_bounds = array<i64: 3>, scalar_prefetch = 0 : i64, scratch_operands = 0 : i64, tpu.core_type = #tpu.core_type<tc>, window_params = [{transform_indices = @transform_0, window_bounds = array<i64: 256, 9>}, {pipeline_mode = #tpu.pipeline_mode<synchronous>, transform_indices = @transform_1, window_bounds = array<i64: 9, 32>}, {pipeline_mode = #tpu.pipeline_mode<synchronous>, transform_indices = @transform_2, window_bounds = array<i64: 1, 32>}, {transform_indices = @transform_3, window_bounds = array<i64: 256, 32>}]} {
    %c0 = arith.constant 0 : index
    %c0_0 = arith.constant 0 : index
    %0 = vector.load %arg1[%c0, %c0_0] : memref<256x9xbf16, #tpu.memory_space<vmem>>, vector<256x9xbf16>
    %c0_1 = arith.constant 0 : index
    %c0_2 = arith.constant 0 : index
    %1 = vector.load %arg2[%c0_1, %c0_2] : memref<9x32xbf16, #tpu.memory_space<vmem>>, vector<9x32xbf16>
    %cst = arith.constant dense<0.000000e+00> : vector<256x32xf32>
    %2 = tpu.matmul %0, %1, %cst {dimension_numbers = #tpu.dot_dimension_numbers<[1], [0], [0], [1], [0, 0, 1, 1], [], []>} : vector<256x9xbf16>, vector<9x32xbf16>, vector<256x32xf32> -> vector<256x32xf32>
    %c0_3 = arith.constant 0 : index
    %c0_4 = arith.constant 0 : index
    %3 = vector.load %arg3[%c0_3, %c0_4] : memref<1x32xf32, #tpu.memory_space<vmem>>, vector<1x32xf32>
    %4 = vector.broadcast %3 : vector<1x32xf32> to vector<256x32xf32>
    %5 = arith.addf %2, %4 : vector<256x32xf32>
    %cst_5 = arith.constant 0.000000e+00 : f32
    %6 = vector.broadcast %cst_5 : f32 to vector<256x32xf32>
    %7 = arith.maximumf %5, %6 : vector<256x32xf32>
    %c0_6 = arith.constant 0 : index
    %c0_7 = arith.constant 0 : index
    %8 = vector.load %arg4[%c0_6, %c0_7] : memref<256x32xf32, #tpu.memory_space<vmem>>, vector<256x32xf32>
    tpu.vector_store %arg4[%c0_6, %c0_7], %7 {strides = array<i32>} : memref<256x32xf32, #tpu.memory_space<vmem>>, vector<256x32xf32>,
    return
  }
  func.func @transform_0(%arg0: i32) -> (i32, i32) {
    %c0_i32 = arith.constant 0 : i32
    %c0_i32_0 = arith.constant 0 : i32
    return %arg0, %c0_i32 : i32, i32
  }
  func.func @transform_1(%arg0: i32) -> (i32, i32) {
    %c0_i32 = arith.constant 0 : i32
    %c0_i32_0 = arith.constant 0 : i32
    %c0_i32_1 = arith.constant 0 : i32
    return %c0_i32, %c0_i32_0 : i32, i32
  }
  func.func @transform_2(%arg0: i32) -> (i32, i32) {
    %c0_i32 = arith.constant 0 : i32
    %c0_i32_0 = arith.constant 0 : i32
    %c0_i32_1 = arith.constant 0 : i32
    return %c0_i32, %c0_i32_0 : i32, i32
  }
  func.func @transform_3(%arg0: i32) -> (i32, i32) {
    %c0_i32 = arith.constant 0 : i32
    %c0_i32_0 = arith.constant 0 : i32
    return %arg0, %c0_i32 : i32, i32
  }
}

module attributes {stable_mosaic.version = 11 : i64} {
  func.func @_matmul_bias_act_kernel(%arg0: i32, %arg1: memref<256x288xbf16, #tpu.memory_space<vmem>>, %arg2: memref<288x32xbf16, #tpu.memory_space<vmem>>, %arg3: memref<1x32xf32, #tpu.memory_space<vmem>>, %arg4: memref<256x32xf32, #tpu.memory_space<vmem>>) attributes {dimension_semantics = [#tpu.dimension_semantics<parallel>], iteration_bounds = array<i64: 3>, scalar_prefetch = 0 : i64, scratch_operands = 0 : i64, tpu.core_type = #tpu.core_type<tc>, window_params = [{transform_indices = @transform_0, window_bounds = array<i64: 256, 288>}, {pipeline_mode = #tpu.pipeline_mode<synchronous>, transform_indices = @transform_1, window_bounds = array<i64: 288, 32>}, {pipeline_mode = #tpu.pipeline_mode<synchronous>, transform_indices = @transform_2, window_bounds = array<i64: 1, 32>}, {transform_indices = @transform_3, window_bounds = array<i64: 256, 32>}]} {
    %c0 = arith.constant 0 : index
    %c0_0 = arith.constant 0 : index
    %0 = vector.load %arg1[%c0, %c0_0] : memref<256x288xbf16, #tpu.memory_space<vmem>>, vector<256x288xbf16>
    %c0_1 = arith.constant 0 : index
    %c0_2 = arith.constant 0 : index
    %1 = vector.load %arg2[%c0_1, %c0_2] : memref<288x32xbf16, #tpu.memory_space<vmem>>, vector<288x32xbf16>
    %cst = arith.constant dense<0.000000e+00> : vector<256x32xf32>
    %2 = tpu.matmul %0, %1, %cst {dimension_numbers = #tpu.dot_dimension_numbers<[1], [0], [0], [1], [0, 0, 1, 1], [], []>} : vector<256x288xbf16>, vector<288x32xbf16>, vector<256x32xf32> -> vector<256x32xf32>
    %c0_3 = arith.constant 0 : index
    %c0_4 = arith.constant 0 : index
    %3 = vector.load %arg3[%c0_3, %c0_4] : memref<1x32xf32, #tpu.memory_space<vmem>>, vector<1x32xf32>
    %4 = vector.broadcast %3 : vector<1x32xf32> to vector<256x32xf32>
    %5 = arith.addf %2, %4 : vector<256x32xf32>
    %cst_5 = arith.constant 0.000000e+00 : f32
    %6 = vector.broadcast %cst_5 : f32 to vector<256x32xf32>
    %7 = arith.maximumf %5, %6 : vector<256x32xf32>
    %c0_6 = arith.constant 0 : index
    %c0_7 = arith.constant 0 : index
    %8 = vector.load %arg4[%c0_6, %c0_7] : memref<256x32xf32, #tpu.memory_space<vmem>>, vector<256x32xf32>
    tpu.vector_store %arg4[%c0_6, %c0_7], %7 {strides = array<i32>} : memref<256x32xf32, #tpu.memory_space<vmem>>, vector<256x32xf32>,
    return
  }
  func.func @transform_0(%arg0: i32) -> (i32, i32) {
    %c0_i32 = arith.constant 0 : i32
    %c0_i32_0 = arith.constant 0 : i32
    return %arg0, %c0_i32 : i32, i32
  }
  func.func @transform_1(%arg0: i32) -> (i32, i32) {
    %c0_i32 = arith.constant 0 : i32
    %c0_i32_0 = arith.constant 0 : i32
    %c0_i32_1 = arith.constant 0 : i32
    return %c0_i32, %c0_i32_0 : i32, i32
  }
  func.func @transform_2(%arg0: i32) -> (i32, i32) {
    %c0_i32 = arith.constant 0 : i32
    %c0_i32_0 = arith.constant 0 : i32
    %c0_i32_1 = arith.constant 0 : i32
    return %c0_i32, %c0_i32_0 : i32, i32
  }
  func.func @transform_3(%arg0: i32) -> (i32, i32) {
    %c0_i32 = arith.constant 0 : i32
    %c0_i32_0 = arith.constant 0 : i32
    return %arg0, %c0_i32 : i32, i32
  }
}

module attributes {stable_mosaic.version = 11 : i64} {
  func.func @_matmul_bias_act_kernel(%arg0: i32, %arg1: memref<256x288xbf16, #tpu.memory_space<vmem>>, %arg2: memref<288x64xbf16, #tpu.memory_space<vmem>>, %arg3: memref<1x64xf32, #tpu.memory_space<vmem>>, %arg4: memref<256x64xf32, #tpu.memory_space<vmem>>) attributes {dimension_semantics = [#tpu.dimension_semantics<parallel>], iteration_bounds = array<i64: 3>, scalar_prefetch = 0 : i64, scratch_operands = 0 : i64, tpu.core_type = #tpu.core_type<tc>, window_params = [{transform_indices = @transform_0, window_bounds = array<i64: 256, 288>}, {pipeline_mode = #tpu.pipeline_mode<synchronous>, transform_indices = @transform_1, window_bounds = array<i64: 288, 64>}, {pipeline_mode = #tpu.pipeline_mode<synchronous>, transform_indices = @transform_2, window_bounds = array<i64: 1, 64>}, {transform_indices = @transform_3, window_bounds = array<i64: 256, 64>}]} {
    %c0 = arith.constant 0 : index
    %c0_0 = arith.constant 0 : index
    %0 = vector.load %arg1[%c0, %c0_0] : memref<256x288xbf16, #tpu.memory_space<vmem>>, vector<256x288xbf16>
    %c0_1 = arith.constant 0 : index
    %c0_2 = arith.constant 0 : index
    %1 = vector.load %arg2[%c0_1, %c0_2] : memref<288x64xbf16, #tpu.memory_space<vmem>>, vector<288x64xbf16>
    %cst = arith.constant dense<0.000000e+00> : vector<256x64xf32>
    %2 = tpu.matmul %0, %1, %cst {dimension_numbers = #tpu.dot_dimension_numbers<[1], [0], [0], [1], [0, 0, 1, 1], [], []>} : vector<256x288xbf16>, vector<288x64xbf16>, vector<256x64xf32> -> vector<256x64xf32>
    %c0_3 = arith.constant 0 : index
    %c0_4 = arith.constant 0 : index
    %3 = vector.load %arg3[%c0_3, %c0_4] : memref<1x64xf32, #tpu.memory_space<vmem>>, vector<1x64xf32>
    %4 = vector.broadcast %3 : vector<1x64xf32> to vector<256x64xf32>
    %5 = arith.addf %2, %4 : vector<256x64xf32>
    %cst_5 = arith.constant 0.000000e+00 : f32
    %6 = vector.broadcast %cst_5 : f32 to vector<256x64xf32>
    %7 = arith.maximumf %5, %6 : vector<256x64xf32>
    %c0_6 = arith.constant 0 : index
    %c0_7 = arith.constant 0 : index
    %8 = vector.load %arg4[%c0_6, %c0_7] : memref<256x64xf32, #tpu.memory_space<vmem>>, vector<256x64xf32>
    tpu.vector_store %arg4[%c0_6, %c0_7], %7 {strides = array<i32>} : memref<256x64xf32, #tpu.memory_space<vmem>>, vector<256x64xf32>,
    return
  }
  func.func @transform_0(%arg0: i32) -> (i32, i32) {
    %c0_i32 = arith.constant 0 : i32
    %c0_i32_0 = arith.constant 0 : i32
    return %arg0, %c0_i32 : i32, i32
  }
  func.func @transform_1(%arg0: i32) -> (i32, i32) {
    %c0_i32 = arith.constant 0 : i32
    %c0_i32_0 = arith.constant 0 : i32
    %c0_i32_1 = arith.constant 0 : i32
    return %c0_i32, %c0_i32_0 : i32, i32
  }
  func.func @transform_2(%arg0: i32) -> (i32, i32) {
    %c0_i32 = arith.constant 0 : i32
    %c0_i32_0 = arith.constant 0 : i32
    %c0_i32_1 = arith.constant 0 : i32
    return %c0_i32, %c0_i32_0 : i32, i32
  }
  func.func @transform_3(%arg0: i32) -> (i32, i32) {
    %c0_i32 = arith.constant 0 : i32
    %c0_i32_0 = arith.constant 0 : i32
    return %arg0, %c0_i32 : i32, i32
  }
}

module attributes {stable_mosaic.version = 11 : i64} {
  func.func @_maxpool3x3_dense_kernel(%arg0: memref<2x17x17x64xf32, #tpu.memory_space<vmem>>, %arg1: memref<2x15x15x64xf32, #tpu.memory_space<vmem>>) attributes {dimension_semantics = [], scalar_prefetch = 0 : i64, scratch_operands = 0 : i64, tpu.core_type = #tpu.core_type<tc>} {
    %c0 = arith.constant 0 : index
    %c0_0 = arith.constant 0 : index
    %c0_1 = arith.constant 0 : index
    %c0_2 = arith.constant 0 : index
    %0 = vector.load %arg0[%c0, %c0_0, %c0_1, %c0_2] : memref<2x17x17x64xf32, #tpu.memory_space<vmem>>, vector<2x17x17x64xf32>
    %1 = vector.extract_strided_slice %0 {offsets = [0, 0, 0, 0], sizes = [2, 17, 15, 64], strides = [1, 1, 1, 1]} : vector<2x17x17x64xf32> to vector<2x17x15x64xf32>
    %2 = vector.extract_strided_slice %0 {offsets = [0, 0, 1, 0], sizes = [2, 17, 15, 64], strides = [1, 1, 1, 1]} : vector<2x17x17x64xf32> to vector<2x17x15x64xf32>
    %3 = arith.maximumf %1, %2 : vector<2x17x15x64xf32>
    %4 = vector.extract_strided_slice %0 {offsets = [0, 0, 2, 0], sizes = [2, 17, 15, 64], strides = [1, 1, 1, 1]} : vector<2x17x17x64xf32> to vector<2x17x15x64xf32>
    %5 = arith.maximumf %3, %4 : vector<2x17x15x64xf32>
    %6 = vector.extract_strided_slice %5 {offsets = [0, 0, 0, 0], sizes = [2, 15, 15, 64], strides = [1, 1, 1, 1]} : vector<2x17x15x64xf32> to vector<2x15x15x64xf32>
    %7 = vector.extract_strided_slice %5 {offsets = [0, 1, 0, 0], sizes = [2, 15, 15, 64], strides = [1, 1, 1, 1]} : vector<2x17x15x64xf32> to vector<2x15x15x64xf32>
    %8 = arith.maximumf %6, %7 : vector<2x15x15x64xf32>
    %9 = vector.extract_strided_slice %5 {offsets = [0, 2, 0, 0], sizes = [2, 15, 15, 64], strides = [1, 1, 1, 1]} : vector<2x17x15x64xf32> to vector<2x15x15x64xf32>
    %10 = arith.maximumf %8, %9 : vector<2x15x15x64xf32>
    %c0_3 = arith.constant 0 : index
    %c0_4 = arith.constant 0 : index
    %c0_5 = arith.constant 0 : index
    %c0_6 = arith.constant 0 : index
    %11 = vector.load %arg1[%c0_3, %c0_4, %c0_5, %c0_6] : memref<2x15x15x64xf32, #tpu.memory_space<vmem>>, vector<2x15x15x64xf32>
    tpu.vector_store %arg1[%c0_3, %c0_4, %c0_5, %c0_6], %10 {strides = array<i32>} : memref<2x15x15x64xf32, #tpu.memory_space<vmem>>, vector<2x15x15x64xf32>,
    return
  }
}

module attributes {stable_mosaic.version = 11 : i64} {
  func.func @_matmul_bias_act_kernel(%arg0: i32, %arg1: memref<128x64xbf16, #tpu.memory_space<vmem>>, %arg2: memref<64x80xbf16, #tpu.memory_space<vmem>>, %arg3: memref<1x80xf32, #tpu.memory_space<vmem>>, %arg4: memref<128x80xf32, #tpu.memory_space<vmem>>) attributes {dimension_semantics = [#tpu.dimension_semantics<parallel>], iteration_bounds = array<i64: 1>, scalar_prefetch = 0 : i64, scratch_operands = 0 : i64, tpu.core_type = #tpu.core_type<tc>, window_params = [{transform_indices = @transform_0, window_bounds = array<i64: 128, 64>}, {pipeline_mode = #tpu.pipeline_mode<synchronous>, transform_indices = @transform_1, window_bounds = array<i64: 64, 80>}, {pipeline_mode = #tpu.pipeline_mode<synchronous>, transform_indices = @transform_2, window_bounds = array<i64: 1, 80>}, {transform_indices = @transform_3, window_bounds = array<i64: 128, 80>}]} {
    %c0 = arith.constant 0 : index
    %c0_0 = arith.constant 0 : index
    %0 = vector.load %arg1[%c0, %c0_0] : memref<128x64xbf16, #tpu.memory_space<vmem>>, vector<128x64xbf16>
    %c0_1 = arith.constant 0 : index
    %c0_2 = arith.constant 0 : index
    %1 = vector.load %arg2[%c0_1, %c0_2] : memref<64x80xbf16, #tpu.memory_space<vmem>>, vector<64x80xbf16>
    %cst = arith.constant dense<0.000000e+00> : vector<128x80xf32>
    %2 = tpu.matmul %0, %1, %cst {dimension_numbers = #tpu.dot_dimension_numbers<[1], [0], [0], [1], [0, 0, 1, 1], [], []>} : vector<128x64xbf16>, vector<64x80xbf16>, vector<128x80xf32> -> vector<128x80xf32>
    %c0_3 = arith.constant 0 : index
    %c0_4 = arith.constant 0 : index
    %3 = vector.load %arg3[%c0_3, %c0_4] : memref<1x80xf32, #tpu.memory_space<vmem>>, vector<1x80xf32>
    %4 = vector.broadcast %3 : vector<1x80xf32> to vector<128x80xf32>
    %5 = arith.addf %2, %4 : vector<128x80xf32>
    %cst_5 = arith.constant 0.000000e+00 : f32
    %6 = vector.broadcast %cst_5 : f32 to vector<128x80xf32>
    %7 = arith.maximumf %5, %6 : vector<128x80xf32>
    %c0_6 = arith.constant 0 : index
    %c0_7 = arith.constant 0 : index
    %8 = vector.load %arg4[%c0_6, %c0_7] : memref<128x80xf32, #tpu.memory_space<vmem>>, vector<128x80xf32>
    tpu.vector_store %arg4[%c0_6, %c0_7], %7 {strides = array<i32>} : memref<128x80xf32, #tpu.memory_space<vmem>>, vector<128x80xf32>,
    return
  }
  func.func @transform_0(%arg0: i32) -> (i32, i32) {
    %c0_i32 = arith.constant 0 : i32
    %c0_i32_0 = arith.constant 0 : i32
    return %arg0, %c0_i32 : i32, i32
  }
  func.func @transform_1(%arg0: i32) -> (i32, i32) {
    %c0_i32 = arith.constant 0 : i32
    %c0_i32_0 = arith.constant 0 : i32
    %c0_i32_1 = arith.constant 0 : i32
    return %c0_i32, %c0_i32_0 : i32, i32
  }
  func.func @transform_2(%arg0: i32) -> (i32, i32) {
    %c0_i32 = arith.constant 0 : i32
    %c0_i32_0 = arith.constant 0 : i32
    %c0_i32_1 = arith.constant 0 : i32
    return %c0_i32, %c0_i32_0 : i32, i32
  }
  func.func @transform_3(%arg0: i32) -> (i32, i32) {
    %c0_i32 = arith.constant 0 : i32
    %c0_i32_0 = arith.constant 0 : i32
    return %arg0, %c0_i32 : i32, i32
  }
}

module attributes {stable_mosaic.version = 11 : i64} {
  func.func @_matmul_bias_act_kernel(%arg0: i32, %arg1: memref<72x720xbf16, #tpu.memory_space<vmem>>, %arg2: memref<720x192xbf16, #tpu.memory_space<vmem>>, %arg3: memref<1x192xf32, #tpu.memory_space<vmem>>, %arg4: memref<72x192xf32, #tpu.memory_space<vmem>>) attributes {dimension_semantics = [#tpu.dimension_semantics<parallel>], iteration_bounds = array<i64: 1>, scalar_prefetch = 0 : i64, scratch_operands = 0 : i64, tpu.core_type = #tpu.core_type<tc>, window_params = [{transform_indices = @transform_0, window_bounds = array<i64: 72, 720>}, {pipeline_mode = #tpu.pipeline_mode<synchronous>, transform_indices = @transform_1, window_bounds = array<i64: 720, 192>}, {pipeline_mode = #tpu.pipeline_mode<synchronous>, transform_indices = @transform_2, window_bounds = array<i64: 1, 192>}, {transform_indices = @transform_3, window_bounds = array<i64: 72, 192>}]} {
    %c0 = arith.constant 0 : index
    %c0_0 = arith.constant 0 : index
    %0 = vector.load %arg1[%c0, %c0_0] : memref<72x720xbf16, #tpu.memory_space<vmem>>, vector<72x720xbf16>
    %c0_1 = arith.constant 0 : index
    %c0_2 = arith.constant 0 : index
    %1 = vector.load %arg2[%c0_1, %c0_2] : memref<720x192xbf16, #tpu.memory_space<vmem>>, vector<720x192xbf16>
    %cst = arith.constant dense<0.000000e+00> : vector<72x192xf32>
    %2 = tpu.matmul %0, %1, %cst {dimension_numbers = #tpu.dot_dimension_numbers<[1], [0], [0], [1], [0, 0, 1, 1], [], []>} : vector<72x720xbf16>, vector<720x192xbf16>, vector<72x192xf32> -> vector<72x192xf32>
    %c0_3 = arith.constant 0 : index
    %c0_4 = arith.constant 0 : index
    %3 = vector.load %arg3[%c0_3, %c0_4] : memref<1x192xf32, #tpu.memory_space<vmem>>, vector<1x192xf32>
    %4 = vector.broadcast %3 : vector<1x192xf32> to vector<72x192xf32>
    %5 = arith.addf %2, %4 : vector<72x192xf32>
    %cst_5 = arith.constant 0.000000e+00 : f32
    %6 = vector.broadcast %cst_5 : f32 to vector<72x192xf32>
    %7 = arith.maximumf %5, %6 : vector<72x192xf32>
    %c0_6 = arith.constant 0 : index
    %c0_7 = arith.constant 0 : index
    %8 = vector.load %arg4[%c0_6, %c0_7] : memref<72x192xf32, #tpu.memory_space<vmem>>, vector<72x192xf32>
    tpu.vector_store %arg4[%c0_6, %c0_7], %7 {strides = array<i32>} : memref<72x192xf32, #tpu.memory_space<vmem>>, vector<72x192xf32>,
    return
  }
  func.func @transform_0(%arg0: i32) -> (i32, i32) {
    %c0_i32 = arith.constant 0 : i32
    %c0_i32_0 = arith.constant 0 : i32
    return %arg0, %c0_i32 : i32, i32
  }
  func.func @transform_1(%arg0: i32) -> (i32, i32) {
    %c0_i32 = arith.constant 0 : i32
    %c0_i32_0 = arith.constant 0 : i32
    %c0_i32_1 = arith.constant 0 : i32
    return %c0_i32, %c0_i32_0 : i32, i32
  }
  func.func @transform_2(%arg0: i32) -> (i32, i32) {
    %c0_i32 = arith.constant 0 : i32
    %c0_i32_0 = arith.constant 0 : i32
    %c0_i32_1 = arith.constant 0 : i32
    return %c0_i32, %c0_i32_0 : i32, i32
  }
  func.func @transform_3(%arg0: i32) -> (i32, i32) {
    %c0_i32 = arith.constant 0 : i32
    %c0_i32_0 = arith.constant 0 : i32
    return %arg0, %c0_i32 : i32, i32
  }
}

module attributes {stable_mosaic.version = 11 : i64} {
  func.func @_maxpool3x3_dense_kernel(%arg0: memref<2x6x6x192xf32, #tpu.memory_space<vmem>>, %arg1: memref<2x4x4x192xf32, #tpu.memory_space<vmem>>) attributes {dimension_semantics = [], scalar_prefetch = 0 : i64, scratch_operands = 0 : i64, tpu.core_type = #tpu.core_type<tc>} {
    %c0 = arith.constant 0 : index
    %c0_0 = arith.constant 0 : index
    %c0_1 = arith.constant 0 : index
    %c0_2 = arith.constant 0 : index
    %0 = vector.load %arg0[%c0, %c0_0, %c0_1, %c0_2] : memref<2x6x6x192xf32, #tpu.memory_space<vmem>>, vector<2x6x6x192xf32>
    %1 = vector.extract_strided_slice %0 {offsets = [0, 0, 0, 0], sizes = [2, 6, 4, 192], strides = [1, 1, 1, 1]} : vector<2x6x6x192xf32> to vector<2x6x4x192xf32>
    %2 = vector.extract_strided_slice %0 {offsets = [0, 0, 1, 0], sizes = [2, 6, 4, 192], strides = [1, 1, 1, 1]} : vector<2x6x6x192xf32> to vector<2x6x4x192xf32>
    %3 = arith.maximumf %1, %2 : vector<2x6x4x192xf32>
    %4 = vector.extract_strided_slice %0 {offsets = [0, 0, 2, 0], sizes = [2, 6, 4, 192], strides = [1, 1, 1, 1]} : vector<2x6x6x192xf32> to vector<2x6x4x192xf32>
    %5 = arith.maximumf %3, %4 : vector<2x6x4x192xf32>
    %6 = vector.extract_strided_slice %5 {offsets = [0, 0, 0, 0], sizes = [2, 4, 4, 192], strides = [1, 1, 1, 1]} : vector<2x6x4x192xf32> to vector<2x4x4x192xf32>
    %7 = vector.extract_strided_slice %5 {offsets = [0, 1, 0, 0], sizes = [2, 4, 4, 192], strides = [1, 1, 1, 1]} : vector<2x6x4x192xf32> to vector<2x4x4x192xf32>
    %8 = arith.maximumf %6, %7 : vector<2x4x4x192xf32>
    %9 = vector.extract_strided_slice %5 {offsets = [0, 2, 0, 0], sizes = [2, 4, 4, 192], strides = [1, 1, 1, 1]} : vector<2x6x4x192xf32> to vector<2x4x4x192xf32>
    %10 = arith.maximumf %8, %9 : vector<2x4x4x192xf32>
    %c0_3 = arith.constant 0 : index
    %c0_4 = arith.constant 0 : index
    %c0_5 = arith.constant 0 : index
    %c0_6 = arith.constant 0 : index
    %11 = vector.load %arg1[%c0_3, %c0_4, %c0_5, %c0_6] : memref<2x4x4x192xf32, #tpu.memory_space<vmem>>, vector<2x4x4x192xf32>
    tpu.vector_store %arg1[%c0_3, %c0_4, %c0_5, %c0_6], %10 {strides = array<i32>} : memref<2x4x4x192xf32, #tpu.memory_space<vmem>>, vector<2x4x4x192xf32>,
    return
  }
}

module attributes {stable_mosaic.version = 11 : i64} {
  func.func @_matmul_bias_act_kernel(%arg0: i32, %arg1: memref<8x192xbf16, #tpu.memory_space<vmem>>, %arg2: memref<192x272xbf16, #tpu.memory_space<vmem>>, %arg3: memref<1x272xf32, #tpu.memory_space<vmem>>, %arg4: memref<8x272xf32, #tpu.memory_space<vmem>>) attributes {dimension_semantics = [#tpu.dimension_semantics<parallel>], iteration_bounds = array<i64: 1>, scalar_prefetch = 0 : i64, scratch_operands = 0 : i64, tpu.core_type = #tpu.core_type<tc>, window_params = [{transform_indices = @transform_0, window_bounds = array<i64: 8, 192>}, {pipeline_mode = #tpu.pipeline_mode<synchronous>, transform_indices = @transform_1, window_bounds = array<i64: 192, 272>}, {pipeline_mode = #tpu.pipeline_mode<synchronous>, transform_indices = @transform_2, window_bounds = array<i64: 1, 272>}, {transform_indices = @transform_3, window_bounds = array<i64: 8, 272>}]} {
    %c0 = arith.constant 0 : index
    %c0_0 = arith.constant 0 : index
    %0 = vector.load %arg1[%c0, %c0_0] : memref<8x192xbf16, #tpu.memory_space<vmem>>, vector<8x192xbf16>
    %c0_1 = arith.constant 0 : index
    %c0_2 = arith.constant 0 : index
    %1 = vector.load %arg2[%c0_1, %c0_2] : memref<192x272xbf16, #tpu.memory_space<vmem>>, vector<192x272xbf16>
    %cst = arith.constant dense<0.000000e+00> : vector<8x272xf32>
    %2 = tpu.matmul %0, %1, %cst {dimension_numbers = #tpu.dot_dimension_numbers<[1], [0], [0], [1], [0, 0, 1, 1], [], []>} : vector<8x192xbf16>, vector<192x272xbf16>, vector<8x272xf32> -> vector<8x272xf32>
    %c0_3 = arith.constant 0 : index
    %c0_4 = arith.constant 0 : index
    %3 = vector.load %arg3[%c0_3, %c0_4] : memref<1x272xf32, #tpu.memory_space<vmem>>, vector<1x272xf32>
    %4 = vector.broadcast %3 : vector<1x272xf32> to vector<8x272xf32>
    %5 = arith.addf %2, %4 : vector<8x272xf32>
    %c0_5 = arith.constant 0 : index
    %c0_6 = arith.constant 0 : index
    %6 = vector.load %arg4[%c0_5, %c0_6] : memref<8x272xf32, #tpu.memory_space<vmem>>, vector<8x272xf32>
    tpu.vector_store %arg4[%c0_5, %c0_6], %5 {strides = array<i32>} : memref<8x272xf32, #tpu.memory_space<vmem>>, vector<8x272xf32>,
    return
  }
  func.func @transform_0(%arg0: i32) -> (i32, i32) {
    %c0_i32 = arith.constant 0 : i32
    %c0_i32_0 = arith.constant 0 : i32
    return %arg0, %c0_i32 : i32, i32
  }
  func.func @transform_1(%arg0: i32) -> (i32, i32) {
    %c0_i32 = arith.constant 0 : i32
    %c0_i32_0 = arith.constant 0 : i32
    %c0_i32_1 = arith.constant 0 : i32
    return %c0_i32, %c0_i32_0 : i32, i32
  }
  func.func @transform_2(%arg0: i32) -> (i32, i32) {
    %c0_i32 = arith.constant 0 : i32
    %c0_i32_0 = arith.constant 0 : i32
    %c0_i32_1 = arith.constant 0 : i32
    return %c0_i32, %c0_i32_0 : i32, i32
  }
  func.func @transform_3(%arg0: i32) -> (i32, i32) {
    %c0_i32 = arith.constant 0 : i32
    %c0_i32_0 = arith.constant 0 : i32
    return %arg0, %c0_i32 : i32, i32
  }
}

module attributes {stable_mosaic.version = 11 : i64} {
  func.func @_matmul_bias_act_kernel(%arg0: i32, %arg1: memref<8x576xbf16, #tpu.memory_space<vmem>>, %arg2: memref<576x96xbf16, #tpu.memory_space<vmem>>, %arg3: memref<1x96xf32, #tpu.memory_space<vmem>>, %arg4: memref<8x96xf32, #tpu.memory_space<vmem>>) attributes {dimension_semantics = [#tpu.dimension_semantics<parallel>], iteration_bounds = array<i64: 1>, scalar_prefetch = 0 : i64, scratch_operands = 0 : i64, tpu.core_type = #tpu.core_type<tc>, window_params = [{transform_indices = @transform_0, window_bounds = array<i64: 8, 576>}, {pipeline_mode = #tpu.pipeline_mode<synchronous>, transform_indices = @transform_1, window_bounds = array<i64: 576, 96>}, {pipeline_mode = #tpu.pipeline_mode<synchronous>, transform_indices = @transform_2, window_bounds = array<i64: 1, 96>}, {transform_indices = @transform_3, window_bounds = array<i64: 8, 96>}]} {
    %c0 = arith.constant 0 : index
    %c0_0 = arith.constant 0 : index
    %0 = vector.load %arg1[%c0, %c0_0] : memref<8x576xbf16, #tpu.memory_space<vmem>>, vector<8x576xbf16>
    %c0_1 = arith.constant 0 : index
    %c0_2 = arith.constant 0 : index
    %1 = vector.load %arg2[%c0_1, %c0_2] : memref<576x96xbf16, #tpu.memory_space<vmem>>, vector<576x96xbf16>
    %cst = arith.constant dense<0.000000e+00> : vector<8x96xf32>
    %2 = tpu.matmul %0, %1, %cst {dimension_numbers = #tpu.dot_dimension_numbers<[1], [0], [0], [1], [0, 0, 1, 1], [], []>} : vector<8x576xbf16>, vector<576x96xbf16>, vector<8x96xf32> -> vector<8x96xf32>
    %c0_3 = arith.constant 0 : index
    %c0_4 = arith.constant 0 : index
    %3 = vector.load %arg3[%c0_3, %c0_4] : memref<1x96xf32, #tpu.memory_space<vmem>>, vector<1x96xf32>
    %4 = vector.broadcast %3 : vector<1x96xf32> to vector<8x96xf32>
    %5 = arith.addf %2, %4 : vector<8x96xf32>
    %c0_5 = arith.constant 0 : index
    %c0_6 = arith.constant 0 : index
    %6 = vector.load %arg4[%c0_5, %c0_6] : memref<8x96xf32, #tpu.memory_space<vmem>>, vector<8x96xf32>
    tpu.vector_store %arg4[%c0_5, %c0_6], %5 {strides = array<i32>} : memref<8x96xf32, #tpu.memory_space<vmem>>, vector<8x96xf32>,
    return
  }
  func.func @transform_0(%arg0: i32) -> (i32, i32) {
    %c0_i32 = arith.constant 0 : i32
    %c0_i32_0 = arith.constant 0 : i32
    return %arg0, %c0_i32 : i32, i32
  }
  func.func @transform_1(%arg0: i32) -> (i32, i32) {
    %c0_i32 = arith.constant 0 : i32
    %c0_i32_0 = arith.constant 0 : i32
    %c0_i32_1 = arith.constant 0 : i32
    return %c0_i32, %c0_i32_0 : i32, i32
  }
  func.func @transform_2(%arg0: i32) -> (i32, i32) {
    %c0_i32 = arith.constant 0 : i32
    %c0_i32_0 = arith.constant 0 : i32
    %c0_i32_1 = arith.constant 0 : i32
    return %c0_i32, %c0_i32_0 : i32, i32
  }
  func.func @transform_3(%arg0: i32) -> (i32, i32) {
    %c0_i32 = arith.constant 0 : i32
    %c0_i32_0 = arith.constant 0 : i32
    return %arg0, %c0_i32 : i32, i32
  }
}

module attributes {stable_mosaic.version = 11 : i64} {
  func.func @_matmul_bias_act_kernel(%arg0: i32, %arg1: memref<8x864xbf16, #tpu.memory_space<vmem>>, %arg2: memref<864x96xbf16, #tpu.memory_space<vmem>>, %arg3: memref<1x96xf32, #tpu.memory_space<vmem>>, %arg4: memref<8x96xf32, #tpu.memory_space<vmem>>) attributes {dimension_semantics = [#tpu.dimension_semantics<parallel>], iteration_bounds = array<i64: 1>, scalar_prefetch = 0 : i64, scratch_operands = 0 : i64, tpu.core_type = #tpu.core_type<tc>, window_params = [{transform_indices = @transform_0, window_bounds = array<i64: 8, 864>}, {pipeline_mode = #tpu.pipeline_mode<synchronous>, transform_indices = @transform_1, window_bounds = array<i64: 864, 96>}, {pipeline_mode = #tpu.pipeline_mode<synchronous>, transform_indices = @transform_2, window_bounds = array<i64: 1, 96>}, {transform_indices = @transform_3, window_bounds = array<i64: 8, 96>}]} {
    %c0 = arith.constant 0 : index
    %c0_0 = arith.constant 0 : index
    %0 = vector.load %arg1[%c0, %c0_0] : memref<8x864xbf16, #tpu.memory_space<vmem>>, vector<8x864xbf16>
    %c0_1 = arith.constant 0 : index
    %c0_2 = arith.constant 0 : index
    %1 = vector.load %arg2[%c0_1, %c0_2] : memref<864x96xbf16, #tpu.memory_space<vmem>>, vector<864x96xbf16>
    %cst = arith.constant dense<0.000000e+00> : vector<8x96xf32>
    %2 = tpu.matmul %0, %1, %cst {dimension_numbers = #tpu.dot_dimension_numbers<[1], [0], [0], [1], [0, 0, 1, 1], [], []>} : vector<8x864xbf16>, vector<864x96xbf16>, vector<8x96xf32> -> vector<8x96xf32>
    %c0_3 = arith.constant 0 : index
    %c0_4 = arith.constant 0 : index
    %3 = vector.load %arg3[%c0_3, %c0_4] : memref<1x96xf32, #tpu.memory_space<vmem>>, vector<1x96xf32>
    %4 = vector.broadcast %3 : vector<1x96xf32> to vector<8x96xf32>
    %5 = arith.addf %2, %4 : vector<8x96xf32>
    %c0_5 = arith.constant 0 : index
    %c0_6 = arith.constant 0 : index
    %6 = vector.load %arg4[%c0_5, %c0_6] : memref<8x96xf32, #tpu.memory_space<vmem>>, vector<8x96xf32>
    tpu.vector_store %arg4[%c0_5, %c0_6], %5 {strides = array<i32>} : memref<8x96xf32, #tpu.memory_space<vmem>>, vector<8x96xf32>,
    return
  }
  func.func @transform_0(%arg0: i32) -> (i32, i32) {
    %c0_i32 = arith.constant 0 : i32
    %c0_i32_0 = arith.constant 0 : i32
    return %arg0, %c0_i32 : i32, i32
  }
  func.func @transform_1(%arg0: i32) -> (i32, i32) {
    %c0_i32 = arith.constant 0 : i32
    %c0_i32_0 = arith.constant 0 : i32
    %c0_i32_1 = arith.constant 0 : i32
    return %c0_i32, %c0_i32_0 : i32, i32
  }
  func.func @transform_2(%arg0: i32) -> (i32, i32) {
    %c0_i32 = arith.constant 0 : i32
    %c0_i32_0 = arith.constant 0 : i32
    %c0_i32_1 = arith.constant 0 : i32
    return %c0_i32, %c0_i32_0 : i32, i32
  }
  func.func @transform_3(%arg0: i32) -> (i32, i32) {
    %c0_i32 = arith.constant 0 : i32
    %c0_i32_0 = arith.constant 0 : i32
    return %arg0, %c0_i32 : i32, i32
  }
}

module attributes {stable_mosaic.version = 11 : i64} {
  func.func @_concat_bn_relu_kernel(%arg0: memref<8x272xf32, #tpu.memory_space<vmem>>, %arg1: memref<8x64xf32, #tpu.memory_space<vmem>>, %arg2: memref<8x96xf32, #tpu.memory_space<vmem>>, %arg3: memref<1x320xf32, #tpu.memory_space<vmem>>, %arg4: memref<1x320xf32, #tpu.memory_space<vmem>>, %arg5: memref<8x320xf32, #tpu.memory_space<vmem>>) attributes {dimension_semantics = [], scalar_prefetch = 0 : i64, scratch_operands = 0 : i64, tpu.core_type = #tpu.core_type<tc>} {
    %c0 = arith.constant 0 : index
    %c0_0 = arith.constant 0 : index
    %0 = vector.load %arg0[%c0, %c0_0] : memref<8x272xf32, #tpu.memory_space<vmem>>, vector<8x96xf32>
    %c0_1 = arith.constant 0 : index
    %c0_2 = arith.constant 0 : index
    %1 = vector.load %arg3[%c0_1, %c0_2] : memref<1x320xf32, #tpu.memory_space<vmem>>, vector<1x96xf32>
    %c0_3 = arith.constant 0 : index
    %c0_4 = arith.constant 0 : index
    %2 = vector.load %arg4[%c0_3, %c0_4] : memref<1x320xf32, #tpu.memory_space<vmem>>, vector<1x96xf32>
    %cst = arith.constant dense<0.000000e+00> : vector<96xf32>
    %3 = vector.multi_reduction <add>, %0, %cst [0] : vector<8x96xf32> to vector<96xf32>
    %4 = vector.shape_cast %3 : vector<96xf32> to vector<1x96xf32>
    %cst_5 = arith.constant 8.000000e+00 : f32
    %5 = vector.broadcast %cst_5 : f32 to vector<1x96xf32>
    %6 = arith.divf %4, %5 : vector<1x96xf32>
    %7 = vector.broadcast %6 : vector<1x96xf32> to vector<8x96xf32>
    %8 = arith.subf %0, %7 : vector<8x96xf32>
    %9 = arith.mulf %8, %8 : vector<8x96xf32>
    %cst_6 = arith.constant dense<0.000000e+00> : vector<96xf32>
    %10 = vector.multi_reduction <add>, %9, %cst_6 [0] : vector<8x96xf32> to vector<96xf32>
    %11 = vector.shape_cast %10 : vector<96xf32> to vector<1x96xf32>
    %cst_7 = arith.constant 8.000000e+00 : f32
    %12 = vector.broadcast %cst_7 : f32 to vector<1x96xf32>
    %13 = arith.divf %11, %12 : vector<1x96xf32>
    %cst_8 = arith.constant 9.99999974E-6 : f32
    %14 = vector.broadcast %cst_8 : f32 to vector<1x96xf32>
    %15 = arith.addf %13, %14 : vector<1x96xf32>
    %16 = math.rsqrt %15 : vector<1x96xf32>
    %17 = vector.broadcast %16 : vector<1x96xf32> to vector<8x96xf32>
    %18 = arith.mulf %8, %17 : vector<8x96xf32>
    %19 = vector.broadcast %1 : vector<1x96xf32> to vector<8x96xf32>
    %20 = arith.mulf %18, %19 : vector<8x96xf32>
    %21 = vector.broadcast %2 : vector<1x96xf32> to vector<8x96xf32>
    %22 = arith.addf %20, %21 : vector<8x96xf32>
    %cst_9 = arith.constant 0.000000e+00 : f32
    %23 = vector.broadcast %cst_9 : f32 to vector<8x96xf32>
    %24 = arith.maximumf %22, %23 : vector<8x96xf32>
    %c0_10 = arith.constant 0 : index
    %c0_11 = arith.constant 0 : index
    %25 = vector.load %arg5[%c0_10, %c0_11] : memref<8x320xf32, #tpu.memory_space<vmem>>, vector<8x96xf32>
    tpu.vector_store %arg5[%c0_10, %c0_11], %24 {strides = array<i32>} : memref<8x320xf32, #tpu.memory_space<vmem>>, vector<8x96xf32>,
    %c0_12 = arith.constant 0 : index
    %c0_13 = arith.constant 0 : index
    %26 = vector.load %arg1[%c0_12, %c0_13] : memref<8x64xf32, #tpu.memory_space<vmem>>, vector<8x64xf32>
    %c0_14 = arith.constant 0 : index
    %c96 = arith.constant 96 : index
    %27 = vector.load %arg3[%c0_14, %c96] : memref<1x320xf32, #tpu.memory_space<vmem>>, vector<1x64xf32>
    %c0_15 = arith.constant 0 : index
    %c96_16 = arith.constant 96 : index
    %28 = vector.load %arg4[%c0_15, %c96_16] : memref<1x320xf32, #tpu.memory_space<vmem>>, vector<1x64xf32>
    %cst_17 = arith.constant dense<0.000000e+00> : vector<64xf32>
    %29 = vector.multi_reduction <add>, %26, %cst_17 [0] : vector<8x64xf32> to vector<64xf32>
    %30 = vector.shape_cast %29 : vector<64xf32> to vector<1x64xf32>
    %cst_18 = arith.constant 8.000000e+00 : f32
    %31 = vector.broadcast %cst_18 : f32 to vector<1x64xf32>
    %32 = arith.divf %30, %31 : vector<1x64xf32>
    %33 = vector.broadcast %32 : vector<1x64xf32> to vector<8x64xf32>
    %34 = arith.subf %26, %33 : vector<8x64xf32>
    %35 = arith.mulf %34, %34 : vector<8x64xf32>
    %cst_19 = arith.constant dense<0.000000e+00> : vector<64xf32>
    %36 = vector.multi_reduction <add>, %35, %cst_19 [0] : vector<8x64xf32> to vector<64xf32>
    %37 = vector.shape_cast %36 : vector<64xf32> to vector<1x64xf32>
    %cst_20 = arith.constant 8.000000e+00 : f32
    %38 = vector.broadcast %cst_20 : f32 to vector<1x64xf32>
    %39 = arith.divf %37, %38 : vector<1x64xf32>
    %cst_21 = arith.constant 9.99999974E-6 : f32
    %40 = vector.broadcast %cst_21 : f32 to vector<1x64xf32>
    %41 = arith.addf %39, %40 : vector<1x64xf32>
    %42 = math.rsqrt %41 : vector<1x64xf32>
    %43 = vector.broadcast %42 : vector<1x64xf32> to vector<8x64xf32>
    %44 = arith.mulf %34, %43 : vector<8x64xf32>
    %45 = vector.broadcast %27 : vector<1x64xf32> to vector<8x64xf32>
    %46 = arith.mulf %44, %45 : vector<8x64xf32>
    %47 = vector.broadcast %28 : vector<1x64xf32> to vector<8x64xf32>
    %48 = arith.addf %46, %47 : vector<8x64xf32>
    %cst_22 = arith.constant 0.000000e+00 : f32
    %49 = vector.broadcast %cst_22 : f32 to vector<8x64xf32>
    %50 = arith.maximumf %48, %49 : vector<8x64xf32>
    %c0_23 = arith.constant 0 : index
    %c96_24 = arith.constant 96 : index
    %51 = vector.load %arg5[%c0_23, %c96_24] : memref<8x320xf32, #tpu.memory_space<vmem>>, vector<8x64xf32>
    tpu.vector_store %arg5[%c0_23, %c96_24], %50 {strides = array<i32>} : memref<8x320xf32, #tpu.memory_space<vmem>>, vector<8x64xf32>,
    %c0_25 = arith.constant 0 : index
    %c0_26 = arith.constant 0 : index
    %52 = vector.load %arg2[%c0_25, %c0_26] : memref<8x96xf32, #tpu.memory_space<vmem>>, vector<8x96xf32>
    %c0_27 = arith.constant 0 : index
    %c160 = arith.constant 160 : index
    %53 = vector.load %arg3[%c0_27, %c160] : memref<1x320xf32, #tpu.memory_space<vmem>>, vector<1x96xf32>
    %c0_28 = arith.constant 0 : index
    %c160_29 = arith.constant 160 : index
    %54 = vector.load %arg4[%c0_28, %c160_29] : memref<1x320xf32, #tpu.memory_space<vmem>>, vector<1x96xf32>
    %cst_30 = arith.constant dense<0.000000e+00> : vector<96xf32>
    %55 = vector.multi_reduction <add>, %52, %cst_30 [0] : vector<8x96xf32> to vector<96xf32>
    %56 = vector.shape_cast %55 : vector<96xf32> to vector<1x96xf32>
    %cst_31 = arith.constant 8.000000e+00 : f32
    %57 = vector.broadcast %cst_31 : f32 to vector<1x96xf32>
    %58 = arith.divf %56, %57 : vector<1x96xf32>
    %59 = vector.broadcast %58 : vector<1x96xf32> to vector<8x96xf32>
    %60 = arith.subf %52, %59 : vector<8x96xf32>
    %61 = arith.mulf %60, %60 : vector<8x96xf32>
    %cst_32 = arith.constant dense<0.000000e+00> : vector<96xf32>
    %62 = vector.multi_reduction <add>, %61, %cst_32 [0] : vector<8x96xf32> to vector<96xf32>
    %63 = vector.shape_cast %62 : vector<96xf32> to vector<1x96xf32>
    %cst_33 = arith.constant 8.000000e+00 : f32
    %64 = vector.broadcast %cst_33 : f32 to vector<1x96xf32>
    %65 = arith.divf %63, %64 : vector<1x96xf32>
    %cst_34 = arith.constant 9.99999974E-6 : f32
    %66 = vector.broadcast %cst_34 : f32 to vector<1x96xf32>
    %67 = arith.addf %65, %66 : vector<1x96xf32>
    %68 = math.rsqrt %67 : vector<1x96xf32>
    %69 = vector.broadcast %68 : vector<1x96xf32> to vector<8x96xf32>
    %70 = arith.mulf %60, %69 : vector<8x96xf32>
    %71 = vector.broadcast %53 : vector<1x96xf32> to vector<8x96xf32>
    %72 = arith.mulf %70, %71 : vector<8x96xf32>
    %73 = vector.broadcast %54 : vector<1x96xf32> to vector<8x96xf32>
    %74 = arith.addf %72, %73 : vector<8x96xf32>
    %cst_35 = arith.constant 0.000000e+00 : f32
    %75 = vector.broadcast %cst_35 : f32 to vector<8x96xf32>
    %76 = arith.maximumf %74, %75 : vector<8x96xf32>
    %c0_36 = arith.constant 0 : index
    %c160_37 = arith.constant 160 : index
    %77 = vector.load %arg5[%c0_36, %c160_37] : memref<8x320xf32, #tpu.memory_space<vmem>>, vector<8x96xf32>
    tpu.vector_store %arg5[%c0_36, %c160_37], %76 {strides = array<i32>} : memref<8x320xf32, #tpu.memory_space<vmem>>, vector<8x96xf32>,
    %c0_38 = arith.constant 0 : index
    %c208 = arith.constant 208 : index
    %78 = vector.load %arg0[%c0_38, %c208] : memref<8x272xf32, #tpu.memory_space<vmem>>, vector<8x64xf32>
    %c0_39 = arith.constant 0 : index
    %c256 = arith.constant 256 : index
    %79 = vector.load %arg3[%c0_39, %c256] : memref<1x320xf32, #tpu.memory_space<vmem>>, vector<1x64xf32>
    %c0_40 = arith.constant 0 : index
    %c256_41 = arith.constant 256 : index
    %80 = vector.load %arg4[%c0_40, %c256_41] : memref<1x320xf32, #tpu.memory_space<vmem>>, vector<1x64xf32>
    %cst_42 = arith.constant dense<0.000000e+00> : vector<64xf32>
    %81 = vector.multi_reduction <add>, %78, %cst_42 [0] : vector<8x64xf32> to vector<64xf32>
    %82 = vector.shape_cast %81 : vector<64xf32> to vector<1x64xf32>
    %cst_43 = arith.constant 8.000000e+00 : f32
    %83 = vector.broadcast %cst_43 : f32 to vector<1x64xf32>
    %84 = arith.divf %82, %83 : vector<1x64xf32>
    %85 = vector.broadcast %84 : vector<1x64xf32> to vector<8x64xf32>
    %86 = arith.subf %78, %85 : vector<8x64xf32>
    %87 = arith.mulf %86, %86 : vector<8x64xf32>
    %cst_44 = arith.constant dense<0.000000e+00> : vector<64xf32>
    %88 = vector.multi_reduction <add>, %87, %cst_44 [0] : vector<8x64xf32> to vector<64xf32>
    %89 = vector.shape_cast %88 : vector<64xf32> to vector<1x64xf32>
    %cst_45 = arith.constant 8.000000e+00 : f32
    %90 = vector.broadcast %cst_45 : f32 to vector<1x64xf32>
    %91 = arith.divf %89, %90 : vector<1x64xf32>
    %cst_46 = arith.constant 9.99999974E-6 : f32
    %92 = vector.broadcast %cst_46 : f32 to vector<1x64xf32>
    %93 = arith.addf %91, %92 : vector<1x64xf32>
    %94 = math.rsqrt %93 : vector<1x64xf32>
    %95 = vector.broadcast %94 : vector<1x64xf32> to vector<8x64xf32>
    %96 = arith.mulf %86, %95 : vector<8x64xf32>
    %97 = vector.broadcast %79 : vector<1x64xf32> to vector<8x64xf32>
    %98 = arith.mulf %96, %97 : vector<8x64xf32>
    %99 = vector.broadcast %80 : vector<1x64xf32> to vector<8x64xf32>
    %100 = arith.addf %98, %99 : vector<8x64xf32>
    %cst_47 = arith.constant 0.000000e+00 : f32
    %101 = vector.broadcast %cst_47 : f32 to vector<8x64xf32>
    %102 = arith.maximumf %100, %101 : vector<8x64xf32>
    %c0_48 = arith.constant 0 : index
    %c256_49 = arith.constant 256 : index
    %103 = vector.load %arg5[%c0_48, %c256_49] : memref<8x320xf32, #tpu.memory_space<vmem>>, vector<8x64xf32>
    tpu.vector_store %arg5[%c0_48, %c256_49], %102 {strides = array<i32>} : memref<8x320xf32, #tpu.memory_space<vmem>>, vector<8x64xf32>,
    return
  }
}

module attributes {stable_mosaic.version = 11 : i64} {
  func.func @_matmul_bias_act_kernel(%arg0: i32, %arg1: memref<8x1200xbf16, #tpu.memory_space<vmem>>, %arg2: memref<1200x64xbf16, #tpu.memory_space<vmem>>, %arg3: memref<1x64xf32, #tpu.memory_space<vmem>>, %arg4: memref<8x64xf32, #tpu.memory_space<vmem>>) attributes {dimension_semantics = [#tpu.dimension_semantics<parallel>], iteration_bounds = array<i64: 1>, scalar_prefetch = 0 : i64, scratch_operands = 0 : i64, tpu.core_type = #tpu.core_type<tc>, window_params = [{transform_indices = @transform_0, window_bounds = array<i64: 8, 1200>}, {pipeline_mode = #tpu.pipeline_mode<synchronous>, transform_indices = @transform_1, window_bounds = array<i64: 1200, 64>}, {pipeline_mode = #tpu.pipeline_mode<synchronous>, transform_indices = @transform_2, window_bounds = array<i64: 1, 64>}, {transform_indices = @transform_3, window_bounds = array<i64: 8, 64>}]} {
    %c0 = arith.constant 0 : index
    %c0_0 = arith.constant 0 : index
    %0 = vector.load %arg1[%c0, %c0_0] : memref<8x1200xbf16, #tpu.memory_space<vmem>>, vector<8x1200xbf16>
    %c0_1 = arith.constant 0 : index
    %c0_2 = arith.constant 0 : index
    %1 = vector.load %arg2[%c0_1, %c0_2] : memref<1200x64xbf16, #tpu.memory_space<vmem>>, vector<1200x64xbf16>
    %cst = arith.constant dense<0.000000e+00> : vector<8x64xf32>
    %2 = tpu.matmul %0, %1, %cst {dimension_numbers = #tpu.dot_dimension_numbers<[1], [0], [0], [1], [0, 0, 1, 1], [], []>} : vector<8x1200xbf16>, vector<1200x64xbf16>, vector<8x64xf32> -> vector<8x64xf32>
    %c0_3 = arith.constant 0 : index
    %c0_4 = arith.constant 0 : index
    %3 = vector.load %arg3[%c0_3, %c0_4] : memref<1x64xf32, #tpu.memory_space<vmem>>, vector<1x64xf32>
    %4 = vector.broadcast %3 : vector<1x64xf32> to vector<8x64xf32>
    %5 = arith.addf %2, %4 : vector<8x64xf32>
    %c0_5 = arith.constant 0 : index
    %c0_6 = arith.constant 0 : index
    %6 = vector.load %arg4[%c0_5, %c0_6] : memref<8x64xf32, #tpu.memory_space<vmem>>, vector<8x64xf32>
    tpu.vector_store %arg4[%c0_5, %c0_6], %5 {strides = array<i32>} : memref<8x64xf32, #tpu.memory_space<vmem>>, vector<8x64xf32>,
    return
  }
  func.func @transform_0(%arg0: i32) -> (i32, i32) {
    %c0_i32 = arith.constant 0 : i32
    %c0_i32_0 = arith.constant 0 : i32
    return %arg0, %c0_i32 : i32, i32
  }
  func.func @transform_1(%arg0: i32) -> (i32, i32) {
    %c0_i32 = arith.constant 0 : i32
    %c0_i32_0 = arith.constant 0 : i32
    %c0_i32_1 = arith.constant 0 : i32
    return %c0_i32, %c0_i32_0 : i32, i32
  }
  func.func @transform_2(%arg0: i32) -> (i32, i32) {
    %c0_i32 = arith.constant 0 : i32
    %c0_i32_0 = arith.constant 0 : i32
    %c0_i32_1 = arith.constant 0 : i32
    return %c0_i32, %c0_i32_0 : i32, i32
  }
  func.func @transform_3(%arg0: i32) -> (i32, i32) {
    %c0_i32 = arith.constant 0 : i32
    %c0_i32_0 = arith.constant 0 : i32
    return %arg0, %c0_i32 : i32, i32
  }
}

</mosaic_0001>

<bundles_post_ra>
// kernel: stem_forward.12
= control target key start
LH: loop header
LB: loop body
LE: loop exit
PB: predicated region body
PF: predicated region fallthrough
CT: control target
= control target key end

     0   :  { %s718_s12 = smov 0   ;;  %s864_s0 = inlined_call_operand.vmem [shape: bf16[768,9], index: 0, kind: input, shape index: {}]   ;;  %s865_s1 = inlined_call_operand.vmem [shape: bf16[9,32], index: 1, kind: input, shape index: {}]   ;;  %s866_s2 = inlined_call_operand.vmem [shape: f32[1,32], index: 2, kind: input, shape index: {}]   ;;  %s867_s3 = inlined_call_operand.vmem [shape: f32[768,32], index: 3, kind: output, shape index: {}]  }
   0x1 LB: > { %s564_s13 = sadd.s32 4294967295, %s695_s12   ;;  %p568_p0 = scmp.ge.s32.totalorder %s695_s12, 1  ;;  %s695_s12 = sphi %s718_s12, %s13_s12  }
   0x2   : > { %p138_p1 = scmp.lt.s32.totalorder %s695_s12, 4 }
   0x4   : > { %p139_p2 = pnand %p568_p0, %p138_p1 }
   0x5   : > { %s569_s18 = sshll.u32 (!%p139_p2), %s564_s13, 5 }
   0x6   : > { %142 = sbr.rel (%p139_p2) target bundleno = 215 (0xd7), region = 32  ;;  %p163_p3 = scmp.lt.s32.totalorder (!%p139_p2), %s569_s18, 95 }
   0xb   : > { %v639_v0 = vld [vmem:[%s865_s1] sm:$0xf]  ;;  %v675_v1 = vld [vmem:[%s865_s1] sm:$0x10]  ;;  %vm347_vm0 = vcmask 1043456   ;;  %vm348_vm1 = vcmask 1044480  }
   0xc   : > { %v640_v2 = vor.u32 %v675_v1, %v639_v0  ;;  %v697_v3 = vmov 65535   ;;  %s869_s18 = smov (!%p163_p3, %s569_s18), 95  ;;  %vm298_vm2 = vcmask 72704   ;;  %v757_v23 = vld [vmem:[%s866_s2] ss:$0 sm:$0xff]  ;;  %vm475_vm3 = vcmask 261120  }
   0xd   : > { %v349_v4 = vsel %vm347_vm0, 4294967295, %v697_v3  ;;  %s570_s19 = sshll.u32 %s869_s18, 2  ;;  %s572_s25 = sshll.u32 %s869_s18, 3 }
   0xe   : > { %v350_v5 = vsel %vm348_vm1, %v349_v4, 0  ;;  %s166_s22 = scalar_lea.vmem %s864_s0, %s570_s19  ;;  %s765_s28 = scalar_lea.vmem %s867_s3, %s572_s25 }
   0xf   : > { %v352_v6 = vand.u32 %v640_v2, %v350_v5  ;;  %v659_v7 = vld [vmem:[%s166_s22] sm:$0xff]  ;;  %v660_v11 = vld [vmem:[%s166_s22 + $0x8] sm:$0xff]  ;;  %v661_v15 = vld [vmem:[%s166_s22 + $0x10] sm:$0xff] }
  0x10   : > { %v663_v8 = vld [vmem:[%s166_s22 + $0x20] sm:$0xff]  ;;  %v664_v12 = vld [vmem:[%s166_s22 + $0x28] sm:$0xff]  ;;  %v665_v16 = vld [vmem:[%s166_s22 + $0x30] sm:$0xff] }
  0x11   : > { %361 = vmatpush.bf16.msra.mxu0 %v352_v6  ;;  %676 = vmatpush.bf16.msra.mxu1 %v352_v6  ;;  %v667_v9 = vld [vmem:[%s166_s22 + $0x40] sm:$0xff]  ;;  %v668_v13 = vld [vmem:[%s166_s22 + $0x48] sm:$0xff]  ;;  %v669_v17 = vld [vmem:[%s166_s22 + $0x50] sm:$0xff] }
  0x12   : > { %677 = vmatpush.bf16.msra.mxu2 %v352_v6  ;;  %678 = vmatpush.bf16.msra.mxu3 %v352_v6  ;;  %v671_v10 = vld [vmem:[%s166_s22 + $0x60] sm:$0xff]  ;;  %v672_v14 = vld [vmem:[%s166_s22 + $0x68] sm:$0xff]  ;;  %v673_v18 = vld [vmem:[%s166_s22 + $0x70] sm:$0xff] }
  0x13   : > { %v662_v19 = vld [vmem:[%s166_s22 + $0x18] sm:$0xff] }
  0x14   : > { %641 = vmatmul.msk.bf16.vlgmr.msra.gmra.mxu0 %vm298_vm2, %v659_v7  ;;  %645 = vmatmul.msk.bf16.vlgmr.msra.gmra.mxu1 %vm298_vm2, %v663_v8  ;;  %v666_v20 = vld [vmem:[%s166_s22 + $0x38] sm:$0xff] }
  0x15   : > { %649 = vmatmul.msk.bf16.vlgmr.msra.gmra.mxu2 %vm298_vm2, %v667_v9  ;;  %653 = vmatmul.msk.bf16.vlgmr.msra.gmra.mxu3 %vm298_vm2, %v671_v10  ;;  %v670_v21 = vld [vmem:[%s166_s22 + $0x58] sm:$0xff] }
  0x16   : > { %v674_v22 = vld [vmem:[%s166_s22 + $0x78] sm:$0xff] }
  0x24   : > { %642 = vmatmul.msk.bf16.gmra.mxu0 %vm298_vm2, %v660_v11  ;;  %646 = vmatmul.msk.bf16.gmra.mxu1 %vm298_vm2, %v664_v12 }
  0x25   : > { %650 = vmatmul.msk.bf16.gmra.mxu2 %vm298_vm2, %v668_v13  ;;  %654 = vmatmul.msk.bf16.gmra.mxu3 %vm298_vm2, %v672_v14 }
  0x34   : > { %643 = vmatmul.msk.bf16.gmra.mxu0 %vm298_vm2, %v661_v15  ;;  %647 = vmatmul.msk.bf16.gmra.mxu1 %vm298_vm2, %v665_v16 }
  0x35   : > { %651 = vmatmul.msk.bf16.gmra.mxu2 %vm298_vm2, %v669_v17  ;;  %655 = vmatmul.msk.bf16.gmra.mxu3 %vm298_vm2, %v673_v18 }
  0x44   : > { %644 = vmatmul.msk.bf16.gmra.mxu0 %vm298_vm2, %v662_v19  ;;  %648 = vmatmul.msk.bf16.gmra.mxu1 %vm298_vm2, %v666_v20 }
  0x45   : > { %652 = vmatmul.msk.bf16.gmra.mxu2 %vm298_vm2, %v670_v21  ;;  %656 = vmatmul.msk.bf16.gmra.mxu3 %vm298_vm2, %v674_v22 }
  0x91   : > { %v363_v24 = vpop.f32.mrf.mxu0  ;;  %v383_v25 = vpop.f32.mrf.mxu1 }
  0x92   : > { %v364_v26 = vadd.f32 %v757_v23, %v363_v24  ;;  %v384_v27 = vadd.f32 %v757_v23, %v383_v25 }
  0x94   : > { %v443_v28 = vmax.f32 %v364_v26, 0.0  ;;  %v451_v29 = vmax.f32 %v384_v27, 0.0 }
  0x96   : > { %476 = vst.msk [vmem:[%s765_s28] sm:$0xff] %vm475_vm3, %v443_v28 }
  0x97   : > { %484 = vst.msk [vmem:[%s765_s28 + $0x40] sm:$0xff] %vm475_vm3, %v451_v29 }
  0x98   : > { %v403_v30 = vpop.f32.mrf.mxu2  ;;  %v423_v31 = vpop.f32.mrf.mxu3 }
  0x99   : > { %v404_v32 = vadd.f32 %v757_v23, %v403_v30  ;;  %v424_v33 = vadd.f32 %v757_v23, %v423_v31  ;;  %v365_v34 = vpop.f32.mrf.mxu0  ;;  %v385_v35 = vpop.f32.mrf.mxu1 }
  0x9a   : > { %v366_v36 = vadd.f32 %v757_v23, %v365_v34  ;;  %v386_v37 = vadd.f32 %v757_v23, %v385_v35 }
  0x9b   : > { %v459_v38 = vmax.f32 %v404_v32, 0.0  ;;  %v467_v39 = vmax.f32 %v424_v33, 0.0 }
  0x9c   : > { %v444_v40 = vmax.f32 %v366_v36, 0.0  ;;  %v452_v41 = vmax.f32 %v386_v37, 0.0 }
  0x9d   : > { %492 = vst.msk [vmem:[%s765_s28 + $0x80] sm:$0xff] %vm475_vm3, %v459_v38 }
  0x9e   : > { %500 = vst.msk [vmem:[%s765_s28 + $0xc0] sm:$0xff] %vm475_vm3, %v467_v39 }
  0x9f   : > { %477 = vst.msk [vmem:[%s765_s28 + $0x8] sm:$0xff] %vm475_vm3, %v444_v40 }
  0xa0   : > { %485 = vst.msk [vmem:[%s765_s28 + $0x48] sm:$0xff] %vm475_vm3, %v452_v41  ;;  %v405_v42 = vpop.f32.mrf.mxu2  ;;  %v425_v43 = vpop.f32.mrf.mxu3 }
  0xa1   : > { %v406_v44 = vadd.f32 %v757_v23, %v405_v42  ;;  %v426_v45 = vadd.f32 %v757_v23, %v425_v43  ;;  %v368_v46 = vpop.f32.mrf.mxu0  ;;  %v388_v47 = vpop.f32.mrf.mxu1 }
  0xa2   : > { %v369_v48 = vadd.f32 %v757_v23, %v368_v46  ;;  %v389_v49 = vadd.f32 %v757_v23, %v388_v47 }
  0xa3   : > { %v460_v50 = vmax.f32 %v406_v44, 0.0  ;;  %v468_v51 = vmax.f32 %v426_v45, 0.0 }
  0xa4   : > { %v445_v52 = vmax.f32 %v369_v48, 0.0  ;;  %v453_v53 = vmax.f32 %v389_v49, 0.0 }
  0xa5   : > { %493 = vst.msk [vmem:[%s765_s28 + $0x88] sm:$0xff] %vm475_vm3, %v460_v50 }
  0xa6   : > { %501 = vst.msk [vmem:[%s765_s28 + $0xc8] sm:$0xff] %vm475_vm3, %v468_v51 }
  0xa7   : > { %478 = vst.msk [vmem:[%s765_s28 + $0x10] sm:$0xff] %vm475_vm3, %v445_v52 }
  0xa8   : > { %486 = vst.msk [vmem:[%s765_s28 + $0x50] sm:$0xff] %vm475_vm3, %v453_v53  ;;  %v408_v54 = vpop.f32.mrf.mxu2  ;;  %v428_v55 = vpop.f32.mrf.mxu3 }
  0xa9   : > { %v409_v56 = vadd.f32 %v757_v23, %v408_v54  ;;  %v429_v57 = vadd.f32 %v757_v23, %v428_v55  ;;  %v370_v58 = vpop.f32.mrf.mxu0  ;;  %v390_v59 = vpop.f32.mrf.mxu1 }
  0xaa   : > { %v371_v60 = vadd.f32 %v757_v23, %v370_v58  ;;  %v391_v61 = vadd.f32 %v757_v23, %v390_v59 }
  0xab   : > { %v461_v62 = vmax.f32 %v409_v56, 0.0  ;;  %v469_v63 = vmax.f32 %v429_v57, 0.0 }
  0xac   : > { %v446_v0 = vmax.f32 %v371_v60, 0.0  ;;  %v454_v1 = vmax.f32 %v391_v61, 0.0 }
  0xad   : > { %494 = vst.msk [vmem:[%s765_s28 + $0x90] sm:$0xff] %vm475_vm3, %v461_v62 }
  0xae   : > { %502 = vst.msk [vmem:[%s765_s28 + $0xd0] sm:$0xff] %vm475_vm3, %v469_v63 }
  0xaf   : > { %479 = vst.msk [vmem:[%s765_s28 + $0x18] sm:$0xff] %vm475_vm3, %v446_v0 }
  0xb0   : > { %487 = vst.msk [vmem:[%s765_s28 + $0x58] sm:$0xff] %vm475_vm3, %v454_v1  ;;  %v410_v2 = vpop.f32.mrf.mxu2  ;;  %v430_v3 = vpop.f32.mrf.mxu3 }
  0xb1   : > { %v411_v4 = vadd.f32 %v757_v23, %v410_v2  ;;  %v431_v5 = vadd.f32 %v757_v23, %v430_v3  ;;  %v373_v6 = vpop.f32.mrf.mxu0  ;;  %v393_v7 = vpop.f32.mrf.mxu1 }
  0xb2   : > { %v374_v8 = vadd.f32 %v757_v23, %v373_v6  ;;  %v394_v9 = vadd.f32 %v757_v23, %v393_v7 }
  0xb3   : > { %v462_v10 = vmax.f32 %v411_v4, 0.0  ;;  %v470_v11 = vmax.f32 %v431_v5, 0.0 }
  0xb4   : > { %v447_v12 = vmax.f32 %v374_v8, 0.0  ;;  %v455_v13 = vmax.f32 %v394_v9, 0.0 }
  0xb5   : > { %495 = vst.msk [vmem:[%s765_s28 + $0x98] sm:$0xff] %vm475_vm3, %v462_v10 }
  0xb6   : > { %503 = vst.msk [vmem:[%s765_s28 + $0xd8] sm:$0xff] %vm475_vm3, %v470_v11 }
  0xb7   : > { %480 = vst.msk [vmem:[%s765_s28 + $0x20] sm:$0xff] %vm475_vm3, %v447_v12 }
  0xb8   : > { %488 = vst.msk [vmem:[%s765_s28 + $0x60] sm:$0xff] %vm475_vm3, %v455_v13  ;;  %v413_v14 = vpop.f32.mrf.mxu2  ;;  %v433_v15 = vpop.f32.mrf.mxu3 }
  0xb9   : > { %v414_v16 = vadd.f32 %v757_v23, %v413_v14  ;;  %v434_v17 = vadd.f32 %v757_v23, %v433_v15  ;;  %v375_v18 = vpop.f32.mrf.mxu0  ;;  %v395_v19 = vpop.f32.mrf.mxu1 }
  0xba   : > { %v376_v20 = vadd.f32 %v757_v23, %v375_v18  ;;  %v396_v21 = vadd.f32 %v757_v23, %v395_v19 }
  0xbb   : > { %v463_v22 = vmax.f32 %v414_v16, 0.0  ;;  %v471_v24 = vmax.f32 %v434_v17, 0.0 }
  0xbc   : > { %v448_v25 = vmax.f32 %v376_v20, 0.0  ;;  %v456_v26 = vmax.f32 %v396_v21, 0.0 }
  0xbd   : > { %496 = vst.msk [vmem:[%s765_s28 + $0xa0] sm:$0xff] %vm475_vm3, %v463_v22 }
  0xbe   : > { %504 = vst.msk [vmem:[%s765_s28 + $0xe0] sm:$0xff] %vm475_vm3, %v471_v24 }
  0xbf   : > { %481 = vst.msk [vmem:[%s765_s28 + $0x28] sm:$0xff] %vm475_vm3, %v448_v25 }
  0xc0   : > { %489 = vst.msk [vmem:[%s765_s28 + $0x68] sm:$0xff] %vm475_vm3, %v456_v26  ;;  %v415_v27 = vpop.f32.mrf.mxu2  ;;  %v435_v28 = vpop.f32.mrf.mxu3 }
  0xc1   : > { %v416_v29 = vadd.f32 %v757_v23, %v415_v27  ;;  %v436_v30 = vadd.f32 %v757_v23, %v435_v28  ;;  %v378_v31 = vpop.f32.mrf.mxu0  ;;  %v398_v32 = vpop.f32.mrf.mxu1 }
  0xc2   : > { %v379_v33 = vadd.f32 %v757_v23, %v378_v31  ;;  %v399_v34 = vadd.f32 %v757_v23, %v398_v32 }
  0xc3   : > { %v464_v35 = vmax.f32 %v416_v29, 0.0  ;;  %v472_v36 = vmax.f32 %v436_v30, 0.0 }
  0xc4   : > { %v449_v37 = vmax.f32 %v379_v33, 0.0  ;;  %v457_v38 = vmax.f32 %v399_v34, 0.0 }
  0xc5   : > { %497 = vst.msk [vmem:[%s765_s28 + $0xa8] sm:$0xff] %vm475_vm3, %v464_v35 }
  0xc6   : > { %505 = vst.msk [vmem:[%s765_s28 + $0xe8] sm:$0xff] %vm475_vm3, %v472_v36 }
  0xc7   : > { %482 = vst.msk [vmem:[%s765_s28 + $0x30] sm:$0xff] %vm475_vm3, %v449_v37 }
  0xc8   : > { %490 = vst.msk [vmem:[%s765_s28 + $0x70] sm:$0xff] %vm475_vm3, %v457_v38  ;;  %v418_v39 = vpop.f32.mrf.mxu2  ;;  %v438_v40 = vpop.f32.mrf.mxu3 }
  0xc9   : > { %v419_v41 = vadd.f32 %v757_v23, %v418_v39  ;;  %v439_v42 = vadd.f32 %v757_v23, %v438_v40  ;;  %v380_v43 = vpop.f32.mrf.mxu0  ;;  %v400_v44 = vpop.f32.mrf.mxu1 }
  0xca   : > { %v381_v45 = vadd.f32 %v757_v23, %v380_v43  ;;  %v401_v46 = vadd.f32 %v757_v23, %v400_v44 }
  0xcb   : > { %v465_v47 = vmax.f32 %v419_v41, 0.0  ;;  %v473_v48 = vmax.f32 %v439_v42, 0.0 }
  0xcc   : > { %v450_v49 = vmax.f32 %v381_v45, 0.0  ;;  %v458_v50 = vmax.f32 %v401_v46, 0.0 }
  0xcd   : > { %498 = vst.msk [vmem:[%s765_s28 + $0xb0] sm:$0xff] %vm475_vm3, %v465_v47 }
  0xce   : > { %506 = vst.msk [vmem:[%s765_s28 + $0xf0] sm:$0xff] %vm475_vm3, %v473_v48 }
  0xcf   : > { %483 = vst.msk [vmem:[%s765_s28 + $0x38] sm:$0xff] %vm475_vm3, %v450_v49 }
  0xd0   : > { %491 = vst.msk [vmem:[%s765_s28 + $0x78] sm:$0xff] %vm475_vm3, %v458_v50  ;;  %v420_v51 = vpop.f32.mrf.mxu2  ;;  %v440_v52 = vpop.f32.mrf.mxu3 }
  0xd1   : > { %v421_v53 = vadd.f32 %v757_v23, %v420_v51  ;;  %v441_v54 = vadd.f32 %v757_v23, %v440_v52 }
  0xd3   : > { %v466_v55 = vmax.f32 %v421_v53, 0.0  ;;  %v474_v56 = vmax.f32 %v441_v54, 0.0 }
  0xd5   : > { %499 = vst.msk [vmem:[%s765_s28 + $0xb8] sm:$0xff] %vm475_vm3, %v466_v55 }
  0xd6   : > { %507 = vst.msk [vmem:[%s765_s28 + $0xf8] sm:$0xff] %vm475_vm3, %v474_v56 }
  0xd7 PF: > { %s13_s12 = sadd.s32 1, %s695_s12  }
  0xd8   : > { %p10_p4 = scmp.ge.s32.totalorder %s13_s12, 5  }
  0xda   :  { %12 = sbr.rel (!%p10_p4) target bundleno = 1 (0x1), region = 62 }

// kernel: stem_forward.13
= control target key start
LH: loop header
LB: loop body
LE: loop exit
PB: predicated region body
PF: predicated region fallthrough
CT: control target
= control target key end

     0   :  { %s1479_s12 = smov 0   ;;  %s1819_s0 = inlined_call_operand.vmem [shape: bf16[768,288], index: 0, kind: input, shape index: {}]   ;;  %s1820_s1 = inlined_call_operand.vmem [shape: bf16[288,32], index: 1, kind: input, shape index: {}]   ;;  %s1821_s2 = inlined_call_operand.vmem [shape: f32[1,32], index: 2, kind: input, shape index: {}]   ;;  %s1822_s3 = inlined_call_operand.vmem [shape: f32[768,32], index: 3, kind: output, shape index: {}]  }
   0x1 LB: > { %s1066_s13 = sadd.s32 4294967295, %s1457_s12   ;;  %p1070_p0 = scmp.ge.s32.totalorder %s1457_s12, 1  ;;  %s1457_s12 = sphi %s1479_s12, %s13_s12  }
   0x2   : > { %p139_p1 = scmp.lt.s32.totalorder %s1457_s12, 4 }
   0x4   : > { %p140_p2 = pnand %p1070_p0, %p139_p1 }
   0x5   : > { %s1071_s20 = sshll.u32 (!%p140_p2), %s1066_s13, 5 }
   0x6   : > { %143 = sbr.rel (%p140_p2) target bundleno = 374 (0x176), region = 32  ;;  %p165_p3 = scmp.lt.s32.totalorder (!%p140_p2), %s1071_s20, 95 }
   0xb   : > { %v1412_v0 = vld [vmem:[%s1820_s1 + $0x38] sm:$0xff]  ;;  %v1493_v1 = vld [vmem:[%s1820_s1 + $0x88] sm:$0xff]  ;;  %v1411_v3 = vld [vmem:[%s1820_s1 + $0x30] sm:$0xff]  ;;  %s1824_s20 = smov (!%p165_p3, %s1071_s20), 95  ;;  %vm630_vm0 = vcmask 261120  }
   0xc   : > { %v1498_v2 = vld [vmem:[%s1820_s1 + $0x78] sm:$0xff]  ;;  %679 = vmatpush.bf16.msra.mxu0 %v1412_v0  ;;  %1423 = vmatpush.bf16.msra.mxu3 %v1412_v0  ;;  %v1508_v4 = vld [vmem:[%s1820_s1 + $0x80] sm:$0xff]  ;;  %v1419_v5 = vld [vmem:[%s1820_s1 + $0x70] sm:$0xff]  ;;  %s1441_s27 = smul.u32 12, %s1824_s20  ;;  %s1074_s6 = sshll.u32 %s1824_s20, 3 }
   0xd   : > { %863 = vmatpush.bf16.msra.mxu2 %v1493_v1  ;;  %768 = vmatpush.bf16.msra.mxu1 %v1498_v2  ;;  %v1410_v6 = vld [vmem:[%s1820_s1 + $0x28] sm:$0xff]  ;;  %v1409_v11 = vld [vmem:[%s1820_s1 + $0x20] sm:$0xff]  ;;  %v1408_v13 = vld [vmem:[%s1820_s1 + $0x18] sm:$0xff]  ;;  %s1656_s9 = scalar_lea.vmem %s1822_s3, %s1074_s6 }
   0xe   : > { %s1523_s5 = scalar_lea.vmem %s1819_s0, %s1441_s27  ;;  %v1418_v7 = vld [vmem:[%s1820_s1 + $0x68] sm:$0xff]  ;;  %v1417_v12 = vld [vmem:[%s1820_s1 + $0x60] sm:$0xff]  ;;  %v1416_v14 = vld [vmem:[%s1820_s1 + $0x58] sm:$0xff] }
   0xf   : > { %v1085_v8 = vld [vmem:[%s1523_s5 + $0x8] sm:$0xf]  ;;  %v1359_v9 = vld [vmem:[%s1523_s5 + $0x10] sm:$0xf0]  ;;  %v1097_v17 = vld [vmem:[%s1523_s5 + $0x20] sm:$0xf] }
  0x10   : > { %680 = vmatpush.bf16.msra.mxu0 %v1411_v3  ;;  %1424 = vmatpush.bf16.msra.mxu3 %v1411_v3  ;;  %v1086_v10 = vor.u32 %v1359_v9, %v1085_v8  ;;  %v1407_v15 = vld [vmem:[%s1820_s1 + $0x10] sm:$0xff]  ;;  %v1362_v18 = vld [vmem:[%s1523_s5 + $0x28] sm:$0xf0]  ;;  %v1405_v22 = vld [vmem:[%s1820_s1] sm:$0xff] }
  0x11   : > { %864 = vmatpush.bf16.msra.mxu2 %v1508_v4  ;;  %769 = vmatpush.bf16.msra.mxu1 %v1419_v5  ;;  %v1415_v16 = vld [vmem:[%s1820_s1 + $0x50] sm:$0xff]  ;;  %v1406_v19 = vld [vmem:[%s1820_s1 + $0x8] sm:$0xff]  ;;  %v1098_v20 = vor.u32 %v1362_v18, %v1097_v17  ;;  %v1077_v23 = vld [vmem:[%s1523_s5] sm:$0xf] }
  0x12   : > { %v1414_v21 = vld [vmem:[%s1820_s1 + $0x48] sm:$0xff]  ;;  %v1221_v25 = vld [vmem:[%s1523_s5 + $0x120] sm:$0xf]  ;;  %v1357_v28 = vld [vmem:[%s1523_s5 + $0x4] sm:$0xf] }
  0x13   : > { %v1358_v24 = vld [vmem:[%s1523_s5 + $0x8] sm:$0xf0]  ;;  %v1413_v27 = vld [vmem:[%s1820_s1 + $0x40] sm:$0xff]  ;;  %v1079_v29 = vld [vmem:[%s1523_s5 + $0xc] sm:$0xf0] }
  0x14   : > { %681 = vmatpush.bf16.msra.mxu0 %v1410_v6  ;;  %1425 = vmatpush.bf16.msra.mxu3 %v1410_v6  ;;  %v1394_v26 = vld [vmem:[%s1523_s5 + $0x128] sm:$0xf0]  ;;  %v1078_v30 = vor.u32 %v1358_v24, %v1077_v23  ;;  %v1082_v32 = vor.u32 %v1357_v28, %v1079_v29  ;;  %v1109_v33 = vld [vmem:[%s1523_s5 + $0x38] sm:$0xf]  ;;  %v1365_v34 = vld [vmem:[%s1523_s5 + $0x40] sm:$0xf0] }
  0x15   : > { %1339 = vmatmul.msk.bf16.vlgmr.msra.gmra.mxu2 %vm630_vm0, %v1086_v10  ;;  %770 = vmatpush.bf16.msra.mxu1 %v1418_v7  ;;  %v1222_v31 = vor.u32 %v1394_v26, %v1221_v25  ;;  %v1110_v35 = vor.u32 %v1365_v34, %v1109_v33  ;;  %v1089_v36 = vld [vmem:[%s1523_s5 + $0x18] sm:$0xf]  ;;  %v1361_v37 = vld [vmem:[%s1523_s5 + $0x20] sm:$0xf0]  ;;  %v1360_v40 = vld [vmem:[%s1523_s5 + $0x1c] sm:$0xf] }
  0x16   : > { %v1233_v38 = vld [vmem:[%s1523_s5 + $0x138] sm:$0xf]  ;;  %v1397_v39 = vld [vmem:[%s1523_s5 + $0x140] sm:$0xf0]  ;;  %v1091_v41 = vld [vmem:[%s1523_s5 + $0x24] sm:$0xf0]  ;;  %v1090_v42 = vor.u32 %v1361_v37, %v1089_v36 }
  0x17   : > { %v1234_v43 = vor.u32 %v1397_v39, %v1233_v38  ;;  %v1094_v44 = vor.u32 %v1360_v40, %v1091_v41  ;;  %v1121_v45 = vld [vmem:[%s1523_s5 + $0x50] sm:$0xf]  ;;  %v1368_v46 = vld [vmem:[%s1523_s5 + $0x58] sm:$0xf0]  ;;  %v1363_v52 = vld [vmem:[%s1523_s5 + $0x34] sm:$0xf] }
  0x18   : > { %682 = vmatpush.bf16.msra.mxu0 %v1409_v11  ;;  %1426 = vmatpush.bf16.msra.mxu3 %v1409_v11  ;;  %v1122_v47 = vor.u32 %v1368_v46, %v1121_v45  ;;  %v1101_v48 = vld [vmem:[%s1523_s5 + $0x30] sm:$0xf]  ;;  %v1364_v49 = vld [vmem:[%s1523_s5 + $0x38] sm:$0xf0]  ;;  %v1103_v53 = vld [vmem:[%s1523_s5 + $0x3c] sm:$0xf0] }
  0x19   : > { %771 = vmatpush.bf16.msra.mxu1 %v1417_v12  ;;  %v1245_v50 = vld [vmem:[%s1523_s5 + $0x150] sm:$0xf]  ;;  %v1400_v51 = vld [vmem:[%s1523_s5 + $0x158] sm:$0xf0]  ;;  %v1102_v54 = vor.u32 %v1364_v49, %v1101_v48  ;;  %v1106_v56 = vor.u32 %v1363_v52, %v1103_v53  ;;  %v1133_v57 = vld [vmem:[%s1523_s5 + $0x68] sm:$0xf] }
  0x1a   : > { %v1246_v55 = vor.u32 %v1400_v51, %v1245_v50  ;;  %v1371_v58 = vld [vmem:[%s1523_s5 + $0x70] sm:$0xf0]  ;;  %v1113_v60 = vld [vmem:[%s1523_s5 + $0x48] sm:$0xf]  ;;  %v1366_v0 = vld [vmem:[%s1523_s5 + $0x4c] sm:$0xf] }
  0x1b   : > { %v1134_v59 = vor.u32 %v1371_v58, %v1133_v57  ;;  %v1367_v61 = vld [vmem:[%s1523_s5 + $0x50] sm:$0xf0]  ;;  %v1257_v62 = vld [vmem:[%s1523_s5 + $0x168] sm:$0xf]  ;;  %v1374_v6 = vld [vmem:[%s1523_s5 + $0x88] sm:$0xf0] }
  0x1c   : > { %683 = vmatpush.bf16.msra.mxu0 %v1408_v13  ;;  %1427 = vmatpush.bf16.msra.mxu3 %v1408_v13  ;;  %v1403_v63 = vld [vmem:[%s1523_s5 + $0x170] sm:$0xf0]  ;;  %v1125_v8 = vld [vmem:[%s1523_s5 + $0x60] sm:$0xf]  ;;  %v1370_v9 = vld [vmem:[%s1523_s5 + $0x68] sm:$0xf0] }
  0x1d   : > { %772 = vmatpush.bf16.msra.mxu1 %v1416_v14  ;;  %v1258_v3 = vor.u32 %v1403_v63, %v1257_v62  ;;  %v1393_v10 = vld [vmem:[%s1523_s5 + $0x124] sm:$0xf]  ;;  %v1223_v11 = vld [vmem:[%s1523_s5 + $0x12c] sm:$0xf0]  ;;  %v1157_v17 = vld [vmem:[%s1523_s5 + $0x98] sm:$0xf] }
  0x1e   : > { %v1127_v13 = vld [vmem:[%s1523_s5 + $0x6c] sm:$0xf0]  ;;  %v1377_v18 = vld [vmem:[%s1523_s5 + $0xa0] sm:$0xf0]  ;;  %v1235_v23 = vld [vmem:[%s1523_s5 + $0x144] sm:$0xf0] }
  0x1f   : > { %v1372_v24 = vld [vmem:[%s1523_s5 + $0x7c] sm:$0xf]  ;;  %v1139_v25 = vld [vmem:[%s1523_s5 + $0x84] sm:$0xf0]  ;;  %v1169_v29 = vld [vmem:[%s1523_s5 + $0xb0] sm:$0xf] }
  0x20   : > { %684 = vmatpush.bf16.msra.mxu0 %v1407_v15  ;;  %1428 = vmatpush.bf16.msra.mxu3 %v1407_v15  ;;  %v1226_v15 = vor.u32 %v1393_v10, %v1223_v11  ;;  %v1142_v28 = vor.u32 %v1372_v24, %v1139_v25  ;;  %v1376_v33 = vld [vmem:[%s1523_s5 + $0x98] sm:$0xf0]  ;;  %v1399_v34 = vld [vmem:[%s1523_s5 + $0x154] sm:$0xf]  ;;  %v1151_v37 = vld [vmem:[%s1523_s5 + $0x9c] sm:$0xf0] }
  0x21   : > { %773 = vmatpush.bf16.msra.mxu1 %v1415_v16  ;;  %v1375_v36 = vld [vmem:[%s1523_s5 + $0x94] sm:$0xf]  ;;  %v1181_v41 = vld [vmem:[%s1523_s5 + $0xc8] sm:$0xf]  ;;  %v1402_v46 = vld [vmem:[%s1523_s5 + $0x16c] sm:$0xf] }
  0x22   : > { %v1154_v40 = vor.u32 %v1375_v36, %v1151_v37  ;;  %v1379_v45 = vld [vmem:[%s1523_s5 + $0xb0] sm:$0xf0]  ;;  %v1378_v48 = vld [vmem:[%s1523_s5 + $0xac] sm:$0xf]  ;;  %v1163_v49 = vld [vmem:[%s1523_s5 + $0xb4] sm:$0xf0] }
  0x23   : > { %v1166_v53 = vor.u32 %v1378_v48, %v1163_v49  ;;  %v1173_v58 = vld [vmem:[%s1523_s5 + $0xc0] sm:$0xf]  ;;  %v1381_v63 = vld [vmem:[%s1523_s5 + $0xc4] sm:$0xf]  ;;  %v1205_v11 = vld [vmem:[%s1523_s5 + $0xf8] sm:$0xf] }
  0x24   : > { %685 = vmatpush.bf16.msra.mxu0 %v1406_v19  ;;  %1429 = vmatpush.bf16.msra.mxu3 %v1406_v19  ;;  %v1158_v19 = vor.u32 %v1377_v18, %v1157_v17  ;;  %v1646_v62 = vld [vmem:[%s1821_s2] ss:$0 sm:$0xff]  ;;  %v1384_v25 = vld [vmem:[%s1523_s5 + $0xdc] sm:$0xf]  ;;  %v1197_v48 = vld [vmem:[%s1523_s5 + $0xf0] sm:$0xf] }
  0x25   : > { %1340 = vmatmul.msk.bf16.gmra.mxu2 %vm630_vm0, %v1098_v20  ;;  %774 = vmatpush.bf16.msra.mxu1 %v1414_v21  ;;  %v1137_v20 = vld [vmem:[%s1523_s5 + $0x78] sm:$0xf]  ;;  %v1388_v49 = vld [vmem:[%s1523_s5 + $0xf8] sm:$0xf0] }
  0x28   : > { %686 = vmatpush.bf16.msra.mxu0 %v1405_v22  ;;  %1430 = vmatpush.bf16.msra.mxu3 %v1405_v22  ;;  %v1396_v22 = vld [vmem:[%s1523_s5 + $0x13c] sm:$0xf] }
  0x29   : > { %775 = vmatpush.bf16.msra.mxu1 %v1413_v27 }
  0x2b   : > { %687 = vmatmul.bf16.vlgmr.msra.gmra.mxu0 %v1078_v30  ;;  %747 = vmatmul.bf16.vlgmr.msra.gmra.mxu3 %v1222_v31  ;;  %v1380_v30 = vld [vmem:[%s1523_s5 + $0xb8] sm:$0xf0] }
  0x2c   : > { %1431 = vmatpush.bf16.msrb.mxu3 %v1498_v2  ;;  %776 = vmatmul.bf16.vlgmr.msra.gmra.mxu1 %v1082_v32  ;;  %v1114_v2 = vor.u32 %v1367_v61, %v1113_v60  ;;  %v1170_v31 = vor.u32 %v1380_v30, %v1169_v29  ;;  %v1149_v32 = vld [vmem:[%s1523_s5 + $0x90] sm:$0xf]  ;;  %v1253_v60 = vld [vmem:[%s1523_s5 + $0x158] sm:$0xf]  ;;  %v1401_v61 = vld [vmem:[%s1523_s5 + $0x160] sm:$0xf0] }
  0x2d   : > { %v1150_v38 = vor.u32 %v1376_v33, %v1149_v32 }
  0x30   : > { %1432 = vmatpush.bf16.msrb.mxu3 %v1419_v5  ;;  %v1145_v5 = vld [vmem:[%s1523_s5 + $0x80] sm:$0xf] }
  0x34   : > { %1433 = vmatpush.bf16.msrb.mxu3 %v1418_v7  ;;  %v1146_v7 = vor.u32 %v1374_v6, %v1145_v5 }
  0x35   : > { %1341 = vmatmul.msk.bf16.gmra.mxu2 %vm630_vm0, %v1110_v35  ;;  %v1247_v35 = vld [vmem:[%s1523_s5 + $0x15c] sm:$0xf0] }
  0x36   : > { %v1250_v39 = vor.u32 %v1399_v34, %v1247_v35 }
  0x38   : > { %1434 = vmatpush.bf16.msrb.mxu3 %v1417_v12  ;;  %v1369_v12 = vld [vmem:[%s1523_s5 + $0x64] sm:$0xf] }
  0x3b   : > { %692 = vmatmul.bf16.gmra.mxu0 %v1090_v42  ;;  %752 = vmatmul.bf16.gmra.mxu3 %v1234_v43  ;;  %v1383_v42 = vld [vmem:[%s1523_s5 + $0xd0] sm:$0xf0] }
  0x3c   : > { %1435 = vmatpush.bf16.msrb.mxu3 %v1416_v14  ;;  %781 = vmatmul.bf16.gmra.mxu1 %v1094_v44  ;;  %v1126_v14 = vor.u32 %v1370_v9, %v1125_v8  ;;  %v1182_v43 = vor.u32 %v1383_v42, %v1181_v41  ;;  %v1161_v44 = vld [vmem:[%s1523_s5 + $0xa8] sm:$0xf] }
  0x3d   : > { %v1162_v50 = vor.u32 %v1379_v45, %v1161_v44 }
  0x40   : > { %1436 = vmatpush.bf16.msrb.mxu3 %v1415_v16  ;;  %v1130_v16 = vor.u32 %v1369_v12, %v1127_v13  ;;  %v1389_v12 = vld [vmem:[%s1523_s5 + $0x100] sm:$0xf0] }
  0x41   : > { %v1206_v18 = vor.u32 %v1389_v12, %v1205_v11  ;;  %v1209_v11 = vld [vmem:[%s1523_s5 + $0x108] sm:$0xf]  ;;  %v1391_v12 = vld [vmem:[%s1523_s5 + $0x110] sm:$0xf0] }
  0x44   : > { %1437 = vmatpush.bf16.msrb.mxu3 %v1414_v21  ;;  %v1373_v21 = vld [vmem:[%s1523_s5 + $0x80] sm:$0xf0] }
  0x45   : > { %1342 = vmatmul.msk.bf16.gmra.mxu2 %vm630_vm0, %v1122_v47  ;;  %v1138_v26 = vor.u32 %v1373_v21, %v1137_v20  ;;  %v1259_v47 = vld [vmem:[%s1523_s5 + $0x174] sm:$0xf0]  ;;  %v1385_v21 = vld [vmem:[%s1523_s5 + $0xe0] sm:$0xf0] }
  0x46   : > { %v1262_v51 = vor.u32 %v1402_v46, %v1259_v47  ;;  %v1185_v20 = vld [vmem:[%s1523_s5 + $0xd8] sm:$0xf] }
  0x47   : > { %v1186_v29 = vor.u32 %v1385_v21, %v1185_v20 }
  0x48   : > { %1438 = vmatpush.bf16.msrb.mxu3 %v1413_v27  ;;  %v1238_v27 = vor.u32 %v1396_v22, %v1235_v23  ;;  %v1265_v22 = vld [vmem:[%s1523_s5 + $0x170] sm:$0xf]  ;;  %v1404_v23 = vld [vmem:[%s1523_s5 + $0x178] sm:$0xf0] }
  0x49   : > { %v1266_v30 = vor.u32 %v1404_v23, %v1265_v22 }
  0x4b   : > { %697 = vmatmul.bf16.gmra.mxu0 %v1102_v54  ;;  %757 = vmatmul.bf16.gmra.mxu3 %v1246_v55  ;;  %v1193_v54 = vld [vmem:[%s1523_s5 + $0xe0] sm:$0xf]  ;;  %v1386_v55 = vld [vmem:[%s1523_s5 + $0xe8] sm:$0xf0] }
  0x4c   : > { %1439 = vmatpush.bf16.msra.mxu3 %v1493_v1  ;;  %786 = vmatmul.bf16.gmra.mxu1 %v1106_v56  ;;  %v1115_v1 = vld [vmem:[%s1523_s5 + $0x54] sm:$0xf0]  ;;  %v1194_v57 = vor.u32 %v1386_v55, %v1193_v54  ;;  %v1198_v55 = vor.u32 %v1388_v49, %v1197_v48 }
  0x50   : > { %1440 = vmatpush.bf16.msra.mxu3 %v1508_v4  ;;  %v1118_v4 = vor.u32 %v1366_v0, %v1115_v1  ;;  %v1175_v0 = vld [vmem:[%s1523_s5 + $0xcc] sm:$0xf0] }
  0x51   : > { %v1178_v5 = vor.u32 %v1381_v63, %v1175_v0 }
  0x55   : > { %1343 = vmatmul.msk.bf16.gmra.mxu2 %vm630_vm0, %v1134_v59  ;;  %v1382_v59 = vld [vmem:[%s1523_s5 + $0xc8] sm:$0xf0] }
  0x56   : > { %v1174_v1 = vor.u32 %v1382_v59, %v1173_v58 }
  0x5b   : > { %702 = vmatmul.bf16.gmra.mxu0 %v1114_v2  ;;  %762 = vmatmul.bf16.gmra.mxu3 %v1258_v3  ;;  %v1254_v2 = vor.u32 %v1401_v61, %v1253_v60 }
  0x5c   : > { %791 = vmatmul.bf16.gmra.mxu1 %v1118_v4 }
  0x65   : > { %1344 = vmatmul.msk.bf16.gmra.mxu2 %vm630_vm0, %v1146_v7 }
  0x6b   : > { %707 = vmatmul.bf16.gmra.mxu0 %v1126_v14  ;;  %836 = vmatmul.bf16.vlgmr.msrb.gmra.mxu3 %v1226_v15 }
  0x6c   : > { %796 = vmatmul.bf16.gmra.mxu1 %v1130_v16 }
  0x75   : > { %1345 = vmatmul.msk.bf16.gmra.mxu2 %vm630_vm0, %v1158_v19 }
  0x7b   : > { %712 = vmatmul.bf16.gmra.mxu0 %v1138_v26  ;;  %841 = vmatmul.bf16.gmra.mxu3 %v1238_v27  ;;  %v1187_v26 = vld [vmem:[%s1523_s5 + $0xe4] sm:$0xf0] }
  0x7c   : > { %801 = vmatmul.bf16.gmra.mxu1 %v1142_v28  ;;  %v1190_v33 = vor.u32 %v1384_v25, %v1187_v26 }
  0x85   : > { %1346 = vmatmul.msk.bf16.gmra.mxu2 %vm630_vm0, %v1170_v31 }
  0x8b   : > { %717 = vmatmul.bf16.gmra.mxu0 %v1150_v38  ;;  %846 = vmatmul.bf16.gmra.mxu3 %v1250_v39  ;;  %v1217_v39 = vld [vmem:[%s1523_s5 + $0x110] sm:$0xf] }
  0x8c   : > { %806 = vmatmul.bf16.gmra.mxu1 %v1154_v40  ;;  %v1392_v40 = vld [vmem:[%s1523_s5 + $0x118] sm:$0xf0] }
  0x8d   : > { %v1218_v46 = vor.u32 %v1392_v40, %v1217_v39 }
  0x95   : > { %1347 = vmatmul.msk.bf16.gmra.mxu2 %vm630_vm0, %v1182_v43 }
  0x98   : > { %v866_v52 = vpop.f32.mrf.mxu2 }
  0x9b   : > { %722 = vmatmul.bf16.gmra.mxu0 %v1162_v50  ;;  %851 = vmatmul.bf16.gmra.mxu3 %v1262_v51  ;;  %v1387_v51 = vld [vmem:[%s1523_s5 + $0xf4] sm:$0xf] }
  0x9c   : > { %811 = vmatmul.bf16.gmra.mxu1 %v1166_v53 }
  0xa0   : > { %v868_v56 = vpop.f32.mrf.mxu2 }
  0xa5   : > { %1348 = vmatmul.msk.bf16.gmra.mxu2 %vm630_vm0, %v1194_v57 }
  0xa8   : > { %v871_v3 = vpop.f32.mrf.mxu2  ;;  %v688_v4 = vpop.f32.mrf.mxu0 }
  0xa9   : > { %v689_v6 = vadd.f32 %v1646_v62, %v688_v4  ;;  %v777_v7 = vpop.f32.mrf.mxu1 }
  0xab   : > { %v778_v8 = vadd.f32 %v777_v7, %v689_v6  ;;  %727 = vmatmul.bf16.gmra.mxu0 %v1174_v1  ;;  %1353 = vmatmul.msk.bf16.vlgmr.msra.gmra.mxu3 %vm630_vm0, %v1254_v2  ;;  %v1229_v1 = vld [vmem:[%s1523_s5 + $0x128] sm:$0xf]  ;;  %v1395_v2 = vld [vmem:[%s1523_s5 + $0x130] sm:$0xf0] }
  0xac   : > { %816 = vmatmul.bf16.gmra.mxu1 %v1178_v5 }
  0xad   : > { %v867_v9 = vadd.f32 %v866_v52, %v778_v8  ;;  %v1199_v52 = vld [vmem:[%s1523_s5 + $0xfc] sm:$0xf0]  ;;  %v1230_v8 = vor.u32 %v1395_v2, %v1229_v1 }
  0xae   : > { %v1658_v10 = vpop.f32.mrf.mxu3  ;;  %v1202_v58 = vor.u32 %v1387_v51, %v1199_v52 }
  0xaf   : > { %v946_v13 = vmax.f32 %v867_v9, 0.0 }
  0xb0   : > { %v873_v14 = vpop.f32.mrf.mxu2  ;;  %v690_v15 = vpop.f32.mrf.mxu0 }
  0xb1   : > { %978 = vst.msk [vmem:[%s1656_s9] sm:$0xff] %vm630_vm0, %v946_v13  ;;  %v691_v16 = vadd.f32 %v1646_v62, %v690_v15  ;;  %v779_v17 = vpop.f32.mrf.mxu1  ;;  %v1211_v15 = vld [vmem:[%s1523_s5 + $0x114] sm:$0xf0] }
  0xb3   : > { %v780_v19 = vadd.f32 %v779_v17, %v691_v16 }
  0xb5   : > { %v869_v24 = vadd.f32 %v868_v56, %v780_v19  ;;  %1349 = vmatmul.msk.bf16.gmra.mxu2 %vm630_vm0, %v1206_v18  ;;  %v1210_v18 = vor.u32 %v1391_v12, %v1209_v11 }
  0xb6   : > { %v1672_v27 = vpop.f32.mrf.mxu3 }
  0xb7   : > { %v947_v28 = vmax.f32 %v869_v24, 0.0 }
  0xb8   : > { %v876_v31 = vpop.f32.mrf.mxu2  ;;  %v693_v32 = vpop.f32.mrf.mxu0 }
  0xb9   : > { %979 = vst.msk [vmem:[%s1656_s9 + $0x8] sm:$0xff] %vm630_vm0, %v947_v28  ;;  %v694_v34 = vadd.f32 %v1646_v62, %v693_v32  ;;  %v782_v35 = vpop.f32.mrf.mxu1  ;;  %v1241_v28 = vld [vmem:[%s1523_s5 + $0x140] sm:$0xf] }
  0xbb   : > { %v783_v36 = vadd.f32 %v782_v35, %v694_v34  ;;  %732 = vmatmul.bf16.gmra.mxu0 %v1186_v29  ;;  %1354 = vmatmul.msk.bf16.gmra.mxu3 %vm630_vm0, %v1266_v30  ;;  %v1398_v29 = vld [vmem:[%s1523_s5 + $0x148] sm:$0xf0] }
  0xbc   : > { %821 = vmatmul.bf16.gmra.mxu1 %v1190_v33  ;;  %v1242_v35 = vor.u32 %v1398_v29, %v1241_v28 }
  0xbd   : > { %v872_v37 = vadd.f32 %v871_v3, %v783_v36 }
  0xbe   : > { %v1678_v38 = vpop.f32.mrf.mxu3 }
  0xbf   : > { %v948_v41 = vmax.f32 %v872_v37, 0.0 }
  0xc0   : > { %v878_v42 = vpop.f32.mrf.mxu2  ;;  %v695_v43 = vpop.f32.mrf.mxu0 }
  0xc1   : > { %980 = vst.msk [vmem:[%s1656_s9 + $0x10] sm:$0xff] %vm630_vm0, %v948_v41  ;;  %v696_v44 = vadd.f32 %v1646_v62, %v695_v43  ;;  %v784_v45 = vpop.f32.mrf.mxu1 }
  0xc3   : > { %v785_v47 = vadd.f32 %v784_v45, %v696_v44 }
  0xc5   : > { %v874_v50 = vadd.f32 %v873_v14, %v785_v47  ;;  %1350 = vmatmul.msk.bf16.gmra.mxu2 %vm630_vm0, %v1218_v46  ;;  %v1390_v14 = vld [vmem:[%s1523_s5 + $0x10c] sm:$0xf]  ;;  %v749_v46 = vadd.f32 %v1646_v62, %v1658_v10 }
  0xc6   : > { %v1690_v53 = vpop.f32.mrf.mxu3  ;;  %v1214_v21 = vor.u32 %v1390_v14, %v1211_v15 }
  0xc7   : > { %v949_v54 = vmax.f32 %v874_v50, 0.0  ;;  %v756_v14 = vadd.f32 %v1646_v62, %v1690_v53 }
  0xc8   : > { %v881_v56 = vpop.f32.mrf.mxu2  ;;  %v698_v57 = vpop.f32.mrf.mxu0 }
  0xc9   : > { %981 = vst.msk [vmem:[%s1656_s9 + $0x18] sm:$0xff] %vm630_vm0, %v949_v54  ;;  %v699_v59 = vadd.f32 %v1646_v62, %v698_v57  ;;  %v787_v60 = vpop.f32.mrf.mxu1  ;;  %v751_v57 = vadd.f32 %v1646_v62, %v1672_v27 }
  0xcb   : > { %v788_v61 = vadd.f32 %v787_v60, %v699_v59  ;;  %737 = vmatmul.bf16.gmra.mxu0 %v1198_v55 }
  0xcc   : > { %826 = vmatmul.bf16.gmra.mxu1 %v1202_v58 }
  0xcd   : > { %v877_v63 = vadd.f32 %v876_v31, %v788_v61 }
  0xce   : > { %v1695_v0 = vpop.f32.mrf.mxu3 }
  0xcf   : > { %v950_v3 = vmax.f32 %v877_v63, 0.0 }
  0xd0   : > { %v883_v4 = vpop.f32.mrf.mxu2  ;;  %v700_v5 = vpop.f32.mrf.mxu0 }
  0xd1   : > { %982 = vst.msk [vmem:[%s1656_s9 + $0x20] sm:$0xff] %vm630_vm0, %v950_v3  ;;  %v701_v6 = vadd.f32 %v1646_v62, %v700_v5  ;;  %v789_v7 = vpop.f32.mrf.mxu1 }
  0xd3   : > { %v790_v9 = vadd.f32 %v789_v7, %v701_v6 }
  0xd5   : > { %v879_v13 = vadd.f32 %v878_v42, %v790_v9  ;;  %1351 = vmatmul.msk.bf16.gmra.mxu2 %vm630_vm0, %v1230_v8 }
  0xd6   : > { %v1707_v16 = vpop.f32.mrf.mxu3 }
  0xd7   : > { %v951_v17 = vmax.f32 %v879_v13, 0.0 }
  0xd8   : > { %v886_v19 = vpop.f32.mrf.mxu2  ;;  %v703_v20 = vpop.f32.mrf.mxu0 }
  0xd9   : > { %983 = vst.msk [vmem:[%s1656_s9 + $0x28] sm:$0xff] %vm630_vm0, %v951_v17  ;;  %v704_v22 = vadd.f32 %v1646_v62, %v703_v20  ;;  %v792_v23 = vpop.f32.mrf.mxu1 }
  0xdb   : > { %v793_v24 = vadd.f32 %v792_v23, %v704_v22  ;;  %742 = vmatmul.bf16.gmra.mxu0 %v1210_v18 }
  0xdc   : > { %831 = vmatmul.bf16.gmra.mxu1 %v1214_v21 }
  0xdd   : > { %v882_v25 = vadd.f32 %v881_v56, %v793_v24 }
  0xde   : > { %v1712_v26 = vpop.f32.mrf.mxu3 }
  0xdf   : > { %v952_v30 = vmax.f32 %v882_v25, 0.0 }
  0xe0   : > { %v888_v31 = vpop.f32.mrf.mxu2  ;;  %v705_v32 = vpop.f32.mrf.mxu0 }
  0xe1   : > { %984 = vst.msk [vmem:[%s1656_s9 + $0x30] sm:$0xff] %vm630_vm0, %v952_v30  ;;  %v706_v33 = vadd.f32 %v1646_v62, %v705_v32  ;;  %v794_v34 = vpop.f32.mrf.mxu1 }
  0xe3   : > { %v795_v36 = vadd.f32 %v794_v34, %v706_v33 }
  0xe5   : > { %v884_v37 = vadd.f32 %v883_v4, %v795_v36  ;;  %1352 = vmatmul.msk.bf16.gmra.mxu2 %vm630_vm0, %v1242_v35  ;;  %v754_v4 = vadd.f32 %v1646_v62, %v1678_v38 }
  0xe6   : > { %v1720_v39 = vpop.f32.mrf.mxu3 }
  0xe7   : > { %v953_v40 = vmax.f32 %v884_v37, 0.0 }
  0xe8   : > { %v891_v41 = vpop.f32.mrf.mxu2  ;;  %v708_v42 = vpop.f32.mrf.mxu0 }
  0xe9   : > { %985 = vst.msk [vmem:[%s1656_s9 + $0x38] sm:$0xff] %vm630_vm0, %v953_v40  ;;  %v709_v43 = vadd.f32 %v1646_v62, %v708_v42  ;;  %v797_v44 = vpop.f32.mrf.mxu1 }
  0xeb   : > { %v798_v45 = vadd.f32 %v797_v44, %v709_v43 }
  0xed   : > { %v887_v47 = vadd.f32 %v886_v19, %v798_v45 }
  0xee   : > { %v837_v48 = vpop.f32.mrf.mxu3 }
  0xef   : > { %v954_v49 = vmax.f32 %v887_v47, 0.0  ;;  %v1727_v50 = vadd.f32 %v837_v48, %v749_v46 }
  0xf0   : > { %v893_v51 = vpop.f32.mrf.mxu2  ;;  %v710_v52 = vpop.f32.mrf.mxu0 }
  0xf1   : > { %986 = vst.msk [vmem:[%s1656_s9 + $0x40] sm:$0xff] %vm630_vm0, %v954_v49  ;;  %v711_v54 = vadd.f32 %v1646_v62, %v710_v52  ;;  %v799_v55 = vpop.f32.mrf.mxu1 }
  0xf3   : > { %v800_v56 = vadd.f32 %v799_v55, %v711_v54 }
  0xf5   : > { %v889_v58 = vadd.f32 %v888_v31, %v800_v56 }
  0xf6   : > { %v839_v59 = vpop.f32.mrf.mxu3 }
  0xf7   : > { %v955_v10 = vmax.f32 %v889_v58, 0.0  ;;  %v1734_v60 = vadd.f32 %v839_v59, %v751_v57 }
  0xf8   : > { %v896_v61 = vpop.f32.mrf.mxu2  ;;  %v713_v63 = vpop.f32.mrf.mxu0 }
  0xf9   : > { %987 = vst.msk [vmem:[%s1656_s9 + $0x48] sm:$0xff] %vm630_vm0, %v955_v10  ;;  %v714_v1 = vadd.f32 %v1646_v62, %v713_v63  ;;  %v802_v2 = vpop.f32.mrf.mxu1  ;;  %v759_v10 = vadd.f32 %v1646_v62, %v1695_v0 }
  0xfb   : > { %v803_v3 = vadd.f32 %v802_v2, %v714_v1 }
  0xfd   : > { %v892_v5 = vadd.f32 %v891_v41, %v803_v3 }
  0xfe   : > { %v842_v6 = vpop.f32.mrf.mxu3 }
  0xff   : > { %v956_v27 = vmax.f32 %v892_v5, 0.0  ;;  %v1741_v7 = vadd.f32 %v842_v6, %v754_v4 }
 0x100   : > { %v898_v8 = vpop.f32.mrf.mxu2  ;;  %v715_v9 = vpop.f32.mrf.mxu0 }
 0x101   : > { %988 = vst.msk [vmem:[%s1656_s9 + $0x50] sm:$0xff] %vm630_vm0, %v956_v27  ;;  %v716_v11 = vadd.f32 %v1646_v62, %v715_v9  ;;  %v804_v12 = vpop.f32.mrf.mxu1 }
 0x103   : > { %v805_v13 = vadd.f32 %v804_v12, %v716_v11  ;;  %v761_v11 = vadd.f32 %v1646_v62, %v1707_v16  ;;  %v764_v16 = vadd.f32 %v1646_v62, %v1712_v26  ;;  %v766_v26 = vadd.f32 %v1646_v62, %v1720_v39 }
 0x105   : > { %v894_v15 = vadd.f32 %v893_v51, %v805_v13 }
 0x106   : > { %v844_v38 = vpop.f32.mrf.mxu3 }
 0x107   : > { %v957_v17 = vmax.f32 %v894_v15, 0.0  ;;  %v1748_v18 = vadd.f32 %v844_v38, %v756_v14 }
 0x108   : > { %v901_v19 = vpop.f32.mrf.mxu2  ;;  %v718_v20 = vpop.f32.mrf.mxu0 }
 0x109   : > { %989 = vst.msk [vmem:[%s1656_s9 + $0x58] sm:$0xff] %vm630_vm0, %v957_v17  ;;  %v719_v21 = vadd.f32 %v1646_v62, %v718_v20  ;;  %v807_v22 = vpop.f32.mrf.mxu1 }
 0x10b   : > { %v808_v23 = vadd.f32 %v807_v22, %v719_v21 }
 0x10d   : > { %v897_v24 = vadd.f32 %v896_v61, %v808_v23 }
 0x10e   : > { %v847_v25 = vpop.f32.mrf.mxu3 }
 0x10f   : > { %v958_v28 = vmax.f32 %v897_v24, 0.0  ;;  %v848_v63 = vadd.f32 %v847_v25, %v759_v10 }
 0x110   : > { %v903_v29 = vpop.f32.mrf.mxu2  ;;  %v720_v53 = vpop.f32.mrf.mxu0 }
 0x111   : > { %990 = vst.msk [vmem:[%s1656_s9 + $0x60] sm:$0xff] %vm630_vm0, %v958_v28  ;;  %v721_v30 = vadd.f32 %v1646_v62, %v720_v53  ;;  %v809_v31 = vpop.f32.mrf.mxu1 }
 0x113   : > { %v810_v32 = vadd.f32 %v809_v31, %v721_v30 }
 0x115   : > { %v899_v33 = vadd.f32 %v898_v8, %v810_v32 }
 0x116   : > { %v849_v34 = vpop.f32.mrf.mxu3 }
 0x117   : > { %v959_v35 = vmax.f32 %v899_v33, 0.0  ;;  %v850_v12 = vadd.f32 %v849_v34, %v761_v11 }
 0x118   : > { %v906_v36 = vpop.f32.mrf.mxu2  ;;  %v723_v37 = vpop.f32.mrf.mxu0 }
 0x119   : > { %991 = vst.msk [vmem:[%s1656_s9 + $0x68] sm:$0xff] %vm630_vm0, %v959_v35  ;;  %v724_v40 = vadd.f32 %v1646_v62, %v723_v37  ;;  %v812_v41 = vpop.f32.mrf.mxu1 }
 0x11b   : > { %v813_v42 = vadd.f32 %v812_v41, %v724_v40 }
 0x11d   : > { %v902_v43 = vadd.f32 %v901_v19, %v813_v42 }
 0x11e   : > { %v852_v44 = vpop.f32.mrf.mxu3 }
 0x11f   : > { %v960_v45 = vmax.f32 %v902_v43, 0.0  ;;  %v853_v24 = vadd.f32 %v852_v44, %v764_v16 }
 0x120   : > { %v908_v46 = vpop.f32.mrf.mxu2  ;;  %v725_v47 = vpop.f32.mrf.mxu0 }
 0x121   : > { %992 = vst.msk [vmem:[%s1656_s9 + $0x70] sm:$0xff] %vm630_vm0, %v960_v45  ;;  %v726_v48 = vadd.f32 %v1646_v62, %v725_v47  ;;  %v814_v49 = vpop.f32.mrf.mxu1 }
 0x123   : > { %v815_v51 = vadd.f32 %v814_v49, %v726_v48 }
 0x125   : > { %v904_v52 = vadd.f32 %v903_v29, %v815_v51 }
 0x126   : > { %v854_v54 = vpop.f32.mrf.mxu3 }
 0x127   : > { %v961_v55 = vmax.f32 %v904_v52, 0.0 }
 0x128   : > { %v911_v56 = vpop.f32.mrf.mxu2  ;;  %v728_v57 = vpop.f32.mrf.mxu0 }
 0x129   : > { %993 = vst.msk [vmem:[%s1656_s9 + $0x78] sm:$0xff] %vm630_vm0, %v961_v55  ;;  %v729_v58 = vadd.f32 %v1646_v62, %v728_v57  ;;  %v817_v59 = vpop.f32.mrf.mxu1 }
 0x12b   : > { %v818_v61 = vadd.f32 %v817_v59, %v729_v58 }
 0x12d   : > { %v907_v1 = vadd.f32 %v906_v36, %v818_v61  ;;  %v855_v36 = vadd.f32 %v854_v54, %v766_v26 }
 0x12e   : > { %v936_v2 = vpop.f32.mrf.mxu3 }
 0x12f   : > { %v962_v3 = vmax.f32 %v907_v1, 0.0  ;;  %v937_v4 = vadd.f32 %v936_v2, %v848_v63 }
 0x130   : > { %v913_v5 = vpop.f32.mrf.mxu2  ;;  %v730_v6 = vpop.f32.mrf.mxu0 }
 0x131   : > { %994 = vst.msk [vmem:[%s1656_s9 + $0x80] sm:$0xff] %vm630_vm0, %v962_v3  ;;  %v974_v27 = vmax.f32 %v937_v4, 0.0  ;;  %v731_v8 = vadd.f32 %v1646_v62, %v730_v6  ;;  %v819_v9 = vpop.f32.mrf.mxu1 }
 0x133   : > { %1006 = vst.msk [vmem:[%s1656_s9 + $0xe0] sm:$0xff] %vm630_vm0, %v974_v27  ;;  %v820_v0 = vadd.f32 %v819_v9, %v731_v8 }
 0x135   : > { %v909_v13 = vadd.f32 %v908_v46, %v820_v0 }
 0x136   : > { %v938_v14 = vpop.f32.mrf.mxu3 }
 0x137   : > { %v963_v15 = vmax.f32 %v909_v13, 0.0  ;;  %v939_v38 = vadd.f32 %v938_v14, %v850_v12 }
 0x138   : > { %v916_v17 = vpop.f32.mrf.mxu2  ;;  %v733_v19 = vpop.f32.mrf.mxu0 }
 0x139   : > { %995 = vst.msk [vmem:[%s1656_s9 + $0x88] sm:$0xff] %vm630_vm0, %v963_v15  ;;  %v975_v20 = vmax.f32 %v939_v38, 0.0  ;;  %v734_v21 = vadd.f32 %v1646_v62, %v733_v19  ;;  %v822_v22 = vpop.f32.mrf.mxu1 }
 0x13b   : > { %1007 = vst.msk [vmem:[%s1656_s9 + $0xe8] sm:$0xff] %vm630_vm0, %v975_v20  ;;  %v823_v23 = vadd.f32 %v822_v22, %v734_v21 }
 0x13d   : > { %v912_v25 = vadd.f32 %v911_v56, %v823_v23 }
 0x13e   : > { %v941_v28 = vpop.f32.mrf.mxu3 }
 0x13f   : > { %v964_v29 = vmax.f32 %v912_v25, 0.0  ;;  %v942_v53 = vadd.f32 %v941_v28, %v853_v24 }
 0x140   : > { %v918_v30 = vpop.f32.mrf.mxu2  ;;  %v735_v31 = vpop.f32.mrf.mxu0 }
 0x141   : > { %996 = vst.msk [vmem:[%s1656_s9 + $0x90] sm:$0xff] %vm630_vm0, %v964_v29  ;;  %v976_v32 = vmax.f32 %v942_v53, 0.0  ;;  %v736_v33 = vadd.f32 %v1646_v62, %v735_v31  ;;  %v824_v34 = vpop.f32.mrf.mxu1 }
 0x143   : > { %1008 = vst.msk [vmem:[%s1656_s9 + $0xf0] sm:$0xff] %vm630_vm0, %v976_v32  ;;  %v825_v35 = vadd.f32 %v824_v34, %v736_v33 }
 0x145   : > { %v914_v37 = vadd.f32 %v913_v5, %v825_v35 }
 0x146   : > { %v943_v40 = vpop.f32.mrf.mxu3 }
 0x147   : > { %v965_v41 = vmax.f32 %v914_v37, 0.0  ;;  %v944_v42 = vadd.f32 %v943_v40, %v855_v36 }
 0x148   : > { %v921_v43 = vpop.f32.mrf.mxu2  ;;  %v738_v44 = vpop.f32.mrf.mxu0 }
 0x149   : > { %997 = vst.msk [vmem:[%s1656_s9 + $0x98] sm:$0xff] %vm630_vm0, %v965_v41  ;;  %v977_v45 = vmax.f32 %v944_v42, 0.0  ;;  %v739_v46 = vadd.f32 %v1646_v62, %v738_v44  ;;  %v827_v47 = vpop.f32.mrf.mxu1 }
 0x14b   : > { %1009 = vst.msk [vmem:[%s1656_s9 + $0xf8] sm:$0xff] %vm630_vm0, %v977_v45  ;;  %v828_v39 = vadd.f32 %v827_v47, %v739_v46 }
 0x14d   : > { %v917_v48 = vadd.f32 %v916_v17, %v828_v39 }
 0x14f   : > { %v966_v49 = vmax.f32 %v917_v48, 0.0 }
 0x150   : > { %v923_v51 = vpop.f32.mrf.mxu2  ;;  %v740_v52 = vpop.f32.mrf.mxu0 }
 0x151   : > { %998 = vst.msk [vmem:[%s1656_s9 + $0xa0] sm:$0xff] %vm630_vm0, %v966_v49  ;;  %v741_v54 = vadd.f32 %v1646_v62, %v740_v52  ;;  %v829_v55 = vpop.f32.mrf.mxu1 }
 0x153   : > { %v830_v56 = vadd.f32 %v829_v55, %v741_v54 }
 0x155   : > { %v919_v57 = vadd.f32 %v918_v30, %v830_v56 }
 0x157   : > { %v967_v58 = vmax.f32 %v919_v57, 0.0 }
 0x158   : > { %v926_v59 = vpop.f32.mrf.mxu2  ;;  %v743_v10 = vpop.f32.mrf.mxu0 }
 0x159   : > { %999 = vst.msk [vmem:[%s1656_s9 + $0xa8] sm:$0xff] %vm630_vm0, %v967_v58  ;;  %v927_v61 = vadd.f32 %v926_v59, %v1727_v50  ;;  %v744_v63 = vadd.f32 %v1646_v62, %v743_v10  ;;  %v832_v1 = vpop.f32.mrf.mxu1 }
 0x15b   : > { %v970_v2 = vmax.f32 %v927_v61, 0.0  ;;  %v833_v3 = vadd.f32 %v832_v1, %v744_v63 }
 0x15d   : > { %1002 = vst.msk [vmem:[%s1656_s9 + $0xc0] sm:$0xff] %vm630_vm0, %v970_v2  ;;  %v922_v4 = vadd.f32 %v921_v43, %v833_v3 }
 0x15f   : > { %v968_v5 = vmax.f32 %v922_v4, 0.0 }
 0x160   : > { %v928_v6 = vpop.f32.mrf.mxu2  ;;  %v745_v27 = vpop.f32.mrf.mxu0 }
 0x161   : > { %1000 = vst.msk [vmem:[%s1656_s9 + $0xb0] sm:$0xff] %vm630_vm0, %v968_v5  ;;  %v929_v8 = vadd.f32 %v928_v6, %v1734_v60  ;;  %v746_v50 = vadd.f32 %v1646_v62, %v745_v27  ;;  %v834_v9 = vpop.f32.mrf.mxu1 }
 0x163   : > { %v971_v11 = vmax.f32 %v929_v8, 0.0  ;;  %v835_v0 = vadd.f32 %v834_v9, %v746_v50 }
 0x165   : > { %1003 = vst.msk [vmem:[%s1656_s9 + $0xc8] sm:$0xff] %vm630_vm0, %v971_v11  ;;  %v924_v12 = vadd.f32 %v923_v51, %v835_v0 }
 0x167   : > { %v969_v13 = vmax.f32 %v924_v12, 0.0 }
 0x168   : > { %v931_v14 = vpop.f32.mrf.mxu2 }
 0x169   : > { %1001 = vst.msk [vmem:[%s1656_s9 + $0xb8] sm:$0xff] %vm630_vm0, %v969_v13  ;;  %v932_v15 = vadd.f32 %v931_v14, %v1741_v7 }
 0x16b   : > { %v972_v38 = vmax.f32 %v932_v15, 0.0 }
 0x16d   : > { %1004 = vst.msk [vmem:[%s1656_s9 + $0xd0] sm:$0xff] %vm630_vm0, %v972_v38 }
 0x170   : > { %v933_v17 = vpop.f32.mrf.mxu2 }
 0x171   : > { %v934_v60 = vadd.f32 %v933_v17, %v1748_v18 }
 0x173   : > { %v973_v19 = vmax.f32 %v934_v60, 0.0 }
 0x175   : > { %1005 = vst.msk [vmem:[%s1656_s9 + $0xd8] sm:$0xff] %vm630_vm0, %v973_v19 }
 0x176 PF: > { %s13_s12 = sadd.s32 1, %s1457_s12  }
 0x177   : > { %p10_p4 = scmp.ge.s32.totalorder %s13_s12, 5  }
 0x179   :  { %12 = sbr.rel (!%p10_p4) target bundleno = 1 (0x1), region = 62 }

// kernel: stem_forward.14
= control target key start
LH: loop header
LB: loop body
LE: loop exit
PB: predicated region body
PF: predicated region fallthrough
CT: control target
= control target key end

     0   :  { %s1480_s12 = smov 0   ;;  %s1820_s0 = inlined_call_operand.vmem [shape: bf16[768,288], index: 0, kind: input, shape index: {}]   ;;  %s1821_s1 = inlined_call_operand.vmem [shape: bf16[288,64], index: 1, kind: input, shape index: {}]   ;;  %s1822_s2 = inlined_call_operand.vmem [shape: f32[1,64], index: 2, kind: input, shape index: {}]   ;;  %s1823_s3 = inlined_call_operand.vmem [shape: f32[768,64], index: 3, kind: output, shape index: {}]  }
   0x1 LB: > { %s1067_s13 = sadd.s32 4294967295, %s1458_s12   ;;  %p1071_p0 = scmp.ge.s32.totalorder %s1458_s12, 1  ;;  %s1458_s12 = sphi %s1480_s12, %s13_s12  }
   0x2   : > { %p139_p1 = scmp.lt.s32.totalorder %s1458_s12, 4 }
   0x4   : > { %p140_p2 = pnand %p1071_p0, %p139_p1 }
   0x5   : > { %s1072_s20 = sshll.u32 (!%p140_p2), %s1067_s13, 5 }
   0x6   : > { %143 = sbr.rel (%p140_p2) target bundleno = 374 (0x176), region = 32  ;;  %p165_p3 = scmp.lt.s32.totalorder (!%p140_p2), %s1072_s20, 95 }
   0xb   : > { %v1413_v0 = vld [vmem:[%s1821_s1 + $0x38] sm:$0xff]  ;;  %v1494_v1 = vld [vmem:[%s1821_s1 + $0x88] sm:$0xff]  ;;  %v1412_v3 = vld [vmem:[%s1821_s1 + $0x30] sm:$0xff]  ;;  %s1825_s20 = smov (!%p165_p3, %s1072_s20), 95  ;;  %vm630_vm0 = vcmask 261120   ;;  %vm978_vm1 = vcmask 523264  }
   0xc   : > { %v1499_v2 = vld [vmem:[%s1821_s1 + $0x78] sm:$0xff]  ;;  %679 = vmatpush.bf16.msra.mxu0 %v1413_v0  ;;  %1424 = vmatpush.bf16.msra.mxu3 %v1413_v0  ;;  %v1509_v4 = vld [vmem:[%s1821_s1 + $0x80] sm:$0xff]  ;;  %v1420_v5 = vld [vmem:[%s1821_s1 + $0x70] sm:$0xff]  ;;  %s1442_s27 = smul.u32 12, %s1825_s20  ;;  %s1075_s6 = sshll.u32 %s1825_s20, 3 }
   0xd   : > { %863 = vmatpush.bf16.msra.mxu2 %v1494_v1  ;;  %768 = vmatpush.bf16.msra.mxu1 %v1499_v2  ;;  %v1411_v6 = vld [vmem:[%s1821_s1 + $0x28] sm:$0xff]  ;;  %v1410_v11 = vld [vmem:[%s1821_s1 + $0x20] sm:$0xff]  ;;  %v1409_v13 = vld [vmem:[%s1821_s1 + $0x18] sm:$0xff]  ;;  %s1657_s9 = scalar_lea.vmem %s1823_s3, %s1075_s6 }
   0xe   : > { %s1524_s5 = scalar_lea.vmem %s1820_s0, %s1442_s27  ;;  %v1419_v7 = vld [vmem:[%s1821_s1 + $0x68] sm:$0xff]  ;;  %v1418_v12 = vld [vmem:[%s1821_s1 + $0x60] sm:$0xff]  ;;  %v1417_v14 = vld [vmem:[%s1821_s1 + $0x58] sm:$0xff] }
   0xf   : > { %v1086_v8 = vld [vmem:[%s1524_s5 + $0x8] sm:$0xf]  ;;  %v1360_v9 = vld [vmem:[%s1524_s5 + $0x10] sm:$0xf0]  ;;  %v1098_v17 = vld [vmem:[%s1524_s5 + $0x20] sm:$0xf] }
  0x10   : > { %680 = vmatpush.bf16.msra.mxu0 %v1412_v3  ;;  %1425 = vmatpush.bf16.msra.mxu3 %v1412_v3  ;;  %v1087_v10 = vor.u32 %v1360_v9, %v1086_v8  ;;  %v1408_v15 = vld [vmem:[%s1821_s1 + $0x10] sm:$0xff]  ;;  %v1363_v18 = vld [vmem:[%s1524_s5 + $0x28] sm:$0xf0]  ;;  %v1406_v22 = vld [vmem:[%s1821_s1] sm:$0xff] }
  0x11   : > { %864 = vmatpush.bf16.msra.mxu2 %v1509_v4  ;;  %769 = vmatpush.bf16.msra.mxu1 %v1420_v5  ;;  %v1416_v16 = vld [vmem:[%s1821_s1 + $0x50] sm:$0xff]  ;;  %v1407_v19 = vld [vmem:[%s1821_s1 + $0x8] sm:$0xff]  ;;  %v1099_v20 = vor.u32 %v1363_v18, %v1098_v17  ;;  %v1078_v23 = vld [vmem:[%s1524_s5] sm:$0xf] }
  0x12   : > { %v1415_v21 = vld [vmem:[%s1821_s1 + $0x48] sm:$0xff]  ;;  %v1222_v25 = vld [vmem:[%s1524_s5 + $0x120] sm:$0xf]  ;;  %v1358_v28 = vld [vmem:[%s1524_s5 + $0x4] sm:$0xf] }
  0x13   : > { %v1359_v24 = vld [vmem:[%s1524_s5 + $0x8] sm:$0xf0]  ;;  %v1414_v27 = vld [vmem:[%s1821_s1 + $0x40] sm:$0xff]  ;;  %v1080_v29 = vld [vmem:[%s1524_s5 + $0xc] sm:$0xf0] }
  0x14   : > { %681 = vmatpush.bf16.msra.mxu0 %v1411_v6  ;;  %1426 = vmatpush.bf16.msra.mxu3 %v1411_v6  ;;  %v1395_v26 = vld [vmem:[%s1524_s5 + $0x128] sm:$0xf0]  ;;  %v1079_v30 = vor.u32 %v1359_v24, %v1078_v23  ;;  %v1083_v32 = vor.u32 %v1358_v28, %v1080_v29  ;;  %v1110_v33 = vld [vmem:[%s1524_s5 + $0x38] sm:$0xf]  ;;  %v1366_v34 = vld [vmem:[%s1524_s5 + $0x40] sm:$0xf0] }
  0x15   : > { %1340 = vmatmul.msk.bf16.vlgmr.msra.gmra.mxu2 %vm630_vm0, %v1087_v10  ;;  %770 = vmatpush.bf16.msra.mxu1 %v1419_v7  ;;  %v1223_v31 = vor.u32 %v1395_v26, %v1222_v25  ;;  %v1111_v35 = vor.u32 %v1366_v34, %v1110_v33  ;;  %v1090_v36 = vld [vmem:[%s1524_s5 + $0x18] sm:$0xf]  ;;  %v1362_v37 = vld [vmem:[%s1524_s5 + $0x20] sm:$0xf0]  ;;  %v1361_v40 = vld [vmem:[%s1524_s5 + $0x1c] sm:$0xf] }
  0x16   : > { %v1234_v38 = vld [vmem:[%s1524_s5 + $0x138] sm:$0xf]  ;;  %v1398_v39 = vld [vmem:[%s1524_s5 + $0x140] sm:$0xf0]  ;;  %v1092_v41 = vld [vmem:[%s1524_s5 + $0x24] sm:$0xf0]  ;;  %v1091_v42 = vor.u32 %v1362_v37, %v1090_v36 }
  0x17   : > { %v1235_v43 = vor.u32 %v1398_v39, %v1234_v38  ;;  %v1095_v44 = vor.u32 %v1361_v40, %v1092_v41  ;;  %v1122_v45 = vld [vmem:[%s1524_s5 + $0x50] sm:$0xf]  ;;  %v1369_v46 = vld [vmem:[%s1524_s5 + $0x58] sm:$0xf0]  ;;  %v1364_v52 = vld [vmem:[%s1524_s5 + $0x34] sm:$0xf] }
  0x18   : > { %682 = vmatpush.bf16.msra.mxu0 %v1410_v11  ;;  %1427 = vmatpush.bf16.msra.mxu3 %v1410_v11  ;;  %v1123_v47 = vor.u32 %v1369_v46, %v1122_v45  ;;  %v1102_v48 = vld [vmem:[%s1524_s5 + $0x30] sm:$0xf]  ;;  %v1365_v49 = vld [vmem:[%s1524_s5 + $0x38] sm:$0xf0]  ;;  %v1104_v53 = vld [vmem:[%s1524_s5 + $0x3c] sm:$0xf0] }
  0x19   : > { %771 = vmatpush.bf16.msra.mxu1 %v1418_v12  ;;  %v1246_v50 = vld [vmem:[%s1524_s5 + $0x150] sm:$0xf]  ;;  %v1401_v51 = vld [vmem:[%s1524_s5 + $0x158] sm:$0xf0]  ;;  %v1103_v54 = vor.u32 %v1365_v49, %v1102_v48  ;;  %v1107_v56 = vor.u32 %v1364_v52, %v1104_v53  ;;  %v1134_v57 = vld [vmem:[%s1524_s5 + $0x68] sm:$0xf] }
  0x1a   : > { %v1247_v55 = vor.u32 %v1401_v51, %v1246_v50  ;;  %v1372_v58 = vld [vmem:[%s1524_s5 + $0x70] sm:$0xf0]  ;;  %v1114_v60 = vld [vmem:[%s1524_s5 + $0x48] sm:$0xf]  ;;  %v1367_v0 = vld [vmem:[%s1524_s5 + $0x4c] sm:$0xf] }
  0x1b   : > { %v1135_v59 = vor.u32 %v1372_v58, %v1134_v57  ;;  %v1368_v61 = vld [vmem:[%s1524_s5 + $0x50] sm:$0xf0]  ;;  %v1258_v62 = vld [vmem:[%s1524_s5 + $0x168] sm:$0xf]  ;;  %v1375_v6 = vld [vmem:[%s1524_s5 + $0x88] sm:$0xf0] }
  0x1c   : > { %683 = vmatpush.bf16.msra.mxu0 %v1409_v13  ;;  %1428 = vmatpush.bf16.msra.mxu3 %v1409_v13  ;;  %v1404_v63 = vld [vmem:[%s1524_s5 + $0x170] sm:$0xf0]  ;;  %v1126_v8 = vld [vmem:[%s1524_s5 + $0x60] sm:$0xf]  ;;  %v1371_v9 = vld [vmem:[%s1524_s5 + $0x68] sm:$0xf0] }
  0x1d   : > { %772 = vmatpush.bf16.msra.mxu1 %v1417_v14  ;;  %v1259_v3 = vor.u32 %v1404_v63, %v1258_v62  ;;  %v1394_v10 = vld [vmem:[%s1524_s5 + $0x124] sm:$0xf]  ;;  %v1224_v11 = vld [vmem:[%s1524_s5 + $0x12c] sm:$0xf0]  ;;  %v1158_v17 = vld [vmem:[%s1524_s5 + $0x98] sm:$0xf] }
  0x1e   : > { %v1128_v13 = vld [vmem:[%s1524_s5 + $0x6c] sm:$0xf0]  ;;  %v1378_v18 = vld [vmem:[%s1524_s5 + $0xa0] sm:$0xf0]  ;;  %v1236_v23 = vld [vmem:[%s1524_s5 + $0x144] sm:$0xf0] }
  0x1f   : > { %v1373_v24 = vld [vmem:[%s1524_s5 + $0x7c] sm:$0xf]  ;;  %v1140_v25 = vld [vmem:[%s1524_s5 + $0x84] sm:$0xf0]  ;;  %v1170_v29 = vld [vmem:[%s1524_s5 + $0xb0] sm:$0xf] }
  0x20   : > { %684 = vmatpush.bf16.msra.mxu0 %v1408_v15  ;;  %1429 = vmatpush.bf16.msra.mxu3 %v1408_v15  ;;  %v1227_v15 = vor.u32 %v1394_v10, %v1224_v11  ;;  %v1143_v28 = vor.u32 %v1373_v24, %v1140_v25  ;;  %v1377_v33 = vld [vmem:[%s1524_s5 + $0x98] sm:$0xf0]  ;;  %v1400_v34 = vld [vmem:[%s1524_s5 + $0x154] sm:$0xf]  ;;  %v1152_v37 = vld [vmem:[%s1524_s5 + $0x9c] sm:$0xf0] }
  0x21   : > { %773 = vmatpush.bf16.msra.mxu1 %v1416_v16  ;;  %v1376_v36 = vld [vmem:[%s1524_s5 + $0x94] sm:$0xf]  ;;  %v1182_v41 = vld [vmem:[%s1524_s5 + $0xc8] sm:$0xf]  ;;  %v1403_v46 = vld [vmem:[%s1524_s5 + $0x16c] sm:$0xf] }
  0x22   : > { %v1155_v40 = vor.u32 %v1376_v36, %v1152_v37  ;;  %v1380_v45 = vld [vmem:[%s1524_s5 + $0xb0] sm:$0xf0]  ;;  %v1379_v48 = vld [vmem:[%s1524_s5 + $0xac] sm:$0xf]  ;;  %v1164_v49 = vld [vmem:[%s1524_s5 + $0xb4] sm:$0xf0] }
  0x23   : > { %v1167_v53 = vor.u32 %v1379_v48, %v1164_v49  ;;  %v1174_v58 = vld [vmem:[%s1524_s5 + $0xc0] sm:$0xf]  ;;  %v1382_v63 = vld [vmem:[%s1524_s5 + $0xc4] sm:$0xf]  ;;  %v1206_v11 = vld [vmem:[%s1524_s5 + $0xf8] sm:$0xf] }
  0x24   : > { %685 = vmatpush.bf16.msra.mxu0 %v1407_v19  ;;  %1430 = vmatpush.bf16.msra.mxu3 %v1407_v19  ;;  %v1159_v19 = vor.u32 %v1378_v18, %v1158_v17  ;;  %v1647_v62 = vld [vmem:[%s1822_s2] ss:$0 sm:$0xff]  ;;  %v1385_v25 = vld [vmem:[%s1524_s5 + $0xdc] sm:$0xf]  ;;  %v1198_v48 = vld [vmem:[%s1524_s5 + $0xf0] sm:$0xf] }
  0x25   : > { %1341 = vmatmul.msk.bf16.gmra.mxu2 %vm630_vm0, %v1099_v20  ;;  %774 = vmatpush.bf16.msra.mxu1 %v1415_v21  ;;  %v1138_v20 = vld [vmem:[%s1524_s5 + $0x78] sm:$0xf]  ;;  %v1389_v49 = vld [vmem:[%s1524_s5 + $0xf8] sm:$0xf0] }
  0x28   : > { %686 = vmatpush.bf16.msra.mxu0 %v1406_v22  ;;  %1431 = vmatpush.bf16.msra.mxu3 %v1406_v22  ;;  %v1397_v22 = vld [vmem:[%s1524_s5 + $0x13c] sm:$0xf] }
  0x29   : > { %775 = vmatpush.bf16.msra.mxu1 %v1414_v27 }
  0x2b   : > { %687 = vmatmul.bf16.vlgmr.msra.gmra.mxu0 %v1079_v30  ;;  %747 = vmatmul.bf16.vlgmr.msra.gmra.mxu3 %v1223_v31  ;;  %v1381_v30 = vld [vmem:[%s1524_s5 + $0xb8] sm:$0xf0] }
  0x2c   : > { %1432 = vmatpush.bf16.msrb.mxu3 %v1499_v2  ;;  %776 = vmatmul.bf16.vlgmr.msra.gmra.mxu1 %v1083_v32  ;;  %v1115_v2 = vor.u32 %v1368_v61, %v1114_v60  ;;  %v1171_v31 = vor.u32 %v1381_v30, %v1170_v29  ;;  %v1150_v32 = vld [vmem:[%s1524_s5 + $0x90] sm:$0xf]  ;;  %v1254_v60 = vld [vmem:[%s1524_s5 + $0x158] sm:$0xf]  ;;  %v1402_v61 = vld [vmem:[%s1524_s5 + $0x160] sm:$0xf0] }
  0x2d   : > { %v1151_v38 = vor.u32 %v1377_v33, %v1150_v32 }
  0x30   : > { %1433 = vmatpush.bf16.msrb.mxu3 %v1420_v5  ;;  %v1146_v5 = vld [vmem:[%s1524_s5 + $0x80] sm:$0xf] }
  0x34   : > { %1434 = vmatpush.bf16.msrb.mxu3 %v1419_v7  ;;  %v1147_v7 = vor.u32 %v1375_v6, %v1146_v5 }
  0x35   : > { %1342 = vmatmul.msk.bf16.gmra.mxu2 %vm630_vm0, %v1111_v35  ;;  %v1248_v35 = vld [vmem:[%s1524_s5 + $0x15c] sm:$0xf0] }
  0x36   : > { %v1251_v39 = vor.u32 %v1400_v34, %v1248_v35 }
  0x38   : > { %1435 = vmatpush.bf16.msrb.mxu3 %v1418_v12  ;;  %v1370_v12 = vld [vmem:[%s1524_s5 + $0x64] sm:$0xf] }
  0x3b   : > { %692 = vmatmul.bf16.gmra.mxu0 %v1091_v42  ;;  %752 = vmatmul.bf16.gmra.mxu3 %v1235_v43  ;;  %v1384_v42 = vld [vmem:[%s1524_s5 + $0xd0] sm:$0xf0] }
  0x3c   : > { %1436 = vmatpush.bf16.msrb.mxu3 %v1417_v14  ;;  %781 = vmatmul.bf16.gmra.mxu1 %v1095_v44  ;;  %v1127_v14 = vor.u32 %v1371_v9, %v1126_v8  ;;  %v1183_v43 = vor.u32 %v1384_v42, %v1182_v41  ;;  %v1162_v44 = vld [vmem:[%s1524_s5 + $0xa8] sm:$0xf] }
  0x3d   : > { %v1163_v50 = vor.u32 %v1380_v45, %v1162_v44 }
  0x40   : > { %1437 = vmatpush.bf16.msrb.mxu3 %v1416_v16  ;;  %v1131_v16 = vor.u32 %v1370_v12, %v1128_v13  ;;  %v1390_v12 = vld [vmem:[%s1524_s5 + $0x100] sm:$0xf0] }
  0x41   : > { %v1207_v18 = vor.u32 %v1390_v12, %v1206_v11  ;;  %v1210_v11 = vld [vmem:[%s1524_s5 + $0x108] sm:$0xf]  ;;  %v1392_v12 = vld [vmem:[%s1524_s5 + $0x110] sm:$0xf0] }
  0x44   : > { %1438 = vmatpush.bf16.msrb.mxu3 %v1415_v21  ;;  %v1374_v21 = vld [vmem:[%s1524_s5 + $0x80] sm:$0xf0] }
  0x45   : > { %1343 = vmatmul.msk.bf16.gmra.mxu2 %vm630_vm0, %v1123_v47  ;;  %v1139_v26 = vor.u32 %v1374_v21, %v1138_v20  ;;  %v1260_v47 = vld [vmem:[%s1524_s5 + $0x174] sm:$0xf0]  ;;  %v1386_v21 = vld [vmem:[%s1524_s5 + $0xe0] sm:$0xf0] }
  0x46   : > { %v1263_v51 = vor.u32 %v1403_v46, %v1260_v47  ;;  %v1186_v20 = vld [vmem:[%s1524_s5 + $0xd8] sm:$0xf] }
  0x47   : > { %v1187_v29 = vor.u32 %v1386_v21, %v1186_v20 }
  0x48   : > { %1439 = vmatpush.bf16.msrb.mxu3 %v1414_v27  ;;  %v1239_v27 = vor.u32 %v1397_v22, %v1236_v23  ;;  %v1266_v22 = vld [vmem:[%s1524_s5 + $0x170] sm:$0xf]  ;;  %v1405_v23 = vld [vmem:[%s1524_s5 + $0x178] sm:$0xf0] }
  0x49   : > { %v1267_v30 = vor.u32 %v1405_v23, %v1266_v22 }
  0x4b   : > { %697 = vmatmul.bf16.gmra.mxu0 %v1103_v54  ;;  %757 = vmatmul.bf16.gmra.mxu3 %v1247_v55  ;;  %v1194_v54 = vld [vmem:[%s1524_s5 + $0xe0] sm:$0xf]  ;;  %v1387_v55 = vld [vmem:[%s1524_s5 + $0xe8] sm:$0xf0] }
  0x4c   : > { %1440 = vmatpush.bf16.msra.mxu3 %v1494_v1  ;;  %786 = vmatmul.bf16.gmra.mxu1 %v1107_v56  ;;  %v1116_v1 = vld [vmem:[%s1524_s5 + $0x54] sm:$0xf0]  ;;  %v1195_v57 = vor.u32 %v1387_v55, %v1194_v54  ;;  %v1199_v55 = vor.u32 %v1389_v49, %v1198_v48 }
  0x50   : > { %1441 = vmatpush.bf16.msra.mxu3 %v1509_v4  ;;  %v1119_v4 = vor.u32 %v1367_v0, %v1116_v1  ;;  %v1176_v0 = vld [vmem:[%s1524_s5 + $0xcc] sm:$0xf0] }
  0x51   : > { %v1179_v5 = vor.u32 %v1382_v63, %v1176_v0 }
  0x55   : > { %1344 = vmatmul.msk.bf16.gmra.mxu2 %vm630_vm0, %v1135_v59  ;;  %v1383_v59 = vld [vmem:[%s1524_s5 + $0xc8] sm:$0xf0] }
  0x56   : > { %v1175_v1 = vor.u32 %v1383_v59, %v1174_v58 }
  0x5b   : > { %702 = vmatmul.bf16.gmra.mxu0 %v1115_v2  ;;  %762 = vmatmul.bf16.gmra.mxu3 %v1259_v3  ;;  %v1255_v2 = vor.u32 %v1402_v61, %v1254_v60 }
  0x5c   : > { %791 = vmatmul.bf16.gmra.mxu1 %v1119_v4 }
  0x65   : > { %1345 = vmatmul.msk.bf16.gmra.mxu2 %vm630_vm0, %v1147_v7 }
  0x6b   : > { %707 = vmatmul.bf16.gmra.mxu0 %v1127_v14  ;;  %836 = vmatmul.bf16.vlgmr.msrb.gmra.mxu3 %v1227_v15 }
  0x6c   : > { %796 = vmatmul.bf16.gmra.mxu1 %v1131_v16 }
  0x75   : > { %1346 = vmatmul.msk.bf16.gmra.mxu2 %vm630_vm0, %v1159_v19 }
  0x7b   : > { %712 = vmatmul.bf16.gmra.mxu0 %v1139_v26  ;;  %841 = vmatmul.bf16.gmra.mxu3 %v1239_v27  ;;  %v1188_v26 = vld [vmem:[%s1524_s5 + $0xe4] sm:$0xf0] }
  0x7c   : > { %801 = vmatmul.bf16.gmra.mxu1 %v1143_v28  ;;  %v1191_v33 = vor.u32 %v1385_v25, %v1188_v26 }
  0x85   : > { %1347 = vmatmul.msk.bf16.gmra.mxu2 %vm630_vm0, %v1171_v31 }
  0x8b   : > { %717 = vmatmul.bf16.gmra.mxu0 %v1151_v38  ;;  %846 = vmatmul.bf16.gmra.mxu3 %v1251_v39  ;;  %v1218_v39 = vld [vmem:[%s1524_s5 + $0x110] sm:$0xf] }
  0x8c   : > { %806 = vmatmul.bf16.gmra.mxu1 %v1155_v40  ;;  %v1393_v40 = vld [vmem:[%s1524_s5 + $0x118] sm:$0xf0] }
  0x8d   : > { %v1219_v46 = vor.u32 %v1393_v40, %v1218_v39 }
  0x95   : > { %1348 = vmatmul.msk.bf16.gmra.mxu2 %vm630_vm0, %v1183_v43 }
  0x98   : > { %v866_v52 = vpop.f32.mrf.mxu2 }
  0x9b   : > { %722 = vmatmul.bf16.gmra.mxu0 %v1163_v50  ;;  %851 = vmatmul.bf16.gmra.mxu3 %v1263_v51  ;;  %v1388_v51 = vld [vmem:[%s1524_s5 + $0xf4] sm:$0xf] }
  0x9c   : > { %811 = vmatmul.bf16.gmra.mxu1 %v1167_v53 }
  0xa0   : > { %v868_v56 = vpop.f32.mrf.mxu2 }
  0xa5   : > { %1349 = vmatmul.msk.bf16.gmra.mxu2 %vm630_vm0, %v1195_v57 }
  0xa8   : > { %v871_v3 = vpop.f32.mrf.mxu2  ;;  %v688_v4 = vpop.f32.mrf.mxu0 }
  0xa9   : > { %v689_v6 = vadd.f32 %v1647_v62, %v688_v4  ;;  %v777_v7 = vpop.f32.mrf.mxu1 }
  0xab   : > { %v778_v8 = vadd.f32 %v777_v7, %v689_v6  ;;  %727 = vmatmul.bf16.gmra.mxu0 %v1175_v1  ;;  %1354 = vmatmul.msk.bf16.vlgmr.msra.gmra.mxu3 %vm630_vm0, %v1255_v2  ;;  %v1230_v1 = vld [vmem:[%s1524_s5 + $0x128] sm:$0xf]  ;;  %v1396_v2 = vld [vmem:[%s1524_s5 + $0x130] sm:$0xf0] }
  0xac   : > { %816 = vmatmul.bf16.gmra.mxu1 %v1179_v5 }
  0xad   : > { %v867_v9 = vadd.f32 %v866_v52, %v778_v8  ;;  %v1200_v52 = vld [vmem:[%s1524_s5 + $0xfc] sm:$0xf0]  ;;  %v1231_v8 = vor.u32 %v1396_v2, %v1230_v1 }
  0xae   : > { %v1659_v10 = vpop.f32.mrf.mxu3  ;;  %v1203_v58 = vor.u32 %v1388_v51, %v1200_v52 }
  0xaf   : > { %v946_v13 = vmax.f32 %v867_v9, 0.0 }
  0xb0   : > { %v873_v14 = vpop.f32.mrf.mxu2  ;;  %v690_v15 = vpop.f32.mrf.mxu0 }
  0xb1   : > { %979 = vst.msk [vmem:[%s1657_s9] sm:$0xff] %vm978_vm1, %v946_v13  ;;  %v691_v16 = vadd.f32 %v1647_v62, %v690_v15  ;;  %v779_v17 = vpop.f32.mrf.mxu1  ;;  %v1212_v15 = vld [vmem:[%s1524_s5 + $0x114] sm:$0xf0] }
  0xb3   : > { %v780_v19 = vadd.f32 %v779_v17, %v691_v16 }
  0xb5   : > { %v869_v24 = vadd.f32 %v868_v56, %v780_v19  ;;  %1350 = vmatmul.msk.bf16.gmra.mxu2 %vm630_vm0, %v1207_v18  ;;  %v1211_v18 = vor.u32 %v1392_v12, %v1210_v11 }
  0xb6   : > { %v1673_v27 = vpop.f32.mrf.mxu3 }
  0xb7   : > { %v947_v28 = vmax.f32 %v869_v24, 0.0 }
  0xb8   : > { %v876_v31 = vpop.f32.mrf.mxu2  ;;  %v693_v32 = vpop.f32.mrf.mxu0 }
  0xb9   : > { %980 = vst.msk [vmem:[%s1657_s9 + $0x8] sm:$0xff] %vm978_vm1, %v947_v28  ;;  %v694_v34 = vadd.f32 %v1647_v62, %v693_v32  ;;  %v782_v35 = vpop.f32.mrf.mxu1  ;;  %v1242_v28 = vld [vmem:[%s1524_s5 + $0x140] sm:$0xf] }
  0xbb   : > { %v783_v36 = vadd.f32 %v782_v35, %v694_v34  ;;  %732 = vmatmul.bf16.gmra.mxu0 %v1187_v29  ;;  %1355 = vmatmul.msk.bf16.gmra.mxu3 %vm630_vm0, %v1267_v30  ;;  %v1399_v29 = vld [vmem:[%s1524_s5 + $0x148] sm:$0xf0] }
  0xbc   : > { %821 = vmatmul.bf16.gmra.mxu1 %v1191_v33  ;;  %v1243_v35 = vor.u32 %v1399_v29, %v1242_v28 }
  0xbd   : > { %v872_v37 = vadd.f32 %v871_v3, %v783_v36 }
  0xbe   : > { %v1679_v38 = vpop.f32.mrf.mxu3 }
  0xbf   : > { %v948_v41 = vmax.f32 %v872_v37, 0.0 }
  0xc0   : > { %v878_v42 = vpop.f32.mrf.mxu2  ;;  %v695_v43 = vpop.f32.mrf.mxu0 }
  0xc1   : > { %981 = vst.msk [vmem:[%s1657_s9 + $0x10] sm:$0xff] %vm978_vm1, %v948_v41  ;;  %v696_v44 = vadd.f32 %v1647_v62, %v695_v43  ;;  %v784_v45 = vpop.f32.mrf.mxu1 }
  0xc3   : > { %v785_v47 = vadd.f32 %v784_v45, %v696_v44 }
  0xc5   : > { %v874_v50 = vadd.f32 %v873_v14, %v785_v47  ;;  %1351 = vmatmul.msk.bf16.gmra.mxu2 %vm630_vm0, %v1219_v46  ;;  %v1391_v14 = vld [vmem:[%s1524_s5 + $0x10c] sm:$0xf]  ;;  %v749_v46 = vadd.f32 %v1647_v62, %v1659_v10 }
  0xc6   : > { %v1691_v53 = vpop.f32.mrf.mxu3  ;;  %v1215_v21 = vor.u32 %v1391_v14, %v1212_v15 }
  0xc7   : > { %v949_v54 = vmax.f32 %v874_v50, 0.0  ;;  %v756_v14 = vadd.f32 %v1647_v62, %v1691_v53 }
  0xc8   : > { %v881_v56 = vpop.f32.mrf.mxu2  ;;  %v698_v57 = vpop.f32.mrf.mxu0 }
  0xc9   : > { %982 = vst.msk [vmem:[%s1657_s9 + $0x18] sm:$0xff] %vm978_vm1, %v949_v54  ;;  %v699_v59 = vadd.f32 %v1647_v62, %v698_v57  ;;  %v787_v60 = vpop.f32.mrf.mxu1  ;;  %v751_v57 = vadd.f32 %v1647_v62, %v1673_v27 }
  0xcb   : > { %v788_v61 = vadd.f32 %v787_v60, %v699_v59  ;;  %737 = vmatmul.bf16.gmra.mxu0 %v1199_v55 }
  0xcc   : > { %826 = vmatmul.bf16.gmra.mxu1 %v1203_v58 }
  0xcd   : > { %v877_v63 = vadd.f32 %v876_v31, %v788_v61 }
  0xce   : > { %v1696_v0 = vpop.f32.mrf.mxu3 }
  0xcf   : > { %v950_v3 = vmax.f32 %v877_v63, 0.0 }
  0xd0   : > { %v883_v4 = vpop.f32.mrf.mxu2  ;;  %v700_v5 = vpop.f32.mrf.mxu0 }
  0xd1   : > { %983 = vst.msk [vmem:[%s1657_s9 + $0x20] sm:$0xff] %vm978_vm1, %v950_v3  ;;  %v701_v6 = vadd.f32 %v1647_v62, %v700_v5  ;;  %v789_v7 = vpop.f32.mrf.mxu1 }
  0xd3   : > { %v790_v9 = vadd.f32 %v789_v7, %v701_v6 }
  0xd5   : > { %v879_v13 = vadd.f32 %v878_v42, %v790_v9  ;;  %1352 = vmatmul.msk.bf16.gmra.mxu2 %vm630_vm0, %v1231_v8 }
  0xd6   : > { %v1708_v16 = vpop.f32.mrf.mxu3 }
  0xd7   : > { %v951_v17 = vmax.f32 %v879_v13, 0.0 }
  0xd8   : > { %v886_v19 = vpop.f32.mrf.mxu2  ;;  %v703_v20 = vpop.f32.mrf.mxu0 }
  0xd9   : > { %984 = vst.msk [vmem:[%s1657_s9 + $0x28] sm:$0xff] %vm978_vm1, %v951_v17  ;;  %v704_v22 = vadd.f32 %v1647_v62, %v703_v20  ;;  %v792_v23 = vpop.f32.mrf.mxu1 }
  0xdb   : > { %v793_v24 = vadd.f32 %v792_v23, %v704_v22  ;;  %742 = vmatmul.bf16.gmra.mxu0 %v1211_v18 }
  0xdc   : > { %831 = vmatmul.bf16.gmra.mxu1 %v1215_v21 }
  0xdd   : > { %v882_v25 = vadd.f32 %v881_v56, %v793_v24 }
  0xde   : > { %v1713_v26 = vpop.f32.mrf.mxu3 }
  0xdf   : > { %v952_v30 = vmax.f32 %v882_v25, 0.0 }
  0xe0   : > { %v888_v31 = vpop.f32.mrf.mxu2  ;;  %v705_v32 = vpop.f32.mrf.mxu0 }
  0xe1   : > { %985 = vst.msk [vmem:[%s1657_s9 + $0x30] sm:$0xff] %vm978_vm1, %v952_v30  ;;  %v706_v33 = vadd.f32 %v1647_v62, %v705_v32  ;;  %v794_v34 = vpop.f32.mrf.mxu1 }
  0xe3   : > { %v795_v36 = vadd.f32 %v794_v34, %v706_v33 }
  0xe5   : > { %v884_v37 = vadd.f32 %v883_v4, %v795_v36  ;;  %1353 = vmatmul.msk.bf16.gmra.mxu2 %vm630_vm0, %v1243_v35  ;;  %v754_v4 = vadd.f32 %v1647_v62, %v1679_v38 }
  0xe6   : > { %v1721_v39 = vpop.f32.mrf.mxu3 }
  0xe7   : > { %v953_v40 = vmax.f32 %v884_v37, 0.0 }
  0xe8   : > { %v891_v41 = vpop.f32.mrf.mxu2  ;;  %v708_v42 = vpop.f32.mrf.mxu0 }
  0xe9   : > { %986 = vst.msk [vmem:[%s1657_s9 + $0x38] sm:$0xff] %vm978_vm1, %v953_v40  ;;  %v709_v43 = vadd.f32 %v1647_v62, %v708_v42  ;;  %v797_v44 = vpop.f32.mrf.mxu1 }
  0xeb   : > { %v798_v45 = vadd.f32 %v797_v44, %v709_v43 }
  0xed   : > { %v887_v47 = vadd.f32 %v886_v19, %v798_v45 }
  0xee   : > { %v837_v48 = vpop.f32.mrf.mxu3 }
  0xef   : > { %v954_v49 = vmax.f32 %v887_v47, 0.0  ;;  %v1728_v50 = vadd.f32 %v837_v48, %v749_v46 }
  0xf0   : > { %v893_v51 = vpop.f32.mrf.mxu2  ;;  %v710_v52 = vpop.f32.mrf.mxu0 }
  0xf1   : > { %987 = vst.msk [vmem:[%s1657_s9 + $0x40] sm:$0xff] %vm978_vm1, %v954_v49  ;;  %v711_v54 = vadd.f32 %v1647_v62, %v710_v52  ;;  %v799_v55 = vpop.f32.mrf.mxu1 }
  0xf3   : > { %v800_v56 = vadd.f32 %v799_v55, %v711_v54 }
  0xf5   : > { %v889_v58 = vadd.f32 %v888_v31, %v800_v56 }
  0xf6   : > { %v839_v59 = vpop.f32.mrf.mxu3 }
  0xf7   : > { %v955_v10 = vmax.f32 %v889_v58, 0.0  ;;  %v1735_v60 = vadd.f32 %v839_v59, %v751_v57 }
  0xf8   : > { %v896_v61 = vpop.f32.mrf.mxu2  ;;  %v713_v63 = vpop.f32.mrf.mxu0 }
  0xf9   : > { %988 = vst.msk [vmem:[%s1657_s9 + $0x48] sm:$0xff] %vm978_vm1, %v955_v10  ;;  %v714_v1 = vadd.f32 %v1647_v62, %v713_v63  ;;  %v802_v2 = vpop.f32.mrf.mxu1  ;;  %v759_v10 = vadd.f32 %v1647_v62, %v1696_v0 }
  0xfb   : > { %v803_v3 = vadd.f32 %v802_v2, %v714_v1 }
  0xfd   : > { %v892_v5 = vadd.f32 %v891_v41, %v803_v3 }
  0xfe   : > { %v842_v6 = vpop.f32.mrf.mxu3 }
  0xff   : > { %v956_v27 = vmax.f32 %v892_v5, 0.0  ;;  %v1742_v7 = vadd.f32 %v842_v6, %v754_v4 }
 0x100   : > { %v898_v8 = vpop.f32.mrf.mxu2  ;;  %v715_v9 = vpop.f32.mrf.mxu0 }
 0x101   : > { %989 = vst.msk [vmem:[%s1657_s9 + $0x50] sm:$0xff] %vm978_vm1, %v956_v27  ;;  %v716_v11 = vadd.f32 %v1647_v62, %v715_v9  ;;  %v804_v12 = vpop.f32.mrf.mxu1 }
 0x103   : > { %v805_v13 = vadd.f32 %v804_v12, %v716_v11  ;;  %v761_v11 = vadd.f32 %v1647_v62, %v1708_v16  ;;  %v764_v16 = vadd.f32 %v1647_v62, %v1713_v26  ;;  %v766_v26 = vadd.f32 %v1647_v62, %v1721_v39 }
 0x105   : > { %v894_v15 = vadd.f32 %v893_v51, %v805_v13 }
 0x106   : > { %v844_v38 = vpop.f32.mrf.mxu3 }
 0x107   : > { %v957_v17 = vmax.f32 %v894_v15, 0.0  ;;  %v1749_v18 = vadd.f32 %v844_v38, %v756_v14 }
 0x108   : > { %v901_v19 = vpop.f32.mrf.mxu2  ;;  %v718_v20 = vpop.f32.mrf.mxu0 }
 0x109   : > { %990 = vst.msk [vmem:[%s1657_s9 + $0x58] sm:$0xff] %vm978_vm1, %v957_v17  ;;  %v719_v21 = vadd.f32 %v1647_v62, %v718_v20  ;;  %v807_v22 = vpop.f32.mrf.mxu1 }
 0x10b   : > { %v808_v23 = vadd.f32 %v807_v22, %v719_v21 }
 0x10d   : > { %v897_v24 = vadd.f32 %v896_v61, %v808_v23 }
 0x10e   : > { %v847_v25 = vpop.f32.mrf.mxu3 }
 0x10f   : > { %v958_v28 = vmax.f32 %v897_v24, 0.0  ;;  %v848_v63 = vadd.f32 %v847_v25, %v759_v10 }
 0x110   : > { %v903_v29 = vpop.f32.mrf.mxu2  ;;  %v720_v53 = vpop.f32.mrf.mxu0 }
 0x111   : > { %991 = vst.msk [vmem:[%s1657_s9 + $0x60] sm:$0xff] %vm978_vm1, %v958_v28  ;;  %v721_v30 = vadd.f32 %v1647_v62, %v720_v53  ;;  %v809_v31 = vpop.f32.mrf.mxu1 }
 0x113   : > { %v810_v32 = vadd.f32 %v809_v31, %v721_v30 }
 0x115   : > { %v899_v33 = vadd.f32 %v898_v8, %v810_v32 }
 0x116   : > { %v849_v34 = vpop.f32.mrf.mxu3 }
 0x117   : > { %v959_v35 = vmax.f32 %v899_v33, 0.0  ;;  %v850_v12 = vadd.f32 %v849_v34, %v761_v11 }
 0x118   : > { %v906_v36 = vpop.f32.mrf.mxu2  ;;  %v723_v37 = vpop.f32.mrf.mxu0 }
 0x119   : > { %992 = vst.msk [vmem:[%s1657_s9 + $0x68] sm:$0xff] %vm978_vm1, %v959_v35  ;;  %v724_v40 = vadd.f32 %v1647_v62, %v723_v37  ;;  %v812_v41 = vpop.f32.mrf.mxu1 }
 0x11b   : > { %v813_v42 = vadd.f32 %v812_v41, %v724_v40 }
 0x11d   : > { %v902_v43 = vadd.f32 %v901_v19, %v813_v42 }
 0x11e   : > { %v852_v44 = vpop.f32.mrf.mxu3 }
 0x11f   : > { %v960_v45 = vmax.f32 %v902_v43, 0.0  ;;  %v853_v24 = vadd.f32 %v852_v44, %v764_v16 }
 0x120   : > { %v908_v46 = vpop.f32.mrf.mxu2  ;;  %v725_v47 = vpop.f32.mrf.mxu0 }
 0x121   : > { %993 = vst.msk [vmem:[%s1657_s9 + $0x70] sm:$0xff] %vm978_vm1, %v960_v45  ;;  %v726_v48 = vadd.f32 %v1647_v62, %v725_v47  ;;  %v814_v49 = vpop.f32.mrf.mxu1 }
 0x123   : > { %v815_v51 = vadd.f32 %v814_v49, %v726_v48 }
 0x125   : > { %v904_v52 = vadd.f32 %v903_v29, %v815_v51 }
 0x126   : > { %v854_v54 = vpop.f32.mrf.mxu3 }
 0x127   : > { %v961_v55 = vmax.f32 %v904_v52, 0.0 }
 0x128   : > { %v911_v56 = vpop.f32.mrf.mxu2  ;;  %v728_v57 = vpop.f32.mrf.mxu0 }
 0x129   : > { %994 = vst.msk [vmem:[%s1657_s9 + $0x78] sm:$0xff] %vm978_vm1, %v961_v55  ;;  %v729_v58 = vadd.f32 %v1647_v62, %v728_v57  ;;  %v817_v59 = vpop.f32.mrf.mxu1 }
 0x12b   : > { %v818_v61 = vadd.f32 %v817_v59, %v729_v58 }
 0x12d   : > { %v907_v1 = vadd.f32 %v906_v36, %v818_v61  ;;  %v855_v36 = vadd.f32 %v854_v54, %v766_v26 }
 0x12e   : > { %v936_v2 = vpop.f32.mrf.mxu3 }
 0x12f   : > { %v962_v3 = vmax.f32 %v907_v1, 0.0  ;;  %v937_v4 = vadd.f32 %v936_v2, %v848_v63 }
 0x130   : > { %v913_v5 = vpop.f32.mrf.mxu2  ;;  %v730_v6 = vpop.f32.mrf.mxu0 }
 0x131   : > { %995 = vst.msk [vmem:[%s1657_s9 + $0x80] sm:$0xff] %vm978_vm1, %v962_v3  ;;  %v974_v27 = vmax.f32 %v937_v4, 0.0  ;;  %v731_v8 = vadd.f32 %v1647_v62, %v730_v6  ;;  %v819_v9 = vpop.f32.mrf.mxu1 }
 0x133   : > { %1007 = vst.msk [vmem:[%s1657_s9 + $0xe0] sm:$0xff] %vm978_vm1, %v974_v27  ;;  %v820_v0 = vadd.f32 %v819_v9, %v731_v8 }
 0x135   : > { %v909_v13 = vadd.f32 %v908_v46, %v820_v0 }
 0x136   : > { %v938_v14 = vpop.f32.mrf.mxu3 }
 0x137   : > { %v963_v15 = vmax.f32 %v909_v13, 0.0  ;;  %v939_v38 = vadd.f32 %v938_v14, %v850_v12 }
 0x138   : > { %v916_v17 = vpop.f32.mrf.mxu2  ;;  %v733_v19 = vpop.f32.mrf.mxu0 }
 0x139   : > { %996 = vst.msk [vmem:[%s1657_s9 + $0x88] sm:$0xff] %vm978_vm1, %v963_v15  ;;  %v975_v20 = vmax.f32 %v939_v38, 0.0  ;;  %v734_v21 = vadd.f32 %v1647_v62, %v733_v19  ;;  %v822_v22 = vpop.f32.mrf.mxu1 }
 0x13b   : > { %1008 = vst.msk [vmem:[%s1657_s9 + $0xe8] sm:$0xff] %vm978_vm1, %v975_v20  ;;  %v823_v23 = vadd.f32 %v822_v22, %v734_v21 }
 0x13d   : > { %v912_v25 = vadd.f32 %v911_v56, %v823_v23 }
 0x13e   : > { %v941_v28 = vpop.f32.mrf.mxu3 }
 0x13f   : > { %v964_v29 = vmax.f32 %v912_v25, 0.0  ;;  %v942_v53 = vadd.f32 %v941_v28, %v853_v24 }
 0x140   : > { %v918_v30 = vpop.f32.mrf.mxu2  ;;  %v735_v31 = vpop.f32.mrf.mxu0 }
 0x141   : > { %997 = vst.msk [vmem:[%s1657_s9 + $0x90] sm:$0xff] %vm978_vm1, %v964_v29  ;;  %v976_v32 = vmax.f32 %v942_v53, 0.0  ;;  %v736_v33 = vadd.f32 %v1647_v62, %v735_v31  ;;  %v824_v34 = vpop.f32.mrf.mxu1 }
 0x143   : > { %1009 = vst.msk [vmem:[%s1657_s9 + $0xf0] sm:$0xff] %vm978_vm1, %v976_v32  ;;  %v825_v35 = vadd.f32 %v824_v34, %v736_v33 }
 0x145   : > { %v914_v37 = vadd.f32 %v913_v5, %v825_v35 }
 0x146   : > { %v943_v40 = vpop.f32.mrf.mxu3 }
 0x147   : > { %v965_v41 = vmax.f32 %v914_v37, 0.0  ;;  %v944_v42 = vadd.f32 %v943_v40, %v855_v36 }
 0x148   : > { %v921_v43 = vpop.f32.mrf.mxu2  ;;  %v738_v44 = vpop.f32.mrf.mxu0 }
 0x149   : > { %998 = vst.msk [vmem:[%s1657_s9 + $0x98] sm:$0xff] %vm978_vm1, %v965_v41  ;;  %v977_v45 = vmax.f32 %v944_v42, 0.0  ;;  %v739_v46 = vadd.f32 %v1647_v62, %v738_v44  ;;  %v827_v47 = vpop.f32.mrf.mxu1 }
 0x14b   : > { %1010 = vst.msk [vmem:[%s1657_s9 + $0xf8] sm:$0xff] %vm978_vm1, %v977_v45  ;;  %v828_v39 = vadd.f32 %v827_v47, %v739_v46 }
 0x14d   : > { %v917_v48 = vadd.f32 %v916_v17, %v828_v39 }
 0x14f   : > { %v966_v49 = vmax.f32 %v917_v48, 0.0 }
 0x150   : > { %v923_v51 = vpop.f32.mrf.mxu2  ;;  %v740_v52 = vpop.f32.mrf.mxu0 }
 0x151   : > { %999 = vst.msk [vmem:[%s1657_s9 + $0xa0] sm:$0xff] %vm978_vm1, %v966_v49  ;;  %v741_v54 = vadd.f32 %v1647_v62, %v740_v52  ;;  %v829_v55 = vpop.f32.mrf.mxu1 }
 0x153   : > { %v830_v56 = vadd.f32 %v829_v55, %v741_v54 }
 0x155   : > { %v919_v57 = vadd.f32 %v918_v30, %v830_v56 }
 0x157   : > { %v967_v58 = vmax.f32 %v919_v57, 0.0 }
 0x158   : > { %v926_v59 = vpop.f32.mrf.mxu2  ;;  %v743_v10 = vpop.f32.mrf.mxu0 }
 0x159   : > { %1000 = vst.msk [vmem:[%s1657_s9 + $0xa8] sm:$0xff] %vm978_vm1, %v967_v58  ;;  %v927_v61 = vadd.f32 %v926_v59, %v1728_v50  ;;  %v744_v63 = vadd.f32 %v1647_v62, %v743_v10  ;;  %v832_v1 = vpop.f32.mrf.mxu1 }
 0x15b   : > { %v970_v2 = vmax.f32 %v927_v61, 0.0  ;;  %v833_v3 = vadd.f32 %v832_v1, %v744_v63 }
 0x15d   : > { %1003 = vst.msk [vmem:[%s1657_s9 + $0xc0] sm:$0xff] %vm978_vm1, %v970_v2  ;;  %v922_v4 = vadd.f32 %v921_v43, %v833_v3 }
 0x15f   : > { %v968_v5 = vmax.f32 %v922_v4, 0.0 }
 0x160   : > { %v928_v6 = vpop.f32.mrf.mxu2  ;;  %v745_v27 = vpop.f32.mrf.mxu0 }
 0x161   : > { %1001 = vst.msk [vmem:[%s1657_s9 + $0xb0] sm:$0xff] %vm978_vm1, %v968_v5  ;;  %v929_v8 = vadd.f32 %v928_v6, %v1735_v60  ;;  %v746_v50 = vadd.f32 %v1647_v62, %v745_v27  ;;  %v834_v9 = vpop.f32.mrf.mxu1 }
 0x163   : > { %v971_v11 = vmax.f32 %v929_v8, 0.0  ;;  %v835_v0 = vadd.f32 %v834_v9, %v746_v50 }
 0x165   : > { %1004 = vst.msk [vmem:[%s1657_s9 + $0xc8] sm:$0xff] %vm978_vm1, %v971_v11  ;;  %v924_v12 = vadd.f32 %v923_v51, %v835_v0 }
 0x167   : > { %v969_v13 = vmax.f32 %v924_v12, 0.0 }
 0x168   : > { %v931_v14 = vpop.f32.mrf.mxu2 }
 0x169   : > { %1002 = vst.msk [vmem:[%s1657_s9 + $0xb8] sm:$0xff] %vm978_vm1, %v969_v13  ;;  %v932_v15 = vadd.f32 %v931_v14, %v1742_v7 }
 0x16b   : > { %v972_v38 = vmax.f32 %v932_v15, 0.0 }
 0x16d   : > { %1005 = vst.msk [vmem:[%s1657_s9 + $0xd0] sm:$0xff] %vm978_vm1, %v972_v38 }
 0x170   : > { %v933_v17 = vpop.f32.mrf.mxu2 }
 0x171   : > { %v934_v60 = vadd.f32 %v933_v17, %v1749_v18 }
 0x173   : > { %v973_v19 = vmax.f32 %v934_v60, 0.0 }
 0x175   : > { %1006 = vst.msk [vmem:[%s1657_s9 + $0xd8] sm:$0xff] %vm978_vm1, %v973_v19 }
 0x176 PF: > { %s13_s12 = sadd.s32 1, %s1458_s12  }
 0x177   : > { %p10_p4 = scmp.ge.s32.totalorder %s13_s12, 5  }
 0x179   :  { %12 = sbr.rel (!%p10_p4) target bundleno = 1 (0x1), region = 62 }

// kernel: stem_forward.16
= control target key start
LH: loop header
LB: loop body
LE: loop exit
PB: predicated region body
PF: predicated region fallthrough
CT: control target
= control target key end

     0   :  { %vm107_vm0 = vcmask 523264   ;;  %vm197_vm1 = vcmask 654336   ;;  %s430_s1 = inlined_call_operand.vmem [shape: bf16[64,80], index: 1, kind: input, shape index: {}]   ;;  %s431_s2 = inlined_call_operand.vmem [shape: f32[1,80], index: 2, kind: input, shape index: {}]   ;;  %s432_s0 = inlined_call_operand.vmem [shape: bf16[128,64], index: 0, kind: input, shape index: {}]   ;;  %s433_s3 = inlined_call_operand.vmem [shape: f32[128,80], index: 3, kind: output, shape index: {}]  }
   0x1   :  { %v285_v0 = vld [vmem:[%s430_s1 + $0x18] sm:$0xff]  ;;  %v284_v1 = vld [vmem:[%s430_s1 + $0x10] sm:$0xff]  ;;  %v283_v2 = vld [vmem:[%s430_s1 + $0x8] sm:$0xff] }
   0x2   :  { %136 = vmatpush.bf16.msra.mxu0 %v285_v0  ;;  %286 = vmatpush.bf16.msra.mxu1 %v285_v0  ;;  %v282_v3 = vld [vmem:[%s430_s1] sm:$0xff]  ;;  %v276_v5 = vld [vmem:[%s432_s0 + $0x10] sm:$0xff]  ;;  %v275_v8 = vld [vmem:[%s432_s0 + $0x8] sm:$0xff] }
   0x3   :  { %287 = vmatpush.bf16.msra.mxu2 %v285_v0  ;;  %288 = vmatpush.bf16.msra.mxu3 %v285_v0  ;;  %v274_v4 = vld [vmem:[%s432_s0] sm:$0xff]  ;;  %v280_v7 = vld [vmem:[%s432_s0 + $0x30] sm:$0xff]  ;;  %v277_v9 = vld [vmem:[%s432_s0 + $0x18] sm:$0xff] }
   0x4   :  { %v278_v6 = vld [vmem:[%s432_s0 + $0x20] sm:$0xff]  ;;  %v279_v10 = vld [vmem:[%s432_s0 + $0x28] sm:$0xff]  ;;  %v281_v11 = vld [vmem:[%s432_s0 + $0x38] sm:$0xff] }
   0x5   :  { %v298_v12 = vld [vmem:[%s431_s2] ss:$0 sm:$0xff] }
   0x6   :  { %137 = vmatpush.bf16.msra.mxu0 %v284_v1  ;;  %289 = vmatpush.bf16.msra.mxu1 %v284_v1 }
   0x7   :  { %290 = vmatpush.bf16.msra.mxu2 %v284_v1  ;;  %291 = vmatpush.bf16.msra.mxu3 %v284_v1 }
   0xa   :  { %138 = vmatpush.bf16.msra.mxu0 %v283_v2  ;;  %292 = vmatpush.bf16.msra.mxu1 %v283_v2 }
   0xb   :  { %293 = vmatpush.bf16.msra.mxu2 %v283_v2  ;;  %294 = vmatpush.bf16.msra.mxu3 %v283_v2 }
   0xe   :  { %139 = vmatpush.bf16.msra.mxu0 %v282_v3  ;;  %295 = vmatpush.bf16.msra.mxu1 %v282_v3 }
   0xf   :  { %296 = vmatpush.bf16.msra.mxu2 %v282_v3  ;;  %297 = vmatpush.bf16.msra.mxu3 %v282_v3 }
  0x11   :  { %266 = vmatmul.msk.bf16.vlgmr.msra.gmra.mxu0 %vm107_vm0, %v274_v4  ;;  %268 = vmatmul.msk.bf16.vlgmr.msra.gmra.mxu1 %vm107_vm0, %v276_v5 }
  0x12   :  { %270 = vmatmul.msk.bf16.vlgmr.msra.gmra.mxu2 %vm107_vm0, %v278_v6  ;;  %272 = vmatmul.msk.bf16.vlgmr.msra.gmra.mxu3 %vm107_vm0, %v280_v7 }
  0x21   :  { %267 = vmatmul.msk.bf16.gmra.mxu0 %vm107_vm0, %v275_v8  ;;  %269 = vmatmul.msk.bf16.gmra.mxu1 %vm107_vm0, %v277_v9 }
  0x22   :  { %271 = vmatmul.msk.bf16.gmra.mxu2 %vm107_vm0, %v279_v10  ;;  %273 = vmatmul.msk.bf16.gmra.mxu3 %vm107_vm0, %v281_v11 }
  0x8e   :  { %v141_v13 = vpop.f32.mrf.mxu0  ;;  %v151_v14 = vpop.f32.mrf.mxu1 }
  0x8f   :  { %v142_v15 = vadd.f32 %v298_v12, %v141_v13  ;;  %v152_v16 = vadd.f32 %v298_v12, %v151_v14 }
  0x91   :  { %v181_v17 = vmax.f32 %v142_v15, 0.0  ;;  %v185_v18 = vmax.f32 %v152_v16, 0.0 }
  0x93   :  { %198 = vst.msk [vmem:[%s433_s3] sm:$0xff] %vm197_vm1, %v181_v17 }
  0x94   :  { %202 = vst.msk [vmem:[%s433_s3 + $0x20] sm:$0xff] %vm197_vm1, %v185_v18 }
  0x95   :  { %v161_v19 = vpop.f32.mrf.mxu2  ;;  %v171_v20 = vpop.f32.mrf.mxu3 }
  0x96   :  { %v162_v21 = vadd.f32 %v298_v12, %v161_v19  ;;  %v172_v22 = vadd.f32 %v298_v12, %v171_v20  ;;  %v143_v23 = vpop.f32.mrf.mxu0  ;;  %v153_v24 = vpop.f32.mrf.mxu1 }
  0x97   :  { %v144_v25 = vadd.f32 %v298_v12, %v143_v23  ;;  %v154_v26 = vadd.f32 %v298_v12, %v153_v24 }
  0x98   :  { %v189_v27 = vmax.f32 %v162_v21, 0.0  ;;  %v193_v28 = vmax.f32 %v172_v22, 0.0 }
  0x99   :  { %v182_v29 = vmax.f32 %v144_v25, 0.0  ;;  %v186_v30 = vmax.f32 %v154_v26, 0.0 }
  0x9a   :  { %206 = vst.msk [vmem:[%s433_s3 + $0x40] sm:$0xff] %vm197_vm1, %v189_v27 }
  0x9b   :  { %210 = vst.msk [vmem:[%s433_s3 + $0x60] sm:$0xff] %vm197_vm1, %v193_v28 }
  0x9c   :  { %199 = vst.msk [vmem:[%s433_s3 + $0x8] sm:$0xff] %vm197_vm1, %v182_v29 }
  0x9d   :  { %203 = vst.msk [vmem:[%s433_s3 + $0x28] sm:$0xff] %vm197_vm1, %v186_v30  ;;  %v163_v31 = vpop.f32.mrf.mxu2  ;;  %v173_v32 = vpop.f32.mrf.mxu3 }
  0x9e   :  { %v164_v33 = vadd.f32 %v298_v12, %v163_v31  ;;  %v174_v34 = vadd.f32 %v298_v12, %v173_v32  ;;  %v146_v35 = vpop.f32.mrf.mxu0  ;;  %v156_v36 = vpop.f32.mrf.mxu1 }
  0x9f   :  { %v147_v37 = vadd.f32 %v298_v12, %v146_v35  ;;  %v157_v38 = vadd.f32 %v298_v12, %v156_v36 }
  0xa0   :  { %v190_v39 = vmax.f32 %v164_v33, 0.0  ;;  %v194_v40 = vmax.f32 %v174_v34, 0.0 }
  0xa1   :  { %v183_v41 = vmax.f32 %v147_v37, 0.0  ;;  %v187_v42 = vmax.f32 %v157_v38, 0.0 }
  0xa2   :  { %207 = vst.msk [vmem:[%s433_s3 + $0x48] sm:$0xff] %vm197_vm1, %v190_v39 }
  0xa3   :  { %211 = vst.msk [vmem:[%s433_s3 + $0x68] sm:$0xff] %vm197_vm1, %v194_v40 }
  0xa4   :  { %200 = vst.msk [vmem:[%s433_s3 + $0x10] sm:$0xff] %vm197_vm1, %v183_v41 }
  0xa5   :  { %204 = vst.msk [vmem:[%s433_s3 + $0x30] sm:$0xff] %vm197_vm1, %v187_v42  ;;  %v166_v43 = vpop.f32.mrf.mxu2  ;;  %v176_v44 = vpop.f32.mrf.mxu3 }
  0xa6   :  { %v167_v45 = vadd.f32 %v298_v12, %v166_v43  ;;  %v177_v46 = vadd.f32 %v298_v12, %v176_v44  ;;  %v148_v47 = vpop.f32.mrf.mxu0  ;;  %v158_v48 = vpop.f32.mrf.mxu1 }
  0xa7   :  { %v149_v49 = vadd.f32 %v298_v12, %v148_v47  ;;  %v159_v50 = vadd.f32 %v298_v12, %v158_v48 }
  0xa8   :  { %v191_v51 = vmax.f32 %v167_v45, 0.0  ;;  %v195_v52 = vmax.f32 %v177_v46, 0.0 }
  0xa9   :  { %v184_v53 = vmax.f32 %v149_v49, 0.0  ;;  %v188_v54 = vmax.f32 %v159_v50, 0.0 }
  0xaa   :  { %208 = vst.msk [vmem:[%s433_s3 + $0x50] sm:$0xff] %vm197_vm1, %v191_v51 }
  0xab   :  { %212 = vst.msk [vmem:[%s433_s3 + $0x70] sm:$0xff] %vm197_vm1, %v195_v52 }
  0xac   :  { %201 = vst.msk [vmem:[%s433_s3 + $0x18] sm:$0xff] %vm197_vm1, %v184_v53 }
  0xad   :  { %205 = vst.msk [vmem:[%s433_s3 + $0x38] sm:$0xff] %vm197_vm1, %v188_v54  ;;  %v168_v55 = vpop.f32.mrf.mxu2  ;;  %v178_v56 = vpop.f32.mrf.mxu3 }
  0xae   :  { %v169_v57 = vadd.f32 %v298_v12, %v168_v55  ;;  %v179_v58 = vadd.f32 %v298_v12, %v178_v56 }
  0xb0   :  { %v192_v59 = vmax.f32 %v169_v57, 0.0  ;;  %v196_v60 = vmax.f32 %v179_v58, 0.0 }
  0xb2   :  { %209 = vst.msk [vmem:[%s433_s3 + $0x58] sm:$0xff] %vm197_vm1, %v192_v59 }
  0xb3   :  { %213 = vst.msk [vmem:[%s433_s3 + $0x78] sm:$0xff] %vm197_vm1, %v196_v60 }

// kernel: stem_forward.15
= control target key start
LH: loop header
LB: loop body
LE: loop exit
PB: predicated region body
PF: predicated region fallthrough
CT: control target
= control target key end

     0   :  { %vm178_vm0 = vcmask 1046528   ;;  %vm451_vm1 = vcmask 1045504   ;;  %vm878_vm2 = vcmask 523264   ;;  %vm880_vm3 = vcmask 522240   ;;  %s1607_s0 = inlined_call_operand.vmem [shape: f32[2,17,17,64], index: 0, kind: input, shape index: {}]   ;;  %s1608_s1 = inlined_call_operand.vmem [shape: f32[2,15,15,64], index: 1, kind: output, shape index: {}]  }
   0x1   :  { %v8_v0 = vld [vmem:[%s1607_s0] sm:$0xff]  ;;  %v9_v1 = vld [vmem:[%s1607_s0 + $0x8] sm:$0xff]  ;;  %v11_v2 = vld [vmem:[%s1607_s0 + $0x18] sm:$0xff] }
   0x2   :  { %v12_v3 = vld [vmem:[%s1607_s0 + $0x20] sm:$0xff]  ;;  %v14_v4 = vld [vmem:[%s1607_s0 + $0x30] sm:$0xff]  ;;  %v15_v5 = vld [vmem:[%s1607_s0 + $0x38] sm:$0xff]  ;;  %v179_v6 = vrot.slane %v8_v0, 1  ;;  %v180_v7 = vrot.slane %v9_v1, 1  ;;  %v182_v8 = vrot.slane %v11_v2, 1 }
   0x3   :  { %v183_v9 = vrot.slane %v12_v3, 1  ;;  %v185_v10 = vrot.slane %v14_v4, 1  ;;  %v186_v11 = vrot.slane %v15_v5, 1  ;;  %v452_v12 = vrot.slane %v8_v0, 2  ;;  %v10_v21 = vld [vmem:[%s1607_s0 + $0x10] sm:$0x1] }
   0x4   :  { %v181_v13 = vsel %vm178_vm0, %v179_v6, %v180_v7  ;;  %v453_v14 = vrot.slane %v9_v1, 2  ;;  %v457_v15 = vrot.slane %v11_v2, 2  ;;  %v458_v16 = vrot.slane %v12_v3, 2  ;;  %v13_v22 = vld [vmem:[%s1607_s0 + $0x28] sm:$0x1]  ;;  %v18_v29 = vld [vmem:[%s1607_s0 + $0x50] sm:$0xff] }
   0x5   :  { %v184_v17 = vsel %vm178_vm0, %v182_v8, %v183_v9  ;;  %v187_v18 = vsel %vm178_vm0, %v185_v10, %v186_v11  ;;  %v349_v19 = vmax.f32 %v8_v0, %v181_v13  ;;  %v462_v20 = vrot.slane %v14_v4, 2  ;;  %v16_v27 = vld [vmem:[%s1607_s0 + $0x40] sm:$0x1]  ;;  %v17_v28 = vld [vmem:[%s1607_s0 + $0x48] sm:$0xff]  ;;  %v19_v50 = vld [vmem:[%s1607_s0 + $0x58] sm:$0x1] }
   0x6   :  { %v351_v23 = vmax.f32 %v11_v2, %v184_v17  ;;  %v353_v24 = vmax.f32 %v14_v4, %v187_v18  ;;  %v454_v25 = vsel %vm451_vm1, %v452_v12, %v453_v14  ;;  %v459_v26 = vsel %vm451_vm1, %v457_v15, %v458_v16  ;;  %v20_v51 = vld [vmem:[%s1607_s0 + $0x60] sm:$0xff]  ;;  %v21_v52 = vld [vmem:[%s1607_s0 + $0x68] sm:$0xff]  ;;  %v23_v6 = vld [vmem:[%s1607_s0 + $0x78] sm:$0xff] }
   0x7   :  { %v463_v30 = vrot.slane %v15_v5, 2  ;;  %v690_v31 = vmax.f32 %v349_v19, %v454_v25  ;;  %v350_v32 = vmax.f32 %v9_v1, %v180_v7  ;;  %v352_v33 = vmax.f32 %v12_v3, %v183_v9  ;;  %v22_v1 = vld [vmem:[%s1607_s0 + $0x70] sm:$0x1]  ;;  %v24_v7 = vld [vmem:[%s1607_s0 + $0x80] sm:$0xff] }
   0x8   :  { %v692_v34 = vmax.f32 %v351_v23, %v459_v26  ;;  %v354_v35 = vmax.f32 %v15_v5, %v186_v11  ;;  %v455_v36 = vrot.slane %v10_v21, 2  ;;  %v460_v37 = vrot.slane %v13_v22, 2 }
   0x9   :  { %v464_v38 = vsel %vm451_vm1, %v462_v20, %v463_v30  ;;  %v465_v39 = vrot.slane %v16_v27, 2  ;;  %v188_v40 = vrot.slane %v17_v28, 1  ;;  %v189_v41 = vrot.slane %v18_v29, 1 }
   0xa   :  { %v694_v42 = vmax.f32 %v353_v24, %v464_v38  ;;  %v758_v43 = vmax.f32 %v690_v31, %v692_v34  ;;  %v456_v44 = vsel %vm451_vm1, %v453_v14, %v455_v36  ;;  %v461_v45 = vsel %vm451_vm1, %v458_v16, %v460_v37  ;;  %v25_v24 = vld [vmem:[%s1607_s0 + $0x88] sm:$0x1] }
   0xb   :  { %v466_v46 = vsel %vm451_vm1, %v463_v30, %v465_v39  ;;  %v691_v47 = vmax.f32 %v350_v32, %v456_v44  ;;  %v693_v48 = vmax.f32 %v352_v33, %v461_v45  ;;  %v190_v49 = vsel %vm178_vm0, %v188_v40, %v189_v41  ;;  %v27_v30 = vld [vmem:[%s1607_s0 + $0x98] sm:$0xff]  ;;  %v29_v36 = vld [vmem:[%s1607_s0 + $0xa8] sm:$0xff] }
   0xc   :  { %v818_v53 = vmax.f32 %v758_v43, %v694_v42  ;;  %v695_v54 = vmax.f32 %v354_v35, %v466_v46  ;;  %v355_v55 = vmax.f32 %v17_v28, %v190_v49  ;;  %v467_v56 = vrot.slane %v17_v28, 2  ;;  %v28_v35 = vld [vmem:[%s1607_s0 + $0xa0] sm:$0x1] }
   0xd   :  { %v759_v57 = vmax.f32 %v691_v47, %v693_v48  ;;  %v468_v58 = vrot.slane %v18_v29, 2  ;;  %v760_v59 = vmax.f32 %v692_v34, %v694_v42  ;;  %v356_v60 = vmax.f32 %v18_v29, %v189_v41  ;;  %v26_v29 = vld [vmem:[%s1607_s0 + $0x90] sm:$0xff] }
   0xe   :  { %879 = vst.msk [vmem:[%s1608_s1] sm:$0xff] %vm878_vm2, %v818_v53  ;;  %v470_v61 = vrot.slane %v19_v50, 2  ;;  %v761_v62 = vmax.f32 %v693_v48, %v695_v54  ;;  %v191_v63 = vrot.slane %v20_v51, 1  ;;  %v192_v0 = vrot.slane %v21_v52, 1  ;;  %v30_v48 = vld [vmem:[%s1607_s0 + $0xb0] sm:$0xff] }
   0xf   :  { %v819_v2 = vmax.f32 %v759_v57, %v695_v54  ;;  %v469_v3 = vsel %vm451_vm1, %v467_v56, %v468_v58  ;;  %v472_v4 = vrot.slane %v20_v51, 2  ;;  %v473_v5 = vrot.slane %v21_v52, 2 }
  0x10   :  { %v696_v8 = vmax.f32 %v355_v55, %v469_v3  ;;  %v471_v9 = vsel %vm451_vm1, %v468_v58, %v470_v61  ;;  %v193_v10 = vsel %vm178_vm0, %v191_v63, %v192_v0  ;;  %v358_v11 = vmax.f32 %v21_v52, %v192_v0 }
  0x11   :  { %881 = vst.msk [vmem:[%s1608_s1 + $0x8] sm:$0x7f] %vm880_vm3, %v819_v2  ;;  %v697_v12 = vmax.f32 %v356_v60, %v471_v9  ;;  %v357_v13 = vmax.f32 %v20_v51, %v193_v10  ;;  %v474_v14 = vsel %vm451_vm1, %v472_v4, %v473_v5  ;;  %v475_v15 = vrot.slane %v22_v1, 2  ;;  %v33_v60 = vld [vmem:[%s1607_s0 + $0xc8] sm:$0xff] }
  0x12   :  { %v820_v16 = vmax.f32 %v760_v59, %v696_v8  ;;  %v762_v17 = vmax.f32 %v694_v42, %v696_v8  ;;  %v194_v18 = vrot.slane %v23_v6, 1  ;;  %v195_v19 = vrot.slane %v24_v7, 1  ;;  %v32_v59 = vld [vmem:[%s1607_s0 + $0xc0] sm:$0xff] }
  0x13   :  { %v821_v20 = vmax.f32 %v761_v62, %v697_v12  ;;  %v698_v21 = vmax.f32 %v357_v13, %v474_v14  ;;  %v476_v22 = vsel %vm451_vm1, %v473_v5, %v475_v15  ;;  %v763_v23 = vmax.f32 %v695_v54, %v697_v12  ;;  %v31_v54 = vld [vmem:[%s1607_s0 + $0xb8] sm:$0x1]  ;;  %v34_v13 = vld [vmem:[%s1607_s0 + $0xd0] sm:$0x1] }
  0x14   :  { %882 = vst.msk [vmem:[%s1608_s1 + $0x10] sm:$0xff] %vm878_vm2, %v820_v16  ;;  %v699_v25 = vmax.f32 %v358_v11, %v476_v22  ;;  %v196_v26 = vsel %vm178_vm0, %v194_v18, %v195_v19  ;;  %v477_v27 = vrot.slane %v23_v6, 2  ;;  %v478_v28 = vrot.slane %v24_v7, 2  ;;  %v35_v14 = vld [vmem:[%s1607_s0 + $0xd8] sm:$0xff] }
  0x15   :  { %883 = vst.msk [vmem:[%s1608_s1 + $0x18] sm:$0x7f] %vm880_vm3, %v821_v20  ;;  %v822_v31 = vmax.f32 %v762_v17, %v698_v21  ;;  %v359_v32 = vmax.f32 %v23_v6, %v196_v26  ;;  %v764_v33 = vmax.f32 %v696_v8, %v698_v21  ;;  %v360_v34 = vmax.f32 %v24_v7, %v195_v19 }
  0x16   :  { %v823_v37 = vmax.f32 %v763_v23, %v699_v25  ;;  %v479_v38 = vsel %vm451_vm1, %v477_v27, %v478_v28  ;;  %v480_v39 = vrot.slane %v25_v24, 2  ;;  %v765_v40 = vmax.f32 %v697_v12, %v699_v25  ;;  %v36_v23 = vld [vmem:[%s1607_s0 + $0xe0] sm:$0xff]  ;;  %v37_v24 = vld [vmem:[%s1607_s0 + $0xe8] sm:$0x1] }
  0x17   :  { %884 = vst.msk [vmem:[%s1608_s1 + $0x20] sm:$0xff] %vm878_vm2, %v822_v31  ;;  %v700_v41 = vmax.f32 %v359_v32, %v479_v38  ;;  %v197_v42 = vrot.slane %v26_v29, 1  ;;  %v198_v43 = vrot.slane %v27_v30, 1  ;;  %v482_v44 = vrot.slane %v26_v29, 2 }
  0x18   :  { %885 = vst.msk [vmem:[%s1608_s1 + $0x28] sm:$0x7f] %vm880_vm3, %v823_v37  ;;  %v481_v45 = vsel %vm451_vm1, %v478_v28, %v480_v39  ;;  %v483_v46 = vrot.slane %v27_v30, 2  ;;  %v485_v47 = vrot.slane %v28_v35, 2  ;;  %v200_v49 = vrot.slane %v29_v36, 1 }
  0x19   :  { %v824_v50 = vmax.f32 %v764_v33, %v700_v41  ;;  %v701_v51 = vmax.f32 %v360_v34, %v481_v45  ;;  %v199_v52 = vsel %vm178_vm0, %v197_v42, %v198_v43  ;;  %v766_v53 = vmax.f32 %v698_v21, %v700_v41  ;;  %v38_v33 = vld [vmem:[%s1607_s0 + $0xf0] sm:$0xff]  ;;  %v39_v34 = vld [vmem:[%s1607_s0 + $0xf8] sm:$0xff] }
  0x1a   :  { %v361_v55 = vmax.f32 %v26_v29, %v199_v52  ;;  %v484_v56 = vsel %vm451_vm1, %v482_v44, %v483_v46  ;;  %v362_v57 = vmax.f32 %v27_v30, %v198_v43  ;;  %v486_v58 = vsel %vm451_vm1, %v483_v46, %v485_v47  ;;  %v41_v52 = vld [vmem:[%s1607_s0 + $0x108] sm:$0xff] }
  0x1b   :  { %886 = vst.msk [vmem:[%s1608_s1 + $0x30] sm:$0xff] %vm878_vm2, %v824_v50  ;;  %v825_v61 = vmax.f32 %v765_v40, %v701_v51  ;;  %v767_v62 = vmax.f32 %v699_v25, %v701_v51  ;;  %v201_v63 = vrot.slane %v30_v48, 1  ;;  %v487_v0 = vrot.slane %v29_v36, 2 }
  0x1c   :  { %v702_v1 = vmax.f32 %v361_v55, %v484_v56  ;;  %v703_v2 = vmax.f32 %v362_v57, %v486_v58  ;;  %v488_v3 = vrot.slane %v30_v48, 2  ;;  %v490_v4 = vrot.slane %v31_v54, 2 }
  0x1d   :  { %887 = vst.msk [vmem:[%s1608_s1 + $0x38] sm:$0x7f] %vm880_vm3, %v825_v61  ;;  %v202_v5 = vsel %vm178_vm0, %v200_v49, %v201_v63  ;;  %v364_v6 = vmax.f32 %v30_v48, %v201_v63  ;;  %v203_v7 = vrot.slane %v32_v59, 1  ;;  %v204_v8 = vrot.slane %v33_v60, 1  ;;  %v42_v61 = vld [vmem:[%s1607_s0 + $0x110] sm:$0xff] }
  0x1e   :  { %v826_v9 = vmax.f32 %v766_v53, %v702_v1  ;;  %v827_v10 = vmax.f32 %v767_v62, %v703_v2  ;;  %v363_v11 = vmax.f32 %v29_v36, %v202_v5  ;;  %v489_v12 = vsel %vm451_vm1, %v487_v0, %v488_v3  ;;  %v43_v62 = vld [vmem:[%s1607_s0 + $0x118] sm:$0x1] }
  0x1f   :  { %v768_v15 = vmax.f32 %v700_v41, %v702_v1  ;;  %v491_v16 = vsel %vm451_vm1, %v488_v3, %v490_v4  ;;  %v769_v17 = vmax.f32 %v701_v51, %v703_v2  ;;  %v205_v18 = vsel %vm178_vm0, %v203_v7, %v204_v8  ;;  %v40_v51 = vld [vmem:[%s1607_s0 + $0x100] sm:$0x1] }
  0x20   :  { %888 = vst.msk [vmem:[%s1608_s1 + $0x40] sm:$0xff] %vm878_vm2, %v826_v9  ;;  %v704_v19 = vmax.f32 %v363_v11, %v489_v12  ;;  %v705_v20 = vmax.f32 %v364_v6, %v491_v16  ;;  %v365_v21 = vmax.f32 %v32_v59, %v205_v18  ;;  %v492_v22 = vrot.slane %v32_v59, 2  ;;  %v44_v7 = vld [vmem:[%s1607_s0 + $0x120] sm:$0xff] }
  0x21   :  { %889 = vst.msk [vmem:[%s1608_s1 + $0x48] sm:$0x7f] %vm880_vm3, %v827_v10  ;;  %v493_v25 = vrot.slane %v33_v60, 2  ;;  %v366_v26 = vmax.f32 %v33_v60, %v204_v8  ;;  %v495_v27 = vrot.slane %v34_v13, 2  ;;  %v206_v28 = vrot.slane %v35_v14, 1  ;;  %v45_v8 = vld [vmem:[%s1607_s0 + $0x128] sm:$0xff] }
  0x22   :  { %v828_v29 = vmax.f32 %v768_v15, %v704_v19  ;;  %v829_v30 = vmax.f32 %v769_v17, %v705_v20  ;;  %v770_v31 = vmax.f32 %v702_v1, %v704_v19  ;;  %v771_v32 = vmax.f32 %v703_v2, %v705_v20 }
  0x23   :  { %v494_v35 = vsel %vm451_vm1, %v492_v22, %v493_v25  ;;  %v496_v36 = vsel %vm451_vm1, %v493_v25, %v495_v27  ;;  %v207_v37 = vrot.slane %v36_v23, 1  ;;  %v497_v38 = vrot.slane %v35_v14, 2  ;;  %v46_v25 = vld [vmem:[%s1607_s0 + $0x130] sm:$0x1] }
  0x24   :  { %890 = vst.msk [vmem:[%s1608_s1 + $0x50] sm:$0xff] %vm878_vm2, %v828_v29  ;;  %v706_v39 = vmax.f32 %v365_v21, %v494_v35  ;;  %v707_v40 = vmax.f32 %v366_v26, %v496_v36  ;;  %v498_v41 = vrot.slane %v36_v23, 2  ;;  %v500_v42 = vrot.slane %v37_v24, 2  ;;  %v47_v26 = vld [vmem:[%s1607_s0 + $0x138] sm:$0xff]  ;;  %v48_v35 = vld [vmem:[%s1607_s0 + $0x140] sm:$0xff] }
  0x25   :  { %891 = vst.msk [vmem:[%s1608_s1 + $0x58] sm:$0x7f] %vm880_vm3, %v829_v30  ;;  %v208_v43 = vsel %vm178_vm0, %v206_v28, %v207_v37  ;;  %v368_v44 = vmax.f32 %v36_v23, %v207_v37  ;;  %v209_v45 = vrot.slane %v38_v33, 1  ;;  %v210_v46 = vrot.slane %v39_v34, 1  ;;  %v49_v36 = vld [vmem:[%s1607_s0 + $0x148] sm:$0x1] }
  0x26   :  { %v830_v47 = vmax.f32 %v770_v31, %v706_v39  ;;  %v831_v48 = vmax.f32 %v771_v32, %v707_v40  ;;  %v367_v49 = vmax.f32 %v35_v14, %v208_v43  ;;  %v499_v50 = vsel %vm451_vm1, %v497_v38, %v498_v41 }
  0x27   :  { %v772_v53 = vmax.f32 %v704_v19, %v706_v39  ;;  %v501_v54 = vsel %vm451_vm1, %v498_v41, %v500_v42  ;;  %v773_v55 = vmax.f32 %v705_v20, %v707_v40  ;;  %v211_v56 = vsel %vm178_vm0, %v209_v45, %v210_v46  ;;  %v50_v45 = vld [vmem:[%s1607_s0 + $0x150] sm:$0xff] }
  0x28   :  { %892 = vst.msk [vmem:[%s1608_s1 + $0x60] sm:$0xff] %vm878_vm2, %v830_v47  ;;  %v708_v57 = vmax.f32 %v367_v49, %v499_v50  ;;  %v709_v58 = vmax.f32 %v368_v44, %v501_v54  ;;  %v369_v59 = vmax.f32 %v38_v33, %v211_v56  ;;  %v502_v60 = vrot.slane %v38_v33, 2 }
  0x29   :  { %893 = vst.msk [vmem:[%s1608_s1 + $0x68] sm:$0x7f] %vm880_vm3, %v831_v48  ;;  %v503_v63 = vrot.slane %v39_v34, 2  ;;  %v370_v0 = vmax.f32 %v39_v34, %v210_v46  ;;  %v505_v1 = vrot.slane %v40_v51, 2  ;;  %v212_v2 = vrot.slane %v41_v52, 1  ;;  %v51_v46 = vld [vmem:[%s1607_s0 + $0x158] sm:$0xff] }
  0x2a   :  { %v832_v3 = vmax.f32 %v772_v53, %v708_v57  ;;  %v833_v4 = vmax.f32 %v773_v55, %v709_v58  ;;  %v774_v5 = vmax.f32 %v706_v39, %v708_v57  ;;  %v775_v6 = vmax.f32 %v707_v40, %v709_v58 }
  0x2b   :  { %v504_v9 = vsel %vm451_vm1, %v502_v60, %v503_v63  ;;  %v506_v10 = vsel %vm451_vm1, %v503_v63, %v505_v1  ;;  %v213_v11 = vrot.slane %v42_v61, 1  ;;  %v507_v12 = vrot.slane %v41_v52, 2  ;;  %v52_v63 = vld [vmem:[%s1607_s0 + $0x160] sm:$0x1] }
  0x2c   :  { %894 = vst.msk [vmem:[%s1608_s1 + $0x70] sm:$0xff] %vm878_vm2, %v832_v3  ;;  %v710_v13 = vmax.f32 %v369_v59, %v504_v9  ;;  %v711_v14 = vmax.f32 %v370_v0, %v506_v10  ;;  %v508_v15 = vrot.slane %v42_v61, 2  ;;  %v510_v16 = vrot.slane %v43_v62, 2  ;;  %v53_v0 = vld [vmem:[%s1607_s0 + $0x168] sm:$0xff]  ;;  %v54_v9 = vld [vmem:[%s1607_s0 + $0x170] sm:$0xff] }
  0x2d   :  { %895 = vst.msk [vmem:[%s1608_s1 + $0x78] sm:$0x7f] %vm880_vm3, %v833_v4  ;;  %v214_v17 = vsel %vm178_vm0, %v212_v2, %v213_v11  ;;  %v372_v18 = vmax.f32 %v42_v61, %v213_v11  ;;  %v215_v19 = vrot.slane %v44_v7, 1  ;;  %v216_v20 = vrot.slane %v45_v8, 1  ;;  %v55_v10 = vld [vmem:[%s1607_s0 + $0x178] sm:$0x1] }
  0x2e   :  { %v834_v21 = vmax.f32 %v774_v5, %v710_v13  ;;  %v835_v22 = vmax.f32 %v775_v6, %v711_v14  ;;  %v371_v23 = vmax.f32 %v41_v52, %v214_v17  ;;  %v509_v24 = vsel %vm451_vm1, %v507_v12, %v508_v15 }
  0x2f   :  { %v776_v27 = vmax.f32 %v708_v57, %v710_v13  ;;  %v511_v28 = vsel %vm451_vm1, %v508_v15, %v510_v16  ;;  %v777_v29 = vmax.f32 %v709_v58, %v711_v14  ;;  %v217_v30 = vsel %vm178_vm0, %v215_v19, %v216_v20  ;;  %v56_v19 = vld [vmem:[%s1607_s0 + $0x180] sm:$0xff] }
  0x30   :  { %896 = vst.msk [vmem:[%s1608_s1 + $0x80] sm:$0xff] %vm878_vm2, %v834_v21  ;;  %v712_v31 = vmax.f32 %v371_v23, %v509_v24  ;;  %v713_v32 = vmax.f32 %v372_v18, %v511_v28  ;;  %v373_v33 = vmax.f32 %v44_v7, %v217_v30  ;;  %v512_v34 = vrot.slane %v44_v7, 2 }
  0x31   :  { %897 = vst.msk [vmem:[%s1608_s1 + $0x88] sm:$0x7f] %vm880_vm3, %v835_v22  ;;  %v513_v37 = vrot.slane %v45_v8, 2  ;;  %v374_v38 = vmax.f32 %v45_v8, %v216_v20  ;;  %v515_v39 = vrot.slane %v46_v25, 2  ;;  %v218_v40 = vrot.slane %v47_v26, 1  ;;  %v57_v20 = vld [vmem:[%s1607_s0 + $0x188] sm:$0xff] }
  0x32   :  { %v836_v41 = vmax.f32 %v776_v27, %v712_v31  ;;  %v837_v42 = vmax.f32 %v777_v29, %v713_v32  ;;  %v778_v43 = vmax.f32 %v710_v13, %v712_v31  ;;  %v779_v44 = vmax.f32 %v711_v14, %v713_v32 }
  0x33   :  { %v514_v47 = vsel %vm451_vm1, %v512_v34, %v513_v37  ;;  %v516_v48 = vsel %vm451_vm1, %v513_v37, %v515_v39  ;;  %v219_v49 = vrot.slane %v48_v35, 1  ;;  %v517_v50 = vrot.slane %v47_v26, 2  ;;  %v58_v37 = vld [vmem:[%s1607_s0 + $0x190] sm:$0x1] }
  0x34   :  { %898 = vst.msk [vmem:[%s1608_s1 + $0x90] sm:$0xff] %vm878_vm2, %v836_v41  ;;  %v714_v51 = vmax.f32 %v373_v33, %v514_v47  ;;  %v715_v52 = vmax.f32 %v374_v38, %v516_v48  ;;  %v518_v53 = vrot.slane %v48_v35, 2  ;;  %v520_v54 = vrot.slane %v49_v36, 2  ;;  %v59_v38 = vld [vmem:[%s1607_s0 + $0x198] sm:$0xff]  ;;  %v60_v47 = vld [vmem:[%s1607_s0 + $0x1a0] sm:$0xff]  ;;  %v62_v48 = vld [vmem:[%s1607_s0 + $0x1b0] sm:$0xff] }
  0x35   :  { %899 = vst.msk [vmem:[%s1608_s1 + $0x98] sm:$0x7f] %vm880_vm3, %v837_v42  ;;  %v220_v55 = vsel %vm178_vm0, %v218_v40, %v219_v49  ;;  %v376_v56 = vmax.f32 %v48_v35, %v219_v49  ;;  %v221_v57 = vrot.slane %v50_v45, 1  ;;  %v222_v58 = vrot.slane %v51_v46, 1  ;;  %v63_v49 = vld [vmem:[%s1607_s0 + $0x1b8] sm:$0xff] }
  0x36   :  { %v838_v59 = vmax.f32 %v778_v43, %v714_v51  ;;  %v839_v60 = vmax.f32 %v779_v44, %v715_v52  ;;  %v375_v61 = vmax.f32 %v47_v26, %v220_v55  ;;  %v519_v62 = vsel %vm451_vm1, %v517_v50, %v518_v53 }
  0x37   :  { %v780_v1 = vmax.f32 %v712_v31, %v714_v51  ;;  %v521_v2 = vsel %vm451_vm1, %v518_v53, %v520_v54  ;;  %v781_v3 = vmax.f32 %v713_v32, %v715_v52  ;;  %v223_v4 = vsel %vm178_vm0, %v221_v57, %v222_v58  ;;  %v65_v53 = vld [vmem:[%s1607_s0 + $0x1c8] sm:$0xff] }
  0x38   :  { %900 = vst.msk [vmem:[%s1608_s1 + $0xa0] sm:$0xff] %vm878_vm2, %v838_v59  ;;  %v716_v5 = vmax.f32 %v375_v61, %v519_v62  ;;  %v717_v6 = vmax.f32 %v376_v56, %v521_v2  ;;  %v377_v7 = vmax.f32 %v50_v45, %v223_v4  ;;  %v522_v8 = vrot.slane %v50_v45, 2  ;;  %v66_v59 = vld [vmem:[%s1607_s0 + $0x1d0] sm:$0xff] }
  0x39   :  { %901 = vst.msk [vmem:[%s1608_s1 + $0xa8] sm:$0x7f] %vm880_vm3, %v839_v60  ;;  %v523_v11 = vrot.slane %v51_v46, 2  ;;  %v378_v12 = vmax.f32 %v51_v46, %v222_v58  ;;  %v525_v13 = vrot.slane %v52_v63, 2  ;;  %v224_v14 = vrot.slane %v53_v0, 1 }
  0x3a   :  { %v840_v15 = vmax.f32 %v780_v1, %v716_v5  ;;  %v841_v16 = vmax.f32 %v781_v3, %v717_v6  ;;  %v782_v17 = vmax.f32 %v714_v51, %v716_v5  ;;  %v783_v18 = vmax.f32 %v715_v52, %v717_v6 }
  0x3b   :  { %v524_v21 = vsel %vm451_vm1, %v522_v8, %v523_v11  ;;  %v526_v22 = vsel %vm451_vm1, %v523_v11, %v525_v13  ;;  %v225_v23 = vrot.slane %v54_v9, 1  ;;  %v527_v24 = vrot.slane %v53_v0, 2 }
  0x3c   :  { %902 = vst.msk [vmem:[%s1608_s1 + $0xb0] sm:$0xff] %vm878_vm2, %v840_v15  ;;  %v718_v25 = vmax.f32 %v377_v7, %v524_v21  ;;  %v719_v26 = vmax.f32 %v378_v12, %v526_v22  ;;  %v528_v27 = vrot.slane %v54_v9, 2  ;;  %v530_v28 = vrot.slane %v55_v10, 2  ;;  %v61_v12 = vld [vmem:[%s1607_s0 + $0x1a8] sm:$0x1] }
  0x3d   :  { %903 = vst.msk [vmem:[%s1608_s1 + $0xb8] sm:$0x7f] %vm880_vm3, %v841_v16  ;;  %v226_v29 = vsel %vm178_vm0, %v224_v14, %v225_v23  ;;  %v380_v30 = vmax.f32 %v54_v9, %v225_v23  ;;  %v227_v31 = vrot.slane %v56_v19, 1  ;;  %v228_v32 = vrot.slane %v57_v20, 1  ;;  %v68_v23 = vld [vmem:[%s1607_s0 + $0x1e0] sm:$0xff] }
  0x3e   :  { %v842_v33 = vmax.f32 %v782_v17, %v718_v25  ;;  %v843_v34 = vmax.f32 %v783_v18, %v719_v26  ;;  %v379_v35 = vmax.f32 %v53_v0, %v226_v29  ;;  %v529_v36 = vsel %vm451_vm1, %v527_v24, %v528_v27  ;;  %v64_v17 = vld [vmem:[%s1607_s0 + $0x1c0] sm:$0x1]  ;;  %v67_v18 = vld [vmem:[%s1607_s0 + $0x1d8] sm:$0x1] }
  0x3f   :  { %v784_v39 = vmax.f32 %v716_v5, %v718_v25  ;;  %v531_v40 = vsel %vm451_vm1, %v528_v27, %v530_v28  ;;  %v785_v41 = vmax.f32 %v717_v6, %v719_v26  ;;  %v229_v42 = vsel %vm178_vm0, %v227_v31, %v228_v32  ;;  %v69_v28 = vld [vmem:[%s1607_s0 + $0x1e8] sm:$0xff] }
  0x40   :  { %904 = vst.msk [vmem:[%s1608_s1 + $0xc0] sm:$0xff] %vm878_vm2, %v842_v33  ;;  %v720_v43 = vmax.f32 %v379_v35, %v529_v36  ;;  %v721_v44 = vmax.f32 %v380_v30, %v531_v40  ;;  %v381_v45 = vmax.f32 %v56_v19, %v229_v42  ;;  %v532_v46 = vrot.slane %v56_v19, 2 }
  0x41   :  { %905 = vst.msk [vmem:[%s1608_s1 + $0xc8] sm:$0x7f] %vm880_vm3, %v843_v34  ;;  %v533_v50 = vrot.slane %v57_v20, 2  ;;  %v382_v51 = vmax.f32 %v57_v20, %v228_v32  ;;  %v535_v52 = vrot.slane %v58_v37, 2  ;;  %v230_v54 = vrot.slane %v59_v38, 1 }
  0x42   :  { %v844_v55 = vmax.f32 %v784_v39, %v720_v43  ;;  %v845_v56 = vmax.f32 %v785_v41, %v721_v44  ;;  %v786_v57 = vmax.f32 %v718_v25, %v720_v43  ;;  %v787_v58 = vmax.f32 %v719_v26, %v721_v44 }
  0x43   :  { %v534_v60 = vsel %vm451_vm1, %v532_v46, %v533_v50  ;;  %v536_v61 = vsel %vm451_vm1, %v533_v50, %v535_v52  ;;  %v231_v62 = vrot.slane %v60_v47, 1  ;;  %v233_v63 = vrot.slane %v62_v48, 1  ;;  %v71_v46 = vld [vmem:[%s1607_s0 + $0x1f8] sm:$0xff] }
  0x44   :  { %906 = vst.msk [vmem:[%s1608_s1 + $0xd0] sm:$0xff] %vm878_vm2, %v844_v55  ;;  %v722_v0 = vmax.f32 %v381_v45, %v534_v60  ;;  %v723_v1 = vmax.f32 %v382_v51, %v536_v61  ;;  %v234_v2 = vrot.slane %v63_v49, 1  ;;  %v236_v3 = vrot.slane %v65_v53, 1  ;;  %v70_v45 = vld [vmem:[%s1607_s0 + $0x1f0] sm:$0x1]  ;;  %v72_v51 = vld [vmem:[%s1607_s0 + $0x200] sm:$0xff] }
  0x45   :  { %907 = vst.msk [vmem:[%s1608_s1 + $0xd8] sm:$0x7f] %vm880_vm3, %v845_v56  ;;  %v232_v4 = vsel %vm178_vm0, %v230_v54, %v231_v62  ;;  %v237_v5 = vrot.slane %v66_v59, 1  ;;  %v537_v6 = vrot.slane %v59_v38, 2  ;;  %v538_v7 = vrot.slane %v60_v47, 2 }
  0x46   :  { %v846_v8 = vmax.f32 %v786_v57, %v722_v0  ;;  %v847_v9 = vmax.f32 %v787_v58, %v723_v1  ;;  %v235_v10 = vsel %vm178_vm0, %v233_v63, %v234_v2  ;;  %v383_v11 = vmax.f32 %v59_v38, %v232_v4  ;;  %v73_v56 = vld [vmem:[%s1607_s0 + $0x208] sm:$0x1]  ;;  %v74_v57 = vld [vmem:[%s1607_s0 + $0x210] sm:$0xff] }
  0x47   :  { %v238_v13 = vsel %vm178_vm0, %v236_v3, %v237_v5  ;;  %v385_v14 = vmax.f32 %v62_v48, %v235_v10  ;;  %v539_v15 = vsel %vm451_vm1, %v537_v6, %v538_v7  ;;  %v542_v16 = vrot.slane %v62_v48, 2 }
  0x48   :  { %908 = vst.msk [vmem:[%s1608_s1 + $0xe0] sm:$0xff] %vm878_vm2, %v846_v8  ;;  %v387_v19 = vmax.f32 %v65_v53, %v238_v13  ;;  %v543_v20 = vrot.slane %v63_v49, 2  ;;  %v547_v21 = vrot.slane %v65_v53, 2  ;;  %v548_v22 = vrot.slane %v66_v59, 2 }
  0x49   :  { %909 = vst.msk [vmem:[%s1608_s1 + $0xe8] sm:$0x7f] %vm880_vm3, %v847_v9  ;;  %v724_v24 = vmax.f32 %v383_v11, %v539_v15  ;;  %v384_v25 = vmax.f32 %v60_v47, %v231_v62  ;;  %v386_v26 = vmax.f32 %v63_v49, %v234_v2  ;;  %v388_v27 = vmax.f32 %v66_v59, %v237_v5  ;;  %v75_v5 = vld [vmem:[%s1607_s0 + $0x218] sm:$0xff]  ;;  %v76_v11 = vld [vmem:[%s1607_s0 + $0x220] sm:$0x1] }
  0x4a   :  { %v544_v29 = vsel %vm451_vm1, %v542_v16, %v543_v20  ;;  %v549_v30 = vsel %vm451_vm1, %v547_v21, %v548_v22  ;;  %v540_v31 = vrot.slane %v61_v12, 2  ;;  %v545_v32 = vrot.slane %v64_v17, 2  ;;  %v77_v16 = vld [vmem:[%s1607_s0 + $0x228] sm:$0xff]  ;;  %v78_v17 = vld [vmem:[%s1607_s0 + $0x230] sm:$0xff] }
  0x4b   :  { %v726_v33 = vmax.f32 %v385_v14, %v544_v29  ;;  %v1317_v34 = vmax.f32 %v387_v19, %v549_v30  ;;  %v550_v35 = vrot.slane %v67_v18, 2  ;;  %v239_v36 = vrot.slane %v68_v23, 1 }
  0x4c   :  { %v541_v37 = vsel %vm451_vm1, %v538_v7, %v540_v31  ;;  %v546_v38 = vsel %vm451_vm1, %v543_v20, %v545_v32  ;;  %v240_v39 = vrot.slane %v69_v28, 1  ;;  %v552_v40 = vrot.slane %v68_v23, 2 }
  0x4d   :  { %v788_v41 = vmax.f32 %v724_v24, %v726_v33  ;;  %v551_v42 = vsel %vm451_vm1, %v548_v22, %v550_v35  ;;  %v725_v43 = vmax.f32 %v384_v25, %v541_v37  ;;  %v727_v44 = vmax.f32 %v386_v26, %v546_v38  ;;  %v80_v35 = vld [vmem:[%s1607_s0 + $0x240] sm:$0xff] }
  0x4e   :  { %v729_v47 = vmax.f32 %v388_v27, %v551_v42  ;;  %v241_v48 = vsel %vm178_vm0, %v239_v36, %v240_v39  ;;  %v553_v49 = vrot.slane %v69_v28, 2  ;;  %v790_v50 = vmax.f32 %v726_v33, %v1317_v34 }
  0x4f   :  { %v848_v52 = vmax.f32 %v788_v41, %v1317_v34  ;;  %v789_v53 = vmax.f32 %v725_v43, %v727_v44  ;;  %v389_v54 = vmax.f32 %v68_v23, %v241_v48  ;;  %v390_v55 = vmax.f32 %v69_v28, %v240_v39 }
  0x50   :  { %v554_v58 = vsel %vm451_vm1, %v552_v40, %v553_v49  ;;  %v555_v59 = vrot.slane %v70_v45, 2  ;;  %v791_v60 = vmax.f32 %v727_v44, %v729_v47  ;;  %v242_v61 = vrot.slane %v71_v46, 1  ;;  %v81_v44 = vld [vmem:[%s1607_s0 + $0x248] sm:$0xff]  ;;  %v82_v45 = vld [vmem:[%s1607_s0 + $0x250] sm:$0x1] }
  0x51   :  { %910 = vst.msk [vmem:[%s1608_s1 + $0xf0] sm:$0xff] %vm878_vm2, %v848_v52  ;;  %v849_v62 = vmax.f32 %v789_v53, %v729_v47  ;;  %v730_v63 = vmax.f32 %v389_v54, %v554_v58  ;;  %v243_v0 = vrot.slane %v72_v51, 1  ;;  %v557_v1 = vrot.slane %v71_v46, 2  ;;  %v83_v54 = vld [vmem:[%s1607_s0 + $0x258] sm:$0xff] }
  0x52   :  { %v556_v2 = vsel %vm451_vm1, %v553_v49, %v555_v59  ;;  %v558_v3 = vrot.slane %v72_v51, 2  ;;  %v560_v4 = vrot.slane %v73_v56, 2  ;;  %v245_v6 = vrot.slane %v74_v57, 1 }
  0x53   :  { %911 = vst.msk [vmem:[%s1608_s1 + $0xf8] sm:$0x7f] %vm880_vm3, %v849_v62  ;;  %v850_v7 = vmax.f32 %v790_v50, %v730_v63  ;;  %v731_v8 = vmax.f32 %v390_v55, %v556_v2  ;;  %v244_v9 = vsel %vm178_vm0, %v242_v61, %v243_v0  ;;  %v792_v10 = vmax.f32 %v1317_v34, %v730_v63  ;;  %v79_v34 = vld [vmem:[%s1607_s0 + $0x238] sm:$0x1]  ;;  %v84_v55 = vld [vmem:[%s1607_s0 + $0x260] sm:$0xff] }
  0x54   :  { %v391_v12 = vmax.f32 %v71_v46, %v244_v9  ;;  %v559_v13 = vsel %vm451_vm1, %v557_v1, %v558_v3  ;;  %v392_v14 = vmax.f32 %v72_v51, %v243_v0  ;;  %v561_v15 = vsel %vm451_vm1, %v558_v3, %v560_v4  ;;  %v86_v9 = vld [vmem:[%s1607_s0 + $0x270] sm:$0xff] }
  0x55   :  { %912 = vst.msk [vmem:[%s1608_s1 + $0x100] sm:$0xff] %vm878_vm2, %v850_v7  ;;  %v851_v18 = vmax.f32 %v791_v60, %v731_v8  ;;  %v793_v19 = vmax.f32 %v729_v47, %v731_v8  ;;  %v246_v20 = vrot.slane %v75_v5, 1  ;;  %v562_v21 = vrot.slane %v74_v57, 2 }
  0x56   :  { %v732_v22 = vmax.f32 %v391_v12, %v559_v13  ;;  %v733_v23 = vmax.f32 %v392_v14, %v561_v15  ;;  %v563_v24 = vrot.slane %v75_v5, 2  ;;  %v565_v25 = vrot.slane %v76_v11, 2 }
  0x57   :  { %913 = vst.msk [vmem:[%s1608_s1 + $0x108] sm:$0x7f] %vm880_vm3, %v851_v18  ;;  %v247_v26 = vsel %vm178_vm0, %v245_v6, %v246_v20  ;;  %v394_v27 = vmax.f32 %v75_v5, %v246_v20  ;;  %v248_v28 = vrot.slane %v77_v16, 1  ;;  %v249_v29 = vrot.slane %v78_v17, 1  ;;  %v87_v18 = vld [vmem:[%s1607_s0 + $0x278] sm:$0xff] }
  0x58   :  { %v852_v30 = vmax.f32 %v792_v10, %v732_v22  ;;  %v853_v31 = vmax.f32 %v793_v19, %v733_v23  ;;  %v393_v32 = vmax.f32 %v74_v57, %v247_v26  ;;  %v564_v33 = vsel %vm451_vm1, %v562_v21, %v563_v24  ;;  %v88_v19 = vld [vmem:[%s1607_s0 + $0x280] sm:$0x1] }
  0x59   :  { %v794_v36 = vmax.f32 %v730_v63, %v732_v22  ;;  %v566_v37 = vsel %vm451_vm1, %v563_v24, %v565_v25  ;;  %v795_v38 = vmax.f32 %v731_v8, %v733_v23  ;;  %v250_v39 = vsel %vm178_vm0, %v248_v28, %v249_v29  ;;  %v85_v8 = vld [vmem:[%s1607_s0 + $0x268] sm:$0x1] }
  0x5a   :  { %914 = vst.msk [vmem:[%s1608_s1 + $0x110] sm:$0xff] %vm878_vm2, %v852_v30  ;;  %v734_v40 = vmax.f32 %v393_v32, %v564_v33  ;;  %v735_v41 = vmax.f32 %v394_v27, %v566_v37  ;;  %v395_v42 = vmax.f32 %v77_v16, %v250_v39  ;;  %v567_v43 = vrot.slane %v77_v16, 2  ;;  %v89_v28 = vld [vmem:[%s1607_s0 + $0x288] sm:$0xff] }
  0x5b   :  { %915 = vst.msk [vmem:[%s1608_s1 + $0x118] sm:$0x7f] %vm880_vm3, %v853_v31  ;;  %v568_v46 = vrot.slane %v78_v17, 2  ;;  %v396_v47 = vmax.f32 %v78_v17, %v249_v29  ;;  %v570_v48 = vrot.slane %v79_v34, 2  ;;  %v251_v49 = vrot.slane %v80_v35, 1  ;;  %v90_v29 = vld [vmem:[%s1607_s0 + $0x290] sm:$0xff] }
  0x5c   :  { %v854_v50 = vmax.f32 %v794_v36, %v734_v40  ;;  %v855_v51 = vmax.f32 %v795_v38, %v735_v41  ;;  %v796_v52 = vmax.f32 %v732_v22, %v734_v40  ;;  %v797_v53 = vmax.f32 %v733_v23, %v735_v41 }
  0x5d   :  { %v569_v56 = vsel %vm451_vm1, %v567_v43, %v568_v46  ;;  %v571_v57 = vsel %vm451_vm1, %v568_v46, %v570_v48  ;;  %v252_v58 = vrot.slane %v81_v44, 1  ;;  %v572_v59 = vrot.slane %v80_v35, 2  ;;  %v91_v46 = vld [vmem:[%s1607_s0 + $0x298] sm:$0x1] }
  0x5e   :  { %916 = vst.msk [vmem:[%s1608_s1 + $0x120] sm:$0xff] %vm878_vm2, %v854_v50  ;;  %v736_v60 = vmax.f32 %v395_v42, %v569_v56  ;;  %v737_v61 = vmax.f32 %v396_v47, %v571_v57  ;;  %v573_v62 = vrot.slane %v81_v44, 2  ;;  %v575_v63 = vrot.slane %v82_v45, 2  ;;  %v92_v47 = vld [vmem:[%s1607_s0 + $0x2a0] sm:$0xff]  ;;  %v93_v56 = vld [vmem:[%s1607_s0 + $0x2a8] sm:$0xff] }
  0x5f   :  { %917 = vst.msk [vmem:[%s1608_s1 + $0x128] sm:$0x7f] %vm880_vm3, %v855_v51  ;;  %v253_v0 = vsel %vm178_vm0, %v251_v49, %v252_v58  ;;  %v398_v1 = vmax.f32 %v81_v44, %v252_v58  ;;  %v254_v2 = vrot.slane %v83_v54, 1  ;;  %v255_v3 = vrot.slane %v84_v55, 1  ;;  %v94_v57 = vld [vmem:[%s1607_s0 + $0x2b0] sm:$0x1] }
  0x60   :  { %v856_v4 = vmax.f32 %v796_v52, %v736_v60  ;;  %v857_v5 = vmax.f32 %v797_v53, %v737_v61  ;;  %v397_v6 = vmax.f32 %v80_v35, %v253_v0  ;;  %v574_v7 = vsel %vm451_vm1, %v572_v59, %v573_v62 }
  0x61   :  { %v798_v10 = vmax.f32 %v734_v40, %v736_v60  ;;  %v576_v11 = vsel %vm451_vm1, %v573_v62, %v575_v63  ;;  %v799_v12 = vmax.f32 %v735_v41, %v737_v61  ;;  %v256_v13 = vsel %vm178_vm0, %v254_v2, %v255_v3  ;;  %v95_v2 = vld [vmem:[%s1607_s0 + $0x2b8] sm:$0xff] }
  0x62   :  { %918 = vst.msk [vmem:[%s1608_s1 + $0x130] sm:$0xff] %vm878_vm2, %v856_v4  ;;  %v738_v14 = vmax.f32 %v397_v6, %v574_v7  ;;  %v739_v15 = vmax.f32 %v398_v1, %v576_v11  ;;  %v399_v16 = vmax.f32 %v83_v54, %v256_v13  ;;  %v577_v17 = vrot.slane %v83_v54, 2 }
  0x63   :  { %919 = vst.msk [vmem:[%s1608_s1 + $0x138] sm:$0x7f] %vm880_vm3, %v857_v5  ;;  %v578_v20 = vrot.slane %v84_v55, 2  ;;  %v400_v21 = vmax.f32 %v84_v55, %v255_v3  ;;  %v580_v22 = vrot.slane %v85_v8, 2  ;;  %v257_v23 = vrot.slane %v86_v9, 1  ;;  %v96_v3 = vld [vmem:[%s1607_s0 + $0x2c0] sm:$0xff] }
  0x64   :  { %v858_v24 = vmax.f32 %v798_v10, %v738_v14  ;;  %v859_v25 = vmax.f32 %v799_v12, %v739_v15  ;;  %v800_v26 = vmax.f32 %v736_v60, %v738_v14  ;;  %v801_v27 = vmax.f32 %v737_v61, %v739_v15 }
  0x65   :  { %v579_v30 = vsel %vm451_vm1, %v577_v17, %v578_v20  ;;  %v581_v31 = vsel %vm451_vm1, %v578_v20, %v580_v22  ;;  %v258_v32 = vrot.slane %v87_v18, 1  ;;  %v582_v33 = vrot.slane %v86_v9, 2  ;;  %v97_v20 = vld [vmem:[%s1607_s0 + $0x2c8] sm:$0x1] }
  0x66   :  { %920 = vst.msk [vmem:[%s1608_s1 + $0x140] sm:$0xff] %vm878_vm2, %v858_v24  ;;  %v740_v34 = vmax.f32 %v399_v16, %v579_v30  ;;  %v741_v35 = vmax.f32 %v400_v21, %v581_v31  ;;  %v583_v36 = vrot.slane %v87_v18, 2  ;;  %v585_v37 = vrot.slane %v88_v19, 2  ;;  %v98_v21 = vld [vmem:[%s1607_s0 + $0x2d0] sm:$0xff]  ;;  %v99_v30 = vld [vmem:[%s1607_s0 + $0x2d8] sm:$0xff] }
  0x67   :  { %921 = vst.msk [vmem:[%s1608_s1 + $0x148] sm:$0x7f] %vm880_vm3, %v859_v25  ;;  %v259_v38 = vsel %vm178_vm0, %v257_v23, %v258_v32  ;;  %v402_v39 = vmax.f32 %v87_v18, %v258_v32  ;;  %v260_v40 = vrot.slane %v89_v28, 1  ;;  %v261_v41 = vrot.slane %v90_v29, 1  ;;  %v100_v31 = vld [vmem:[%s1607_s0 + $0x2e0] sm:$0x1] }
  0x68   :  { %v860_v42 = vmax.f32 %v800_v26, %v740_v34  ;;  %v861_v43 = vmax.f32 %v801_v27, %v741_v35  ;;  %v401_v44 = vmax.f32 %v86_v9, %v259_v38  ;;  %v584_v45 = vsel %vm451_vm1, %v582_v33, %v583_v36 }
  0x69   :  { %v802_v48 = vmax.f32 %v738_v14, %v740_v34  ;;  %v586_v49 = vsel %vm451_vm1, %v583_v36, %v585_v37  ;;  %v803_v50 = vmax.f32 %v739_v15, %v741_v35  ;;  %v262_v51 = vsel %vm178_vm0, %v260_v40, %v261_v41  ;;  %v101_v40 = vld [vmem:[%s1607_s0 + $0x2e8] sm:$0xff] }
  0x6a   :  { %922 = vst.msk [vmem:[%s1608_s1 + $0x150] sm:$0xff] %vm878_vm2, %v860_v42  ;;  %v742_v52 = vmax.f32 %v401_v44, %v584_v45  ;;  %v743_v53 = vmax.f32 %v402_v39, %v586_v49  ;;  %v403_v54 = vmax.f32 %v89_v28, %v262_v51  ;;  %v587_v55 = vrot.slane %v89_v28, 2 }
  0x6b   :  { %923 = vst.msk [vmem:[%s1608_s1 + $0x158] sm:$0x7f] %vm880_vm3, %v861_v43  ;;  %v588_v58 = vrot.slane %v90_v29, 2  ;;  %v404_v59 = vmax.f32 %v90_v29, %v261_v41  ;;  %v590_v60 = vrot.slane %v91_v46, 2  ;;  %v263_v61 = vrot.slane %v92_v47, 1  ;;  %v102_v41 = vld [vmem:[%s1607_s0 + $0x2f0] sm:$0xff] }
  0x6c   :  { %v862_v62 = vmax.f32 %v802_v48, %v742_v52  ;;  %v863_v63 = vmax.f32 %v803_v50, %v743_v53  ;;  %v804_v0 = vmax.f32 %v740_v34, %v742_v52  ;;  %v805_v1 = vmax.f32 %v741_v35, %v743_v53 }
  0x6d   :  { %v589_v4 = vsel %vm451_vm1, %v587_v55, %v588_v58  ;;  %v591_v5 = vsel %vm451_vm1, %v588_v58, %v590_v60  ;;  %v264_v6 = vrot.slane %v93_v56, 1  ;;  %v592_v7 = vrot.slane %v92_v47, 2  ;;  %v103_v58 = vld [vmem:[%s1607_s0 + $0x2f8] sm:$0x1] }
  0x6e   :  { %924 = vst.msk [vmem:[%s1608_s1 + $0x160] sm:$0xff] %vm878_vm2, %v862_v62  ;;  %v744_v8 = vmax.f32 %v403_v54, %v589_v4  ;;  %v745_v9 = vmax.f32 %v404_v59, %v591_v5  ;;  %v593_v10 = vrot.slane %v93_v56, 2  ;;  %v595_v11 = vrot.slane %v94_v57, 2  ;;  %v104_v59 = vld [vmem:[%s1607_s0 + $0x300] sm:$0xff]  ;;  %v105_v4 = vld [vmem:[%s1607_s0 + $0x308] sm:$0xff] }
  0x6f   :  { %925 = vst.msk [vmem:[%s1608_s1 + $0x168] sm:$0x7f] %vm880_vm3, %v863_v63  ;;  %v265_v12 = vsel %vm178_vm0, %v263_v61, %v264_v6  ;;  %v406_v13 = vmax.f32 %v93_v56, %v264_v6  ;;  %v266_v14 = vrot.slane %v95_v2, 1  ;;  %v267_v15 = vrot.slane %v96_v3, 1  ;;  %v106_v5 = vld [vmem:[%s1607_s0 + $0x310] sm:$0x1] }
  0x70   :  { %v864_v16 = vmax.f32 %v804_v0, %v744_v8  ;;  %v865_v17 = vmax.f32 %v805_v1, %v745_v9  ;;  %v405_v18 = vmax.f32 %v92_v47, %v265_v12  ;;  %v594_v19 = vsel %vm451_vm1, %v592_v7, %v593_v10 }
  0x71   :  { %v806_v22 = vmax.f32 %v742_v52, %v744_v8  ;;  %v596_v23 = vsel %vm451_vm1, %v593_v10, %v595_v11  ;;  %v807_v24 = vmax.f32 %v743_v53, %v745_v9  ;;  %v268_v25 = vsel %vm178_vm0, %v266_v14, %v267_v15  ;;  %v107_v14 = vld [vmem:[%s1607_s0 + $0x318] sm:$0xff] }
  0x72   :  { %926 = vst.msk [vmem:[%s1608_s1 + $0x170] sm:$0xff] %vm878_vm2, %v864_v16  ;;  %v746_v26 = vmax.f32 %v405_v18, %v594_v19  ;;  %v747_v27 = vmax.f32 %v406_v13, %v596_v23  ;;  %v407_v28 = vmax.f32 %v95_v2, %v268_v25  ;;  %v597_v29 = vrot.slane %v95_v2, 2 }
  0x73   :  { %927 = vst.msk [vmem:[%s1608_s1 + $0x178] sm:$0x7f] %vm880_vm3, %v865_v17  ;;  %v598_v32 = vrot.slane %v96_v3, 2  ;;  %v408_v33 = vmax.f32 %v96_v3, %v267_v15  ;;  %v600_v34 = vrot.slane %v97_v20, 2  ;;  %v269_v35 = vrot.slane %v98_v21, 1  ;;  %v108_v15 = vld [vmem:[%s1607_s0 + $0x320] sm:$0xff] }
  0x74   :  { %v866_v36 = vmax.f32 %v806_v22, %v746_v26  ;;  %v867_v37 = vmax.f32 %v807_v24, %v747_v27  ;;  %v808_v38 = vmax.f32 %v744_v8, %v746_v26  ;;  %v809_v39 = vmax.f32 %v745_v9, %v747_v27 }
  0x75   :  { %v599_v42 = vsel %vm451_vm1, %v597_v29, %v598_v32  ;;  %v601_v43 = vsel %vm451_vm1, %v598_v32, %v600_v34  ;;  %v270_v44 = vrot.slane %v99_v30, 1  ;;  %v602_v45 = vrot.slane %v98_v21, 2  ;;  %v109_v32 = vld [vmem:[%s1607_s0 + $0x328] sm:$0x1] }
  0x76   :  { %928 = vst.msk [vmem:[%s1608_s1 + $0x180] sm:$0xff] %vm878_vm2, %v866_v36  ;;  %v748_v46 = vmax.f32 %v407_v28, %v599_v42  ;;  %v749_v47 = vmax.f32 %v408_v33, %v601_v43  ;;  %v603_v48 = vrot.slane %v99_v30, 2  ;;  %v605_v49 = vrot.slane %v100_v31, 2 }
  0x77   :  { %929 = vst.msk [vmem:[%s1608_s1 + $0x188] sm:$0x7f] %vm880_vm3, %v867_v37  ;;  %v271_v50 = vsel %vm178_vm0, %v269_v35, %v270_v44  ;;  %v410_v51 = vmax.f32 %v99_v30, %v270_v44  ;;  %v272_v52 = vrot.slane %v101_v40, 1  ;;  %v273_v53 = vrot.slane %v102_v41, 1 }
  0x78   :  { %v868_v54 = vmax.f32 %v808_v38, %v748_v46  ;;  %v869_v55 = vmax.f32 %v809_v39, %v749_v47  ;;  %v409_v56 = vmax.f32 %v98_v21, %v271_v50  ;;  %v604_v57 = vsel %vm451_vm1, %v602_v45, %v603_v48 }
  0x79   :  { %v810_v60 = vmax.f32 %v746_v26, %v748_v46  ;;  %v606_v61 = vsel %vm451_vm1, %v603_v48, %v605_v49  ;;  %v811_v62 = vmax.f32 %v747_v27, %v749_v47  ;;  %v274_v63 = vsel %vm178_vm0, %v272_v52, %v273_v53 }
  0x7a   :  { %930 = vst.msk [vmem:[%s1608_s1 + $0x190] sm:$0xff] %vm878_vm2, %v868_v54  ;;  %v750_v0 = vmax.f32 %v409_v56, %v604_v57  ;;  %v751_v1 = vmax.f32 %v410_v51, %v606_v61  ;;  %v411_v2 = vmax.f32 %v101_v40, %v274_v63  ;;  %v607_v3 = vrot.slane %v101_v40, 2 }
  0x7b   :  { %931 = vst.msk [vmem:[%s1608_s1 + $0x198] sm:$0x7f] %vm880_vm3, %v869_v55  ;;  %v608_v6 = vrot.slane %v102_v41, 2  ;;  %v412_v7 = vmax.f32 %v102_v41, %v273_v53  ;;  %v610_v8 = vrot.slane %v103_v58, 2  ;;  %v275_v9 = vrot.slane %v104_v59, 1 }
  0x7c   :  { %v870_v10 = vmax.f32 %v810_v60, %v750_v0  ;;  %v871_v11 = vmax.f32 %v811_v62, %v751_v1  ;;  %v812_v12 = vmax.f32 %v748_v46, %v750_v0  ;;  %v813_v13 = vmax.f32 %v749_v47, %v751_v1 }
  0x7d   :  { %v609_v16 = vsel %vm451_vm1, %v607_v3, %v608_v6  ;;  %v611_v17 = vsel %vm451_vm1, %v608_v6, %v610_v8  ;;  %v276_v18 = vrot.slane %v105_v4, 1  ;;  %v612_v19 = vrot.slane %v104_v59, 2 }
  0x7e   :  { %932 = vst.msk [vmem:[%s1608_s1 + $0x1a0] sm:$0xff] %vm878_vm2, %v870_v10  ;;  %v752_v20 = vmax.f32 %v411_v2, %v609_v16  ;;  %v753_v21 = vmax.f32 %v412_v7, %v611_v17  ;;  %v613_v22 = vrot.slane %v105_v4, 2  ;;  %v615_v23 = vrot.slane %v106_v5, 2 }
  0x7f   :  { %933 = vst.msk [vmem:[%s1608_s1 + $0x1a8] sm:$0x7f] %vm880_vm3, %v871_v11  ;;  %v277_v24 = vsel %vm178_vm0, %v275_v9, %v276_v18  ;;  %v414_v25 = vmax.f32 %v105_v4, %v276_v18  ;;  %v278_v26 = vrot.slane %v107_v14, 1  ;;  %v279_v27 = vrot.slane %v108_v15, 1 }
  0x80   :  { %v872_v28 = vmax.f32 %v812_v12, %v752_v20  ;;  %v873_v29 = vmax.f32 %v813_v13, %v753_v21  ;;  %v413_v30 = vmax.f32 %v104_v59, %v277_v24  ;;  %v614_v31 = vsel %vm451_vm1, %v612_v19, %v613_v22 }
  0x81   :  { %v814_v33 = vmax.f32 %v750_v0, %v752_v20  ;;  %v616_v34 = vsel %vm451_vm1, %v613_v22, %v615_v23  ;;  %v815_v35 = vmax.f32 %v751_v1, %v753_v21  ;;  %v280_v36 = vsel %vm178_vm0, %v278_v26, %v279_v27 }
  0x82   :  { %934 = vst.msk [vmem:[%s1608_s1 + $0x1b0] sm:$0xff] %vm878_vm2, %v872_v28  ;;  %v754_v37 = vmax.f32 %v413_v30, %v614_v31  ;;  %v755_v38 = vmax.f32 %v414_v25, %v616_v34  ;;  %v415_v39 = vmax.f32 %v107_v14, %v280_v36  ;;  %v617_v40 = vrot.slane %v107_v14, 2 }
  0x83   :  { %935 = vst.msk [vmem:[%s1608_s1 + $0x1b8] sm:$0x7f] %vm880_vm3, %v873_v29  ;;  %v618_v41 = vrot.slane %v108_v15, 2  ;;  %v416_v42 = vmax.f32 %v108_v15, %v279_v27  ;;  %v620_v43 = vrot.slane %v109_v32, 2 }
  0x84   :  { %v874_v44 = vmax.f32 %v814_v33, %v754_v37  ;;  %v875_v45 = vmax.f32 %v815_v35, %v755_v38  ;;  %v816_v46 = vmax.f32 %v752_v20, %v754_v37  ;;  %v817_v47 = vmax.f32 %v753_v21, %v755_v38 }
  0x85   :  { %v619_v48 = vsel %vm451_vm1, %v617_v40, %v618_v41  ;;  %v621_v49 = vsel %vm451_vm1, %v618_v41, %v620_v43 }
  0x86   :  { %936 = vst.msk [vmem:[%s1608_s1 + $0x1c0] sm:$0xff] %vm878_vm2, %v874_v44  ;;  %v756_v50 = vmax.f32 %v415_v39, %v619_v48  ;;  %v757_v51 = vmax.f32 %v416_v42, %v621_v49 }
  0x87   :  { %937 = vst.msk [vmem:[%s1608_s1 + $0x1c8] sm:$0x7f] %vm880_vm3, %v875_v45 }
  0x88   :  { %v876_v52 = vmax.f32 %v816_v46, %v756_v50  ;;  %v877_v53 = vmax.f32 %v817_v47, %v757_v51 }
  0x8a   :  { %938 = vst.msk [vmem:[%s1608_s1 + $0x1d0] sm:$0xff] %vm878_vm2, %v876_v52 }
  0x8b   :  { %939 = vst.msk [vmem:[%s1608_s1 + $0x1d8] sm:$0x7f] %vm880_vm3, %v877_v53 }

// kernel: stem_forward.18
= control target key start
LH: loop header
LB: loop body
LE: loop exit
PB: predicated region body
PF: predicated region fallthrough
CT: control target
= control target key end

     0   :  { %vm256_vm0 = vcmask 1043456   ;;  %vm273_vm1 = vcmask 523268   ;;  %s423_s0 = inlined_call_operand.vmem [shape: f32[2,6,6,192], index: 0, kind: input, shape index: {}]   ;;  %s424_s1 = inlined_call_operand.vmem [shape: f32[2,4,4,192], index: 1, kind: output, shape index: {}]  }
   0x1   :  { %v8_v0 = vld [vmem:[%s423_s0] sm:$0x3f]  ;;  %v9_v1 = vld [vmem:[%s423_s0 + $0x8] sm:$0x3f]  ;;  %v10_v2 = vld [vmem:[%s423_s0 + $0x10] sm:$0x3f] }
   0x2   :  { %v11_v3 = vld [vmem:[%s423_s0 + $0x18] sm:$0x3f]  ;;  %v12_v4 = vld [vmem:[%s423_s0 + $0x20] sm:$0x3f]  ;;  %v13_v5 = vld [vmem:[%s423_s0 + $0x28] sm:$0x3f] }
   0x3   :  { %v56_v6 = vrot.slane %v8_v0, 1  ;;  %v57_v7 = vrot.slane %v9_v1, 1  ;;  %v58_v8 = vrot.slane %v10_v2, 1  ;;  %v59_v9 = vrot.slane %v11_v3, 1  ;;  %v14_v18 = vld [vmem:[%s423_s0 + $0x30] sm:$0x3f]  ;;  %vm335_vm2 = vmor %vm273_vm1, %vm256_vm0 }
   0x4   :  { %v60_v10 = vrot.slane %v12_v4, 1  ;;  %v61_v11 = vrot.slane %v13_v5, 1  ;;  %v128_v12 = vrot.slane %v8_v0, 2  ;;  %v129_v13 = vrot.slane %v9_v1, 2  ;;  %v15_v19 = vld [vmem:[%s423_s0 + $0x38] sm:$0x3f] }
   0x5   :  { %v104_v14 = vmax.f32 %v8_v0, %v56_v6  ;;  %v105_v15 = vmax.f32 %v9_v1, %v57_v7  ;;  %v106_v16 = vmax.f32 %v10_v2, %v58_v8  ;;  %v107_v17 = vmax.f32 %v11_v3, %v59_v9  ;;  %v16_v32 = vld [vmem:[%s423_s0 + $0x40] sm:$0x3f]  ;;  %v17_v33 = vld [vmem:[%s423_s0 + $0x48] sm:$0x3f]  ;;  %v18_v50 = vld [vmem:[%s423_s0 + $0x50] sm:$0x3f] }
   0x6   :  { %v108_v20 = vmax.f32 %v12_v4, %v60_v10  ;;  %v109_v21 = vmax.f32 %v13_v5, %v61_v11  ;;  %v130_v22 = vrot.slane %v10_v2, 2  ;;  %v131_v23 = vrot.slane %v11_v3, 2  ;;  %v19_v55 = vld [vmem:[%s423_s0 + $0x58] sm:$0x3f]  ;;  %v20_v1 = vld [vmem:[%s423_s0 + $0x60] sm:$0x3f] }
   0x7   :  { %v132_v24 = vrot.slane %v12_v4, 2  ;;  %v133_v25 = vrot.slane %v13_v5, 2  ;;  %v176_v26 = vmax.f32 %v104_v14, %v128_v12  ;;  %v177_v27 = vmax.f32 %v105_v15, %v129_v13  ;;  %v21_v2 = vld [vmem:[%s423_s0 + $0x68] sm:$0x3f]  ;;  %v22_v7 = vld [vmem:[%s423_s0 + $0x70] sm:$0x3f] }
   0x8   :  { %v178_v28 = vmax.f32 %v106_v16, %v130_v22  ;;  %v179_v29 = vmax.f32 %v107_v17, %v131_v23  ;;  %v62_v30 = vrot.slane %v14_v18, 1  ;;  %v63_v31 = vrot.slane %v15_v19, 1  ;;  %v23_v12 = vld [vmem:[%s423_s0 + $0x78] sm:$0x3f]  ;;  %v24_v13 = vld [vmem:[%s423_s0 + $0x80] sm:$0x3f] }
   0x9   :  { %v180_v34 = vmax.f32 %v108_v20, %v132_v24  ;;  %v181_v35 = vmax.f32 %v109_v21, %v133_v25  ;;  %v134_v36 = vrot.slane %v14_v18, 2  ;;  %v135_v37 = vrot.slane %v15_v19, 2 }
   0xa   :  { %v200_v38 = vmax.f32 %v176_v26, %v178_v28  ;;  %v201_v39 = vmax.f32 %v177_v27, %v179_v29  ;;  %v110_v40 = vmax.f32 %v14_v18, %v62_v30  ;;  %v111_v41 = vmax.f32 %v15_v19, %v63_v31  ;;  %v25_v18 = vld [vmem:[%s423_s0 + $0x88] sm:$0x3f] }
   0xb   :  { %v202_v42 = vmax.f32 %v178_v28, %v180_v34  ;;  %v203_v43 = vmax.f32 %v179_v29, %v181_v35  ;;  %v64_v44 = vrot.slane %v16_v32, 1  ;;  %v65_v45 = vrot.slane %v17_v33, 1 }
   0xc   :  { %v216_v46 = vmax.f32 %v200_v38, %v180_v34  ;;  %v217_v47 = vmax.f32 %v201_v39, %v181_v35  ;;  %v182_v48 = vmax.f32 %v110_v40, %v134_v36  ;;  %v183_v49 = vmax.f32 %v111_v41, %v135_v37 }
   0xd   :  { %v112_v51 = vmax.f32 %v16_v32, %v64_v44  ;;  %v113_v52 = vmax.f32 %v17_v33, %v65_v45  ;;  %v136_v53 = vrot.slane %v16_v32, 2  ;;  %v137_v54 = vrot.slane %v17_v33, 2  ;;  %v27_v44 = vld [vmem:[%s423_s0 + $0x98] sm:$0x3f] }
   0xe   :  { %v248_v56 = vrot.slane %v217_v47, 4  ;;  %v218_v58 = vmax.f32 %v202_v42, %v182_v48  ;;  %v219_v59 = vmax.f32 %v203_v43, %v183_v49  ;;  %v204_v60 = vmax.f32 %v180_v34, %v182_v48 }
   0xf   :  { %v184_v61 = vmax.f32 %v112_v51, %v136_v53  ;;  %v185_v62 = vmax.f32 %v113_v52, %v137_v54  ;;  %v205_v63 = vmax.f32 %v181_v35, %v183_v49  ;;  %v66_v0 = vrot.slane %v18_v50, 1  ;;  %v26_v35 = vld [vmem:[%s423_s0 + $0x90] sm:$0x3f]  ;;  %v28_v53 = vld [vmem:[%s423_s0 + $0xa0] sm:$0x3f] }
  0x10   :  { %v257_v3 = vsel %vm256_vm0, %v216_v46, %v248_v56  ;;  %v249_v4 = vrot.slane %v219_v59, 4  ;;  %v67_v5 = vrot.slane %v19_v55, 1  ;;  %v138_v6 = vrot.slane %v18_v50, 2  ;;  %v29_v59 = vld [vmem:[%s423_s0 + $0xa8] sm:$0x3f] }
  0x11   :  { %275 = vst.msk [vmem:[%s424_s1] sm:$0xff] %vm335_vm2, %v257_v3  ;;  %v220_v8 = vmax.f32 %v204_v60, %v184_v61  ;;  %v221_v9 = vmax.f32 %v205_v63, %v185_v62  ;;  %v114_v10 = vmax.f32 %v18_v50, %v66_v0  ;;  %v139_v11 = vrot.slane %v19_v55, 2 }
  0x12   :  { %v258_v14 = vsel %vm256_vm0, %v218_v58, %v249_v4  ;;  %v115_v15 = vmax.f32 %v19_v55, %v67_v5  ;;  %v206_v16 = vmax.f32 %v182_v48, %v184_v61  ;;  %v207_v17 = vmax.f32 %v183_v49, %v185_v62  ;;  %v30_v4 = vld [vmem:[%s423_s0 + $0xb0] sm:$0x3f] }
  0x13   :  { %276 = vst.msk [vmem:[%s424_s1 + $0x8] sm:$0xff] %vm335_vm2, %v258_v14  ;;  %v250_v19 = vrot.slane %v221_v9, 4  ;;  %v186_v20 = vmax.f32 %v114_v10, %v138_v6  ;;  %v68_v21 = vrot.slane %v20_v1, 1  ;;  %v69_v22 = vrot.slane %v21_v2, 1  ;;  %v31_v9 = vld [vmem:[%s423_s0 + $0xb8] sm:$0x3f] }
  0x14   :  { %v187_v23 = vmax.f32 %v115_v15, %v139_v11  ;;  %v70_v24 = vrot.slane %v22_v7, 1  ;;  %v71_v25 = vrot.slane %v23_v12, 1  ;;  %v72_v26 = vrot.slane %v24_v13, 1 }
  0x15   :  { %v259_v27 = vsel %vm256_vm0, %v220_v8, %v250_v19  ;;  %v222_v28 = vmax.f32 %v206_v16, %v186_v20  ;;  %v73_v29 = vrot.slane %v25_v18, 1  ;;  %v116_v30 = vmax.f32 %v20_v1, %v68_v21 }
  0x16   :  { %277 = vst.msk [vmem:[%s424_s1 + $0x10] sm:$0xff] %vm335_vm2, %v259_v27  ;;  %v223_v31 = vmax.f32 %v207_v17, %v187_v23  ;;  %v117_v32 = vmax.f32 %v21_v2, %v69_v22  ;;  %v118_v33 = vmax.f32 %v22_v7, %v70_v24  ;;  %v119_v34 = vmax.f32 %v23_v12, %v71_v25 }
  0x17   :  { %v120_v36 = vmax.f32 %v24_v13, %v72_v26  ;;  %v121_v37 = vmax.f32 %v25_v18, %v73_v29  ;;  %v140_v38 = vrot.slane %v20_v1, 2  ;;  %v141_v39 = vrot.slane %v21_v2, 2 }
  0x18   :  { %v251_v40 = vrot.slane %v223_v31, 4  ;;  %v142_v41 = vrot.slane %v22_v7, 2  ;;  %v143_v42 = vrot.slane %v23_v12, 2  ;;  %v144_v43 = vrot.slane %v24_v13, 2 }
  0x19   :  { %v145_v45 = vrot.slane %v25_v18, 2  ;;  %v188_v46 = vmax.f32 %v116_v30, %v140_v38  ;;  %v189_v47 = vmax.f32 %v117_v32, %v141_v39  ;;  %v74_v48 = vrot.slane %v26_v35, 1 }
  0x1a   :  { %v260_v49 = vsel %vm256_vm0, %v222_v28, %v251_v40  ;;  %v190_v50 = vmax.f32 %v118_v33, %v142_v41  ;;  %v191_v51 = vmax.f32 %v119_v34, %v143_v42  ;;  %v192_v52 = vmax.f32 %v120_v36, %v144_v43 }
  0x1b   :  { %278 = vst.msk [vmem:[%s424_s1 + $0x18] sm:$0xff] %vm335_vm2, %v260_v49  ;;  %v193_v54 = vmax.f32 %v121_v37, %v145_v45  ;;  %v75_v55 = vrot.slane %v27_v44, 1  ;;  %v122_v56 = vmax.f32 %v26_v35, %v74_v48  ;;  %v146_v58 = vrot.slane %v26_v35, 2 }
  0x1c   :  { %v208_v60 = vmax.f32 %v188_v46, %v190_v50  ;;  %v209_v61 = vmax.f32 %v189_v47, %v191_v51  ;;  %v147_v62 = vrot.slane %v27_v44, 2  ;;  %v210_v63 = vmax.f32 %v190_v50, %v192_v52 }
  0x1d   :  { %v123_v0 = vmax.f32 %v27_v44, %v75_v55  ;;  %v194_v1 = vmax.f32 %v122_v56, %v146_v58  ;;  %v211_v2 = vmax.f32 %v191_v51, %v193_v54  ;;  %v76_v3 = vrot.slane %v28_v53, 1 }
  0x1e   :  { %v224_v5 = vmax.f32 %v208_v60, %v192_v52  ;;  %v225_v6 = vmax.f32 %v209_v61, %v193_v54  ;;  %v77_v7 = vrot.slane %v29_v59, 1  ;;  %v148_v8 = vrot.slane %v28_v53, 2 }
  0x1f   :  { %v195_v10 = vmax.f32 %v123_v0, %v147_v62  ;;  %v226_v11 = vmax.f32 %v210_v63, %v194_v1  ;;  %v124_v12 = vmax.f32 %v28_v53, %v76_v3  ;;  %v149_v13 = vrot.slane %v29_v59, 2 }
  0x20   :  { %v252_v14 = vrot.slane %v225_v6, 4  ;;  %v125_v15 = vmax.f32 %v29_v59, %v77_v7  ;;  %v212_v16 = vmax.f32 %v192_v52, %v194_v1  ;;  %v78_v17 = vrot.slane %v30_v4, 1 }
  0x21   :  { %v227_v18 = vmax.f32 %v211_v2, %v195_v10  ;;  %v196_v19 = vmax.f32 %v124_v12, %v148_v8  ;;  %v213_v20 = vmax.f32 %v193_v54, %v195_v10  ;;  %v79_v21 = vrot.slane %v31_v9, 1 }
  0x22   :  { %v261_v22 = vsel %vm256_vm0, %v224_v5, %v252_v14  ;;  %v197_v23 = vmax.f32 %v125_v15, %v149_v13  ;;  %v126_v24 = vmax.f32 %v30_v4, %v78_v17  ;;  %v150_v25 = vrot.slane %v30_v4, 2 }
  0x23   :  { %279 = vst.msk [vmem:[%s424_s1 + $0x20] sm:$0xff] %vm335_vm2, %v261_v22  ;;  %v253_v26 = vrot.slane %v227_v18, 4  ;;  %v228_v27 = vmax.f32 %v212_v16, %v196_v19  ;;  %v127_v28 = vmax.f32 %v31_v9, %v79_v21  ;;  %v151_v29 = vrot.slane %v31_v9, 2 }
  0x24   :  { %v229_v30 = vmax.f32 %v213_v20, %v197_v23  ;;  %v198_v31 = vmax.f32 %v126_v24, %v150_v25  ;;  %v214_v32 = vmax.f32 %v194_v1, %v196_v19  ;;  %v215_v33 = vmax.f32 %v195_v10, %v197_v23 }
  0x25   :  { %v262_v34 = vsel %vm256_vm0, %v226_v11, %v253_v26  ;;  %v199_v35 = vmax.f32 %v127_v28, %v151_v29 }
  0x26   :  { %280 = vst.msk [vmem:[%s424_s1 + $0x28] sm:$0xff] %vm335_vm2, %v262_v34  ;;  %v254_v36 = vrot.slane %v229_v30, 4  ;;  %v230_v37 = vmax.f32 %v214_v32, %v198_v31 }
  0x27   :  { %v231_v38 = vmax.f32 %v215_v33, %v199_v35 }
  0x28   :  { %v263_v39 = vsel %vm256_vm0, %v228_v27, %v254_v36 }
  0x29   :  { %281 = vst.msk [vmem:[%s424_s1 + $0x30] sm:$0xff] %vm335_vm2, %v263_v39  ;;  %v255_v40 = vrot.slane %v231_v38, 4 }
  0x2b   :  { %v264_v41 = vsel %vm256_vm0, %v230_v37, %v255_v40 }
  0x2c   :  { %282 = vst.msk [vmem:[%s424_s1 + $0x38] sm:$0xff] %vm335_vm2, %v264_v41 }

// kernel: stem_forward.17
= control target key start
LH: loop header
LB: loop body
LE: loop exit
PB: predicated region body
PF: predicated region fallthrough
CT: control target
= control target key end

     0   :  { %vm724_vm0 = vcmask 654336   ;;  %vm1155_vm1 = vcmask 523264   ;;  %s2746_s1 = inlined_call_operand.vmem [shape: bf16[720,192], index: 1, kind: input, shape index: {}]   ;;  %s2747_s0 = inlined_call_operand.vmem [shape: bf16[72,720], index: 0, kind: input, shape index: {}]   ;;  %s2748_s2 = inlined_call_operand.vmem [shape: f32[1,192], index: 2, kind: input, shape index: {}]   ;;  %s2749_s3 = inlined_call_operand.vmem [shape: f32[72,192], index: 3, kind: output, shape index: {}]  }
   0x1   :  { %v1331_v0 = vld [vmem:[%s2746_s1 + $0x70] sm:$0xf]  ;;  %v1682_v1 = vld [vmem:[%s2746_s1 + $0x74] sm:$0xf0]  ;;  %v1323_v11 = vld [vmem:[%s2746_s1 + $0x60] sm:$0xf] }
   0x2   :  { %v1395_v2 = vld [vmem:[%s2746_s1 + $0xf0] sm:$0xf]  ;;  %v1332_v3 = vor.u32 %v1682_v1, %v1331_v0  ;;  %v1698_v4 = vld [vmem:[%s2746_s1 + $0xf4] sm:$0xf0]  ;;  %v1680_v13 = vld [vmem:[%s2746_s1 + $0x64] sm:$0xf0] }
   0x3   :  { %v1459_v5 = vld [vmem:[%s2746_s1 + $0x170] sm:$0xf]  ;;  %v1714_v6 = vld [vmem:[%s2746_s1 + $0x174] sm:$0xf0]  ;;  %v1396_v7 = vor.u32 %v1698_v4, %v1395_v2  ;;  %v1387_v14 = vld [vmem:[%s2746_s1 + $0xe0] sm:$0xf]  ;;  %v1324_v16 = vor.u32 %v1680_v13, %v1323_v11 }
   0x4   :  { %v1460_v8 = vor.u32 %v1714_v6, %v1459_v5  ;;  %v1523_v9 = vld [vmem:[%s2746_s1 + $0x1f0] sm:$0xf]  ;;  %v1730_v10 = vld [vmem:[%s2746_s1 + $0x1f4] sm:$0xf0]  ;;  %740 = vmatpush.bf16.msra.mxu0 %v1332_v3  ;;  %v1696_v15 = vld [vmem:[%s2746_s1 + $0xe4] sm:$0xf0] }
   0x5   :  { %v1524_v12 = vor.u32 %v1730_v10, %v1523_v9  ;;  %773 = vmatpush.bf16.msra.mxu1 %v1396_v7  ;;  %v1388_v17 = vor.u32 %v1696_v15, %v1387_v14  ;;  %v1451_v18 = vld [vmem:[%s2746_s1 + $0x160] sm:$0xf]  ;;  %v1712_v19 = vld [vmem:[%s2746_s1 + $0x164] sm:$0xf0]  ;;  %v1315_v23 = vld [vmem:[%s2746_s1 + $0x50] sm:$0xf] }
   0x6   :  { %806 = vmatpush.bf16.msra.mxu2 %v1460_v8  ;;  %v1515_v20 = vld [vmem:[%s2746_s1 + $0x1e0] sm:$0xf]  ;;  %v1452_v21 = vor.u32 %v1712_v19, %v1451_v18  ;;  %v1728_v22 = vld [vmem:[%s2746_s1 + $0x1e4] sm:$0xf0]  ;;  %v1678_v24 = vld [vmem:[%s2746_s1 + $0x54] sm:$0xf0] }
   0x7   :  { %839 = vmatpush.bf16.msra.mxu3 %v1524_v12  ;;  %v1516_v25 = vor.u32 %v1728_v22, %v1515_v20  ;;  %v1379_v26 = vld [vmem:[%s2746_s1 + $0xd0] sm:$0xf]  ;;  %v1694_v27 = vld [vmem:[%s2746_s1 + $0xd4] sm:$0xf0]  ;;  %v1316_v29 = vor.u32 %v1678_v24, %v1315_v23  ;;  %v1307_v35 = vld [vmem:[%s2746_s1 + $0x40] sm:$0xf] }
   0x8   :  { %v1443_v28 = vld [vmem:[%s2746_s1 + $0x150] sm:$0xf]  ;;  %741 = vmatpush.bf16.msra.mxu0 %v1324_v16  ;;  %v1710_v30 = vld [vmem:[%s2746_s1 + $0x154] sm:$0xf0]  ;;  %v1380_v33 = vor.u32 %v1694_v27, %v1379_v26  ;;  %v1676_v36 = vld [vmem:[%s2746_s1 + $0x44] sm:$0xf0] }
   0x9   :  { %v1507_v31 = vld [vmem:[%s2746_s1 + $0x1d0] sm:$0xf]  ;;  %v1726_v32 = vld [vmem:[%s2746_s1 + $0x1d4] sm:$0xf0]  ;;  %774 = vmatpush.bf16.msra.mxu1 %v1388_v17  ;;  %v1444_v34 = vor.u32 %v1710_v30, %v1443_v28  ;;  %v1371_v37 = vld [vmem:[%s2746_s1 + $0xc0] sm:$0xf]  ;;  %v1308_v44 = vor.u32 %v1676_v36, %v1307_v35 }
   0xa   :  { %807 = vmatpush.bf16.msra.mxu2 %v1452_v21  ;;  %v1508_v38 = vor.u32 %v1726_v32, %v1507_v31  ;;  %v1692_v39 = vld [vmem:[%s2746_s1 + $0xc4] sm:$0xf0]  ;;  %v1435_v40 = vld [vmem:[%s2746_s1 + $0x140] sm:$0xf]  ;;  %v1299_v47 = vld [vmem:[%s2746_s1 + $0x30] sm:$0xf] }
   0xb   :  { %840 = vmatpush.bf16.msra.mxu3 %v1516_v25  ;;  %v1708_v41 = vld [vmem:[%s2746_s1 + $0x144] sm:$0xf0]  ;;  %v1499_v42 = vld [vmem:[%s2746_s1 + $0x1c0] sm:$0xf]  ;;  %v1372_v45 = vor.u32 %v1692_v39, %v1371_v37  ;;  %v1674_v48 = vld [vmem:[%s2746_s1 + $0x34] sm:$0xf0] }
   0xc   :  { %v1724_v43 = vld [vmem:[%s2746_s1 + $0x1c4] sm:$0xf0]  ;;  %742 = vmatpush.bf16.msra.mxu0 %v1316_v29  ;;  %v1436_v46 = vor.u32 %v1708_v41, %v1435_v40  ;;  %v1363_v49 = vld [vmem:[%s2746_s1 + $0xb0] sm:$0xf]  ;;  %v1690_v51 = vld [vmem:[%s2746_s1 + $0xb4] sm:$0xf0]  ;;  %v1300_v56 = vor.u32 %v1674_v48, %v1299_v47 }
   0xd   :  { %775 = vmatpush.bf16.msra.mxu1 %v1380_v33  ;;  %v1500_v50 = vor.u32 %v1724_v43, %v1499_v42  ;;  %v1427_v52 = vld [vmem:[%s2746_s1 + $0x130] sm:$0xf]  ;;  %v1706_v53 = vld [vmem:[%s2746_s1 + $0x134] sm:$0xf0]  ;;  %v1364_v57 = vor.u32 %v1690_v51, %v1363_v49  ;;  %v1291_v59 = vld [vmem:[%s2746_s1 + $0x20] sm:$0xf] }
   0xe   :  { %808 = vmatpush.bf16.msra.mxu2 %v1444_v34  ;;  %v1491_v54 = vld [vmem:[%s2746_s1 + $0x1b0] sm:$0xf]  ;;  %v1722_v55 = vld [vmem:[%s2746_s1 + $0x1b4] sm:$0xf0]  ;;  %v1428_v58 = vor.u32 %v1706_v53, %v1427_v52  ;;  %v1672_v60 = vld [vmem:[%s2746_s1 + $0x24] sm:$0xf0] }
   0xf   :  { %841 = vmatpush.bf16.msra.mxu3 %v1508_v38  ;;  %v1355_v61 = vld [vmem:[%s2746_s1 + $0xa0] sm:$0xf]  ;;  %v1492_v62 = vor.u32 %v1722_v55, %v1491_v54  ;;  %v1688_v63 = vld [vmem:[%s2746_s1 + $0xa4] sm:$0xf0]  ;;  %v1292_v4 = vor.u32 %v1672_v60, %v1291_v59  ;;  %v1283_v7 = vld [vmem:[%s2746_s1 + $0x10] sm:$0xf] }
  0x10   :  { %743 = vmatpush.bf16.msra.mxu0 %v1308_v44  ;;  %v1419_v0 = vld [vmem:[%s2746_s1 + $0x120] sm:$0xf]  ;;  %v1704_v1 = vld [vmem:[%s2746_s1 + $0x124] sm:$0xf0]  ;;  %v1356_v5 = vor.u32 %v1688_v63, %v1355_v61  ;;  %v1670_v8 = vld [vmem:[%s2746_s1 + $0x14] sm:$0xf0] }
  0x11   :  { %776 = vmatpush.bf16.msra.mxu1 %v1372_v45  ;;  %v1483_v2 = vld [vmem:[%s2746_s1 + $0x1a0] sm:$0xf]  ;;  %v1720_v3 = vld [vmem:[%s2746_s1 + $0x1a4] sm:$0xf0]  ;;  %v1420_v6 = vor.u32 %v1704_v1, %v1419_v0  ;;  %v1347_v9 = vld [vmem:[%s2746_s1 + $0x90] sm:$0xf]  ;;  %v1284_v17 = vor.u32 %v1670_v8, %v1283_v7 }
  0x12   :  { %809 = vmatpush.bf16.msra.mxu2 %v1436_v46  ;;  %v1484_v10 = vor.u32 %v1720_v3, %v1483_v2  ;;  %v1686_v11 = vld [vmem:[%s2746_s1 + $0x94] sm:$0xf0]  ;;  %v1411_v12 = vld [vmem:[%s2746_s1 + $0x110] sm:$0xf]  ;;  %v1275_v16 = vld [vmem:[%s2746_s1] sm:$0xf] }
  0x13   :  { %842 = vmatpush.bf16.msra.mxu3 %v1500_v50  ;;  %v1702_v13 = vld [vmem:[%s2746_s1 + $0x114] sm:$0xf0]  ;;  %v1475_v14 = vld [vmem:[%s2746_s1 + $0x190] sm:$0xf]  ;;  %v1668_v18 = vld [vmem:[%s2746_s1 + $0x4] sm:$0xf0]  ;;  %v1348_v21 = vor.u32 %v1686_v11, %v1347_v9 }
  0x14   :  { %744 = vmatpush.bf16.msra.mxu0 %v1300_v56  ;;  %v1718_v15 = vld [vmem:[%s2746_s1 + $0x194] sm:$0xf0]  ;;  %v1339_v19 = vld [vmem:[%s2746_s1 + $0x80] sm:$0xf]  ;;  %v1684_v20 = vld [vmem:[%s2746_s1 + $0x84] sm:$0xf0]  ;;  %v1412_v22 = vor.u32 %v1702_v13, %v1411_v12  ;;  %v1276_v34 = vor.u32 %v1668_v18, %v1275_v16 }
  0x15   :  { %777 = vmatpush.bf16.msra.mxu1 %v1364_v57  ;;  %v1403_v23 = vld [vmem:[%s2746_s1 + $0x100] sm:$0xf]  ;;  %v1700_v24 = vld [vmem:[%s2746_s1 + $0x104] sm:$0xf0]  ;;  %v1476_v26 = vor.u32 %v1718_v15, %v1475_v14  ;;  %v1646_v29 = vld [vmem:[%s2747_s0 + $0x14] sm:$0xf0]  ;;  %v1340_v38 = vor.u32 %v1684_v20, %v1339_v19 }
  0x16   :  { %810 = vmatpush.bf16.msra.mxu2 %v1428_v58  ;;  %v1467_v25 = vld [vmem:[%s2746_s1 + $0x180] sm:$0xf]  ;;  %v1716_v27 = vld [vmem:[%s2746_s1 + $0x184] sm:$0xf0]  ;;  %v1643_v30 = vld [vmem:[%s2747_s0 + $0x4] sm:$0xf]  ;;  %v1404_v39 = vor.u32 %v1700_v24, %v1403_v23 }
  0x17   :  { %843 = vmatpush.bf16.msra.mxu3 %v1492_v62  ;;  %v1179_v28 = vld [vmem:[%s2747_s0] sm:$0xf]  ;;  %v1181_v31 = vld [vmem:[%s2747_s0 + $0x18] sm:$0xf0]  ;;  %v1681_v32 = vld [vmem:[%s2746_s1 + $0x74] sm:$0xf]  ;;  %v1468_v43 = vor.u32 %v1716_v27, %v1467_v25 }
  0x18   :  { %745 = vmatpush.bf16.msra.mxu0 %v1292_v4  ;;  %v1333_v33 = vld [vmem:[%s2746_s1 + $0x78] sm:$0xf0]  ;;  %v1187_v35 = vld [vmem:[%s2747_s0 + $0x8] sm:$0xf]  ;;  %v1697_v36 = vld [vmem:[%s2746_s1 + $0xf4] sm:$0xf]  ;;  %v2014_v48 = vor.u32 %v1646_v29, %v1179_v28  ;;  %v2025_v53 = vor.u32 %v1643_v30, %v1181_v31 }
  0x19   :  { %778 = vmatpush.bf16.msra.mxu1 %v1356_v5  ;;  %v1397_v37 = vld [vmem:[%s2746_s1 + $0xf8] sm:$0xf0]  ;;  %v1647_v40 = vld [vmem:[%s2747_s0 + $0x1c] sm:$0xf0]  ;;  %v1644_v41 = vld [vmem:[%s2747_s0 + $0xc] sm:$0xf]  ;;  %v1336_v44 = vor.u32 %v1681_v32, %v1333_v33 }
  0x1a   :  { %811 = vmatpush.bf16.msra.mxu2 %v1420_v6  ;;  %v1189_v42 = vld [vmem:[%s2747_s0 + $0x20] sm:$0xf0]  ;;  %v1587_v45 = vld [vmem:[%s2746_s1 + $0x270] sm:$0xf]  ;;  %v1746_v46 = vld [vmem:[%s2746_s1 + $0x274] sm:$0xf0]  ;;  %v1400_v49 = vor.u32 %v1697_v36, %v1397_v37  ;;  %v2027_v54 = vor.u32 %v1647_v40, %v1187_v35 }
  0x1b   :  { %844 = vmatpush.bf16.msra.mxu3 %v1484_v10  ;;  %v1627_v47 = vld [vmem:[%s2746_s1 + $0x2c0] sm:$0xf]  ;;  %v1756_v50 = vld [vmem:[%s2746_s1 + $0x2c4] sm:$0xf0]  ;;  %v1679_v51 = vld [vmem:[%s2746_s1 + $0x64] sm:$0xf]  ;;  %v2035_v57 = vor.u32 %v1644_v41, %v1189_v42  ;;  %v1588_v58 = vor.u32 %v1746_v46, %v1587_v45 }
  0x1c   :  { %746 = vmatpush.bf16.msra.mxu0 %v1284_v17  ;;  %v1325_v52 = vld [vmem:[%s2746_s1 + $0x68] sm:$0xf0]  ;;  %v1695_v55 = vld [vmem:[%s2746_s1 + $0xe4] sm:$0xf]  ;;  %v1628_v59 = vor.u32 %v1756_v50, %v1627_v47  ;;  %v1579_v61 = vld [vmem:[%s2746_s1 + $0x260] sm:$0xf] }
  0x1d   :  { %779 = vmatpush.bf16.msra.mxu1 %v1348_v21  ;;  %v1389_v56 = vld [vmem:[%s2746_s1 + $0xe8] sm:$0xf0]  ;;  %v1328_v60 = vor.u32 %v1679_v51, %v1325_v52  ;;  %v1744_v62 = vld [vmem:[%s2746_s1 + $0x264] sm:$0xf0]  ;;  %v1677_v63 = vld [vmem:[%s2746_s1 + $0x54] sm:$0xf] }
  0x1e   :  { %812 = vmatpush.bf16.msra.mxu2 %v1412_v22  ;;  %v1392_v0 = vor.u32 %v1695_v55, %v1389_v56  ;;  %v1317_v1 = vld [vmem:[%s2746_s1 + $0x58] sm:$0xf0]  ;;  %v1619_v2 = vld [vmem:[%s2746_s1 + $0x2b0] sm:$0xf]  ;;  %v1754_v3 = vld [vmem:[%s2746_s1 + $0x2b4] sm:$0xf0]  ;;  %v1580_v6 = vor.u32 %v1744_v62, %v1579_v61 }
  0x1f   :  { %845 = vmatpush.bf16.msra.mxu3 %v1476_v26  ;;  %v1693_v4 = vld [vmem:[%s2746_s1 + $0xd4] sm:$0xf]  ;;  %v1381_v5 = vld [vmem:[%s2746_s1 + $0xd8] sm:$0xf0]  ;;  %v1320_v7 = vor.u32 %v1677_v63, %v1317_v1  ;;  %v1620_v8 = vor.u32 %v1754_v3, %v1619_v2  ;;  %v1571_v9 = vld [vmem:[%s2746_s1 + $0x250] sm:$0xf] }
  0x20   :  { %747 = vmatpush.bf16.msra.mxu0 %v1276_v34  ;;  %v1742_v10 = vld [vmem:[%s2746_s1 + $0x254] sm:$0xf0]  ;;  %v1384_v11 = vor.u32 %v1693_v4, %v1381_v5  ;;  %v1675_v12 = vld [vmem:[%s2746_s1 + $0x44] sm:$0xf]  ;;  %v1309_v13 = vld [vmem:[%s2746_s1 + $0x48] sm:$0xf0] }
  0x21   :  { %780 = vmatpush.bf16.msra.mxu1 %v1340_v38  ;;  %v1611_v14 = vld [vmem:[%s2746_s1 + $0x2a0] sm:$0xf]  ;;  %v1691_v15 = vld [vmem:[%s2746_s1 + $0xc4] sm:$0xf]  ;;  %v1373_v16 = vld [vmem:[%s2746_s1 + $0xc8] sm:$0xf0]  ;;  %v1572_v18 = vor.u32 %v1742_v10, %v1571_v9  ;;  %v1312_v21 = vor.u32 %v1675_v12, %v1309_v13 }
  0x22   :  { %813 = vmatpush.bf16.msra.mxu2 %v1404_v39  ;;  %v1752_v17 = vld [vmem:[%s2746_s1 + $0x2a4] sm:$0xf0]  ;;  %v1203_v19 = vld [vmem:[%s2747_s0 + $0x30] sm:$0xf]  ;;  %v1563_v22 = vld [vmem:[%s2746_s1 + $0x240] sm:$0xf]  ;;  %v1376_v26 = vor.u32 %v1691_v15, %v1373_v16 }
  0x23   :  { %846 = vmatpush.bf16.msra.mxu3 %v1468_v43  ;;  %748 = vmatmul.bf16.vlgmr.msra.gmra.mxu0 %v2014_v48  ;;  %v1652_v20 = vld [vmem:[%s2747_s0 + $0x44] sm:$0xf0]  ;;  %v1612_v24 = vor.u32 %v1752_v17, %v1611_v14  ;;  %v1649_v25 = vld [vmem:[%s2747_s0 + $0x34] sm:$0xf]  ;;  %v1301_v28 = vld [vmem:[%s2746_s1 + $0x38] sm:$0xf0] }
  0x24   :  { %781 = vmatmul.bf16.vlgmr.msra.gmra.mxu1 %v2025_v53  ;;  %872 = vmatpush.bf16.msrb.mxu0 %v1588_v58  ;;  %v1740_v23 = vld [vmem:[%s2746_s1 + $0x244] sm:$0xf0]  ;;  %v1673_v27 = vld [vmem:[%s2746_s1 + $0x34] sm:$0xf]  ;;  %v1205_v29 = vld [vmem:[%s2747_s0 + $0x48] sm:$0xf0]  ;;  %v2137_v40 = vor.u32 %v1652_v20, %v1203_v19 }
  0x25   :  { %814 = vmatmul.bf16.vlgmr.msra.gmra.mxu2 %v2027_v54  ;;  %908 = vmatpush.bf16.msrb.mxu1 %v1628_v59  ;;  %v1689_v30 = vld [vmem:[%s2746_s1 + $0xb4] sm:$0xf]  ;;  %v1365_v31 = vld [vmem:[%s2746_s1 + $0xb8] sm:$0xf0]  ;;  %v1211_v32 = vld [vmem:[%s2747_s0 + $0x38] sm:$0xf]  ;;  %v1564_v35 = vor.u32 %v1740_v23, %v1563_v22  ;;  %v1304_v37 = vor.u32 %v1673_v27, %v1301_v28  ;;  %v2139_v42 = vor.u32 %v1649_v25, %v1205_v29 }
  0x26   :  { %938 = vmatpush.bf16.msrb.mxu2 %v1336_v44  ;;  %847 = vmatmul.bf16.vlgmr.msra.gmra.mxu3 %v2035_v57  ;;  %v1653_v33 = vld [vmem:[%s2747_s0 + $0x4c] sm:$0xf0]  ;;  %v1650_v34 = vld [vmem:[%s2747_s0 + $0x3c] sm:$0xf]  ;;  %v1213_v36 = vld [vmem:[%s2747_s0 + $0x50] sm:$0xf0]  ;;  %v1368_v41 = vor.u32 %v1689_v30, %v1365_v31 }
  0x27   :  { %971 = vmatpush.bf16.msrb.mxu3 %v1400_v49  ;;  %v1555_v38 = vld [vmem:[%s2746_s1 + $0x230] sm:$0xf]  ;;  %v1738_v39 = vld [vmem:[%s2746_s1 + $0x234] sm:$0xf0]  ;;  %v2141_v43 = vor.u32 %v1653_v33, %v1211_v32  ;;  %v2143_v44 = vor.u32 %v1650_v34, %v1213_v36  ;;  %v1671_v46 = vld [vmem:[%s2746_s1 + $0x24] sm:$0xf] }
  0x28   :  { %873 = vmatpush.bf16.msrb.mxu0 %v1580_v6  ;;  %v1556_v45 = vor.u32 %v1738_v39, %v1555_v38  ;;  %v1293_v47 = vld [vmem:[%s2746_s1 + $0x28] sm:$0xf0]  ;;  %v1687_v49 = vld [vmem:[%s2746_s1 + $0xa4] sm:$0xf]  ;;  %v1547_v52 = vld [vmem:[%s2746_s1 + $0x220] sm:$0xf] }
  0x29   :  { %909 = vmatpush.bf16.msrb.mxu1 %v1620_v8  ;;  %v1296_v50 = vor.u32 %v1671_v46, %v1293_v47  ;;  %v1357_v51 = vld [vmem:[%s2746_s1 + $0xa8] sm:$0xf0]  ;;  %v1736_v55 = vld [vmem:[%s2746_s1 + $0x224] sm:$0xf0]  ;;  %v1603_v59 = vld [vmem:[%s2746_s1 + $0x290] sm:$0xf] }
  0x2a   :  { %939 = vmatpush.bf16.msrb.mxu2 %v1328_v60  ;;  %v1360_v56 = vor.u32 %v1687_v49, %v1357_v51  ;;  %v1548_v58 = vor.u32 %v1736_v55, %v1547_v52  ;;  %v1750_v60 = vld [vmem:[%s2746_s1 + $0x294] sm:$0xf0]  ;;  %v1669_v61 = vld [vmem:[%s2746_s1 + $0x14] sm:$0xf]  ;;  %v1285_v63 = vld [vmem:[%s2746_s1 + $0x18] sm:$0xf0] }
  0x2b   :  { %972 = vmatpush.bf16.msrb.mxu3 %v1392_v0  ;;  %v1604_v62 = vor.u32 %v1750_v60, %v1603_v59  ;;  %v1685_v0 = vld [vmem:[%s2746_s1 + $0x94] sm:$0xf]  ;;  %v1349_v1 = vld [vmem:[%s2746_s1 + $0x98] sm:$0xf0]  ;;  %v1288_v2 = vor.u32 %v1669_v61, %v1285_v63  ;;  %v1539_v4 = vld [vmem:[%s2746_s1 + $0x210] sm:$0xf] }
  0x2c   :  { %874 = vmatpush.bf16.msrb.mxu0 %v1572_v18  ;;  %v1352_v3 = vor.u32 %v1685_v0, %v1349_v1  ;;  %v1734_v5 = vld [vmem:[%s2746_s1 + $0x214] sm:$0xf0]  ;;  %v1655_v9 = vld [vmem:[%s2747_s0 + $0x64] sm:$0xf]  ;;  %v1229_v10 = vld [vmem:[%s2747_s0 + $0x78] sm:$0xf0] }
  0x2d   :  { %910 = vmatpush.bf16.msrb.mxu1 %v1612_v24  ;;  %v1540_v6 = vor.u32 %v1734_v5, %v1539_v4  ;;  %v1658_v8 = vld [vmem:[%s2747_s0 + $0x74] sm:$0xf0]  ;;  %v1659_v12 = vld [vmem:[%s2747_s0 + $0x7c] sm:$0xf0]  ;;  %v1656_v13 = vld [vmem:[%s2747_s0 + $0x6c] sm:$0xf]  ;;  %v2217_v16 = vor.u32 %v1655_v9, %v1229_v10 }
  0x2e   :  { %940 = vmatpush.bf16.msrb.mxu2 %v1320_v7  ;;  %v1227_v7 = vld [vmem:[%s2747_s0 + $0x60] sm:$0xf]  ;;  %v1237_v14 = vld [vmem:[%s2747_s0 + $0x80] sm:$0xf0]  ;;  %v1748_v20 = vld [vmem:[%s2746_s1 + $0x284] sm:$0xf0] }
  0x2f   :  { %973 = vmatpush.bf16.msrb.mxu3 %v1384_v11  ;;  %v1235_v11 = vld [vmem:[%s2747_s0 + $0x68] sm:$0xf]  ;;  %v2215_v15 = vor.u32 %v1658_v8, %v1227_v7  ;;  %v2221_v18 = vor.u32 %v1656_v13, %v1237_v14  ;;  %v1595_v19 = vld [vmem:[%s2746_s1 + $0x280] sm:$0xf]  ;;  %v1277_v23 = vld [vmem:[%s2746_s1 + $0x8] sm:$0xf0] }
  0x30   :  { %875 = vmatpush.bf16.msrb.mxu0 %v1564_v35  ;;  %v2219_v17 = vor.u32 %v1659_v12, %v1235_v11  ;;  %v1596_v22 = vor.u32 %v1748_v20, %v1595_v19  ;;  %v1683_v24 = vld [vmem:[%s2746_s1 + $0x84] sm:$0xf]  ;;  %v1341_v25 = vld [vmem:[%s2746_s1 + $0x88] sm:$0xf0]  ;;  %v1531_v28 = vld [vmem:[%s2746_s1 + $0x200] sm:$0xf] }
  0x31   :  { %911 = vmatpush.bf16.msrb.mxu1 %v1604_v62  ;;  %v1344_v27 = vor.u32 %v1683_v24, %v1341_v25  ;;  %v1732_v29 = vld [vmem:[%s2746_s1 + $0x204] sm:$0xf0]  ;;  %v1251_v31 = vld [vmem:[%s2747_s0 + $0x90] sm:$0xf]  ;;  %v1661_v33 = vld [vmem:[%s2747_s0 + $0x94] sm:$0xf] }
  0x32   :  { %941 = vmatpush.bf16.msrb.mxu2 %v1312_v21  ;;  %v1667_v21 = vld [vmem:[%s2746_s1 + $0x4] sm:$0xf]  ;;  %v1532_v30 = vor.u32 %v1732_v29, %v1531_v28  ;;  %v1664_v32 = vld [vmem:[%s2747_s0 + $0xa4] sm:$0xf0]  ;;  %v1253_v34 = vld [vmem:[%s2747_s0 + $0xa8] sm:$0xf0] }
  0x33   :  { %974 = vmatpush.bf16.msrb.mxu3 %v1376_v26  ;;  %753 = vmatmul.bf16.gmra.mxu0 %v2137_v40  ;;  %v1280_v26 = vor.u32 %v1667_v21, %v1277_v23  ;;  %v1259_v35 = vld [vmem:[%s2747_s0 + $0x98] sm:$0xf]  ;;  %v1665_v36 = vld [vmem:[%s2747_s0 + $0xac] sm:$0xf0]  ;;  %v1261_v38 = vld [vmem:[%s2747_s0 + $0xb0] sm:$0xf0]  ;;  %v2275_v39 = vor.u32 %v1664_v32, %v1251_v31 }
  0x34   :  { %786 = vmatmul.bf16.gmra.mxu1 %v2139_v42  ;;  %876 = vmatpush.bf16.msrb.mxu0 %v1556_v45  ;;  %v2279_v45 = vor.u32 %v1665_v36, %v1259_v35  ;;  %v1745_v47 = vld [vmem:[%s2746_s1 + $0x274] sm:$0xf]  ;;  %v1589_v49 = vld [vmem:[%s2746_s1 + $0x278] sm:$0xf0]  ;;  %v39_v51 = vld [vmem:[%s2747_s0 + $0xc0] sm:$0xff] }
  0x35   :  { %819 = vmatmul.bf16.gmra.mxu2 %v2141_v43  ;;  %912 = vmatpush.bf16.msrb.mxu1 %v1596_v22  ;;  %v1592_v52 = vor.u32 %v1745_v47, %v1589_v49  ;;  %v1629_v55 = vld [vmem:[%s2746_s1 + $0x2c8] sm:$0xf0]  ;;  %v1729_v61 = vld [vmem:[%s2746_s1 + $0x1f4] sm:$0xf]  ;;  %v1525_v62 = vld [vmem:[%s2746_s1 + $0x1f8] sm:$0xf0]  ;;  %v213_v10 = vunpack.c.l.b16 %v39_v51  ;;  %v214_v11 = vunpack.c.h.b16 %v39_v51 }
  0x36   :  { %942 = vmatpush.bf16.msrb.mxu2 %v1304_v37  ;;  %852 = vmatmul.bf16.gmra.mxu3 %v2143_v44  ;;  %v1662_v37 = vld [vmem:[%s2747_s0 + $0x9c] sm:$0xf]  ;;  %v1743_v63 = vld [vmem:[%s2746_s1 + $0x264] sm:$0xf]  ;;  %v1528_v0 = vor.u32 %v1729_v61, %v1525_v62  ;;  %v1581_v1 = vld [vmem:[%s2746_s1 + $0x268] sm:$0xf0] }
  0x37   :  { %975 = vmatpush.bf16.msrb.mxu3 %v1368_v41  ;;  %v2277_v41 = vor.u32 %v1661_v33, %v1253_v34  ;;  %v2281_v46 = vor.u32 %v1662_v37, %v1261_v38  ;;  %v40_v4 = vld [vmem:[%s2747_s0 + $0xc8] sm:$0xff]  ;;  %v1584_v5 = vor.u32 %v1743_v63, %v1581_v1  ;;  %v1727_v7 = vld [vmem:[%s2746_s1 + $0x1e4] sm:$0xf]  ;;  %v2335_v14 = vpack.c.b16 %v213_v10, %v213_v10  ;;  %v1753_v22 = vld [vmem:[%s2746_s1 + $0x2b4] sm:$0xf] }
  0x38   :  { %877 = vmatpush.bf16.msrb.mxu0 %v1548_v58  ;;  %v1461_v58 = vld [vmem:[%s2746_s1 + $0x178] sm:$0xf0]  ;;  %v1517_v8 = vld [vmem:[%s2746_s1 + $0x1e8] sm:$0xf0]  ;;  %v215_v12 = vunpack.c.l.b16 %v40_v4  ;;  %v216_v13 = vunpack.c.h.b16 %v40_v4  ;;  %v2337_v19 = vpack.c.b16 %v214_v11, %v214_v11  ;;  %v1741_v24 = vld [vmem:[%s2746_s1 + $0x254] sm:$0xf] }
  0x39   :  { %1037 = vmatpush.bf16.msra.mxu1 %v1528_v0  ;;  %v1520_v9 = vor.u32 %v1727_v7, %v1517_v8  ;;  %v1621_v23 = vld [vmem:[%s2746_s1 + $0x2b8] sm:$0xf0]  ;;  %v1725_v31 = vld [vmem:[%s2746_s1 + $0x1d4] sm:$0xf]  ;;  %v1739_v33 = vld [vmem:[%s2746_s1 + $0x244] sm:$0xf] }
  0x3a   :  { %943 = vmatpush.bf16.msrb.mxu2 %v1296_v50  ;;  %v1755_v50 = vld [vmem:[%s2746_s1 + $0x2c4] sm:$0xf]  ;;  %v2339_v20 = vpack.c.b16 %v215_v12, %v215_v12  ;;  %v2341_v21 = vpack.c.b16 %v216_v13, %v216_v13  ;;  %v1624_v25 = vor.u32 %v1753_v22, %v1621_v23  ;;  %v1445_v28 = vld [vmem:[%s2746_s1 + $0x158] sm:$0xf0]  ;;  %v1565_v35 = vld [vmem:[%s2746_s1 + $0x248] sm:$0xf0] }
  0x3b   :  { %976 = vmatpush.bf16.msrb.mxu3 %v1360_v56  ;;  %v1713_v56 = vld [vmem:[%s2746_s1 + $0x174] sm:$0xf]  ;;  %v1632_v59 = vor.u32 %v1755_v50, %v1629_v55  ;;  %v1509_v32 = vld [vmem:[%s2746_s1 + $0x1d8] sm:$0xf0]  ;;  %v1568_v36 = vor.u32 %v1739_v33, %v1565_v35  ;;  %v1195_v37 = vld [vmem:[%s2747_s0 + $0x10] sm:$0xf] }
  0x3c   :  { %878 = vmatpush.bf16.msrb.mxu0 %v1540_v6  ;;  %v1464_v60 = vor.u32 %v1713_v56, %v1461_v58  ;;  %v1512_v34 = vor.u32 %v1725_v31, %v1509_v32  ;;  %v1648_v38 = vld [vmem:[%s2747_s0 + $0x24] sm:$0xf0]  ;;  %v1645_v47 = vld [vmem:[%s2747_s0 + $0x14] sm:$0xf]  ;;  %v1197_v49 = vld [vmem:[%s2747_s0 + $0x28] sm:$0xf0] }
  0x3d   :  { %1038 = vmatpush.bf16.msra.mxu1 %v1520_v9  ;;  %v2389_v50 = vor.u32 %v1648_v38, %v1195_v37  ;;  %v2391_v51 = vor.u32 %v1645_v47, %v1197_v49  ;;  %v1613_v55 = vld [vmem:[%s2746_s1 + $0x2a8] sm:$0xf0]  ;;  %v1707_v56 = vld [vmem:[%s2746_s1 + $0x144] sm:$0xf]  ;;  %v1737_v62 = vld [vmem:[%s2746_s1 + $0x234] sm:$0xf] }
  0x3e   :  { %944 = vmatpush.bf16.msrb.mxu2 %v1288_v2  ;;  %v1711_v2 = vld [vmem:[%s2746_s1 + $0x164] sm:$0xf]  ;;  %v1557_v63 = vld [vmem:[%s2746_s1 + $0x238] sm:$0xf0]  ;;  %v1705_v0 = vld [vmem:[%s2746_s1 + $0x134] sm:$0xf] }
  0x3f   :  { %977 = vmatpush.bf16.msrb.mxu3 %v1352_v3  ;;  %v1453_v3 = vld [vmem:[%s2746_s1 + $0x168] sm:$0xf0]  ;;  %v1560_v1 = vor.u32 %v1737_v62, %v1557_v63  ;;  %v1219_v4 = vld [vmem:[%s2747_s0 + $0x40] sm:$0xf]  ;;  %v1221_v7 = vld [vmem:[%s2747_s0 + $0x58] sm:$0xf0] }
  0x40   :  { %879 = vmatpush.bf16.msrb.mxu0 %v1532_v30  ;;  %v1456_v6 = vor.u32 %v1711_v2, %v1453_v3  ;;  %v1429_v2 = vld [vmem:[%s2746_s1 + $0x138] sm:$0xf0]  ;;  %v1721_v10 = vld [vmem:[%s2746_s1 + $0x1b4] sm:$0xf]  ;;  %v1735_v23 = vld [vmem:[%s2746_s1 + $0x224] sm:$0xf] }
  0x41   :  { %1039 = vmatpush.bf16.msra.mxu1 %v1512_v34  ;;  %v1432_v3 = vor.u32 %v1705_v0, %v1429_v2  ;;  %v1493_v11 = vld [vmem:[%s2746_s1 + $0x1b8] sm:$0xf0]  ;;  %v1749_v13 = vld [vmem:[%s2746_s1 + $0x294] sm:$0xf]  ;;  %v1485_v31 = vld [vmem:[%s2746_s1 + $0x1a8] sm:$0xf0] }
  0x42   :  { %945 = vmatpush.bf16.msrb.mxu2 %v1280_v26  ;;  %v1573_v26 = vld [vmem:[%s2746_s1 + $0x258] sm:$0xf0]  ;;  %v1496_v12 = vor.u32 %v1721_v10, %v1493_v11  ;;  %v1657_v32 = vld [vmem:[%s2747_s0 + $0x74] sm:$0xf]  ;;  %v1245_v33 = vld [vmem:[%s2747_s0 + $0x88] sm:$0xf0] }
  0x43   :  { %758 = vmatmul.bf16.gmra.mxu0 %v2215_v15  ;;  %978 = vmatpush.bf16.msrb.mxu3 %v1344_v27  ;;  %v1709_v27 = vld [vmem:[%s2746_s1 + $0x154] sm:$0xf]  ;;  %v1576_v29 = vor.u32 %v1741_v24, %v1573_v26  ;;  %v1605_v22 = vld [vmem:[%s2746_s1 + $0x298] sm:$0xf0]  ;;  %v1421_v26 = vld [vmem:[%s2746_s1 + $0x128] sm:$0xf0] }
  0x44   :  { %791 = vmatmul.bf16.gmra.mxu1 %v2217_v16  ;;  %1004 = vmatpush.bf16.msra.mxu0 %v1464_v60  ;;  %v1448_v30 = vor.u32 %v1709_v27, %v1445_v28  ;;  %v1608_v24 = vor.u32 %v1749_v13, %v1605_v22  ;;  %v1719_v27 = vld [vmem:[%s2746_s1 + $0x1a4] sm:$0xf]  ;;  %v1243_v28 = vld [vmem:[%s2747_s0 + $0x70] sm:$0xf]  ;;  %v1733_v37 = vld [vmem:[%s2746_s1 + $0x214] sm:$0xf] }
  0x45   :  { %824 = vmatmul.bf16.gmra.mxu2 %v2219_v17  ;;  %v1488_v34 = vor.u32 %v1719_v27, %v1485_v31  ;;  %v1541_v38 = vld [vmem:[%s2746_s1 + $0x218] sm:$0xf0]  ;;  %v1701_v49 = vld [vmem:[%s2746_s1 + $0x114] sm:$0xf]  ;;  %v1699_v62 = vld [vmem:[%s2746_s1 + $0x104] sm:$0xf] }
  0x46   :  { %857 = vmatmul.bf16.gmra.mxu3 %v2221_v18  ;;  %1070 = vmatpush.bf16.msra.mxu2 %v1592_v52  ;;  %v1751_v52 = vld [vmem:[%s2746_s1 + $0x2a4] sm:$0xf]  ;;  %v1544_v47 = vor.u32 %v1733_v37, %v1541_v38  ;;  %v1267_v63 = vld [vmem:[%s2747_s0 + $0xa0] sm:$0xf]  ;;  %v1666_v0 = vld [vmem:[%s2747_s0 + $0xb4] sm:$0xf0] }
  0x47   :  { %1106 = vmatpush.bf16.msra.mxu3 %v1632_v59  ;;  %v1616_v58 = vor.u32 %v1751_v52, %v1613_v55  ;;  %v1437_v59 = vld [vmem:[%s2746_s1 + $0x148] sm:$0xf0]  ;;  %v1413_v52 = vld [vmem:[%s2746_s1 + $0x118] sm:$0xf0]  ;;  %v1715_v10 = vld [vmem:[%s2746_s1 + $0x184] sm:$0xf] }
  0x48   :  { %1005 = vmatpush.bf16.msra.mxu0 %v1456_v6  ;;  %v1440_v60 = vor.u32 %v1707_v56, %v1437_v59  ;;  %v1651_v6 = vld [vmem:[%s2747_s0 + $0x44] sm:$0xf]  ;;  %v1416_v55 = vor.u32 %v1701_v49, %v1413_v52  ;;  %v1717_v59 = vld [vmem:[%s2746_s1 + $0x194] sm:$0xf]  ;;  %v1405_v2 = vld [vmem:[%s2746_s1 + $0x108] sm:$0xf0] }
  0x49   :  { %v2442_v9 = vor.u32 %v1651_v6, %v1221_v7  ;;  %v1747_v56 = vld [vmem:[%s2746_s1 + $0x284] sm:$0xf]  ;;  %v1408_v6 = vor.u32 %v1699_v62, %v1405_v2  ;;  %v2556_v7 = vor.u32 %v1666_v0, %v1267_v63  ;;  %v1469_v11 = vld [vmem:[%s2746_s1 + $0x188] sm:$0xf0] }
  0x4a   :  { %1071 = vmatpush.bf16.msra.mxu2 %v1584_v5  ;;  %v1654_v5 = vld [vmem:[%s2747_s0 + $0x54] sm:$0xf0]  ;;  %v1472_v22 = vor.u32 %v1715_v10, %v1469_v11 }
  0x4b   :  { %1107 = vmatpush.bf16.msra.mxu3 %v1624_v25  ;;  %v2440_v8 = vor.u32 %v1654_v5, %v1219_v4  ;;  %v1663_v4 = vld [vmem:[%s2747_s0 + $0xa4] sm:$0xf]  ;;  %v1269_v5 = vld [vmem:[%s2747_s0 + $0xb8] sm:$0xf0] }
  0x4c   :  { %1006 = vmatpush.bf16.msra.mxu0 %v1448_v30  ;;  %v2564_v13 = vor.u32 %v1663_v4, %v1269_v5 }
  0x4e   :  { %1072 = vmatpush.bf16.msra.mxu2 %v1576_v29  ;;  %v1660_v29 = vld [vmem:[%s2747_s0 + $0x84] sm:$0xf0] }
  0x4f   :  { %1108 = vmatpush.bf16.msra.mxu3 %v1616_v58  ;;  %v2491_v35 = vor.u32 %v1660_v29, %v1243_v28  ;;  %v1597_v58 = vld [vmem:[%s2746_s1 + $0x288] sm:$0xf0]  ;;  %v41_v28 = vld [vmem:[%s2747_s0 + $0xd0] sm:$0xff] }
  0x50   :  { %1007 = vmatpush.bf16.msra.mxu0 %v1440_v60  ;;  %v1731_v60 = vld [vmem:[%s2746_s1 + $0x204] sm:$0xf] }
  0x52   :  { %1073 = vmatpush.bf16.msra.mxu2 %v1568_v36  ;;  %v2493_v36 = vor.u32 %v1657_v32, %v1245_v33  ;;  %v217_v33 = vunpack.c.l.b16 %v41_v28 }
  0x53   :  { %763 = vmatmul.bf16.gmra.mxu0 %v2275_v39  ;;  %1109 = vmatpush.bf16.msra.mxu3 %v1608_v24 }
  0x54   :  { %796 = vmatmul.bf16.gmra.mxu1 %v2277_v41  ;;  %1008 = vmatpush.bf16.msra.mxu0 %v1432_v3 }
  0x55   :  { %829 = vmatmul.bf16.gmra.mxu2 %v2279_v45 }
  0x56   :  { %862 = vmatmul.bf16.gmra.mxu3 %v2281_v46  ;;  %1074 = vmatpush.bf16.msra.mxu2 %v1560_v1 }
  0x63   :  { %768 = vmatmul.bf16.gmra.mxu0 %v2335_v14 }
  0x64   :  { %801 = vmatmul.bf16.gmra.mxu1 %v2337_v19 }
  0x65   :  { %834 = vmatmul.bf16.gmra.mxu2 %v2339_v20 }
  0x66   :  { %867 = vmatmul.bf16.gmra.mxu3 %v2341_v21 }
  0x73   :  { %880 = vmatmul.bf16.vlgmr.msrb.gmra.mxu0 %v2389_v50 }
  0x74   :  { %1633 = vmatmul.msk.bf16.vlgmr.msrb.gmra.mxu1 %vm724_vm0, %v2391_v51 }
  0x75   :  { %946 = vmatmul.bf16.vlgmr.msrb.gmra.mxu2 %v2014_v48  ;;  %v1723_v48 = vld [vmem:[%s2746_s1 + $0x1c4] sm:$0xf] }
  0x76   :  { %979 = vmatmul.bf16.vlgmr.msrb.gmra.mxu3 %v2025_v53  ;;  %v1501_v53 = vld [vmem:[%s2746_s1 + $0x1c8] sm:$0xf0] }
  0x77   :  { %v1504_v61 = vor.u32 %v1723_v48, %v1501_v53  ;;  %v1600_v48 = vor.u32 %v1747_v56, %v1597_v58  ;;  %v2527_v53 = vld [vmem:[%s2748_s2] sm:$0x3] }
  0x78   :  { %v2548_v3 = vperm.slane %v2527_v53, 0 }
  0x79   :  { %1040 = vmatpush.bf16.msra.mxu1 %v1504_v61  ;;  %1110 = vmatpush.bf16.msra.mxu3 %v1600_v48  ;;  %v1533_v61 = vld [vmem:[%s2746_s1 + $0x208] sm:$0xf0] }
  0x7a   :  { %v1536_v1 = vor.u32 %v1731_v60, %v1533_v61 }
  0x7d   :  { %1041 = vmatpush.bf16.msra.mxu1 %v1496_v12 }
  0x81   :  { %1042 = vmatpush.bf16.msra.mxu1 %v1488_v34  ;;  %v218_v34 = vunpack.c.h.b16 %v41_v28 }
  0x83   :  { %885 = vmatmul.bf16.gmra.mxu0 %v2440_v8  ;;  %v2580_v49 = vpack.c.b16 %v218_v34, %v218_v34 }
  0x84   :  { %1634 = vmatmul.msk.bf16.gmra.mxu1 %vm724_vm0, %v2442_v9 }
  0x85   :  { %951 = vmatmul.bf16.gmra.mxu2 %v2137_v40  ;;  %v1549_v40 = vld [vmem:[%s2746_s1 + $0x228] sm:$0xf0] }
  0x86   :  { %984 = vmatmul.bf16.gmra.mxu3 %v2139_v42  ;;  %v1552_v25 = vor.u32 %v1735_v23, %v1549_v40  ;;  %v1703_v42 = vld [vmem:[%s2746_s1 + $0x124] sm:$0xf] }
  0x87   :  { %v1424_v30 = vor.u32 %v1703_v42, %v1421_v26 }
  0x88   :  { %1075 = vmatpush.bf16.msra.mxu2 %v1552_v25 }
  0x89   :  { %1009 = vmatpush.bf16.msra.mxu0 %v1424_v30 }
  0x8c   :  { %1076 = vmatpush.bf16.msra.mxu2 %v1544_v47 }
  0x8d   :  { %1010 = vmatpush.bf16.msra.mxu0 %v1416_v55 }
  0x90   :  { %1077 = vmatpush.bf16.msra.mxu2 %v1536_v1 }
  0x91   :  { %1011 = vmatpush.bf16.msra.mxu0 %v1408_v6 }
  0x93   :  { %890 = vmatmul.bf16.gmra.mxu0 %v2491_v35 }
  0x94   :  { %1635 = vmatmul.msk.bf16.gmra.mxu1 %vm724_vm0, %v2493_v36 }
  0x95   :  { %956 = vmatmul.bf16.gmra.mxu2 %v2215_v15  ;;  %v1477_v15 = vld [vmem:[%s2746_s1 + $0x198] sm:$0xf0] }
  0x96   :  { %989 = vmatmul.bf16.gmra.mxu3 %v2217_v16  ;;  %v1480_v16 = vor.u32 %v1717_v59, %v1477_v15 }
  0x98   :  { %1043 = vmatpush.bf16.msra.mxu1 %v1480_v16 }
  0x9c   :  { %1044 = vmatpush.bf16.msra.mxu1 %v1472_v22 }
  0xa0   :  { %v749_v12 = vpop.f32.mrf.mxu0 }
  0xa1   :  { %v750_v23 = vadd.f32 %v749_v12, %v2548_v3  ;;  %v782_v24 = vpop.f32.mrf.mxu1 }
  0xa3   :  { %v783_v40 = vadd.f32 %v782_v24, %v750_v23  ;;  %895 = vmatmul.bf16.gmra.mxu0 %v2556_v7 }
  0xa4   :  { %1636 = vmatmul.msk.bf16.gmra.mxu1 %vm724_vm0, %v2564_v13 }
  0xa5   :  { %961 = vmatmul.bf16.gmra.mxu2 %v2275_v39  ;;  %v2578_v39 = vpack.c.b16 %v217_v33, %v217_v33 }
  0xa6   :  { %994 = vmatmul.bf16.gmra.mxu3 %v2277_v41 }
  0xa8   :  { %v815_v25 = vpop.f32.mrf.mxu2  ;;  %v751_v27 = vpop.f32.mrf.mxu0 }
  0xa9   :  { %v816_v42 = vadd.f32 %v815_v25, %v783_v40  ;;  %v848_v26 = vpop.f32.mrf.mxu3  ;;  %v752_v29 = vadd.f32 %v751_v27, %v2548_v3  ;;  %v784_v30 = vpop.f32.mrf.mxu1 }
  0xab   :  { %v2576_v31 = vadd.f32 %v848_v26, %v816_v42  ;;  %v785_v32 = vadd.f32 %v784_v30, %v752_v29 }
  0xb0   :  { %v817_v37 = vpop.f32.mrf.mxu2  ;;  %v754_v47 = vpop.f32.mrf.mxu0 }
  0xb1   :  { %v818_v41 = vadd.f32 %v817_v37, %v785_v32  ;;  %v850_v38 = vpop.f32.mrf.mxu3  ;;  %v755_v52 = vadd.f32 %v754_v47, %v2548_v3  ;;  %v787_v55 = vpop.f32.mrf.mxu1 }
  0xb3   :  { %v2583_v56 = vadd.f32 %v850_v38, %v818_v41  ;;  %v788_v58 = vadd.f32 %v787_v55, %v755_v52  ;;  %900 = vmatmul.bf16.gmra.mxu0 %v2578_v39 }
  0xb4   :  { %1637 = vmatmul.msk.bf16.gmra.mxu1 %vm724_vm0, %v2580_v49 }
  0xb5   :  { %966 = vmatmul.bf16.gmra.mxu2 %v2335_v14 }
  0xb6   :  { %999 = vmatmul.bf16.gmra.mxu3 %v2337_v19 }
  0xb8   :  { %v820_v59 = vpop.f32.mrf.mxu2  ;;  %v756_v16 = vpop.f32.mrf.mxu0 }
  0xb9   :  { %v821_v48 = vadd.f32 %v820_v59, %v788_v58  ;;  %v853_v15 = vpop.f32.mrf.mxu3  ;;  %v757_v60 = vadd.f32 %v756_v16, %v2548_v3  ;;  %v789_v61 = vpop.f32.mrf.mxu1 }
  0xbb   :  { %v2591_v62 = vadd.f32 %v853_v15, %v821_v48  ;;  %v790_v63 = vadd.f32 %v789_v61, %v757_v60 }
  0xc0   :  { %v822_v0 = vpop.f32.mrf.mxu2  ;;  %v759_v4 = vpop.f32.mrf.mxu0 }
  0xc1   :  { %v823_v1 = vadd.f32 %v822_v0, %v790_v63  ;;  %v855_v2 = vpop.f32.mrf.mxu3  ;;  %v760_v5 = vadd.f32 %v759_v4, %v2548_v3  ;;  %v792_v6 = vpop.f32.mrf.mxu1 }
  0xc3   :  { %v2594_v14 = vadd.f32 %v855_v2, %v823_v1  ;;  %v793_v19 = vadd.f32 %v792_v6, %v760_v5  ;;  %1012 = vmatmul.bf16.vlgmr.msra.gmra.mxu0 %v2027_v54 }
  0xc4   :  { %1045 = vmatmul.bf16.vlgmr.msra.gmra.mxu1 %v2035_v57 }
  0xc5   :  { %1078 = vmatmul.bf16.vlgmr.msra.gmra.mxu2 %v2389_v50 }
  0xc6   :  { %1638 = vmatmul.msk.bf16.vlgmr.msra.gmra.mxu3 %vm724_vm0, %v2391_v51 }
  0xc8   :  { %v825_v10 = vpop.f32.mrf.mxu2  ;;  %v761_v22 = vpop.f32.mrf.mxu0 }
  0xc9   :  { %v826_v11 = vadd.f32 %v825_v10, %v793_v19  ;;  %v858_v12 = vpop.f32.mrf.mxu3  ;;  %v762_v23 = vadd.f32 %v761_v22, %v2548_v3  ;;  %v794_v24 = vpop.f32.mrf.mxu1 }
  0xcb   :  { %v2602_v40 = vadd.f32 %v858_v12, %v826_v11  ;;  %v795_v25 = vadd.f32 %v794_v24, %v762_v23 }
  0xd0   :  { %v827_v42 = vpop.f32.mrf.mxu2  ;;  %v764_v27 = vpop.f32.mrf.mxu0 }
  0xd1   :  { %v828_v26 = vadd.f32 %v827_v42, %v795_v25  ;;  %v860_v54 = vpop.f32.mrf.mxu3  ;;  %v765_v57 = vadd.f32 %v764_v27, %v2548_v3  ;;  %v797_v50 = vpop.f32.mrf.mxu1 }
  0xd3   :  { %v2605_v28 = vadd.f32 %v860_v54, %v828_v26  ;;  %v798_v51 = vadd.f32 %v797_v50, %v765_v57  ;;  %1017 = vmatmul.bf16.gmra.mxu0 %v2141_v43 }
  0xd4   :  { %1050 = vmatmul.bf16.gmra.mxu1 %v2143_v44 }
  0xd5   :  { %1083 = vmatmul.bf16.gmra.mxu2 %v2440_v8 }
  0xd6   :  { %1639 = vmatmul.msk.bf16.gmra.mxu3 %vm724_vm0, %v2442_v9 }
  0xd8   :  { %v830_v29 = vpop.f32.mrf.mxu2  ;;  %v766_v33 = vpop.f32.mrf.mxu0 }
  0xd9   :  { %v831_v30 = vadd.f32 %v830_v29, %v798_v51  ;;  %v863_v32 = vpop.f32.mrf.mxu3  ;;  %v767_v34 = vadd.f32 %v766_v33, %v2548_v3  ;;  %v799_v37 = vpop.f32.mrf.mxu1 }
  0xdb   :  { %v2613_v41 = vadd.f32 %v863_v32, %v831_v30  ;;  %v800_v38 = vadd.f32 %v799_v37, %v767_v34 }
  0xe0   :  { %v832_v47 = vpop.f32.mrf.mxu2  ;;  %v769_v55 = vpop.f32.mrf.mxu0 }
  0xe1   :  { %v833_v52 = vadd.f32 %v832_v47, %v800_v38  ;;  %v865_v43 = vpop.f32.mrf.mxu3  ;;  %v770_v44 = vadd.f32 %v769_v55, %v2548_v3  ;;  %v802_v8 = vpop.f32.mrf.mxu1 }
  0xe3   :  { %v2616_v58 = vadd.f32 %v865_v43, %v833_v52  ;;  %v803_v9 = vadd.f32 %v802_v8, %v770_v44  ;;  %1022 = vmatmul.bf16.gmra.mxu0 %v2219_v17 }
  0xe4   :  { %1055 = vmatmul.bf16.gmra.mxu1 %v2221_v18  ;;  %v2630_v18 = vperm.slane %v2527_v53, 1 }
  0xe5   :  { %1088 = vmatmul.bf16.gmra.mxu2 %v2491_v35 }
  0xe6   :  { %1640 = vmatmul.msk.bf16.gmra.mxu3 %vm724_vm0, %v2493_v36 }
  0xe8   :  { %v835_v59 = vpop.f32.mrf.mxu2  ;;  %v771_v16 = vpop.f32.mrf.mxu0 }
  0xe9   :  { %v836_v48 = vadd.f32 %v835_v59, %v803_v9  ;;  %v868_v15 = vpop.f32.mrf.mxu3  ;;  %v804_v60 = vpop.f32.mrf.mxu1 }
  0xeb   :  { %v2623_v61 = vadd.f32 %v868_v15, %v836_v48 }
  0xf0   :  { %v837_v3 = vpop.f32.mrf.mxu2  ;;  %v881_v0 = vpop.f32.mrf.mxu0 }
  0xf1   :  { %v870_v63 = vpop.f32.mrf.mxu3  ;;  %v882_v1 = vadd.f32 %v881_v0, %v2576_v31  ;;  %v914_v17 = vpop.f32.mrf.mxu1 }
  0xf3   :  { %v915_v2 = vadd.f32 %v914_v17, %v882_v1  ;;  %1027 = vmatmul.bf16.gmra.mxu0 %v2279_v45 }
  0xf4   :  { %1060 = vmatmul.bf16.gmra.mxu1 %v2281_v46 }
  0xf5   :  { %1093 = vmatmul.bf16.gmra.mxu2 %v2556_v7  ;;  %v1136_v35 = vmax.f32 %v915_v2, 0.0 }
  0xf6   :  { %1641 = vmatmul.msk.bf16.gmra.mxu3 %vm724_vm0, %v2564_v13 }
  0xf7   :  { %1154 = vst [vmem:[%s2749_s3] sm:$0xff] %v1136_v35 }
  0xf8   :  { %v947_v36 = vpop.f32.mrf.mxu2  ;;  %v883_v45 = vpop.f32.mrf.mxu0 }
  0xf9   :  { %v948_v31 = vadd.f32 %v947_v36, %v2630_v18  ;;  %v980_v4 = vpop.f32.mrf.mxu3  ;;  %v884_v46 = vadd.f32 %v883_v45, %v2583_v56  ;;  %v916_v5 = vpop.f32.mrf.mxu1 }
  0xfb   :  { %v2639_v7 = vadd.f32 %v980_v4, %v948_v31  ;;  %v917_v53 = vadd.f32 %v916_v5, %v884_v46 }
  0xfd   :  { %v1138_v6 = vmax.f32 %v917_v53, 0.0 }
  0xff   :  { %1157 = vst [vmem:[%s2749_s3 + $0x10] sm:$0xff] %v1138_v6 }
 0x100   :  { %v949_v13 = vpop.f32.mrf.mxu2  ;;  %v886_v11 = vpop.f32.mrf.mxu0 }
 0x101   :  { %v950_v19 = vadd.f32 %v949_v13, %v2630_v18  ;;  %v982_v10 = vpop.f32.mrf.mxu3  ;;  %v887_v12 = vadd.f32 %v886_v11, %v2591_v62  ;;  %v919_v22 = vpop.f32.mrf.mxu1 }
 0x103   :  { %v2646_v23 = vadd.f32 %v982_v10, %v950_v19  ;;  %v920_v56 = vadd.f32 %v919_v22, %v887_v12  ;;  %1032 = vmatmul.bf16.gmra.mxu0 %v2339_v20 }
 0x104   :  { %1065 = vmatmul.bf16.gmra.mxu1 %v2341_v21 }
 0x105   :  { %1098 = vmatmul.bf16.gmra.mxu2 %v2578_v39  ;;  %v1140_v24 = vmax.f32 %v920_v56, 0.0 }
 0x106   :  { %1642 = vmatmul.msk.bf16.gmra.mxu3 %vm724_vm0, %v2580_v49 }
 0x107   :  { %1159 = vst [vmem:[%s2749_s3 + $0x20] sm:$0xff] %v1140_v24 }
 0x108   :  { %v952_v25 = vpop.f32.mrf.mxu2  ;;  %v888_v26 = vpop.f32.mrf.mxu0 }
 0x109   :  { %v953_v62 = vadd.f32 %v952_v25, %v2630_v18  ;;  %v985_v42 = vpop.f32.mrf.mxu3  ;;  %v889_v54 = vadd.f32 %v888_v26, %v2594_v14  ;;  %v921_v20 = vpop.f32.mrf.mxu1 }
 0x10b   :  { %v2658_v27 = vadd.f32 %v985_v42, %v953_v62  ;;  %v922_v21 = vadd.f32 %v921_v20, %v889_v54 }
 0x10d   :  { %v1142_v39 = vmax.f32 %v922_v21, 0.0 }
 0x10f   :  { %1161 = vst [vmem:[%s2749_s3 + $0x30] sm:$0xff] %v1142_v39 }
 0x110   :  { %v954_v49 = vpop.f32.mrf.mxu2  ;;  %v891_v51 = vpop.f32.mrf.mxu0 }
 0x111   :  { %v955_v57 = vadd.f32 %v954_v49, %v2630_v18  ;;  %v987_v50 = vpop.f32.mrf.mxu3  ;;  %v892_v29 = vadd.f32 %v891_v51, %v2602_v40  ;;  %v924_v30 = vpop.f32.mrf.mxu1 }
 0x113   :  { %v2665_v32 = vadd.f32 %v987_v50, %v955_v57  ;;  %v925_v14 = vadd.f32 %v924_v30, %v892_v29 }
 0x115   :  { %v1144_v33 = vmax.f32 %v925_v14, 0.0 }
 0x117   :  { %1163 = vst [vmem:[%s2749_s3 + $0x40] sm:$0xff] %v1144_v33 }
 0x118   :  { %v957_v34 = vpop.f32.mrf.mxu2  ;;  %v893_v47 = vpop.f32.mrf.mxu0 }
 0x119   :  { %v958_v37 = vadd.f32 %v957_v34, %v2630_v18  ;;  %v990_v38 = vpop.f32.mrf.mxu3  ;;  %v894_v52 = vadd.f32 %v893_v47, %v2605_v28  ;;  %v926_v43 = vpop.f32.mrf.mxu1 }
 0x11b   :  { %v2672_v55 = vadd.f32 %v990_v38, %v958_v37  ;;  %v927_v40 = vadd.f32 %v926_v43, %v894_v52 }
 0x11d   :  { %v1146_v44 = vmax.f32 %v927_v40, 0.0 }
 0x11f   :  { %1165 = vst [vmem:[%s2749_s3 + $0x50] sm:$0xff] %v1146_v44 }
 0x120   :  { %v959_v8 = vpop.f32.mrf.mxu2  ;;  %v896_v48 = vpop.f32.mrf.mxu0 }
 0x121   :  { %v960_v9 = vadd.f32 %v959_v8, %v2630_v18  ;;  %v992_v59 = vpop.f32.mrf.mxu3  ;;  %v897_v15 = vadd.f32 %v896_v48, %v2613_v41  ;;  %v929_v16 = vpop.f32.mrf.mxu1 }
 0x123   :  { %v2679_v60 = vadd.f32 %v992_v59, %v960_v9  ;;  %v930_v28 = vadd.f32 %v929_v16, %v897_v15 }
 0x125   :  { %v1148_v3 = vmax.f32 %v930_v28, 0.0 }
 0x127   :  { %1167 = vst [vmem:[%s2749_s3 + $0x60] sm:$0xff] %v1148_v3 }
 0x128   :  { %v962_v63 = vpop.f32.mrf.mxu2  ;;  %v898_v17 = vpop.f32.mrf.mxu0 }
 0x129   :  { %v963_v0 = vadd.f32 %v962_v63, %v2630_v18  ;;  %v995_v1 = vpop.f32.mrf.mxu3  ;;  %v899_v2 = vadd.f32 %v898_v17, %v2616_v58  ;;  %v931_v35 = vpop.f32.mrf.mxu1 }
 0x12b   :  { %v2686_v36 = vadd.f32 %v995_v1, %v963_v0  ;;  %v932_v41 = vadd.f32 %v931_v35, %v899_v2 }
 0x12d   :  { %v1150_v31 = vmax.f32 %v932_v41, 0.0 }
 0x12f   :  { %1169 = vst [vmem:[%s2749_s3 + $0x70] sm:$0xff] %v1150_v31 }
 0x130   :  { %v964_v4 = vpop.f32.mrf.mxu2  ;;  %v901_v5 = vpop.f32.mrf.mxu0 }
 0x131   :  { %v965_v45 = vadd.f32 %v964_v4, %v2630_v18  ;;  %v997_v46 = vpop.f32.mrf.mxu3  ;;  %v902_v53 = vadd.f32 %v901_v5, %v2623_v61  ;;  %v934_v6 = vpop.f32.mrf.mxu1 }
 0x133   :  { %v2693_v13 = vadd.f32 %v997_v46, %v965_v45  ;;  %v935_v58 = vadd.f32 %v934_v6, %v902_v53 }
 0x135   :  { %v1152_v19 = vmax.f32 %v935_v58, 0.0 }
 0x137   :  { %1171 = vst [vmem:[%s2749_s3 + $0x80] sm:$0xff] %v1152_v19 }
 0x138   :  { %v967_v10 = vpop.f32.mrf.mxu2  ;;  %v903_v22 = vpop.f32.mrf.mxu0 }
 0x139   :  { %v968_v11 = vadd.f32 %v967_v10, %v2630_v18  ;;  %v1000_v12 = vpop.f32.mrf.mxu3  ;;  %v936_v56 = vpop.f32.mrf.mxu1 }
 0x13b   :  { %v2699_v24 = vadd.f32 %v1000_v12, %v968_v11 }
 0x140   :  { %v969_v25 = vpop.f32.mrf.mxu2  ;;  %v1013_v61 = vpop.f32.mrf.mxu0 }
 0x141   :  { %v1002_v62 = vpop.f32.mrf.mxu3  ;;  %v1046_v42 = vpop.f32.mrf.mxu1  ;;  %v1014_v26 = vadd.f32 %v1013_v61, %v2639_v7 }
 0x143   :  { %v1047_v54 = vadd.f32 %v1046_v42, %v1014_v26 }
 0x148   :  { %v1079_v20 = vpop.f32.mrf.mxu2  ;;  %v1015_v49 = vpop.f32.mrf.mxu0 }
 0x149   :  { %v1080_v21 = vadd.f32 %v1079_v20, %v1047_v54  ;;  %v1112_v39 = vpop.f32.mrf.mxu3  ;;  %v1048_v57 = vpop.f32.mrf.mxu1  ;;  %v1016_v18 = vadd.f32 %v1015_v49, %v2646_v23 }
 0x14b   :  { %v1113_v50 = vadd.f32 %v1112_v39, %v1080_v21  ;;  %v1049_v29 = vadd.f32 %v1048_v57, %v1016_v18 }
 0x14d   :  { %v1137_v51 = vmax.f32 %v1113_v50, 0.0 }
 0x14f   :  { %1156 = vst.msk [vmem:[%s2749_s3 + $0x8] sm:$0xff] %vm1155_vm1, %v1137_v51 }
 0x150   :  { %v1081_v30 = vpop.f32.mrf.mxu2  ;;  %v1018_v33 = vpop.f32.mrf.mxu0 }
 0x151   :  { %v1082_v14 = vadd.f32 %v1081_v30, %v1049_v29  ;;  %v1114_v7 = vpop.f32.mrf.mxu3  ;;  %v1051_v34 = vpop.f32.mrf.mxu1  ;;  %v1019_v38 = vadd.f32 %v1018_v33, %v2658_v27 }
 0x153   :  { %v1115_v37 = vadd.f32 %v1114_v7, %v1082_v14  ;;  %v1052_v23 = vadd.f32 %v1051_v34, %v1019_v38 }
 0x155   :  { %v1139_v47 = vmax.f32 %v1115_v37, 0.0 }
 0x157   :  { %1158 = vst.msk [vmem:[%s2749_s3 + $0x18] sm:$0xff] %vm1155_vm1, %v1139_v47 }
 0x158   :  { %v1084_v52 = vpop.f32.mrf.mxu2  ;;  %v1020_v44 = vpop.f32.mrf.mxu0 }
 0x159   :  { %v1085_v43 = vadd.f32 %v1084_v52, %v1052_v23  ;;  %v1117_v40 = vpop.f32.mrf.mxu3  ;;  %v1053_v8 = vpop.f32.mrf.mxu1  ;;  %v1021_v59 = vadd.f32 %v1020_v44, %v2665_v32 }
 0x15b   :  { %v1118_v9 = vadd.f32 %v1117_v40, %v1085_v43  ;;  %v1054_v27 = vadd.f32 %v1053_v8, %v1021_v59 }
 0x15d   :  { %v1141_v48 = vmax.f32 %v1118_v9, 0.0 }
 0x15f   :  { %1160 = vst.msk [vmem:[%s2749_s3 + $0x28] sm:$0xff] %vm1155_vm1, %v1141_v48 }
 0x160   :  { %v1086_v15 = vpop.f32.mrf.mxu2  ;;  %v1023_v3 = vpop.f32.mrf.mxu0 }
 0x161   :  { %v1087_v16 = vadd.f32 %v1086_v15, %v1054_v27  ;;  %v1119_v28 = vpop.f32.mrf.mxu3  ;;  %v1056_v63 = vpop.f32.mrf.mxu1  ;;  %v1024_v1 = vadd.f32 %v1023_v3, %v2672_v55 }
 0x163   :  { %v1120_v0 = vadd.f32 %v1119_v28, %v1087_v16  ;;  %v1057_v32 = vadd.f32 %v1056_v63, %v1024_v1 }
 0x165   :  { %v1143_v17 = vmax.f32 %v1120_v0, 0.0 }
 0x167   :  { %1162 = vst.msk [vmem:[%s2749_s3 + $0x38] sm:$0xff] %vm1155_vm1, %v1143_v17 }
 0x168   :  { %v1089_v2 = vpop.f32.mrf.mxu2  ;;  %v1025_v31 = vpop.f32.mrf.mxu0 }
 0x169   :  { %v1090_v35 = vadd.f32 %v1089_v2, %v1057_v32  ;;  %v1122_v41 = vpop.f32.mrf.mxu3  ;;  %v1058_v4 = vpop.f32.mrf.mxu1  ;;  %v1026_v46 = vadd.f32 %v1025_v31, %v2679_v60 }
 0x16b   :  { %v1123_v45 = vadd.f32 %v1122_v41, %v1090_v35  ;;  %v1059_v55 = vadd.f32 %v1058_v4, %v1026_v46 }
 0x16d   :  { %v1145_v5 = vmax.f32 %v1123_v45, 0.0 }
 0x16f   :  { %1164 = vst.msk [vmem:[%s2749_s3 + $0x48] sm:$0xff] %vm1155_vm1, %v1145_v5 }
 0x170   :  { %v1091_v53 = vpop.f32.mrf.mxu2  ;;  %v1028_v19 = vpop.f32.mrf.mxu0 }
 0x171   :  { %v1092_v6 = vadd.f32 %v1091_v53, %v1059_v55  ;;  %v1124_v58 = vpop.f32.mrf.mxu3  ;;  %v1061_v10 = vpop.f32.mrf.mxu1  ;;  %v1029_v12 = vadd.f32 %v1028_v19, %v2686_v36 }
 0x173   :  { %v1125_v11 = vadd.f32 %v1124_v58, %v1092_v6  ;;  %v1062_v60 = vadd.f32 %v1061_v10, %v1029_v12 }
 0x175   :  { %v1147_v22 = vmax.f32 %v1125_v11, 0.0 }
 0x177   :  { %1166 = vst.msk [vmem:[%s2749_s3 + $0x58] sm:$0xff] %vm1155_vm1, %v1147_v22 }
 0x178   :  { %v1094_v56 = vpop.f32.mrf.mxu2  ;;  %v1030_v61 = vpop.f32.mrf.mxu0 }
 0x179   :  { %v1095_v25 = vadd.f32 %v1094_v56, %v1062_v60  ;;  %v1127_v62 = vpop.f32.mrf.mxu3  ;;  %v1063_v42 = vpop.f32.mrf.mxu1  ;;  %v1031_v54 = vadd.f32 %v1030_v61, %v2693_v13 }
 0x17b   :  { %v1128_v26 = vadd.f32 %v1127_v62, %v1095_v25  ;;  %v1064_v36 = vadd.f32 %v1063_v42, %v1031_v54 }
 0x17d   :  { %v1149_v20 = vmax.f32 %v1128_v26, 0.0 }
 0x17f   :  { %1168 = vst.msk [vmem:[%s2749_s3 + $0x68] sm:$0xff] %vm1155_vm1, %v1149_v20 }
 0x180   :  { %v1096_v21 = vpop.f32.mrf.mxu2  ;;  %v1033_v57 = vpop.f32.mrf.mxu0 }
 0x181   :  { %v1097_v39 = vadd.f32 %v1096_v21, %v1064_v36  ;;  %v1129_v49 = vpop.f32.mrf.mxu3  ;;  %v1066_v50 = vpop.f32.mrf.mxu1  ;;  %v1034_v51 = vadd.f32 %v1033_v57, %v2699_v24 }
 0x183   :  { %v1130_v18 = vadd.f32 %v1129_v49, %v1097_v39  ;;  %v1067_v13 = vadd.f32 %v1066_v50, %v1034_v51 }
 0x185   :  { %v1151_v29 = vmax.f32 %v1130_v18, 0.0 }
 0x187   :  { %1170 = vst.msk [vmem:[%s2749_s3 + $0x78] sm:$0xff] %vm1155_vm1, %v1151_v29 }
 0x188   :  { %v1099_v30 = vpop.f32.mrf.mxu2  ;;  %v1035_v33 = vpop.f32.mrf.mxu0 }
 0x189   :  { %v1100_v14 = vadd.f32 %v1099_v30, %v1067_v13  ;;  %v1132_v7 = vpop.f32.mrf.mxu3  ;;  %v1068_v34 = vpop.f32.mrf.mxu1 }
 0x18b   :  { %v1133_v37 = vadd.f32 %v1132_v7, %v1100_v14 }
 0x18d   :  { %v1153_v38 = vmax.f32 %v1133_v37, 0.0 }
 0x18f   :  { %1172 = vst.msk [vmem:[%s2749_s3 + $0x88] sm:$0xff] %vm1155_vm1, %v1153_v38 }
 0x190   :  { %v1101_v24 = vpop.f32.mrf.mxu2 }
 0x191   :  { %v1134_v47 = vpop.f32.mrf.mxu3 }

// kernel: stem_forward.19
= control target key start
LH: loop header
LB: loop body
LE: loop exit
PB: predicated region body
PF: predicated region fallthrough
CT: control target
= control target key end

     0   :  { %vm270_vm0 = vcmask 523264   ;;  %vm354_vm1 = vcmask 130048   ;;  %s806_s1 = inlined_call_operand.vmem [shape: bf16[192,272], index: 1, kind: input, shape index: {}]   ;;  %s807_s0 = inlined_call_operand.vmem [shape: bf16[8,192], index: 0, kind: input, shape index: {}]   ;;  %s808_s2 = inlined_call_operand.vmem [shape: f32[1,272], index: 2, kind: input, shape index: {}]   ;;  %s809_s3 = inlined_call_operand.vmem [shape: f32[8,272], index: 3, kind: output, shape index: {}]  }
   0x1   :  { %v446_v0 = vld [vmem:[%s806_s1 + $0xa8] sm:$0xf]  ;;  %v529_v1 = vld [vmem:[%s806_s1 + $0xb0] sm:$0xf0]  ;;  %v528_v5 = vld [vmem:[%s806_s1 + $0xac] sm:$0xf] }
   0x2   :  { %v494_v2 = vld [vmem:[%s806_s1 + $0x108] sm:$0xf]  ;;  %v447_v3 = vor.u32 %v529_v1, %v446_v0  ;;  %v541_v4 = vld [vmem:[%s806_s1 + $0x110] sm:$0xf0]  ;;  %v448_v6 = vld [vmem:[%s806_s1 + $0xb4] sm:$0xf0] }
   0x3   :  { %v495_v7 = vor.u32 %v541_v4, %v494_v2  ;;  %v451_v8 = vor.u32 %v528_v5, %v448_v6  ;;  %v540_v9 = vld [vmem:[%s806_s1 + $0x10c] sm:$0xf]  ;;  %v496_v10 = vld [vmem:[%s806_s1 + $0x114] sm:$0xf0]  ;;  %v434_v11 = vld [vmem:[%s806_s1 + $0x90] sm:$0xf] }
   0x4   :  { %274 = vmatpush.bf16.msra.mxu0 %v447_v3  ;;  %v499_v12 = vor.u32 %v540_v9, %v496_v10  ;;  %v526_v13 = vld [vmem:[%s806_s1 + $0x98] sm:$0xf0]  ;;  %v482_v14 = vld [vmem:[%s806_s1 + $0xf0] sm:$0xf]  ;;  %v525_v18 = vld [vmem:[%s806_s1 + $0x94] sm:$0xf] }
   0x5   :  { %v538_v15 = vld [vmem:[%s806_s1 + $0xf8] sm:$0xf0]  ;;  %291 = vmatpush.bf16.msra.mxu1 %v495_v7  ;;  %300 = vmatpush.bf16.msra.mxu2 %v451_v8  ;;  %v435_v16 = vor.u32 %v526_v13, %v434_v11  ;;  %v436_v19 = vld [vmem:[%s806_s1 + $0x9c] sm:$0xf0]  ;;  %v537_v20 = vld [vmem:[%s806_s1 + $0xf4] sm:$0xf] }
   0x6   :  { %v483_v17 = vor.u32 %v538_v15, %v482_v14  ;;  %317 = vmatpush.bf16.msra.mxu3 %v499_v12  ;;  %v439_v21 = vor.u32 %v525_v18, %v436_v19  ;;  %v484_v22 = vld [vmem:[%s806_s1 + $0xfc] sm:$0xf0]  ;;  %v422_v23 = vld [vmem:[%s806_s1 + $0x78] sm:$0xf]  ;;  %v523_v24 = vld [vmem:[%s806_s1 + $0x80] sm:$0xf0] }
   0x7   :  { %v487_v25 = vor.u32 %v537_v20, %v484_v22  ;;  %v470_v26 = vld [vmem:[%s806_s1 + $0xd8] sm:$0xf]  ;;  %v535_v27 = vld [vmem:[%s806_s1 + $0xe0] sm:$0xf0]  ;;  %v522_v28 = vld [vmem:[%s806_s1 + $0x7c] sm:$0xf]  ;;  %v423_v29 = vor.u32 %v523_v24, %v422_v23 }
   0x8   :  { %275 = vmatpush.bf16.msra.mxu0 %v435_v16  ;;  %v424_v30 = vld [vmem:[%s806_s1 + $0x84] sm:$0xf0]  ;;  %v534_v31 = vld [vmem:[%s806_s1 + $0xdc] sm:$0xf]  ;;  %v471_v33 = vor.u32 %v535_v27, %v470_v26  ;;  %v410_v35 = vld [vmem:[%s806_s1 + $0x60] sm:$0xf] }
   0x9   :  { %v472_v32 = vld [vmem:[%s806_s1 + $0xe4] sm:$0xf0]  ;;  %292 = vmatpush.bf16.msra.mxu1 %v483_v17  ;;  %301 = vmatpush.bf16.msra.mxu2 %v439_v21  ;;  %v427_v34 = vor.u32 %v522_v28, %v424_v30  ;;  %v520_v36 = vld [vmem:[%s806_s1 + $0x68] sm:$0xf0]  ;;  %v458_v37 = vld [vmem:[%s806_s1 + $0xc0] sm:$0xf] }
   0xa   :  { %318 = vmatpush.bf16.msra.mxu3 %v487_v25  ;;  %v475_v38 = vor.u32 %v534_v31, %v472_v32  ;;  %v532_v39 = vld [vmem:[%s806_s1 + $0xc8] sm:$0xf0]  ;;  %v519_v40 = vld [vmem:[%s806_s1 + $0x64] sm:$0xf]  ;;  %v412_v41 = vld [vmem:[%s806_s1 + $0x6c] sm:$0xf0]  ;;  %v411_v45 = vor.u32 %v520_v36, %v410_v35 }
   0xb   :  { %v531_v42 = vld [vmem:[%s806_s1 + $0xc4] sm:$0xf]  ;;  %v460_v43 = vld [vmem:[%s806_s1 + $0xcc] sm:$0xf0]  ;;  %v530_v46 = vld [vmem:[%s806_s1 + $0xb8] sm:$0xf0]  ;;  %v459_v48 = vor.u32 %v532_v39, %v458_v37  ;;  %v415_v49 = vor.u32 %v519_v40, %v412_v41 }
   0xc   :  { %v454_v44 = vld [vmem:[%s806_s1 + $0xb0] sm:$0xf]  ;;  %276 = vmatpush.bf16.msra.mxu0 %v423_v29  ;;  %v668_v47 = vld [vmem:[%s807_s0] sm:$0xff]  ;;  %v398_v51 = vld [vmem:[%s806_s1 + $0x48] sm:$0xf]  ;;  %v463_v54 = vor.u32 %v531_v42, %v460_v43 }
   0xd   :  { %293 = vmatpush.bf16.msra.mxu1 %v471_v33  ;;  %302 = vmatpush.bf16.msra.mxu2 %v427_v34  ;;  %v74_v50 = vunpack.c.h.b16 %v668_v47  ;;  %v517_v52 = vld [vmem:[%s806_s1 + $0x50] sm:$0xf0]  ;;  %v516_v53 = vld [vmem:[%s806_s1 + $0x4c] sm:$0xf]  ;;  %v455_v55 = vor.u32 %v530_v46, %v454_v44  ;;  %v400_v56 = vld [vmem:[%s806_s1 + $0x54] sm:$0xf0]  ;;  %v73_v35 = vunpack.c.l.b16 %v668_v47 }
   0xe   :  { %319 = vmatpush.bf16.msra.mxu3 %v475_v38  ;;  %v502_v57 = vld [vmem:[%s806_s1 + $0x110] sm:$0xf]  ;;  %v542_v58 = vld [vmem:[%s806_s1 + $0x118] sm:$0xf0]  ;;  %v442_v60 = vld [vmem:[%s806_s1 + $0x98] sm:$0xf]  ;;  %v399_v62 = vor.u32 %v517_v52, %v398_v51  ;;  %v403_v1 = vor.u32 %v516_v53, %v400_v56 }
   0xf   :  { %v503_v59 = vor.u32 %v542_v58, %v502_v57  ;;  %v527_v61 = vld [vmem:[%s806_s1 + $0xa0] sm:$0xf0]  ;;  %v490_v63 = vld [vmem:[%s806_s1 + $0xf8] sm:$0xf]  ;;  %v698_v0 = vpack.c.b16 %v74_v50, %v74_v50  ;;  %v386_v2 = vld [vmem:[%s806_s1 + $0x30] sm:$0xf]  ;;  %v75_v39 = vpack.c.b16 %v73_v35, %v73_v35 }
  0x10   :  { %277 = vmatpush.bf16.msra.mxu0 %v411_v45  ;;  %v514_v3 = vld [vmem:[%s806_s1 + $0x38] sm:$0xf0]  ;;  %v539_v4 = vld [vmem:[%s806_s1 + $0x100] sm:$0xf0]  ;;  %v443_v5 = vor.u32 %v527_v61, %v442_v60  ;;  %v513_v6 = vld [vmem:[%s806_s1 + $0x34] sm:$0xf] }
  0x11   :  { %294 = vmatpush.bf16.msra.mxu1 %v459_v48  ;;  %303 = vmatpush.bf16.msra.mxu2 %v415_v49  ;;  %v388_v7 = vld [vmem:[%s806_s1 + $0x3c] sm:$0xf0]  ;;  %v491_v8 = vor.u32 %v539_v4, %v490_v63  ;;  %v524_v10 = vld [vmem:[%s806_s1 + $0x88] sm:$0xf0]  ;;  %v387_v11 = vor.u32 %v514_v3, %v386_v2  ;;  %v374_v15 = vld [vmem:[%s806_s1 + $0x18] sm:$0xf] }
  0x12   :  { %320 = vmatpush.bf16.msra.mxu3 %v463_v54  ;;  %v430_v9 = vld [vmem:[%s806_s1 + $0x80] sm:$0xf]  ;;  %v536_v13 = vld [vmem:[%s806_s1 + $0xe8] sm:$0xf0]  ;;  %v391_v14 = vor.u32 %v513_v6, %v388_v7  ;;  %v511_v16 = vld [vmem:[%s806_s1 + $0x20] sm:$0xf0] }
  0x13   :  { %v478_v12 = vld [vmem:[%s806_s1 + $0xe0] sm:$0xf]  ;;  %v431_v17 = vor.u32 %v524_v10, %v430_v9  ;;  %v510_v18 = vld [vmem:[%s806_s1 + $0x1c] sm:$0xf]  ;;  %v376_v19 = vld [vmem:[%s806_s1 + $0x24] sm:$0xf0]  ;;  %v375_v23 = vor.u32 %v511_v16, %v374_v15 }
  0x14   :  { %278 = vmatpush.bf16.msra.mxu0 %v399_v62  ;;  %504 = vmatmul.msk.bf16.vlgmr.msra.gmra.mxu1 %vm270_vm0, %v698_v0  ;;  %v479_v20 = vor.u32 %v536_v13, %v478_v12  ;;  %v418_v21 = vld [vmem:[%s806_s1 + $0x68] sm:$0xf]  ;;  %v521_v22 = vld [vmem:[%s806_s1 + $0x70] sm:$0xf0]  ;;  %v379_v26 = vor.u32 %v510_v18, %v376_v19  ;;  %v362_v27 = vld [vmem:[%s806_s1] sm:$0xf] }
  0x15   :  { %326 = vmatpush.bf16.msrb.mxu1 %v455_v55  ;;  %505 = vmatmul.msk.bf16.vlgmr.msra.gmra.mxu3 %vm270_vm0, %v698_v0  ;;  %v466_v24 = vld [vmem:[%s806_s1 + $0xc8] sm:$0xf]  ;;  %v533_v25 = vld [vmem:[%s806_s1 + $0xd0] sm:$0xf0]  ;;  %v508_v28 = vld [vmem:[%s806_s1 + $0x8] sm:$0xf0]  ;;  %v419_v29 = vor.u32 %v521_v22, %v418_v21 }
  0x16   :  { %343 = vmatpush.bf16.msrb.mxu3 %v503_v59  ;;  %304 = vmatpush.bf16.msra.mxu2 %v403_v1  ;;  %v507_v30 = vld [vmem:[%s806_s1 + $0x4] sm:$0xf]  ;;  %v364_v31 = vld [vmem:[%s806_s1 + $0xc] sm:$0xf0]  ;;  %v467_v32 = vor.u32 %v533_v25, %v466_v24  ;;  %v518_v34 = vld [vmem:[%s806_s1 + $0x58] sm:$0xf0]  ;;  %v363_v36 = vor.u32 %v508_v28, %v362_v27 }
  0x17   :  { %v406_v33 = vld [vmem:[%s806_s1 + $0x50] sm:$0xf]  ;;  %v367_v37 = vor.u32 %v507_v30, %v364_v31  ;;  %v394_v40 = vld [vmem:[%s806_s1 + $0x38] sm:$0xf]  ;;  %v515_v41 = vld [vmem:[%s806_s1 + $0x40] sm:$0xf0] }
  0x18   :  { %279 = vmatpush.bf16.msra.mxu0 %v387_v11  ;;  %v407_v38 = vor.u32 %v518_v34, %v406_v33  ;;  %v395_v42 = vor.u32 %v515_v41, %v394_v40  ;;  %v382_v43 = vld [vmem:[%s806_s1 + $0x20] sm:$0xf]  ;;  %v512_v44 = vld [vmem:[%s806_s1 + $0x28] sm:$0xf0]  ;;  %v370_v46 = vld [vmem:[%s806_s1 + $0x8] sm:$0xf] }
  0x19   :  { %327 = vmatpush.bf16.msrb.mxu1 %v443_v5  ;;  %v383_v45 = vor.u32 %v512_v44, %v382_v43  ;;  %v509_v47 = vld [vmem:[%s806_s1 + $0x10] sm:$0xf0]  ;;  %v64_v52 = vld [vmem:[%s808_s2] sm:$0x7] }
  0x1a   :  { %344 = vmatpush.bf16.msrb.mxu3 %v491_v8  ;;  %305 = vmatpush.bf16.msra.mxu2 %v391_v14  ;;  %v371_v48 = vor.u32 %v509_v47, %v370_v46  ;;  %v66_v53 = vperm.slane %v64_v52, 0  ;;  %v67_v58 = vperm.slane %v64_v52, 1 }
  0x1c   :  { %280 = vmatpush.bf16.msra.mxu0 %v375_v23 }
  0x1d   :  { %328 = vmatpush.bf16.msrb.mxu1 %v431_v17 }
  0x1e   :  { %345 = vmatpush.bf16.msrb.mxu3 %v479_v20  ;;  %306 = vmatpush.bf16.msra.mxu2 %v379_v26 }
  0x20   :  { %281 = vmatpush.bf16.msra.mxu0 %v363_v36 }
  0x21   :  { %329 = vmatpush.bf16.msrb.mxu1 %v419_v29 }
  0x22   :  { %346 = vmatpush.bf16.msrb.mxu3 %v467_v32  ;;  %307 = vmatpush.bf16.msra.mxu2 %v367_v37 }
  0x23   :  { %282 = vmatmul.bf16.vlgmr.msra.gmra.mxu0 %v75_v39 }
  0x25   :  { %330 = vmatpush.bf16.msrb.mxu1 %v407_v38  ;;  %308 = vmatmul.bf16.vlgmr.msra.gmra.mxu2 %v75_v39 }
  0x26   :  { %506 = vmatmul.msk.bf16.vlgmr.msrb.gmra.mxu3 %vm270_vm0, %v698_v0  ;;  %v68_v0 = vperm.slane %v64_v52, 2 }
  0x29   :  { %331 = vmatpush.bf16.msrb.mxu1 %v395_v42 }
  0x2d   :  { %332 = vmatpush.bf16.msrb.mxu1 %v383_v45 }
  0x31   :  { %333 = vmatpush.bf16.msrb.mxu1 %v371_v48 }
  0x34   :  { %334 = vmatmul.bf16.vlgmr.msrb.gmra.mxu1 %v75_v39 }
  0x91   :  { %v296_v49 = vpop.f32.mrf.mxu1 }
  0x98   :  { %v322_v50 = vpop.f32.mrf.mxu3 }
  0x99   :  { %v298_v51 = vpop.f32.mrf.mxu1 }
  0xa0   :  { %v324_v54 = vpop.f32.mrf.mxu3  ;;  %v283_v55 = vpop.f32.mrf.mxu0 }
  0xa1   :  { %v284_v56 = vadd.f32 %v283_v55, %v66_v53 }
  0xa3   :  { %v297_v57 = vadd.f32 %v296_v49, %v284_v56 }
  0xa5   :  { %352 = vst [vmem:[%s809_s3] sm:$0xff] %v297_v57 }
  0xa8   :  { %v309_v59 = vpop.f32.mrf.mxu2  ;;  %v285_v62 = vpop.f32.mrf.mxu0 }
  0xa9   :  { %v310_v60 = vadd.f32 %v309_v59, %v67_v58  ;;  %v348_v61 = vpop.f32.mrf.mxu3 }
  0xab   :  { %v323_v63 = vadd.f32 %v322_v50, %v310_v60 }
  0xad   :  { %353 = vst [vmem:[%s809_s3 + $0x8] sm:$0xff] %v323_v63 }
  0xb0   :  { %v311_v3 = vpop.f32.mrf.mxu2 }
  0xb1   :  { %v335_v1 = vpop.f32.mrf.mxu1  ;;  %v350_v4 = vpop.f32.mrf.mxu3 }
  0xb2   :  { %v336_v2 = vadd.f32 %v335_v1, %v68_v0 }
  0xb4   :  { %v349_v5 = vadd.f32 %v348_v61, %v336_v2 }
  0xb6   :  { %355 = vst.msk [vmem:[%s809_s3 + $0x10] sm:$0xff] %vm354_vm1, %v349_v5 }
  0xb9   :  { %v337_v6 = vpop.f32.mrf.mxu1 }

// kernel: stem_forward.21
= control target key start
LH: loop header
LB: loop body
LE: loop exit
PB: predicated region body
PF: predicated region fallthrough
CT: control target
= control target key end

     0   :  { %vm327_vm0 = vcmask 523264   ;;  %vm396_vm1 = vcmask 785408   ;;  %s727_s1 = inlined_call_operand.vmem [shape: bf16[576,96], index: 1, kind: input, shape index: {}]   ;;  %s728_s2 = inlined_call_operand.vmem [shape: f32[1,96], index: 2, kind: input, shape index: {}]   ;;  %s729_s0 = inlined_call_operand.vmem [shape: bf16[8,576], index: 0, kind: input, shape index: {}]   ;;  %s730_s3 = inlined_call_operand.vmem [shape: f32[8,96], index: 3, kind: output, shape index: {}]  }
   0x1   :  { %v554_v0 = vld [vmem:[%s727_s1 + $0x38] sm:$0xff]  ;;  %v553_v4 = vld [vmem:[%s727_s1 + $0x30] sm:$0xff]  ;;  %v552_v8 = vld [vmem:[%s727_s1 + $0x28] sm:$0xff] }
   0x2   :  { %v570_v1 = vld [vmem:[%s727_s1 + $0xb8] sm:$0xff]  ;;  %331 = vmatpush.bf16.msra.mxu0 %v554_v0  ;;  %v569_v5 = vld [vmem:[%s727_s1 + $0xb0] sm:$0xff]  ;;  %v568_v9 = vld [vmem:[%s727_s1 + $0xa8] sm:$0xff] }
   0x3   :  { %v562_v2 = vld [vmem:[%s727_s1 + $0x78] sm:$0xff]  ;;  %357 = vmatpush.bf16.msra.mxu2 %v570_v1  ;;  %v561_v6 = vld [vmem:[%s727_s1 + $0x70] sm:$0xff]  ;;  %v560_v10 = vld [vmem:[%s727_s1 + $0x68] sm:$0xff] }
   0x4   :  { %v578_v3 = vld [vmem:[%s727_s1 + $0xf8] sm:$0xff]  ;;  %344 = vmatpush.bf16.msra.mxu1 %v562_v2  ;;  %v577_v7 = vld [vmem:[%s727_s1 + $0xf0] sm:$0xff]  ;;  %v576_v11 = vld [vmem:[%s727_s1 + $0xe8] sm:$0xff] }
   0x5   :  { %370 = vmatpush.bf16.msra.mxu3 %v578_v3  ;;  %v551_v12 = vld [vmem:[%s727_s1 + $0x20] sm:$0xff]  ;;  %v550_v16 = vld [vmem:[%s727_s1 + $0x18] sm:$0xff]  ;;  %v549_v20 = vld [vmem:[%s727_s1 + $0x10] sm:$0xff] }
   0x6   :  { %332 = vmatpush.bf16.msra.mxu0 %v553_v4  ;;  %v567_v13 = vld [vmem:[%s727_s1 + $0xa0] sm:$0xff]  ;;  %v566_v17 = vld [vmem:[%s727_s1 + $0x98] sm:$0xff]  ;;  %v565_v21 = vld [vmem:[%s727_s1 + $0x90] sm:$0xff] }
   0x7   :  { %358 = vmatpush.bf16.msra.mxu2 %v569_v5  ;;  %v559_v14 = vld [vmem:[%s727_s1 + $0x60] sm:$0xff]  ;;  %v558_v18 = vld [vmem:[%s727_s1 + $0x58] sm:$0xff]  ;;  %v557_v22 = vld [vmem:[%s727_s1 + $0x50] sm:$0xff] }
   0x8   :  { %345 = vmatpush.bf16.msra.mxu1 %v561_v6  ;;  %v575_v15 = vld [vmem:[%s727_s1 + $0xe0] sm:$0xff]  ;;  %v574_v19 = vld [vmem:[%s727_s1 + $0xd8] sm:$0xff]  ;;  %v573_v23 = vld [vmem:[%s727_s1 + $0xd0] sm:$0xff] }
   0x9   :  { %371 = vmatpush.bf16.msra.mxu3 %v577_v7  ;;  %v548_v24 = vld [vmem:[%s727_s1 + $0x8] sm:$0xff]  ;;  %v15_v26 = vld [vmem:[%s729_s0] sm:$0xff]  ;;  %v582_v38 = vld [vmem:[%s727_s1 + $0x118] sm:$0xff] }
   0xa   :  { %333 = vmatpush.bf16.msra.mxu0 %v552_v8  ;;  %v564_v25 = vld [vmem:[%s727_s1 + $0x88] sm:$0xff]  ;;  %v97_v30 = vunpack.c.l.b16 %v15_v26  ;;  %v547_v32 = vld [vmem:[%s727_s1] sm:$0xff]  ;;  %v98_v34 = vunpack.c.h.b16 %v15_v26  ;;  %v581_v43 = vld [vmem:[%s727_s1 + $0x110] sm:$0xff] }
   0xb   :  { %359 = vmatpush.bf16.msra.mxu2 %v568_v9  ;;  %v16_v27 = vld [vmem:[%s729_s0 + $0x8] sm:$0xff]  ;;  %v563_v33 = vld [vmem:[%s727_s1 + $0x80] sm:$0xff]  ;;  %v17_v45 = vld [vmem:[%s729_s0 + $0x10] sm:$0xf] }
   0xc   :  { %346 = vmatpush.bf16.msra.mxu1 %v560_v10  ;;  %v556_v28 = vld [vmem:[%s727_s1 + $0x48] sm:$0xff]  ;;  %v99_v31 = vunpack.c.l.b16 %v16_v27  ;;  %v100_v35 = vunpack.c.h.b16 %v16_v27  ;;  %v555_v36 = vld [vmem:[%s727_s1 + $0x40] sm:$0xff]  ;;  %v102_v39 = vpack.c.b16 %v97_v30, %v97_v30  ;;  %v103_v41 = vpack.c.b16 %v98_v34, %v98_v34 }
   0xd   :  { %372 = vmatpush.bf16.msra.mxu3 %v576_v11  ;;  %v572_v29 = vld [vmem:[%s727_s1 + $0xc8] sm:$0xff]  ;;  %v571_v37 = vld [vmem:[%s727_s1 + $0xc0] sm:$0xff]  ;;  %v101_v47 = vunpack.c.l.b16 %v17_v45 }
   0xe   :  { %334 = vmatpush.bf16.msra.mxu0 %v551_v12  ;;  %v104_v40 = vpack.c.b16 %v99_v31, %v99_v31  ;;  %v105_v42 = vpack.c.b16 %v100_v35, %v100_v35  ;;  %v580_v44 = vld [vmem:[%s727_s1 + $0x108] sm:$0xff]  ;;  %v579_v46 = vld [vmem:[%s727_s1 + $0x100] sm:$0xff] }
   0xf   :  { %360 = vmatpush.bf16.msra.mxu2 %v567_v13  ;;  %v106_v48 = vpack.c.b16 %v101_v47, %v101_v47  ;;  %v583_v50 = vld [vmem:[%s728_s2] ss:$0 sm:$0xff] }
  0x10   :  { %347 = vmatpush.bf16.msra.mxu1 %v559_v14 }
  0x11   :  { %373 = vmatpush.bf16.msra.mxu3 %v575_v15 }
  0x12   :  { %335 = vmatpush.bf16.msra.mxu0 %v550_v16 }
  0x13   :  { %361 = vmatpush.bf16.msra.mxu2 %v566_v17 }
  0x14   :  { %348 = vmatpush.bf16.msra.mxu1 %v558_v18 }
  0x15   :  { %374 = vmatpush.bf16.msra.mxu3 %v574_v19 }
  0x16   :  { %336 = vmatpush.bf16.msra.mxu0 %v549_v20 }
  0x17   :  { %362 = vmatpush.bf16.msra.mxu2 %v565_v21 }
  0x18   :  { %349 = vmatpush.bf16.msra.mxu1 %v557_v22 }
  0x19   :  { %375 = vmatpush.bf16.msra.mxu3 %v573_v23 }
  0x1a   :  { %337 = vmatpush.bf16.msra.mxu0 %v548_v24 }
  0x1b   :  { %363 = vmatpush.bf16.msra.mxu2 %v564_v25 }
  0x1c   :  { %350 = vmatpush.bf16.msra.mxu1 %v556_v28 }
  0x1d   :  { %376 = vmatpush.bf16.msra.mxu3 %v572_v29 }
  0x1e   :  { %338 = vmatpush.bf16.msra.mxu0 %v547_v32 }
  0x1f   :  { %364 = vmatpush.bf16.msra.mxu2 %v563_v33 }
  0x20   :  { %351 = vmatpush.bf16.msra.mxu1 %v555_v36 }
  0x21   :  { %377 = vmatpush.bf16.msra.mxu3 %v571_v37  ;;  %339 = vmatmul.bf16.vlgmr.msra.gmra.mxu0 %v102_v39 }
  0x22   :  { %387 = vmatpush.bf16.msrb.mxu0 %v582_v38  ;;  %365 = vmatmul.bf16.vlgmr.msra.gmra.mxu2 %v104_v40 }
  0x23   :  { %352 = vmatmul.bf16.vlgmr.msra.gmra.mxu1 %v103_v41 }
  0x24   :  { %378 = vmatmul.bf16.vlgmr.msra.gmra.mxu3 %v105_v42 }
  0x26   :  { %388 = vmatpush.bf16.msrb.mxu0 %v581_v43 }
  0x2a   :  { %389 = vmatpush.bf16.msrb.mxu0 %v580_v44 }
  0x2e   :  { %390 = vmatpush.bf16.msrb.mxu0 %v579_v46 }
  0x31   :  { %546 = vmatmul.msk.bf16.vlgmr.msrb.gmra.mxu0 %vm327_vm0, %v106_v48 }
  0x9e   :  { %v340_v49 = vpop.f32.mrf.mxu0 }
  0x9f   :  { %v341_v52 = vadd.f32 %v583_v50, %v340_v49 }
  0xa0   :  { %v353_v51 = vpop.f32.mrf.mxu1 }
  0xa1   :  { %v354_v56 = vadd.f32 %v353_v51, %v341_v52 }
  0xa5   :  { %v366_v53 = vpop.f32.mrf.mxu2 }
  0xa6   :  { %v342_v55 = vpop.f32.mrf.mxu0  ;;  %v367_v58 = vadd.f32 %v366_v53, %v354_v56 }
  0xa7   :  { %v379_v54 = vpop.f32.mrf.mxu3 }
  0xa8   :  { %v355_v57 = vpop.f32.mrf.mxu1  ;;  %v380_v60 = vadd.f32 %v379_v54, %v367_v58 }
  0xad   :  { %v368_v59 = vpop.f32.mrf.mxu2 }
  0xae   :  { %v392_v62 = vpop.f32.mrf.mxu0 }
  0xaf   :  { %v381_v61 = vpop.f32.mrf.mxu3  ;;  %v393_v63 = vadd.f32 %v392_v62, %v380_v60 }
  0xb1   :  { %397 = vst.msk [vmem:[%s730_s3] sm:$0xff] %vm396_vm1, %v393_v63 }
  0xb6   :  { %v394_v0 = vpop.f32.mrf.mxu0 }

// kernel: stem_forward.22
= control target key start
LH: loop header
LB: loop body
LE: loop exit
PB: predicated region body
PF: predicated region fallthrough
CT: control target
= control target key end

     0   :  { %vm479_vm0 = vcmask 785408   ;;  %s1053_s1 = inlined_call_operand.vmem [shape: bf16[864,96], index: 1, kind: input, shape index: {}]   ;;  %s1054_s2 = inlined_call_operand.vmem [shape: f32[1,96], index: 2, kind: input, shape index: {}]   ;;  %s1055_s0 = inlined_call_operand.vmem [shape: bf16[8,864], index: 0, kind: input, shape index: {}]   ;;  %s1056_s3 = inlined_call_operand.vmem [shape: f32[8,96], index: 3, kind: output, shape index: {}]  }
   0x1   :  { %v803_v0 = vld [vmem:[%s1053_s1 + $0x38] sm:$0xff]  ;;  %v802_v3 = vld [vmem:[%s1053_s1 + $0x30] sm:$0xff]  ;;  %v801_v8 = vld [vmem:[%s1053_s1 + $0x28] sm:$0xff] }
   0x2   :  { %v811_v1 = vld [vmem:[%s1053_s1 + $0x78] sm:$0xff]  ;;  %483 = vmatpush.bf16.msra.mxu0 %v803_v0  ;;  %v810_v4 = vld [vmem:[%s1053_s1 + $0x70] sm:$0xff]  ;;  %v809_v9 = vld [vmem:[%s1053_s1 + $0x68] sm:$0xff] }
   0x3   :  { %v819_v2 = vld [vmem:[%s1053_s1 + $0xb8] sm:$0xff]  ;;  %496 = vmatpush.bf16.msra.mxu1 %v811_v1  ;;  %v818_v5 = vld [vmem:[%s1053_s1 + $0xb0] sm:$0xff]  ;;  %v817_v10 = vld [vmem:[%s1053_s1 + $0xa8] sm:$0xff] }
   0x4   :  { %509 = vmatpush.bf16.msra.mxu2 %v819_v2  ;;  %v827_v6 = vld [vmem:[%s1053_s1 + $0xf8] sm:$0xff]  ;;  %v826_v7 = vld [vmem:[%s1053_s1 + $0xf0] sm:$0xff]  ;;  %v825_v11 = vld [vmem:[%s1053_s1 + $0xe8] sm:$0xff] }
   0x5   :  { %522 = vmatpush.bf16.msra.mxu3 %v827_v6  ;;  %v800_v12 = vld [vmem:[%s1053_s1 + $0x20] sm:$0xff]  ;;  %v799_v16 = vld [vmem:[%s1053_s1 + $0x18] sm:$0xff]  ;;  %v798_v20 = vld [vmem:[%s1053_s1 + $0x10] sm:$0xff] }
   0x6   :  { %484 = vmatpush.bf16.msra.mxu0 %v802_v3  ;;  %v808_v13 = vld [vmem:[%s1053_s1 + $0x60] sm:$0xff]  ;;  %v807_v17 = vld [vmem:[%s1053_s1 + $0x58] sm:$0xff]  ;;  %v806_v21 = vld [vmem:[%s1053_s1 + $0x50] sm:$0xff] }
   0x7   :  { %497 = vmatpush.bf16.msra.mxu1 %v810_v4  ;;  %v816_v14 = vld [vmem:[%s1053_s1 + $0xa0] sm:$0xff]  ;;  %v815_v18 = vld [vmem:[%s1053_s1 + $0x98] sm:$0xff]  ;;  %v814_v22 = vld [vmem:[%s1053_s1 + $0x90] sm:$0xff] }
   0x8   :  { %510 = vmatpush.bf16.msra.mxu2 %v818_v5  ;;  %v824_v15 = vld [vmem:[%s1053_s1 + $0xe0] sm:$0xff]  ;;  %v823_v19 = vld [vmem:[%s1053_s1 + $0xd8] sm:$0xff]  ;;  %v822_v23 = vld [vmem:[%s1053_s1 + $0xd0] sm:$0xff] }
   0x9   :  { %523 = vmatpush.bf16.msra.mxu3 %v826_v7  ;;  %v797_v24 = vld [vmem:[%s1053_s1 + $0x8] sm:$0xff]  ;;  %v15_v26 = vld [vmem:[%s1055_s0] sm:$0xff]  ;;  %v835_v36 = vld [vmem:[%s1053_s1 + $0x138] sm:$0xff] }
   0xa   :  { %485 = vmatpush.bf16.msra.mxu0 %v801_v8  ;;  %v805_v25 = vld [vmem:[%s1053_s1 + $0x48] sm:$0xff]  ;;  %v135_v30 = vunpack.c.l.b16 %v15_v26  ;;  %v136_v31 = vunpack.c.h.b16 %v15_v26  ;;  %v796_v32 = vld [vmem:[%s1053_s1] sm:$0xff]  ;;  %v843_v37 = vld [vmem:[%s1053_s1 + $0x178] sm:$0xff] }
   0xb   :  { %498 = vmatpush.bf16.msra.mxu1 %v809_v9  ;;  %v813_v27 = vld [vmem:[%s1053_s1 + $0x88] sm:$0xff]  ;;  %v804_v33 = vld [vmem:[%s1053_s1 + $0x40] sm:$0xff]  ;;  %v834_v44 = vld [vmem:[%s1053_s1 + $0x130] sm:$0xff] }
   0xc   :  { %511 = vmatpush.bf16.msra.mxu2 %v817_v10  ;;  %v16_v28 = vld [vmem:[%s1055_s0 + $0x8] sm:$0xff]  ;;  %v812_v35 = vld [vmem:[%s1053_s1 + $0x80] sm:$0xff]  ;;  %v142_v39 = vpack.c.b16 %v135_v30, %v135_v30  ;;  %v143_v40 = vpack.c.b16 %v136_v31, %v136_v31  ;;  %v842_v45 = vld [vmem:[%s1053_s1 + $0x170] sm:$0xff] }
   0xd   :  { %524 = vmatpush.bf16.msra.mxu3 %v825_v11  ;;  %v821_v29 = vld [vmem:[%s1053_s1 + $0xc8] sm:$0xff]  ;;  %v137_v34 = vunpack.c.l.b16 %v16_v28  ;;  %v138_v41 = vunpack.c.h.b16 %v16_v28  ;;  %v820_v43 = vld [vmem:[%s1053_s1 + $0xc0] sm:$0xff]  ;;  %v847_v50 = vld [vmem:[%s1053_s1 + $0x198] sm:$0xff] }
   0xe   :  { %486 = vmatpush.bf16.msra.mxu0 %v800_v12  ;;  %v849_v38 = vld [vmem:[%s1053_s1 + $0x1a8] sm:$0xff]  ;;  %v848_v46 = vld [vmem:[%s1053_s1 + $0x1a0] sm:$0xff]  ;;  %v846_v53 = vld [vmem:[%s1053_s1 + $0x190] sm:$0xff] }
   0xf   :  { %499 = vmatpush.bf16.msra.mxu1 %v808_v13  ;;  %v144_v42 = vpack.c.b16 %v137_v34, %v137_v34  ;;  %v145_v47 = vpack.c.b16 %v138_v41, %v138_v41  ;;  %v833_v48 = vld [vmem:[%s1053_s1 + $0x128] sm:$0xff]  ;;  %v832_v51 = vld [vmem:[%s1053_s1 + $0x120] sm:$0xff]  ;;  %v831_v54 = vld [vmem:[%s1053_s1 + $0x118] sm:$0xff] }
  0x10   :  { %512 = vmatpush.bf16.msra.mxu2 %v816_v14  ;;  %v841_v49 = vld [vmem:[%s1053_s1 + $0x168] sm:$0xff]  ;;  %v840_v52 = vld [vmem:[%s1053_s1 + $0x160] sm:$0xff]  ;;  %v839_v55 = vld [vmem:[%s1053_s1 + $0x158] sm:$0xff] }
  0x11   :  { %525 = vmatpush.bf16.msra.mxu3 %v824_v15  ;;  %v845_v56 = vld [vmem:[%s1053_s1 + $0x188] sm:$0xff]  ;;  %v18_v57 = vld [vmem:[%s1055_s0 + $0x18] sm:$0xf]  ;;  %v830_v58 = vld [vmem:[%s1053_s1 + $0x110] sm:$0xff] }
  0x12   :  { %487 = vmatpush.bf16.msra.mxu0 %v799_v16  ;;  %v141_v59 = vunpack.c.l.b16 %v18_v57  ;;  %v838_v60 = vld [vmem:[%s1053_s1 + $0x150] sm:$0xff]  ;;  %v844_v61 = vld [vmem:[%s1053_s1 + $0x180] sm:$0xff]  ;;  %v829_v63 = vld [vmem:[%s1053_s1 + $0x108] sm:$0xff] }
  0x13   :  { %500 = vmatpush.bf16.msra.mxu1 %v807_v17  ;;  %v17_v0 = vld [vmem:[%s1055_s0 + $0x10] sm:$0xff]  ;;  %v837_v1 = vld [vmem:[%s1053_s1 + $0x148] sm:$0xff]  ;;  %v828_v3 = vld [vmem:[%s1053_s1 + $0x100] sm:$0xff] }
  0x14   :  { %513 = vmatpush.bf16.msra.mxu2 %v815_v18  ;;  %v148_v62 = vpack.c.b16 %v141_v59, %v141_v59  ;;  %v139_v2 = vunpack.c.l.b16 %v17_v0  ;;  %v140_v4 = vunpack.c.h.b16 %v17_v0  ;;  %v836_v5 = vld [vmem:[%s1053_s1 + $0x140] sm:$0xff] }
  0x15   :  { %526 = vmatpush.bf16.msra.mxu3 %v823_v19  ;;  %v850_v14 = vld [vmem:[%s1054_s2] ss:$0 sm:$0xff] }
  0x16   :  { %488 = vmatpush.bf16.msra.mxu0 %v798_v20  ;;  %v146_v6 = vpack.c.b16 %v139_v2, %v139_v2  ;;  %v147_v7 = vpack.c.b16 %v140_v4, %v140_v4 }
  0x17   :  { %501 = vmatpush.bf16.msra.mxu1 %v806_v21 }
  0x18   :  { %514 = vmatpush.bf16.msra.mxu2 %v814_v22 }
  0x19   :  { %527 = vmatpush.bf16.msra.mxu3 %v822_v23 }
  0x1a   :  { %489 = vmatpush.bf16.msra.mxu0 %v797_v24 }
  0x1b   :  { %502 = vmatpush.bf16.msra.mxu1 %v805_v25 }
  0x1c   :  { %515 = vmatpush.bf16.msra.mxu2 %v813_v27 }
  0x1d   :  { %528 = vmatpush.bf16.msra.mxu3 %v821_v29 }
  0x1e   :  { %490 = vmatpush.bf16.msra.mxu0 %v796_v32 }
  0x1f   :  { %503 = vmatpush.bf16.msra.mxu1 %v804_v33 }
  0x20   :  { %516 = vmatpush.bf16.msra.mxu2 %v812_v35 }
  0x21   :  { %491 = vmatmul.bf16.vlgmr.msra.gmra.mxu0 %v142_v39  ;;  %529 = vmatpush.bf16.msra.mxu3 %v820_v43 }
  0x22   :  { %535 = vmatpush.bf16.msrb.mxu0 %v835_v36  ;;  %504 = vmatmul.bf16.vlgmr.msra.gmra.mxu1 %v143_v40 }
  0x23   :  { %548 = vmatpush.bf16.msrb.mxu1 %v843_v37  ;;  %517 = vmatmul.bf16.vlgmr.msra.gmra.mxu2 %v144_v42 }
  0x24   :  { %563 = vmatpush.bf16.msrb.mxu2 %v849_v38  ;;  %530 = vmatmul.bf16.vlgmr.msra.gmra.mxu3 %v145_v47 }
  0x26   :  { %536 = vmatpush.bf16.msrb.mxu0 %v834_v44 }
  0x27   :  { %549 = vmatpush.bf16.msrb.mxu1 %v842_v45 }
  0x28   :  { %564 = vmatpush.bf16.msrb.mxu2 %v848_v46 }
  0x2a   :  { %537 = vmatpush.bf16.msrb.mxu0 %v833_v48 }
  0x2b   :  { %550 = vmatpush.bf16.msrb.mxu1 %v841_v49 }
  0x2c   :  { %565 = vmatpush.bf16.msrb.mxu2 %v847_v50 }
  0x2e   :  { %538 = vmatpush.bf16.msrb.mxu0 %v832_v51 }
  0x2f   :  { %551 = vmatpush.bf16.msrb.mxu1 %v840_v52 }
  0x30   :  { %566 = vmatpush.bf16.msrb.mxu2 %v846_v53 }
  0x32   :  { %539 = vmatpush.bf16.msrb.mxu0 %v831_v54 }
  0x33   :  { %552 = vmatpush.bf16.msrb.mxu1 %v839_v55 }
  0x34   :  { %567 = vmatpush.bf16.msrb.mxu2 %v845_v56 }
  0x36   :  { %540 = vmatpush.bf16.msrb.mxu0 %v830_v58 }
  0x37   :  { %553 = vmatpush.bf16.msrb.mxu1 %v838_v60 }
  0x38   :  { %568 = vmatpush.bf16.msrb.mxu2 %v844_v61 }
  0x3a   :  { %541 = vmatpush.bf16.msrb.mxu0 %v829_v63 }
  0x3b   :  { %795 = vmatmul.msk.bf16.vlgmr.msrb.gmra.mxu2 %vm479_vm0, %v148_v62  ;;  %554 = vmatpush.bf16.msrb.mxu1 %v837_v1 }
  0x3e   :  { %542 = vmatpush.bf16.msrb.mxu0 %v828_v3 }
  0x3f   :  { %555 = vmatpush.bf16.msrb.mxu1 %v836_v5 }
  0x41   :  { %543 = vmatmul.bf16.vlgmr.msrb.gmra.mxu0 %v146_v6 }
  0x42   :  { %556 = vmatmul.bf16.vlgmr.msrb.gmra.mxu1 %v147_v7 }
  0x9e   :  { %v492_v8 = vpop.f32.mrf.mxu0 }
  0x9f   :  { %v505_v9 = vpop.f32.mrf.mxu1  ;;  %v493_v16 = vadd.f32 %v850_v14, %v492_v8 }
  0xa1   :  { %v506_v18 = vadd.f32 %v505_v9, %v493_v16 }
  0xa6   :  { %v518_v10 = vpop.f32.mrf.mxu2  ;;  %v494_v11 = vpop.f32.mrf.mxu0 }
  0xa7   :  { %v507_v12 = vpop.f32.mrf.mxu1  ;;  %v531_v13 = vpop.f32.mrf.mxu3  ;;  %v519_v19 = vadd.f32 %v518_v10, %v506_v18 }
  0xa9   :  { %v532_v20 = vadd.f32 %v531_v13, %v519_v19 }
  0xae   :  { %v520_v15 = vpop.f32.mrf.mxu2 }
  0xaf   :  { %v533_v17 = vpop.f32.mrf.mxu3 }
  0xbe   :  { %v570_v21 = vpop.f32.mrf.mxu2  ;;  %v544_v22 = vpop.f32.mrf.mxu0 }
  0xbf   :  { %v545_v23 = vadd.f32 %v544_v22, %v532_v20  ;;  %v557_v24 = vpop.f32.mrf.mxu1 }
  0xc1   :  { %v558_v25 = vadd.f32 %v557_v24, %v545_v23 }
  0xc3   :  { %v571_v26 = vadd.f32 %v570_v21, %v558_v25 }
  0xc5   :  { %574 = vst.msk [vmem:[%s1056_s3] sm:$0xff] %vm479_vm0, %v571_v26 }
  0xc6   :  { %v572_v27 = vpop.f32.mrf.mxu2  ;;  %v546_v28 = vpop.f32.mrf.mxu0 }
  0xc7   :  { %v559_v29 = vpop.f32.mrf.mxu1 }

// kernel: stem_forward.23
= control target key start
LH: loop header
LB: loop body
LE: loop exit
PB: predicated region body
PF: predicated region fallthrough
CT: control target
= control target key end

     0   :  { %s305_s24 = smov 32   ;;  %s306_s25 = smov 80   ;;  %v308_v10 = vmov 8.0   ;;  %vm74_vm0 = vcmask 523264   ;;  %vm190_vm1 = vcmask 1048192   ;;  %vm198_vm2 = vcmask 130048   ;;  %s467_s3 = inlined_call_operand.vmem [shape: f32[1,320], index: 3, kind: input, shape index: {}]   ;;  %s468_s4 = inlined_call_operand.vmem [shape: f32[1,320], index: 4, kind: input, shape index: {}]   ;;  %s469_s1 = inlined_call_operand.vmem [shape: f32[8,64], index: 1, kind: input, shape index: {}]   ;;  %s470_s0 = inlined_call_operand.vmem [shape: f32[8,272], index: 0, kind: input, shape index: {}]   ;;  %s471_s2 = inlined_call_operand.vmem [shape: f32[8,96], index: 2, kind: input, shape index: {}]   ;;  %s472_s5 = inlined_call_operand.vmem [shape: f32[8,320], index: 5, kind: output, shape index: {}]  }
   0x1   :  { %v72_v0 = vld [vmem:[%s467_s3] sm:$0x3]  ;;  %v288_v2 = vld [vmem:[%s467_s3 + $0x2] ss:$0 sm:$0xff]  ;;  %s307_s28 = smov 96   ;;  %293 = vrcp.f32 %v308_v10  ;;  %v186_v17 = vld [vmem:[%s470_s0 + $0x8] sm:$0xff] }
   0x2   :  { %v106_v1 = vperm.slane %v72_v0, 0  ;;  %v73_v3 = vld [vmem:[%s468_s4] sm:$0x3]  ;;  %254 = vrot.lane.b32.xlu1 %v288_v2, %s306_s25  ;;  %v107_v5 = vperm.slane %v72_v0, 1  ;;  %v290_v8 = vld [vmem:[%s468_s4 + $0x2] ss:$0 sm:$0xff] }
   0x3   :  { %v118_v4 = vperm.slane %v73_v3, 1  ;;  %v117_v6 = vperm.slane %v73_v3, 0  ;;  %v292_v7 = vld [vmem:[%s467_s3 + $0x1] ss:$0 sm:$0xff]  ;;  %v187_v18 = vld [vmem:[%s470_s0 + $0x10] sm:$0xff]  ;;  %v191_v19 = vsel %vm190_vm1, %v186_v17, 0.0 }
   0x4   :  { %108 = vrot.lane.b32.xlu0 %v106_v1, %s305_s24  ;;  %v291_v9 = vld [vmem:[%s468_s4 + $0x1] ss:$0 sm:$0xff]  ;;  %v199_v20 = vsel %vm198_vm2, %v187_v18, 0.0  ;;  %v192_v23 = vrot.slane %v191_v19, 4  ;;  %vm23_vm4 = vcmask 785408  }
   0x5   :  { %121 = vrot.lane.b32.xlu2 %v118_v4, %s305_s24  ;;  %v71_v11 = vld [vmem:[%s469_s1] sm:$0xff]  ;;  %v200_v24 = vrot.slane %v199_v20, 4 }
   0x6   :  { %v75_v12 = vsel %vm74_vm0, %v71_v11, 0.0  ;;  %v193_v27 = vadd.f32 %v192_v23, %v191_v19  ;;  %v134_v60 = vld [vmem:[%s471_s2] sm:$0xff] }
   0x7   :  { %v76_v13 = vrot.slane %v75_v12, 4  ;;  %v294_v14 = vpop.eup %293  ;;  %v201_v28 = vadd.f32 %v200_v24, %v199_v20  ;;  %v137_v62 = vsel %vm23_vm4, %v134_v60, 0.0 }
   0x8   :  { %v32_v16 = vmul.f32 8.0, %v294_v14  ;;  %v194_v31 = vrot.slane %v193_v27, 2  ;;  %vm36_vm3 = vweird.f32 %v294_v14  ;;  %v138_v0 = vrot.slane %v137_v62, 4 }
   0x9   :  { %v77_v15 = vadd.f32 %v76_v13, %v75_v12  ;;  %v202_v32 = vrot.slane %v201_v28, 2 }
   0xa   :  { %119 = vrot.lane.b32.xlu1 %v117_v6, %s305_s24  ;;  %v33_v22 = vsub.f32 1.0, %v32_v16  ;;  %v195_v35 = vadd.f32 %v194_v31, %v193_v27  ;;  %v139_v2 = vadd.f32 %v138_v0, %v137_v62 }
   0xb   :  { %v78_v21 = vrot.slane %v77_v15, 2  ;;  %v203_v36 = vadd.f32 %v202_v32, %v201_v28 }
   0xc   :  { %110 = vrot.lane.b32.xlu0 %v107_v5, %s305_s24  ;;  %v34_v26 = vmul.f32 %v294_v14, %v33_v22  ;;  %v196_v38 = vrot.slane %v195_v35, 1  ;;  %v140_v5 = vrot.slane %v139_v2, 2 }
   0xd   :  { %169 = vrot.lane.b32.xlu2 %v292_v7, %s307_s28  ;;  %v79_v25 = vadd.f32 %v78_v21, %v77_v15  ;;  %v204_v39 = vrot.slane %v203_v36, 1 }
   0xe   :  { %v35_v30 = vadd.f32 %v294_v14, %v34_v26  ;;  %v197_v41 = vadd.f32 %v196_v38, %v195_v35  ;;  %v141_v7 = vadd.f32 %v140_v5, %v139_v2 }
   0xf   :  { %v80_v29 = vrot.slane %v79_v25, 1  ;;  %v205_v42 = vadd.f32 %v204_v39, %v203_v36 }
  0x10   :  { %v376_v34 = vsel %vm36_vm3, %v294_v14, %v35_v30  ;;  %v142_v10 = vrot.slane %v141_v7, 1 }
  0x11   :  { %v81_v33 = vadd.f32 %v80_v29, %v79_v25  ;;  %v206_v44 = vmul.f32 %v197_v41, %v376_v34  ;;  %v207_v45 = vmul.f32 %v205_v42, %v376_v34 }
  0x12   :  { %175 = vrot.lane.b32.xlu1 %v291_v9, %s307_s28  ;;  %v143_v12 = vadd.f32 %v142_v10, %v141_v7 }
  0x13   :  { %v82_v37 = vmul.f32 %v81_v33, %v376_v34  ;;  %v386_v47 = vsub.f32 %v186_v17, %v206_v44  ;;  %v388_v48 = vsub.f32 %v187_v18, %v207_v45  ;;  %v20_v18 = vld [vmem:[%s470_s0] sm:$0xff]  ;;  %s309_s0 = smov 48  }
  0x14   :  { %261 = vrot.lane.b32.xlu0 %v290_v8, %s306_s25  ;;  %v144_v15 = vmul.f32 %v143_v12, %v376_v34  ;;  %v24_v20 = vsel %vm23_vm4, %v20_v18, 0.0 }
  0x15   :  { %v379_v40 = vsub.f32 %v71_v11, %v82_v37  ;;  %v210_v50 = vmul.f32 %v386_v47, %v386_v47  ;;  %v211_v51 = vmul.f32 %v388_v48, %v388_v48  ;;  %v25_v23 = vrot.slane %v24_v20, 4 }
  0x16   :  { %v402_v17 = vsub.f32 %v134_v60, %v144_v15 }
  0x17   :  { %v84_v43 = vmul.f32 %v379_v40, %v379_v40  ;;  %v212_v52 = vsel %vm190_vm1, %v210_v50, 0.0  ;;  %v219_v53 = vsel %vm198_vm2, %v211_v51, 0.0  ;;  %v26_v26 = vadd.f32 %v25_v23, %v24_v20 }
  0x18   :  { %v213_v55 = vrot.slane %v212_v52, 4  ;;  %v220_v56 = vrot.slane %v219_v53, 4  ;;  %v146_v22 = vmul.f32 %v402_v17, %v402_v17  ;;  %vm112_vm2 = vcmask 261120  }
  0x19   :  { %v85_v46 = vsel %vm74_vm0, %v84_v43, 0.0  ;;  %v27_v30 = vrot.slane %v26_v26, 2 }
  0x1a   :  { %v86_v49 = vrot.slane %v85_v46, 4  ;;  %v214_v57 = vadd.f32 %v213_v55, %v212_v52  ;;  %v221_v58 = vadd.f32 %v220_v56, %v219_v53  ;;  %v147_v25 = vsel %vm23_vm4, %v146_v22, 0.0 }
  0x1b   :  { %v148_v28 = vrot.slane %v147_v25, 4  ;;  %v28_v32 = vadd.f32 %v27_v30, %v26_v26 }
  0x1c   :  { %v87_v54 = vadd.f32 %v86_v49, %v85_v46  ;;  %v215_v61 = vrot.slane %v214_v57, 2  ;;  %v222_v63 = vrot.slane %v221_v58, 2 }
  0x1d   :  { %v149_v31 = vadd.f32 %v148_v28, %v147_v25  ;;  %v29_v35 = vrot.slane %v28_v32, 1 }
  0x1e   :  { %v88_v59 = vrot.slane %v87_v54, 2  ;;  %v216_v3 = vadd.f32 %v215_v61, %v214_v57  ;;  %v223_v4 = vadd.f32 %v222_v63, %v221_v58 }
  0x1f   :  { %v150_v33 = vrot.slane %v149_v31, 2  ;;  %v30_v38 = vadd.f32 %v29_v35, %v28_v32 }
  0x20   :  { %v89_v1 = vadd.f32 %v88_v59, %v87_v54  ;;  %v217_v8 = vrot.slane %v216_v3, 1  ;;  %v224_v9 = vrot.slane %v223_v4, 1 }
  0x21   :  { %v151_v36 = vadd.f32 %v150_v33, %v149_v31  ;;  %v38_v45 = vmul.f32 %v376_v34, %v30_v38 }
  0x22   :  { %v90_v6 = vrot.slane %v89_v1, 1  ;;  %v218_v13 = vadd.f32 %v217_v8, %v216_v3  ;;  %v225_v14 = vadd.f32 %v224_v9, %v223_v4 }
  0x23   :  { %v152_v39 = vrot.slane %v151_v36, 1  ;;  %v415_v53 = vsub.f32 %v20_v18, %v38_v45 }
  0x24   :  { %v91_v11 = vadd.f32 %v90_v6, %v89_v1  ;;  %v226_v19 = vmul.f32 %v218_v13, %v376_v34  ;;  %v227_v21 = vmul.f32 %v225_v14, %v376_v34 }
  0x25   :  { %v153_v44 = vadd.f32 %v152_v39, %v151_v36  ;;  %v40_v57 = vmul.f32 %v415_v53, %v415_v53 }
  0x26   :  { %v92_v16 = vmul.f32 %v91_v11, %v376_v34  ;;  %v228_v27 = vadd.f32 1e-05, %v226_v19  ;;  %v229_v29 = vadd.f32 1e-05, %v227_v21 }
  0x27   :  { %v154_v49 = vmul.f32 %v153_v44, %v376_v34  ;;  %v41_v63 = vsel %vm23_vm4, %v40_v57, 0.0 }
  0x28   :  { %v93_v24 = vadd.f32 1e-05, %v92_v16  ;;  %vm236_vm7 = vweird.f32 %v228_v27  ;;  %vm246_vm9 = vweird.f32 %v229_v29  ;;  %v42_v6 = vrot.slane %v41_v63, 4 }
  0x29   :  { %v155_v52 = vadd.f32 1e-05, %v154_v49 }
  0x2a   :  { %295 = vrsqrt.f32 %v93_v24  ;;  %vm100_vm5 = vweird.f32 %v93_v24  ;;  %v43_v15 = vadd.f32 %v42_v6, %v41_v63 }
  0x2b   :  { %297 = vrsqrt.f32 %v228_v27  ;;  %vm162_vm12 = vweird.f32 %v155_v52 }
  0x2c   :  { %299 = vrsqrt.f32 %v229_v29  ;;  %v44_v22 = vrot.slane %v43_v15, 2 }
  0x2d   :  { %301 = vrsqrt.f32 %v155_v52 }
  0x2e   :  { %v45_v32 = vadd.f32 %v44_v22, %v43_v15 }
  0x30   :  { %v296_v37 = vpop.eup %295  ;;  %v46_v38 = vrot.slane %v45_v32, 1 }
  0x31   :  { %v298_v41 = vpop.eup %297  ;;  %v95_v43 = vmul.f32 %v296_v37, %v93_v24  ;;  %vm101_vm6 = vweird.f32 %v296_v37 }
  0x32   :  { %v300_v42 = vpop.eup %299  ;;  %v231_v46 = vmul.f32 %v298_v41, %v228_v27  ;;  %vm237_vm8 = vweird.f32 %v298_v41  ;;  %vm420_vm11 = vmor %vm100_vm5, %vm101_vm6  ;;  %v47_v45 = vadd.f32 %v46_v38, %v45_v32 }
  0x33   :  { %v241_v50 = vmul.f32 %v300_v42, %v229_v29  ;;  %v96_v51 = vmul.f32 %v296_v37, %v95_v43  ;;  %v302_v60 = vpop.eup %301  ;;  %vm247_vm10 = vweird.f32 %v300_v42  ;;  %vm238_vm14 = vmor %vm236_vm7, %vm237_vm8  ;;  %vm131_vm7 = vcmask 1048320  }
  0x34   :  { %v232_v54 = vmul.f32 %v298_v41, %v231_v46  ;;  %v157_v62 = vmul.f32 %v302_v60, %v155_v52  ;;  %vm163_vm13 = vweird.f32 %v302_v60  ;;  %vm425_vm15 = vmor %vm246_vm9, %vm247_vm10  ;;  %v48_v46 = vmul.f32 %v47_v45, %v376_v34 }
  0x35   :  { %v242_v55 = vmul.f32 %v300_v42, %v241_v50  ;;  %v97_v56 = vmul.f32 0.5, %v96_v51  ;;  %vm164_vm1 = vmor %vm162_vm12, %vm163_vm13  ;;  %vm184_vm8 = vcmask 1047808   ;;  %vm274_vm9 = vcmask 392192  }
  0x36   :  { %v233_v58 = vmul.f32 0.5, %v232_v54  ;;  %v158_v2 = vmul.f32 %v302_v60, %v157_v62  ;;  %v49_v49 = vadd.f32 1e-05, %v48_v46 }
  0x37   :  { %v243_v59 = vmul.f32 0.5, %v242_v55  ;;  %v98_v61 = vsub.f32 1.5, %v97_v56 }
  0x38   :  { %v234_v0 = vsub.f32 1.5, %v233_v58  ;;  %v159_v8 = vmul.f32 0.5, %v158_v2  ;;  %303 = vrsqrt.f32 %v49_v49  ;;  %vm56_vm3 = vweird.f32 %v49_v49  ;;  %v287_v58 = vld [vmem:[%s467_s3] ss:$0 sm:$0xff] }
  0x39   :  { %v244_v1 = vsub.f32 1.5, %v243_v59  ;;  %v99_v3 = vmul.f32 %v296_v37, %v98_v61  ;;  %v289_v59 = vld [vmem:[%s468_s4] ss:$0 sm:$0xff] }
  0x3a   :  { %v235_v9 = vmul.f32 %v298_v41, %v234_v0  ;;  %v160_v13 = vsub.f32 1.5, %v159_v8 }
  0x3b   :  { %v245_v10 = vmul.f32 %v300_v42, %v244_v1  ;;  %v103_v14 = vsel %vm420_vm11, %v296_v37, %v99_v3 }
  0x3c   :  { %v161_v16 = vmul.f32 %v302_v60, %v160_v13  ;;  %v239_v18 = vsel %vm238_vm14, %v298_v41, %v235_v9  ;;  %v104_v20 = vmul.f32 %v103_v14, %v379_v40 }
  0x3d   :  { %v249_v19 = vsel %vm425_vm15, %v300_v42, %v245_v10  ;;  %v250_v23 = vmul.f32 %v239_v18, %v386_v47 }
  0x3e   :  { %v165_v21 = vsel %vm164_vm1, %v302_v60, %v161_v16  ;;  %v251_v26 = vmul.f32 %v249_v19, %v388_v48  ;;  %v304_v50 = vpop.eup %303 }
  0x3f   :  { %v166_v29 = vmul.f32 %v165_v21, %v402_v17  ;;  %v51_v51 = vmul.f32 %v304_v50, %v49_v49  ;;  %vm57_vm5 = vweird.f32 %v304_v50 }
  0x40   :  { %vm58_vm6 = vmor %vm56_vm3, %vm57_vm5 }
  0x41   :  { %v52_v52 = vmul.f32 %v304_v50, %v51_v51 }
  0x43   :  { %v53_v54 = vmul.f32 0.5, %v52_v52 }
  0x45   :  { %v54_v55 = vsub.f32 1.5, %v53_v54 }
  0x47   :  { %v55_v56 = vmul.f32 %v304_v50, %v54_v55 }
  0x49   :  { %v59_v57 = vsel %vm58_vm6, %v304_v50, %v55_v56 }
  0x4a   :  { %v60_v34 = vmul.f32 %v59_v57, %v415_v53 }
  0x4c   :  { %v64_v60 = vmul.f32 %v287_v58, %v60_v34 }
  0x4e   :  { %v68_v61 = vadd.f32 %v289_v59, %v64_v60 }
  0x50   :  { %v69_v62 = vmax.f32 %v68_v61, 0.0 }
  0x52   :  { %70 = vst.msk [vmem:[%s472_s5] sm:$0xff] %vm23_vm4, %v69_v62 }
  0x5f   :  { %v122_v12 = vpop.permute.xlu2 %121 }
  0x67   :  { %v170_v31 = vpop.permute.xlu2 %169 }
  0x68   :  { %v172_v36 = vmul.f32 %v170_v31, %v166_v29 }
  0x74   :  { %v255_v5 = vpop.permute.xlu1 %254 }
  0x75   :  { %v257_v35 = vmul.f32 %v255_v5, %v250_v23  ;;  %v258_v40 = vmul.f32 %v255_v5, %v251_v26 }
  0x76   :  { %v109_v4 = vpop.permute.xlu0 %108 }
  0x7c   :  { %v120_v25 = vpop.permute.xlu1 %119 }
  0x7d   :  { %v123_v28 = vsel %vm112_vm2, %v120_v25, %v122_v12 }
  0x7e   :  { %v111_v24 = vpop.permute.xlu0 %110 }
  0x7f   :  { %v113_v27 = vsel %vm112_vm2, %v109_v4, %v111_v24 }
  0x80   :  { %v115_v30 = vmul.f32 %v113_v27, %v104_v20 }
  0x82   :  { %v125_v33 = vadd.f32 %v123_v28, %v115_v30 }
  0x84   :  { %v126_v37 = vmax.f32 %v125_v33, 0.0  ;;  %v176_v39 = vpop.permute.xlu1 %175 }
  0x85   :  { %v178_v42 = vadd.f32 %v176_v39, %v172_v36 }
  0x86   :  { %v262_v47 = vpop.permute.xlu0 %261  ;;  %128 = vrot.lane.b32.xlu2 %v126_v37, %s307_s28 }
  0x87   :  { %v264_v48 = vadd.f32 %v262_v47, %v257_v35  ;;  %v265_v41 = vadd.f32 %v262_v47, %v258_v40  ;;  %v179_v17 = vmax.f32 %v178_v42, 0.0 }
  0x89   :  { %v266_v43 = vmax.f32 %v264_v48, 0.0  ;;  %v267_v44 = vmax.f32 %v265_v41, 0.0 }
  0x8b   :  { %272 = vrot.lane.b32.xlu1 %v267_v44, %s309_s0  ;;  %270 = vrot.lane.b32.xlu0 %v266_v43, %s309_s0 }
  0x8e   :  { %181 = vrot.lane.b32.xlu2 %v179_v17, %s305_s24 }
  0xe0   :  { %v129_v63 = vpop.permute.xlu2 %128 }
  0xe1   :  { %132 = vst.msk [vmem:[%s472_s5] sm:$0xff] %vm131_vm7, %v129_v63 }
  0xe2   :  { %133 = vst.msk [vmem:[%s472_s5 + $0x8] sm:$0xff] %vm112_vm2, %v129_v63 }
  0xe8   :  { %v182_v53 = vpop.permute.xlu2 %181 }
  0xe9   :  { %185 = vst.msk [vmem:[%s472_s5 + $0x8] sm:$0xff] %vm184_vm8, %v182_v53 }
  0xfd   :  { %v273_v0 = vpop.permute.xlu1 %272  ;;  %v271_v1 = vpop.permute.xlu0 %270 }
  0xfe   :  { %v275_v2 = vsel %vm274_vm9, %v271_v1, %v273_v0 }
  0xff   :  { %277 = vst.msk [vmem:[%s472_s5 + $0x10] sm:$0xff] %vm74_vm0, %v275_v2 }

// kernel: stem_forward.20
= control target key start
LH: loop header
LB: loop body
LE: loop exit
PB: predicated region body
PF: predicated region fallthrough
CT: control target
= control target key end

     0   :  { %vm658_vm0 = vcmask 392192   ;;  %vm792_vm1 = vcmask 523264   ;;  %s1441_s1 = inlined_call_operand.vmem [shape: bf16[1200,64], index: 1, kind: input, shape index: {}]   ;;  %s1442_s2 = inlined_call_operand.vmem [shape: f32[1,64], index: 2, kind: input, shape index: {}]   ;;  %s1443_s0 = inlined_call_operand.vmem [shape: bf16[8,1200], index: 0, kind: input, shape index: {}]   ;;  %s1444_s3 = inlined_call_operand.vmem [shape: f32[8,64], index: 3, kind: output, shape index: {}]  }
   0x1   :  { %v1106_v0 = vld [vmem:[%s1441_s1 + $0x38] sm:$0xff]  ;;  %v1105_v4 = vld [vmem:[%s1441_s1 + $0x30] sm:$0xff]  ;;  %v1104_v8 = vld [vmem:[%s1441_s1 + $0x28] sm:$0xff] }
   0x2   :  { %v1122_v1 = vld [vmem:[%s1441_s1 + $0xb8] sm:$0xff]  ;;  %662 = vmatpush.bf16.msra.mxu0 %v1106_v0  ;;  %v1121_v5 = vld [vmem:[%s1441_s1 + $0xb0] sm:$0xff]  ;;  %v1120_v9 = vld [vmem:[%s1441_s1 + $0xa8] sm:$0xff] }
   0x3   :  { %v1130_v2 = vld [vmem:[%s1441_s1 + $0xf8] sm:$0xff]  ;;  %688 = vmatpush.bf16.msra.mxu2 %v1122_v1  ;;  %v1129_v6 = vld [vmem:[%s1441_s1 + $0xf0] sm:$0xff]  ;;  %v1128_v10 = vld [vmem:[%s1441_s1 + $0xe8] sm:$0xff] }
   0x4   :  { %v1114_v3 = vld [vmem:[%s1441_s1 + $0x78] sm:$0xff]  ;;  %701 = vmatpush.bf16.msra.mxu3 %v1130_v2  ;;  %v1113_v7 = vld [vmem:[%s1441_s1 + $0x70] sm:$0xff]  ;;  %v1112_v11 = vld [vmem:[%s1441_s1 + $0x68] sm:$0xff] }
   0x5   :  { %675 = vmatpush.bf16.msra.mxu1 %v1114_v3  ;;  %v1103_v12 = vld [vmem:[%s1441_s1 + $0x20] sm:$0xff]  ;;  %v1102_v16 = vld [vmem:[%s1441_s1 + $0x18] sm:$0xff]  ;;  %v1101_v20 = vld [vmem:[%s1441_s1 + $0x10] sm:$0xff] }
   0x6   :  { %663 = vmatpush.bf16.msra.mxu0 %v1105_v4  ;;  %v1119_v13 = vld [vmem:[%s1441_s1 + $0xa0] sm:$0xff]  ;;  %v1118_v17 = vld [vmem:[%s1441_s1 + $0x98] sm:$0xff]  ;;  %v1117_v21 = vld [vmem:[%s1441_s1 + $0x90] sm:$0xff] }
   0x7   :  { %689 = vmatpush.bf16.msra.mxu2 %v1121_v5  ;;  %v1127_v14 = vld [vmem:[%s1441_s1 + $0xe0] sm:$0xff]  ;;  %v1126_v18 = vld [vmem:[%s1441_s1 + $0xd8] sm:$0xff]  ;;  %v1125_v22 = vld [vmem:[%s1441_s1 + $0xd0] sm:$0xff] }
   0x8   :  { %702 = vmatpush.bf16.msra.mxu3 %v1129_v6  ;;  %v1111_v15 = vld [vmem:[%s1441_s1 + $0x60] sm:$0xff]  ;;  %v1110_v19 = vld [vmem:[%s1441_s1 + $0x58] sm:$0xff]  ;;  %v1109_v23 = vld [vmem:[%s1441_s1 + $0x50] sm:$0xff] }
   0x9   :  { %676 = vmatpush.bf16.msra.mxu1 %v1113_v7  ;;  %v1100_v24 = vld [vmem:[%s1441_s1 + $0x8] sm:$0xff]  ;;  %v15_v29 = vld [vmem:[%s1443_s0] sm:$0xff]  ;;  %v1138_v34 = vld [vmem:[%s1441_s1 + $0x138] sm:$0xff] }
   0xa   :  { %664 = vmatpush.bf16.msra.mxu0 %v1104_v8  ;;  %v1116_v25 = vld [vmem:[%s1441_s1 + $0x88] sm:$0xff]  ;;  %v1099_v30 = vld [vmem:[%s1441_s1] sm:$0xff]  ;;  %v179_v33 = vunpack.c.l.b16 %v15_v29  ;;  %v1154_v35 = vld [vmem:[%s1441_s1 + $0x1b8] sm:$0xff]  ;;  %v180_v39 = vunpack.c.h.b16 %v15_v29 }
   0xb   :  { %690 = vmatpush.bf16.msra.mxu2 %v1120_v9  ;;  %v1124_v26 = vld [vmem:[%s1441_s1 + $0xc8] sm:$0xff]  ;;  %v1115_v31 = vld [vmem:[%s1441_s1 + $0x80] sm:$0xff]  ;;  %v1162_v40 = vld [vmem:[%s1441_s1 + $0x1f8] sm:$0xff] }
   0xc   :  { %703 = vmatpush.bf16.msra.mxu3 %v1128_v10  ;;  %v1108_v27 = vld [vmem:[%s1441_s1 + $0x48] sm:$0xff]  ;;  %v1123_v36 = vld [vmem:[%s1441_s1 + $0xc0] sm:$0xff]  ;;  %v1146_v41 = vld [vmem:[%s1441_s1 + $0x178] sm:$0xff]  ;;  %v189_v43 = vpack.c.b16 %v179_v33, %v179_v33  ;;  %v190_v47 = vpack.c.b16 %v180_v39, %v180_v39 }
   0xd   :  { %677 = vmatpush.bf16.msra.mxu1 %v1112_v11  ;;  %v16_v28 = vld [vmem:[%s1443_s0 + $0x8] sm:$0xff]  ;;  %v1107_v37 = vld [vmem:[%s1441_s1 + $0x40] sm:$0xff]  ;;  %v1137_v44 = vld [vmem:[%s1441_s1 + $0x130] sm:$0xff] }
   0xe   :  { %665 = vmatpush.bf16.msra.mxu0 %v1103_v12  ;;  %v181_v32 = vunpack.c.l.b16 %v16_v28  ;;  %v182_v38 = vunpack.c.h.b16 %v16_v28  ;;  %v1153_v45 = vld [vmem:[%s1441_s1 + $0x1b0] sm:$0xff]  ;;  %v1136_v50 = vld [vmem:[%s1441_s1 + $0x128] sm:$0xff]  ;;  %v1135_v54 = vld [vmem:[%s1441_s1 + $0x120] sm:$0xff] }
   0xf   :  { %691 = vmatpush.bf16.msra.mxu2 %v1119_v13  ;;  %v1161_v48 = vld [vmem:[%s1441_s1 + $0x1f0] sm:$0xff]  ;;  %v1152_v51 = vld [vmem:[%s1441_s1 + $0x1a8] sm:$0xff]  ;;  %v1151_v55 = vld [vmem:[%s1441_s1 + $0x1a0] sm:$0xff] }
  0x10   :  { %704 = vmatpush.bf16.msra.mxu3 %v1127_v14  ;;  %v191_v42 = vpack.c.b16 %v181_v32, %v181_v32  ;;  %v192_v46 = vpack.c.b16 %v182_v38, %v182_v38  ;;  %v1145_v49 = vld [vmem:[%s1441_s1 + $0x170] sm:$0xff]  ;;  %v1160_v52 = vld [vmem:[%s1441_s1 + $0x1e8] sm:$0xff]  ;;  %v1159_v56 = vld [vmem:[%s1441_s1 + $0x1e0] sm:$0xff] }
  0x11   :  { %678 = vmatpush.bf16.msra.mxu1 %v1111_v15  ;;  %v1144_v53 = vld [vmem:[%s1441_s1 + $0x168] sm:$0xff]  ;;  %v1143_v57 = vld [vmem:[%s1441_s1 + $0x160] sm:$0xff]  ;;  %v1134_v58 = vld [vmem:[%s1441_s1 + $0x118] sm:$0xff] }
  0x12   :  { %666 = vmatpush.bf16.msra.mxu0 %v1102_v16  ;;  %v1150_v59 = vld [vmem:[%s1441_s1 + $0x198] sm:$0xff]  ;;  %v1133_v62 = vld [vmem:[%s1441_s1 + $0x110] sm:$0xff]  ;;  %v1132_v2 = vld [vmem:[%s1441_s1 + $0x108] sm:$0xff] }
  0x13   :  { %692 = vmatpush.bf16.msra.mxu2 %v1118_v17  ;;  %v1158_v60 = vld [vmem:[%s1441_s1 + $0x1d8] sm:$0xff]  ;;  %v1149_v63 = vld [vmem:[%s1441_s1 + $0x190] sm:$0xff]  ;;  %v1148_v3 = vld [vmem:[%s1441_s1 + $0x188] sm:$0xff] }
  0x14   :  { %705 = vmatpush.bf16.msra.mxu3 %v1126_v18  ;;  %v1142_v61 = vld [vmem:[%s1441_s1 + $0x158] sm:$0xff]  ;;  %v1157_v0 = vld [vmem:[%s1441_s1 + $0x1d0] sm:$0xff]  ;;  %v1156_v6 = vld [vmem:[%s1441_s1 + $0x1c8] sm:$0xff] }
  0x15   :  { %679 = vmatpush.bf16.msra.mxu1 %v1110_v19  ;;  %v1141_v1 = vld [vmem:[%s1441_s1 + $0x150] sm:$0xff]  ;;  %v18_v4 = vld [vmem:[%s1443_s0 + $0x18] sm:$0xff]  ;;  %v1140_v7 = vld [vmem:[%s1441_s1 + $0x148] sm:$0xff] }
  0x16   :  { %667 = vmatpush.bf16.msra.mxu0 %v1101_v20  ;;  %v17_v5 = vld [vmem:[%s1443_s0 + $0x10] sm:$0xff]  ;;  %v185_v8 = vunpack.c.l.b16 %v18_v4  ;;  %v1131_v10 = vld [vmem:[%s1441_s1 + $0x100] sm:$0xff]  ;;  %v1170_v12 = vld [vmem:[%s1441_s1 + $0x238] sm:$0xff]  ;;  %v186_v13 = vunpack.c.h.b16 %v18_v4 }
  0x17   :  { %693 = vmatpush.bf16.msra.mxu2 %v1117_v21  ;;  %v183_v9 = vunpack.c.l.b16 %v17_v5  ;;  %v1147_v11 = vld [vmem:[%s1441_s1 + $0x180] sm:$0xff]  ;;  %v184_v16 = vunpack.c.h.b16 %v17_v5  ;;  %v1173_v19 = vld [vmem:[%s1441_s1 + $0x250] sm:$0xff]  ;;  %v1166_v28 = vld [vmem:[%s1441_s1 + $0x218] sm:$0xff] }
  0x18   :  { %706 = vmatpush.bf16.msra.mxu3 %v1125_v22  ;;  %v1155_v14 = vld [vmem:[%s1441_s1 + $0x1c0] sm:$0xff]  ;;  %v195_v17 = vpack.c.b16 %v185_v8, %v185_v8  ;;  %v1169_v20 = vld [vmem:[%s1441_s1 + $0x230] sm:$0xff]  ;;  %v196_v21 = vpack.c.b16 %v186_v13, %v186_v13  ;;  %v1164_v32 = vld [vmem:[%s1441_s1 + $0x208] sm:$0xff] }
  0x19   :  { %680 = vmatpush.bf16.msra.mxu1 %v1109_v23  ;;  %v1139_v15 = vld [vmem:[%s1441_s1 + $0x140] sm:$0xff]  ;;  %v193_v18 = vpack.c.b16 %v183_v9, %v183_v9  ;;  %v194_v22 = vpack.c.b16 %v184_v16, %v184_v16  ;;  %v1172_v23 = vld [vmem:[%s1441_s1 + $0x248] sm:$0xff] }
  0x1a   :  { %668 = vmatpush.bf16.msra.mxu0 %v1100_v24  ;;  %v1168_v24 = vld [vmem:[%s1441_s1 + $0x228] sm:$0xff] }
  0x1b   :  { %694 = vmatpush.bf16.msra.mxu2 %v1116_v25  ;;  %v1171_v25 = vld [vmem:[%s1441_s1 + $0x240] sm:$0xff] }
  0x1c   :  { %707 = vmatpush.bf16.msra.mxu3 %v1124_v26  ;;  %v1167_v26 = vld [vmem:[%s1441_s1 + $0x220] sm:$0xff] }
  0x1d   :  { %681 = vmatpush.bf16.msra.mxu1 %v1108_v27  ;;  %v19_v27 = vld [vmem:[%s1443_s0 + $0x20] sm:$0xff] }
  0x1e   :  { %669 = vmatpush.bf16.msra.mxu0 %v1099_v30  ;;  %v188_v29 = vunpack.c.h.b16 %v19_v27  ;;  %v1165_v30 = vld [vmem:[%s1441_s1 + $0x210] sm:$0xff]  ;;  %v187_v33 = vunpack.c.l.b16 %v19_v27 }
  0x1f   :  { %695 = vmatpush.bf16.msra.mxu2 %v1115_v31 }
  0x20   :  { %708 = vmatpush.bf16.msra.mxu3 %v1123_v36  ;;  %v198_v31 = vpack.c.b16 %v188_v29, %v188_v29 }
  0x21   :  { %682 = vmatpush.bf16.msra.mxu1 %v1107_v37  ;;  %670 = vmatmul.bf16.vlgmr.msra.gmra.mxu0 %v189_v43 }
  0x22   :  { %714 = vmatpush.bf16.msrb.mxu0 %v1138_v34  ;;  %696 = vmatmul.bf16.vlgmr.msra.gmra.mxu2 %v191_v42  ;;  %v1163_v34 = vld [vmem:[%s1441_s1 + $0x200] sm:$0xff] }
  0x23   :  { %740 = vmatpush.bf16.msrb.mxu2 %v1154_v35  ;;  %709 = vmatmul.bf16.vlgmr.msra.gmra.mxu3 %v192_v46  ;;  %v197_v35 = vpack.c.b16 %v187_v33, %v187_v33 }
  0x24   :  { %753 = vmatpush.bf16.msrb.mxu3 %v1162_v40  ;;  %683 = vmatmul.bf16.vlgmr.msra.gmra.mxu1 %v190_v47 }
  0x25   :  { %727 = vmatpush.bf16.msrb.mxu1 %v1146_v41 }
  0x26   :  { %715 = vmatpush.bf16.msrb.mxu0 %v1137_v44  ;;  %v1174_v44 = vld [vmem:[%s1442_s2] ss:$0 sm:$0xff] }
  0x27   :  { %741 = vmatpush.bf16.msrb.mxu2 %v1153_v45 }
  0x28   :  { %754 = vmatpush.bf16.msrb.mxu3 %v1161_v48 }
  0x29   :  { %728 = vmatpush.bf16.msrb.mxu1 %v1145_v49 }
  0x2a   :  { %716 = vmatpush.bf16.msrb.mxu0 %v1136_v50 }
  0x2b   :  { %742 = vmatpush.bf16.msrb.mxu2 %v1152_v51 }
  0x2c   :  { %755 = vmatpush.bf16.msrb.mxu3 %v1160_v52 }
  0x2d   :  { %729 = vmatpush.bf16.msrb.mxu1 %v1144_v53 }
  0x2e   :  { %717 = vmatpush.bf16.msrb.mxu0 %v1135_v54 }
  0x2f   :  { %743 = vmatpush.bf16.msrb.mxu2 %v1151_v55 }
  0x30   :  { %756 = vmatpush.bf16.msrb.mxu3 %v1159_v56 }
  0x31   :  { %730 = vmatpush.bf16.msrb.mxu1 %v1143_v57 }
  0x32   :  { %718 = vmatpush.bf16.msrb.mxu0 %v1134_v58 }
  0x33   :  { %744 = vmatpush.bf16.msrb.mxu2 %v1150_v59 }
  0x34   :  { %757 = vmatpush.bf16.msrb.mxu3 %v1158_v60 }
  0x35   :  { %731 = vmatpush.bf16.msrb.mxu1 %v1142_v61 }
  0x36   :  { %719 = vmatpush.bf16.msrb.mxu0 %v1133_v62 }
  0x37   :  { %745 = vmatpush.bf16.msrb.mxu2 %v1149_v63 }
  0x38   :  { %758 = vmatpush.bf16.msrb.mxu3 %v1157_v0 }
  0x39   :  { %732 = vmatpush.bf16.msrb.mxu1 %v1141_v1 }
  0x3a   :  { %720 = vmatpush.bf16.msrb.mxu0 %v1132_v2 }
  0x3b   :  { %746 = vmatpush.bf16.msrb.mxu2 %v1148_v3 }
  0x3c   :  { %759 = vmatpush.bf16.msrb.mxu3 %v1156_v6 }
  0x3d   :  { %733 = vmatpush.bf16.msrb.mxu1 %v1140_v7 }
  0x3e   :  { %721 = vmatpush.bf16.msrb.mxu0 %v1131_v10 }
  0x3f   :  { %747 = vmatpush.bf16.msrb.mxu2 %v1147_v11 }
  0x40   :  { %760 = vmatpush.bf16.msrb.mxu3 %v1155_v14 }
  0x41   :  { %734 = vmatpush.bf16.msrb.mxu1 %v1139_v15  ;;  %722 = vmatmul.bf16.vlgmr.msrb.gmra.mxu0 %v193_v18 }
  0x42   :  { %766 = vmatpush.bf16.msra.mxu0 %v1170_v12  ;;  %748 = vmatmul.bf16.vlgmr.msrb.gmra.mxu2 %v195_v17 }
  0x43   :  { %761 = vmatmul.bf16.vlgmr.msrb.gmra.mxu3 %v196_v21 }
  0x44   :  { %735 = vmatmul.bf16.vlgmr.msrb.gmra.mxu1 %v194_v22 }
  0x45   :  { %784 = vmatpush.bf16.msra.mxu1 %v1173_v19 }
  0x46   :  { %767 = vmatpush.bf16.msra.mxu0 %v1169_v20 }
  0x49   :  { %785 = vmatpush.bf16.msra.mxu1 %v1172_v23 }
  0x4a   :  { %768 = vmatpush.bf16.msra.mxu0 %v1168_v24 }
  0x4d   :  { %786 = vmatpush.bf16.msra.mxu1 %v1171_v25 }
  0x4e   :  { %769 = vmatpush.bf16.msra.mxu0 %v1167_v26 }
  0x52   :  { %770 = vmatpush.bf16.msra.mxu0 %v1166_v28 }
  0x54   :  { %1098 = vmatmul.msk.bf16.vlgmr.msra.gmra.mxu1 %vm658_vm0, %v198_v31 }
  0x56   :  { %771 = vmatpush.bf16.msra.mxu0 %v1165_v30 }
  0x5a   :  { %772 = vmatpush.bf16.msra.mxu0 %v1164_v32 }
  0x5e   :  { %773 = vmatpush.bf16.msra.mxu0 %v1163_v34 }
  0x61   :  { %774 = vmatmul.bf16.vlgmr.msra.gmra.mxu0 %v197_v35 }
  0x9e   :  { %v671_v36 = vpop.f32.mrf.mxu0 }
  0x9f   :  { %v672_v45 = vadd.f32 %v1174_v44, %v671_v36 }
  0xa1   :  { %v684_v37 = vpop.f32.mrf.mxu1 }
  0xa2   :  { %v685_v48 = vadd.f32 %v684_v37, %v672_v45 }
  0xa5   :  { %v697_v38 = vpop.f32.mrf.mxu2 }
  0xa6   :  { %v710_v39 = vpop.f32.mrf.mxu3  ;;  %v673_v40 = vpop.f32.mrf.mxu0  ;;  %v698_v50 = vadd.f32 %v697_v38, %v685_v48 }
  0xa8   :  { %v711_v54 = vadd.f32 %v710_v39, %v698_v50 }
  0xa9   :  { %v686_v41 = vpop.f32.mrf.mxu1 }
  0xad   :  { %v699_v42 = vpop.f32.mrf.mxu2 }
  0xae   :  { %v712_v43 = vpop.f32.mrf.mxu3 }
  0xbe   :  { %v723_v46 = vpop.f32.mrf.mxu0 }
  0xbf   :  { %v724_v56 = vadd.f32 %v723_v46, %v711_v54 }
  0xc1   :  { %v736_v47 = vpop.f32.mrf.mxu1 }
  0xc2   :  { %v737_v59 = vadd.f32 %v736_v47, %v724_v56 }
  0xc5   :  { %v749_v49 = vpop.f32.mrf.mxu2 }
  0xc6   :  { %v762_v51 = vpop.f32.mrf.mxu3  ;;  %v725_v52 = vpop.f32.mrf.mxu0  ;;  %v750_v60 = vadd.f32 %v749_v49, %v737_v59 }
  0xc8   :  { %v763_v62 = vadd.f32 %v762_v51, %v750_v60 }
  0xc9   :  { %v738_v53 = vpop.f32.mrf.mxu1 }
  0xcd   :  { %v751_v55 = vpop.f32.mrf.mxu2 }
  0xce   :  { %v764_v57 = vpop.f32.mrf.mxu3 }
  0xd1   :  { %v788_v58 = vpop.f32.mrf.mxu1 }
  0xd9   :  { %v790_v61 = vpop.f32.mrf.mxu1 }
  0xde   :  { %v775_v63 = vpop.f32.mrf.mxu0 }
  0xdf   :  { %v776_v0 = vadd.f32 %v775_v63, %v763_v62 }
  0xe1   :  { %v789_v1 = vadd.f32 %v788_v58, %v776_v0 }
  0xe3   :  { %793 = vst.msk [vmem:[%s1444_s3] sm:$0xff] %vm792_vm1, %v789_v1 }
  0xe6   :  { %v777_v2 = vpop.f32.mrf.mxu0 }

</bundles_post_ra>
